<compile_context>
chip_gen: v6e
topology: v6e:2x2x1
jax: 0.10.0
libtpu: 0.0.40
codegen_flags: <defaults>
</compile_context>

<pallas_src>
import functools

import jax
import jax.numpy as jnp
from jax.experimental import pallas as pl
from jax.experimental.pallas import tpu as pltpu

# -------------------- small, synthetic model config --------------------
IMG_SIZE = 128          # original image H == W
PATCH = 16              # ViT-B/16 patch size
CLIP_RES = 0.5          # asymetric_input bilinear scale factor
WIDTH = 64              # ViT width        (real: 768)
HEADS = 4               # attention heads  (real: 12)
HEAD_DIM = WIDTH // HEADS
MLP = 4 * WIDTH
LAYERS = 3              # need >= 2 (attn_weights[-2] is used)
EMBED = 32              # CLIP joint embedding dim (real: 512)
NUM_CLASSES = 8         # number of vocabulary classes
LN_EPS = 1e-5
GRID = (IMG_SIZE // 2) // PATCH          # 4
SEQ_LEN = 1 + GRID * GRID                # 17 tokens (cls + patches)
PATCH2 = 2 * PATCH                       # effective stride-32 patch on the raw image
PATCH_DIM = 3 * PATCH2 * PATCH2          # 3072

_VMEM = pl.BlockSpec(memory_space=pltpu.MemorySpace.VMEM)


# ============================ kernels ============================

def _backbone_kernel(patches_ref, w_embed_ref, add_ref,
                     lnp_g_ref, lnp_b_ref,
                     ln1g_ref, ln1b_ref,
                     wq_ref, bq_ref, wkT_ref, bk_ref, wv_ref, bv_ref,
                     wo_ref, bo_ref, ln2g_ref, ln2b_ref,
                     wfc1_ref, bfc1_ref, wfc2_ref, bfc2_ref,
                     lnq_g_ref, lnq_b_ref, proj_ref,
                     feat_ref, attn_ref,
                     *, num_layers, num_heads, head_dim, attn_layer):
    """Whole CLIP visual backbone for one image: patch embed -> ln_pre -> blocks -> ln_post+proj."""
    f32 = jnp.float32

    def layer_norm(v, g, b):
        mu = jnp.mean(v, axis=-1, keepdims=True)
        var = jnp.mean(jnp.square(v - mu), axis=-1, keepdims=True)
        return (v - mu) * jax.lax.rsqrt(var + LN_EPS) * g + b

    # patch embedding: pixel normalization + 0.5x bilinear (2x2 avg) pooling are folded into
    # w_embed / add on the host, so this is a single (L, 3072) @ (3072, D) matmul.
    x = jnp.dot(patches_ref[...], w_embed_ref[...], preferred_element_type=f32) + add_ref[...]
    x = layer_norm(x, lnp_g_ref[...], lnp_b_ref[...])            # ln_pre

    L = x.shape[0]
    D = num_heads * head_dim
    scale = 1.0 / (head_dim ** 0.5)

    for l in range(num_layers):                                  # static unroll (small LAYERS)
        # --- attention ---
        xn = layer_norm(x, ln1g_ref[l], ln1b_ref[l])
        xn_t = xn.T                                              # one shared transpose per layer
        acc = jnp.zeros((L, D), f32)
        attn_acc = jnp.zeros((L, L), f32)
        for h in range(num_heads):
            qh = jnp.dot(xn, wq_ref[l, h], preferred_element_type=f32) + bq_ref[l, h]   # (L, hd)
            kt = jnp.dot(wkT_ref[l, h], xn_t, preferred_element_type=f32) + bk_ref[l, h]  # (hd, L)
            vh = jnp.dot(xn, wv_ref[l, h], preferred_element_type=f32) + bv_ref[l, h]   # (L, hd)
            s = jnp.dot(qh, kt, preferred_element_type=f32) * scale                     # (L, L)
            s = s - jnp.max(s, axis=-1, keepdims=True)
            p = jnp.exp(s)
            p = p * pl.reciprocal(jnp.sum(p, axis=-1, keepdims=True), approx=True)
            if l == attn_layer:
                attn_acc = attn_acc + p
            # accumulate through the out-projection per head (no head concat)
            acc = acc + jnp.dot(jnp.dot(p, vh, preferred_element_type=f32),
                                wo_ref[l, h], preferred_element_type=f32)
        if l == attn_layer:
            # head-averaged attention map (nn.MultiheadAttention default)
            attn_ref[...] = attn_acc * (1.0 / num_heads)
        x = x + acc + bo_ref[l]

        # --- MLP (QuickGELU) ---
        xn2 = layer_norm(x, ln2g_ref[l], ln2b_ref[l])
        hdn = jnp.dot(xn2, wfc1_ref[l], preferred_element_type=f32) + bfc1_ref[l]
        hdn = hdn * jax.nn.sigmoid(1.702 * hdn)
        x = x + jnp.dot(hdn, wfc2_ref[l], preferred_element_type=f32) + bfc2_ref[l]

    # ln_post + CLIP visual projection
    xn = layer_norm(x, lnq_g_ref[...], lnq_b_ref[...])
    feat_ref[...] = jnp.dot(xn, proj_ref[...], preferred_element_type=f32)


def _tail_kernel(attn_ref, feat_ref, text_ref, attn_out_ref, logit_ref):
    """CLIPtrase post-processing + classifier logits ('voc' path), all sub-vreg sized."""
    a = attn_ref[...]
    cls_w = a[0:1, 1:]                                           # cls -> patch attention
    attn_out_ref[...] = jnp.maximum(a[1:, 1:] - cls_w, 0.0)      # relu(attn - cls)

    logits = jax.lax.dot_general(text_ref[...], feat_ref[...],
                                 (((1,), (1,)), ((), ())),
                                 preferred_element_type=jnp.float32)        # (K, L)
    logit_ref[...] = logits[:, 1:] * logits[:, 0:1]              # patch_logits * cls_logits


# ============================ wrappers ============================

def _full_spec(arr):
    zeros = (0,) * arr.ndim
    return pl.BlockSpec(arr.shape, lambda b: zeros)


def pallas_backbone(patches, w_embed, add, p):
    B, L, PD = patches.shape
    E = p["proj"].shape[1]
    kernel = functools.partial(_backbone_kernel, num_layers=LAYERS, num_heads=HEADS,
                               head_dim=HEAD_DIM, attn_layer=LAYERS - 2)

    weights = [w_embed, add, p["ln_pre_g"], p["ln_pre_b"],
               p["ln1_g"], p["ln1_b"], p["wq"], p["bq"], p["wkT"], p["bk"],
               p["wv"], p["bv"], p["wo"], p["bo"], p["ln2_g"], p["ln2_b"],
               p["wfc1"], p["bfc1"], p["wfc2"], p["bfc2"],
               p["ln_post_g"], p["ln_post_b"], p["proj"]]

    feats, attn = pl.pallas_call(
        kernel,
        out_shape=(jax.ShapeDtypeStruct((B, L, E), jnp.float32),
                   jax.ShapeDtypeStruct((B, L, L), jnp.float32)),
        grid=(B,),
        in_specs=[pl.BlockSpec((pl.Squeezed(), L, PD), lambda b: (b, 0, 0))]
                 + [_full_spec(w) for w in weights],
        out_specs=(pl.BlockSpec((pl.Squeezed(), L, E), lambda b: (b, 0, 0)),
                   pl.BlockSpec((pl.Squeezed(), L, L), lambda b: (b, 0, 0))),
        compiler_params=pltpu.CompilerParams(dimension_semantics=("parallel",)),
    )(patches, *weights)
    return feats, attn


def pallas_tail(attn0, feats0, text_w):
    L = attn0.shape[0]
    K = text_w.shape[0]
    return pl.pallas_call(
        _tail_kernel,
        out_shape=(jax.ShapeDtypeStruct((L - 1, L - 1), jnp.float32),
                   jax.ShapeDtypeStruct((K, L - 1), jnp.float32)),
        in_specs=[_VMEM, _VMEM, _VMEM],
        out_specs=(_VMEM, _VMEM),
    )(attn0, feats0, text_w)


# ============================ host-side weight preprocessing ============================

def _preprocess(params, pixel_mean, pixel_std):
    D, H, hd, nl = WIDTH, HEADS, HEAD_DIM, LAYERS

    # Fold (x - mean)/std and the exact 0.5x bilinear (== 2x2 average) downsample into an
    # effective 32x32 / stride-32 patch-embed conv on the *raw* image.
    W = params["conv_w"].reshape(D, 3, PATCH, PATCH)
    w_scaled = W / pixel_std[None, :, None, None]
    w_up = 0.25 * jnp.repeat(jnp.repeat(w_scaled, 2, axis=2), 2, axis=3)        # (D,3,32,32)
    w_embed = w_up.reshape(D, PATCH_DIM).T                                      # (3072, D)
    b_eff = -jnp.sum(w_scaled * pixel_mean[None, :, None, None], axis=(1, 2, 3))  # (D,)

    # per-token additive term: row 0 = class_embedding + pos[0]; rows 1.. = b_eff + pos[1:]
    pos = params["pos_embedding"][0]                                            # (L, D)
    cls_row = params["class_embedding"].reshape(1, D)
    add = pos + jnp.concatenate(
        [cls_row, jnp.broadcast_to(b_eff[None, :], (SEQ_LEN - 1, D))], axis=0)

    def g(key):
        return jnp.stack([lp[key] for lp in params["layers"]], axis=0)

    w_qkv = g("w_qkv")                                                          # (nl, D, 3D)
    b_qkv = g("b_qkv")[:, 0, :]                                                 # (nl, 3D)
    wq = w_qkv[:, :, 0:D].reshape(nl, D, H, hd).transpose(0, 2, 1, 3)           # (nl,H,D,hd)
    wkT = w_qkv[:, :, D:2 * D].reshape(nl, D, H, hd).transpose(0, 2, 3, 1)      # (nl,H,hd,D)
    wv = w_qkv[:, :, 2 * D:3 * D].reshape(nl, D, H, hd).transpose(0, 2, 1, 3)   # (nl,H,D,hd)
    bq = b_qkv[:, 0:D].reshape(nl, H, 1, hd)
    bk = b_qkv[:, D:2 * D].reshape(nl, H, hd, 1)
    bv = b_qkv[:, 2 * D:3 * D].reshape(nl, H, 1, hd)
    wo = g("w_out").reshape(nl, H, hd, D)                                       # (nl,H,hd,D)

    prep = dict(
        ln_pre_g=params["ln_pre_g"], ln_pre_b=params["ln_pre_b"],
        ln1_g=g("ln1_g"), ln1_b=g("ln1_b"),
        wq=wq, bq=bq, wkT=wkT, bk=bk, wv=wv, bv=bv, wo=wo, bo=g("b_out"),
        ln2_g=g("ln2_g"), ln2_b=g("ln2_b"),
        wfc1=g("w_fc1"), bfc1=g("b_fc1"), wfc2=g("w_fc2"), bfc2=g("b_fc2"),
        ln_post_g=params["ln_post_g"], ln_post_b=params["ln_post_b"],
        proj=params["proj"],
    )
    return w_embed, add, prep


# ============================ forward (mirrors CLIPtrase.forward) ============================

def cliptrase_forward(images, params, ov_classifier_weight, pixel_mean, pixel_std):
    B = images.shape[0]
    hp = images.shape[2] // PATCH2
    wp = images.shape[3] // PATCH2
    num_patches = hp * wp

    w_embed, add, prep = _preprocess(params, pixel_mean, pixel_std)

    # 32x32 / stride-32 patch extraction of the raw image (normalization + asymetric_input
    # 0.5x bilinear downsample are folded into w_embed / add).  Row 0 is a zero "cls" slot.
    x = images.reshape(B, 3, hp, PATCH2, wp, PATCH2)
    patches = x.transpose(0, 2, 4, 1, 3, 5).reshape(B, num_patches, PATCH_DIM)
    patches = jnp.pad(patches, ((0, 0), (1, 0), (0, 0)))

    # fused visual backbone: features (B, L, E) + layer(-2) head-averaged attention (B, L, L)
    feats, attn_m2 = pallas_backbone(patches, w_embed, add, prep)

    # --- CLIPtrase attention post-processing + classifier ('voc' path), fused tail ---
    # TODO(synk): sklearn DBSCAN clustering + scipy median_filter refinement have no Pallas
    # equivalent; we follow the `cluster_gts is None` branch of the reference forward.
    attn_p, patch_logits = pallas_tail(attn_m2[0], feats[0], ov_classifier_weight)
    patch_logits = patch_logits.reshape(ov_classifier_weight.shape[0], hp, wp)

    # sem_seg_postprocess: bilinear (align_corners=False) upsample back to image size (glue)
    sem_seg = jax.image.resize(
        patch_logits, (patch_logits.shape[0], images.shape[2], images.shape[3]),
        method="bilinear")
    return sem_seg, attn_p


# ============================ deterministic params ============================

def init_params(key):
    D, E, L = WIDTH, EMBED, SEQ_LEN
    keys = jax.random.split(key, 4 + 4 * LAYERS)
    kit = iter(keys)

    def nrm(shape, scale=0.02):
        return scale * jax.random.normal(next(kit), shape, jnp.float32)

    params = {
        "conv_w": nrm((D, 3 * PATCH * PATCH)),
        "class_embedding": nrm((1, 1, D)),
        "pos_embedding": nrm((1, L, D)),
        "ln_pre_g": jnp.ones((1, D), jnp.float32),
        "ln_pre_b": jnp.zeros((1, D), jnp.float32),
        "ln_post_g": jnp.ones((1, D), jnp.float32),
        "ln_post_b": jnp.zeros((1, D), jnp.float32),
        "proj": nrm((D, E)),
        "layers": [],
    }
    for _ in range(LAYERS):
        params["layers"].append({
            "ln1_g": jnp.ones((1, D), jnp.float32),
            "ln1_b": jnp.zeros((1, D), jnp.float32),
            "w_qkv": nrm((D, 3 * D)),
            "b_qkv": jnp.zeros((1, 3 * D), jnp.float32),
            "w_out": nrm((D, D)),
            "b_out": jnp.zeros((1, D), jnp.float32),
            "ln2_g": jnp.ones((1, D), jnp.float32),
            "ln2_b": jnp.zeros((1, D), jnp.float32),
            "w_fc1": nrm((D, MLP)),
            "b_fc1": jnp.zeros((1, MLP), jnp.float32),
            "w_fc2": nrm((MLP, D)),
            "b_fc2": jnp.zeros((1, D), jnp.float32),
        })
    return params


if __name__ == "__main__":
    key = jax.random.PRNGKey(0)
    k_img, k_par, k_txt = jax.random.split(key, 3)

    B = 2
    images = jax.random.uniform(k_img, (B, 3, IMG_SIZE, IMG_SIZE), jnp.float32, 0.0, 255.0)
    pixel_mean = jnp.array([255.0 * m for m in (0.48145466, 0.4578275, 0.40821073)], jnp.float32)
    pixel_std = jnp.array([255.0 * s for s in (0.26862954, 0.26130258, 0.27577711)], jnp.float32)

    params = init_params(k_par)
    txt = jax.random.normal(k_txt, (NUM_CLASSES, EMBED), jnp.float32)
    txt = txt / jnp.linalg.norm(txt, axis=-1, keepdims=True)
    ov_classifier_weight = jnp.float32(100.0) * txt        # logit_scale.exp() * classifier

    fwd = jax.jit(cliptrase_forward)
    sem_seg, attn_p = fwd(images, params, ov_classifier_weight, pixel_mean, pixel_std)
    jax.block_until_ready((sem_seg, attn_p))

    assert sem_seg.shape == (NUM_CLASSES, IMG_SIZE, IMG_SIZE)
    assert attn_p.shape == (SEQ_LEN - 1, SEQ_LEN - 1)
    print("KERNEL_OK")
</pallas_src>

<mosaic_0001>
module attributes {stable_mosaic.version = 11 : i64} {
  func.func @_backbone_kernel(%arg0: i32, %arg1: memref<1x17x3072xf32, #tpu.memory_space<vmem>>, %arg2: memref<3072x64xf32, #tpu.memory_space<vmem>>, %arg3: memref<17x64xf32, #tpu.memory_space<vmem>>, %arg4: memref<1x64xf32, #tpu.memory_space<vmem>>, %arg5: memref<1x64xf32, #tpu.memory_space<vmem>>, %arg6: memref<3x1x64xf32, #tpu.memory_space<vmem>>, %arg7: memref<3x1x64xf32, #tpu.memory_space<vmem>>, %arg8: memref<3x4x64x16xf32, #tpu.memory_space<vmem>>, %arg9: memref<3x4x1x16xf32, #tpu.memory_space<vmem>>, %arg10: memref<3x4x16x64xf32, #tpu.memory_space<vmem>>, %arg11: memref<3x4x16x1xf32, #tpu.memory_space<vmem>>, %arg12: memref<3x4x64x16xf32, #tpu.memory_space<vmem>>, %arg13: memref<3x4x1x16xf32, #tpu.memory_space<vmem>>, %arg14: memref<3x4x16x64xf32, #tpu.memory_space<vmem>>, %arg15: memref<3x1x64xf32, #tpu.memory_space<vmem>>, %arg16: memref<3x1x64xf32, #tpu.memory_space<vmem>>, %arg17: memref<3x1x64xf32, #tpu.memory_space<vmem>>, %arg18: memref<3x64x256xf32, #tpu.memory_space<vmem>>, %arg19: memref<3x1x256xf32, #tpu.memory_space<vmem>>, %arg20: memref<3x256x64xf32, #tpu.memory_space<vmem>>, %arg21: memref<3x1x64xf32, #tpu.memory_space<vmem>>, %arg22: memref<1x64xf32, #tpu.memory_space<vmem>>, %arg23: memref<1x64xf32, #tpu.memory_space<vmem>>, %arg24: memref<64x32xf32, #tpu.memory_space<vmem>>, %arg25: memref<1x17x32xf32, #tpu.memory_space<vmem>>, %arg26: memref<1x17x17xf32, #tpu.memory_space<vmem>>) attributes {dimension_semantics = [#tpu.dimension_semantics<parallel>], iteration_bounds = array<i64: 2>, scalar_prefetch = 0 : i64, scratch_operands = 0 : i64, tpu.core_type = #tpu.core_type<tc>, window_params = [{transform_indices = @transform_0, window_bounds = array<i64: 1, 17, 3072>}, {pipeline_mode = #tpu.pipeline_mode<synchronous>, transform_indices = @transform_1, window_bounds = array<i64: 3072, 64>}, {pipeline_mode = #tpu.pipeline_mode<synchronous>, transform_indices = @transform_2, window_bounds = array<i64: 17, 64>}, {pipeline_mode = #tpu.pipeline_mode<synchronous>, transform_indices = @transform_3, window_bounds = array<i64: 1, 64>}, {pipeline_mode = #tpu.pipeline_mode<synchronous>, transform_indices = @transform_4, window_bounds = array<i64: 1, 64>}, {pipeline_mode = #tpu.pipeline_mode<synchronous>, transform_indices = @transform_5, window_bounds = array<i64: 3, 1, 64>}, {pipeline_mode = #tpu.pipeline_mode<synchronous>, transform_indices = @transform_6, window_bounds = array<i64: 3, 1, 64>}, {pipeline_mode = #tpu.pipeline_mode<synchronous>, transform_indices = @transform_7, window_bounds = array<i64: 3, 4, 64, 16>}, {pipeline_mode = #tpu.pipeline_mode<synchronous>, transform_indices = @transform_8, window_bounds = array<i64: 3, 4, 1, 16>}, {pipeline_mode = #tpu.pipeline_mode<synchronous>, transform_indices = @transform_9, window_bounds = array<i64: 3, 4, 16, 64>}, {pipeline_mode = #tpu.pipeline_mode<synchronous>, transform_indices = @transform_10, window_bounds = array<i64: 3, 4, 16, 1>}, {pipeline_mode = #tpu.pipeline_mode<synchronous>, transform_indices = @transform_11, window_bounds = array<i64: 3, 4, 64, 16>}, {pipeline_mode = #tpu.pipeline_mode<synchronous>, transform_indices = @transform_12, window_bounds = array<i64: 3, 4, 1, 16>}, {pipeline_mode = #tpu.pipeline_mode<synchronous>, transform_indices = @transform_13, window_bounds = array<i64: 3, 4, 16, 64>}, {pipeline_mode = #tpu.pipeline_mode<synchronous>, transform_indices = @transform_14, window_bounds = array<i64: 3, 1, 64>}, {pipeline_mode = #tpu.pipeline_mode<synchronous>, transform_indices = @transform_15, window_bounds = array<i64: 3, 1, 64>}, {pipeline_mode = #tpu.pipeline_mode<synchronous>, transform_indices = @transform_16, window_bounds = array<i64: 3, 1, 64>}, {pipeline_mode = #tpu.pipeline_mode<synchronous>, transform_indices = @transform_17, window_bounds = array<i64: 3, 64, 256>}, {pipeline_mode = #tpu.pipeline_mode<synchronous>, transform_indices = @transform_18, window_bounds = array<i64: 3, 1, 256>}, {pipeline_mode = #tpu.pipeline_mode<synchronous>, transform_indices = @transform_19, window_bounds = array<i64: 3, 256, 64>}, {pipeline_mode = #tpu.pipeline_mode<synchronous>, transform_indices = @transform_20, window_bounds = array<i64: 3, 1, 64>}, {pipeline_mode = #tpu.pipeline_mode<synchronous>, transform_indices = @transform_21, window_bounds = array<i64: 1, 64>}, {pipeline_mode = #tpu.pipeline_mode<synchronous>, transform_indices = @transform_22, window_bounds = array<i64: 1, 64>}, {pipeline_mode = #tpu.pipeline_mode<synchronous>, transform_indices = @transform_23, window_bounds = array<i64: 64, 32>}, {transform_indices = @transform_24, window_bounds = array<i64: 1, 17, 32>}, {transform_indices = @transform_25, window_bounds = array<i64: 1, 17, 17>}]} {
    %c0 = arith.constant 0 : index
    %c0_0 = arith.constant 0 : index
    %c0_1 = arith.constant 0 : index
    %0 = vector.load %arg1[%c0, %c0_0, %c0_1] : memref<1x17x3072xf32, #tpu.memory_space<vmem>>, vector<1x17x3072xf32>
    %1 = vector.shape_cast %0 : vector<1x17x3072xf32> to vector<17x3072xf32>
    %c0_2 = arith.constant 0 : index
    %c0_3 = arith.constant 0 : index
    %2 = vector.load %arg2[%c0_2, %c0_3] : memref<3072x64xf32, #tpu.memory_space<vmem>>, vector<3072x64xf32>
    %cst = arith.constant dense<0.000000e+00> : vector<17x64xf32>
    %3 = tpu.matmul %1, %2, %cst {dimension_numbers = #tpu.dot_dimension_numbers<[1], [0], [0], [1], [0, 0, 1, 1], [], []>} : vector<17x3072xf32>, vector<3072x64xf32>, vector<17x64xf32> -> vector<17x64xf32>
    %c0_4 = arith.constant 0 : index
    %c0_5 = arith.constant 0 : index
    %4 = vector.load %arg3[%c0_4, %c0_5] : memref<17x64xf32, #tpu.memory_space<vmem>>, vector<17x64xf32>
    %5 = arith.addf %3, %4 : vector<17x64xf32>
    %c0_6 = arith.constant 0 : index
    %c0_7 = arith.constant 0 : index
    %6 = vector.load %arg4[%c0_6, %c0_7] : memref<1x64xf32, #tpu.memory_space<vmem>>, vector<1x64xf32>
    %c0_8 = arith.constant 0 : index
    %c0_9 = arith.constant 0 : index
    %7 = vector.load %arg5[%c0_8, %c0_9] : memref<1x64xf32, #tpu.memory_space<vmem>>, vector<1x64xf32>
    %cst_10 = arith.constant dense<0.000000e+00> : vector<17xf32>
    %8 = vector.multi_reduction <add>, %5, %cst_10 [1] : vector<17x64xf32> to vector<17xf32>
    %9 = vector.shape_cast %8 : vector<17xf32> to vector<17x1xf32>
    %cst_11 = arith.constant 6.400000e+01 : f32
    %10 = vector.broadcast %cst_11 : f32 to vector<17x1xf32>
    %11 = arith.divf %9, %10 : vector<17x1xf32>
    %12 = vector.broadcast %11 : vector<17x1xf32> to vector<17x64xf32>
    %13 = arith.subf %5, %12 : vector<17x64xf32>
    %14 = arith.mulf %13, %13 : vector<17x64xf32>
    %cst_12 = arith.constant dense<0.000000e+00> : vector<17xf32>
    %15 = vector.multi_reduction <add>, %14, %cst_12 [1] : vector<17x64xf32> to vector<17xf32>
    %16 = vector.shape_cast %15 : vector<17xf32> to vector<17x1xf32>
    %cst_13 = arith.constant 6.400000e+01 : f32
    %17 = vector.broadcast %cst_13 : f32 to vector<17x1xf32>
    %18 = arith.divf %16, %17 : vector<17x1xf32>
    %19 = vector.broadcast %11 : vector<17x1xf32> to vector<17x64xf32>
    %20 = arith.subf %5, %19 : vector<17x64xf32>
    %cst_14 = arith.constant 9.99999974E-6 : f32
    %21 = vector.broadcast %cst_14 : f32 to vector<17x1xf32>
    %22 = arith.addf %18, %21 : vector<17x1xf32>
    %23 = math.rsqrt %22 : vector<17x1xf32>
    %24 = vector.broadcast %23 : vector<17x1xf32> to vector<17x64xf32>
    %25 = arith.mulf %20, %24 : vector<17x64xf32>
    %26 = vector.broadcast %6 : vector<1x64xf32> to vector<17x64xf32>
    %27 = arith.mulf %25, %26 : vector<17x64xf32>
    %28 = vector.broadcast %7 : vector<1x64xf32> to vector<17x64xf32>
    %29 = arith.addf %27, %28 : vector<17x64xf32>
    %c0_15 = arith.constant 0 : index
    %c0_16 = arith.constant 0 : index
    %c0_17 = arith.constant 0 : index
    %30 = vector.load %arg6[%c0_15, %c0_16, %c0_17] : memref<3x1x64xf32, #tpu.memory_space<vmem>>, vector<1x1x64xf32>
    %31 = vector.shape_cast %30 : vector<1x1x64xf32> to vector<1x64xf32>
    %c0_18 = arith.constant 0 : index
    %c0_19 = arith.constant 0 : index
    %c0_20 = arith.constant 0 : index
    %32 = vector.load %arg7[%c0_18, %c0_19, %c0_20] : memref<3x1x64xf32, #tpu.memory_space<vmem>>, vector<1x1x64xf32>
    %33 = vector.shape_cast %32 : vector<1x1x64xf32> to vector<1x64xf32>
    %cst_21 = arith.constant dense<0.000000e+00> : vector<17xf32>
    %34 = vector.multi_reduction <add>, %29, %cst_21 [1] : vector<17x64xf32> to vector<17xf32>
    %35 = vector.shape_cast %34 : vector<17xf32> to vector<17x1xf32>
    %cst_22 = arith.constant 6.400000e+01 : f32
    %36 = vector.broadcast %cst_22 : f32 to vector<17x1xf32>
    %37 = arith.divf %35, %36 : vector<17x1xf32>
    %38 = vector.broadcast %37 : vector<17x1xf32> to vector<17x64xf32>
    %39 = arith.subf %29, %38 : vector<17x64xf32>
    %40 = arith.mulf %39, %39 : vector<17x64xf32>
    %cst_23 = arith.constant dense<0.000000e+00> : vector<17xf32>
    %41 = vector.multi_reduction <add>, %40, %cst_23 [1] : vector<17x64xf32> to vector<17xf32>
    %42 = vector.shape_cast %41 : vector<17xf32> to vector<17x1xf32>
    %cst_24 = arith.constant 6.400000e+01 : f32
    %43 = vector.broadcast %cst_24 : f32 to vector<17x1xf32>
    %44 = arith.divf %42, %43 : vector<17x1xf32>
    %45 = vector.broadcast %37 : vector<17x1xf32> to vector<17x64xf32>
    %46 = arith.subf %29, %45 : vector<17x64xf32>
    %cst_25 = arith.constant 9.99999974E-6 : f32
    %47 = vector.broadcast %cst_25 : f32 to vector<17x1xf32>
    %48 = arith.addf %44, %47 : vector<17x1xf32>
    %49 = math.rsqrt %48 : vector<17x1xf32>
    %50 = vector.broadcast %49 : vector<17x1xf32> to vector<17x64xf32>
    %51 = arith.mulf %46, %50 : vector<17x64xf32>
    %52 = vector.broadcast %31 : vector<1x64xf32> to vector<17x64xf32>
    %53 = arith.mulf %51, %52 : vector<17x64xf32>
    %54 = vector.broadcast %33 : vector<1x64xf32> to vector<17x64xf32>
    %55 = arith.addf %53, %54 : vector<17x64xf32>
    %56 = tpu.transpose %55, [1, 0] : vector<17x64xf32> -> vector<64x17xf32>
    %cst_26 = arith.constant 0.000000e+00 : f32
    %57 = vector.broadcast %cst_26 : f32 to vector<17x64xf32>
    %c0_27 = arith.constant 0 : index
    %c0_28 = arith.constant 0 : index
    %c0_29 = arith.constant 0 : index
    %c0_30 = arith.constant 0 : index
    %58 = vector.load %arg8[%c0_27, %c0_28, %c0_29, %c0_30] : memref<3x4x64x16xf32, #tpu.memory_space<vmem>>, vector<1x1x64x16xf32>
    %59 = vector.shape_cast %58 : vector<1x1x64x16xf32> to vector<64x16xf32>
    %cst_31 = arith.constant dense<0.000000e+00> : vector<17x16xf32>
    %60 = tpu.matmul %55, %59, %cst_31 {dimension_numbers = #tpu.dot_dimension_numbers<[1], [0], [0], [1], [0, 0, 1, 1], [], []>} : vector<17x64xf32>, vector<64x16xf32>, vector<17x16xf32> -> vector<17x16xf32>
    %c0_32 = arith.constant 0 : index
    %c0_33 = arith.constant 0 : index
    %c0_34 = arith.constant 0 : index
    %c0_35 = arith.constant 0 : index
    %61 = vector.load %arg9[%c0_32, %c0_33, %c0_34, %c0_35] : memref<3x4x1x16xf32, #tpu.memory_space<vmem>>, vector<1x1x1x16xf32>
    %62 = vector.shape_cast %61 : vector<1x1x1x16xf32> to vector<1x16xf32>
    %63 = vector.broadcast %62 : vector<1x16xf32> to vector<17x16xf32>
    %64 = arith.addf %60, %63 : vector<17x16xf32>
    %c0_36 = arith.constant 0 : index
    %c0_37 = arith.constant 0 : index
    %c0_38 = arith.constant 0 : index
    %c0_39 = arith.constant 0 : index
    %65 = vector.load %arg10[%c0_36, %c0_37, %c0_38, %c0_39] : memref<3x4x16x64xf32, #tpu.memory_space<vmem>>, vector<1x1x16x64xf32>
    %66 = vector.shape_cast %65 : vector<1x1x16x64xf32> to vector<16x64xf32>
    %cst_40 = arith.constant dense<0.000000e+00> : vector<16x17xf32>
    %67 = tpu.matmul %66, %56, %cst_40 {dimension_numbers = #tpu.dot_dimension_numbers<[1], [0], [0], [1], [0, 0, 1, 1], [], []>} : vector<16x64xf32>, vector<64x17xf32>, vector<16x17xf32> -> vector<16x17xf32>
    %c0_41 = arith.constant 0 : index
    %c0_42 = arith.constant 0 : index
    %c0_43 = arith.constant 0 : index
    %c0_44 = arith.constant 0 : index
    %68 = vector.load %arg11[%c0_41, %c0_42, %c0_43, %c0_44] : memref<3x4x16x1xf32, #tpu.memory_space<vmem>>, vector<1x1x16x1xf32>
    %69 = vector.shape_cast %68 : vector<1x1x16x1xf32> to vector<16x1xf32>
    %70 = vector.broadcast %69 : vector<16x1xf32> to vector<16x17xf32>
    %71 = arith.addf %67, %70 : vector<16x17xf32>
    %c0_45 = arith.constant 0 : index
    %c0_46 = arith.constant 0 : index
    %c0_47 = arith.constant 0 : index
    %c0_48 = arith.constant 0 : index
    %72 = vector.load %arg12[%c0_45, %c0_46, %c0_47, %c0_48] : memref<3x4x64x16xf32, #tpu.memory_space<vmem>>, vector<1x1x64x16xf32>
    %73 = vector.shape_cast %72 : vector<1x1x64x16xf32> to vector<64x16xf32>
    %cst_49 = arith.constant dense<0.000000e+00> : vector<17x16xf32>
    %74 = tpu.matmul %55, %73, %cst_49 {dimension_numbers = #tpu.dot_dimension_numbers<[1], [0], [0], [1], [0, 0, 1, 1], [], []>} : vector<17x64xf32>, vector<64x16xf32>, vector<17x16xf32> -> vector<17x16xf32>
    %c0_50 = arith.constant 0 : index
    %c0_51 = arith.constant 0 : index
    %c0_52 = arith.constant 0 : index
    %c0_53 = arith.constant 0 : index
    %75 = vector.load %arg13[%c0_50, %c0_51, %c0_52, %c0_53] : memref<3x4x1x16xf32, #tpu.memory_space<vmem>>, vector<1x1x1x16xf32>
    %76 = vector.shape_cast %75 : vector<1x1x1x16xf32> to vector<1x16xf32>
    %77 = vector.broadcast %76 : vector<1x16xf32> to vector<17x16xf32>
    %78 = arith.addf %74, %77 : vector<17x16xf32>
    %cst_54 = arith.constant dense<0.000000e+00> : vector<17x17xf32>
    %79 = tpu.matmul %64, %71, %cst_54 {dimension_numbers = #tpu.dot_dimension_numbers<[1], [0], [0], [1], [0, 0, 1, 1], [], []>} : vector<17x16xf32>, vector<16x17xf32>, vector<17x17xf32> -> vector<17x17xf32>
    %cst_55 = arith.constant 2.500000e-01 : f32
    %80 = vector.broadcast %cst_55 : f32 to vector<17x17xf32>
    %81 = arith.mulf %79, %80 : vector<17x17xf32>
    %cst_56 = arith.constant dense<0xFF800000> : vector<17xf32>
    %82 = vector.multi_reduction <maximumf>, %81, %cst_56 [1] : vector<17x17xf32> to vector<17xf32>
    %83 = vector.shape_cast %82 : vector<17xf32> to vector<17x1xf32>
    %84 = vector.broadcast %83 : vector<17x1xf32> to vector<17x17xf32>
    %85 = arith.subf %81, %84 : vector<17x17xf32>
    %86 = math.exp %85 : vector<17x17xf32>
    %cst_57 = arith.constant dense<0.000000e+00> : vector<17xf32>
    %87 = vector.multi_reduction <add>, %86, %cst_57 [1] : vector<17x17xf32> to vector<17xf32>
    %88 = vector.shape_cast %87 : vector<17xf32> to vector<17x1xf32>
    %89 = tpu.reciprocal %88 {approx = true} : vector<17x1xf32> -> vector<17x1xf32>
    %90 = vector.broadcast %89 : vector<17x1xf32> to vector<17x17xf32>
    %91 = arith.mulf %86, %90 : vector<17x17xf32>
    %cst_58 = arith.constant dense<0.000000e+00> : vector<17x16xf32>
    %92 = tpu.matmul %91, %78, %cst_58 {dimension_numbers = #tpu.dot_dimension_numbers<[1], [0], [0], [1], [0, 0, 1, 1], [], []>} : vector<17x17xf32>, vector<17x16xf32>, vector<17x16xf32> -> vector<17x16xf32>
    %c0_59 = arith.constant 0 : index
    %c0_60 = arith.constant 0 : index
    %c0_61 = arith.constant 0 : index
    %c0_62 = arith.constant 0 : index
    %93 = vector.load %arg14[%c0_59, %c0_60, %c0_61, %c0_62] : memref<3x4x16x64xf32, #tpu.memory_space<vmem>>, vector<1x1x16x64xf32>
    %94 = vector.shape_cast %93 : vector<1x1x16x64xf32> to vector<16x64xf32>
    %cst_63 = arith.constant dense<0.000000e+00> : vector<17x64xf32>
    %95 = tpu.matmul %92, %94, %cst_63 {dimension_numbers = #tpu.dot_dimension_numbers<[1], [0], [0], [1], [0, 0, 1, 1], [], []>} : vector<17x16xf32>, vector<16x64xf32>, vector<17x64xf32> -> vector<17x64xf32>
    %96 = arith.addf %57, %95 : vector<17x64xf32>
    %c0_64 = arith.constant 0 : index
    %c1 = arith.constant 1 : index
    %c0_65 = arith.constant 0 : index
    %c0_66 = arith.constant 0 : index
    %97 = vector.load %arg8[%c0_64, %c1, %c0_65, %c0_66] : memref<3x4x64x16xf32, #tpu.memory_space<vmem>>, vector<1x1x64x16xf32>
    %98 = vector.shape_cast %97 : vector<1x1x64x16xf32> to vector<64x16xf32>
    %cst_67 = arith.constant dense<0.000000e+00> : vector<17x16xf32>
    %99 = tpu.matmul %55, %98, %cst_67 {dimension_numbers = #tpu.dot_dimension_numbers<[1], [0], [0], [1], [0, 0, 1, 1], [], []>} : vector<17x64xf32>, vector<64x16xf32>, vector<17x16xf32> -> vector<17x16xf32>
    %c0_68 = arith.constant 0 : index
    %c1_69 = arith.constant 1 : index
    %c0_70 = arith.constant 0 : index
    %c0_71 = arith.constant 0 : index
    %100 = vector.load %arg9[%c0_68, %c1_69, %c0_70, %c0_71] : memref<3x4x1x16xf32, #tpu.memory_space<vmem>>, vector<1x1x1x16xf32>
    %101 = vector.shape_cast %100 : vector<1x1x1x16xf32> to vector<1x16xf32>
    %102 = vector.broadcast %101 : vector<1x16xf32> to vector<17x16xf32>
    %103 = arith.addf %99, %102 : vector<17x16xf32>
    %c0_72 = arith.constant 0 : index
    %c1_73 = arith.constant 1 : index
    %c0_74 = arith.constant 0 : index
    %c0_75 = arith.constant 0 : index
    %104 = vector.load %arg10[%c0_72, %c1_73, %c0_74, %c0_75] : memref<3x4x16x64xf32, #tpu.memory_space<vmem>>, vector<1x1x16x64xf32>
    %105 = vector.shape_cast %104 : vector<1x1x16x64xf32> to vector<16x64xf32>
    %cst_76 = arith.constant dense<0.000000e+00> : vector<16x17xf32>
    %106 = tpu.matmul %105, %56, %cst_76 {dimension_numbers = #tpu.dot_dimension_numbers<[1], [0], [0], [1], [0, 0, 1, 1], [], []>} : vector<16x64xf32>, vector<64x17xf32>, vector<16x17xf32> -> vector<16x17xf32>
    %c0_77 = arith.constant 0 : index
    %c1_78 = arith.constant 1 : index
    %c0_79 = arith.constant 0 : index
    %c0_80 = arith.constant 0 : index
    %107 = vector.load %arg11[%c0_77, %c1_78, %c0_79, %c0_80] : memref<3x4x16x1xf32, #tpu.memory_space<vmem>>, vector<1x1x16x1xf32>
    %108 = vector.shape_cast %107 : vector<1x1x16x1xf32> to vector<16x1xf32>
    %109 = vector.broadcast %108 : vector<16x1xf32> to vector<16x17xf32>
    %110 = arith.addf %106, %109 : vector<16x17xf32>
    %c0_81 = arith.constant 0 : index
    %c1_82 = arith.constant 1 : index
    %c0_83 = arith.constant 0 : index
    %c0_84 = arith.constant 0 : index
    %111 = vector.load %arg12[%c0_81, %c1_82, %c0_83, %c0_84] : memref<3x4x64x16xf32, #tpu.memory_space<vmem>>, vector<1x1x64x16xf32>
    %112 = vector.shape_cast %111 : vector<1x1x64x16xf32> to vector<64x16xf32>
    %cst_85 = arith.constant dense<0.000000e+00> : vector<17x16xf32>
    %113 = tpu.matmul %55, %112, %cst_85 {dimension_numbers = #tpu.dot_dimension_numbers<[1], [0], [0], [1], [0, 0, 1, 1], [], []>} : vector<17x64xf32>, vector<64x16xf32>, vector<17x16xf32> -> vector<17x16xf32>
    %c0_86 = arith.constant 0 : index
    %c1_87 = arith.constant 1 : index
    %c0_88 = arith.constant 0 : index
    %c0_89 = arith.constant 0 : index
    %114 = vector.load %arg13[%c0_86, %c1_87, %c0_88, %c0_89] : memref<3x4x1x16xf32, #tpu.memory_space<vmem>>, vector<1x1x1x16xf32>
    %115 = vector.shape_cast %114 : vector<1x1x1x16xf32> to vector<1x16xf32>
    %116 = vector.broadcast %115 : vector<1x16xf32> to vector<17x16xf32>
    %117 = arith.addf %113, %116 : vector<17x16xf32>
    %cst_90 = arith.constant dense<0.000000e+00> : vector<17x17xf32>
    %118 = tpu.matmul %103, %110, %cst_90 {dimension_numbers = #tpu.dot_dimension_numbers<[1], [0], [0], [1], [0, 0, 1, 1], [], []>} : vector<17x16xf32>, vector<16x17xf32>, vector<17x17xf32> -> vector<17x17xf32>
    %cst_91 = arith.constant 2.500000e-01 : f32
    %119 = vector.broadcast %cst_91 : f32 to vector<17x17xf32>
    %120 = arith.mulf %118, %119 : vector<17x17xf32>
    %cst_92 = arith.constant dense<0xFF800000> : vector<17xf32>
    %121 = vector.multi_reduction <maximumf>, %120, %cst_92 [1] : vector<17x17xf32> to vector<17xf32>
    %122 = vector.shape_cast %121 : vector<17xf32> to vector<17x1xf32>
    %123 = vector.broadcast %122 : vector<17x1xf32> to vector<17x17xf32>
    %124 = arith.subf %120, %123 : vector<17x17xf32>
    %125 = math.exp %124 : vector<17x17xf32>
    %cst_93 = arith.constant dense<0.000000e+00> : vector<17xf32>
    %126 = vector.multi_reduction <add>, %125, %cst_93 [1] : vector<17x17xf32> to vector<17xf32>
    %127 = vector.shape_cast %126 : vector<17xf32> to vector<17x1xf32>
    %128 = tpu.reciprocal %127 {approx = true} : vector<17x1xf32> -> vector<17x1xf32>
    %129 = vector.broadcast %128 : vector<17x1xf32> to vector<17x17xf32>
    %130 = arith.mulf %125, %129 : vector<17x17xf32>
    %cst_94 = arith.constant dense<0.000000e+00> : vector<17x16xf32>
    %131 = tpu.matmul %130, %117, %cst_94 {dimension_numbers = #tpu.dot_dimension_numbers<[1], [0], [0], [1], [0, 0, 1, 1], [], []>} : vector<17x17xf32>, vector<17x16xf32>, vector<17x16xf32> -> vector<17x16xf32>
    %c0_95 = arith.constant 0 : index
    %c1_96 = arith.constant 1 : index
    %c0_97 = arith.constant 0 : index
    %c0_98 = arith.constant 0 : index
    %132 = vector.load %arg14[%c0_95, %c1_96, %c0_97, %c0_98] : memref<3x4x16x64xf32, #tpu.memory_space<vmem>>, vector<1x1x16x64xf32>
    %133 = vector.shape_cast %132 : vector<1x1x16x64xf32> to vector<16x64xf32>
    %cst_99 = arith.constant dense<0.000000e+00> : vector<17x64xf32>
    %134 = tpu.matmul %131, %133, %cst_99 {dimension_numbers = #tpu.dot_dimension_numbers<[1], [0], [0], [1], [0, 0, 1, 1], [], []>} : vector<17x16xf32>, vector<16x64xf32>, vector<17x64xf32> -> vector<17x64xf32>
    %135 = arith.addf %96, %134 : vector<17x64xf32>
    %c0_100 = arith.constant 0 : index
    %c2 = arith.constant 2 : index
    %c0_101 = arith.constant 0 : index
    %c0_102 = arith.constant 0 : index
    %136 = vector.load %arg8[%c0_100, %c2, %c0_101, %c0_102] : memref<3x4x64x16xf32, #tpu.memory_space<vmem>>, vector<1x1x64x16xf32>
    %137 = vector.shape_cast %136 : vector<1x1x64x16xf32> to vector<64x16xf32>
    %cst_103 = arith.constant dense<0.000000e+00> : vector<17x16xf32>
    %138 = tpu.matmul %55, %137, %cst_103 {dimension_numbers = #tpu.dot_dimension_numbers<[1], [0], [0], [1], [0, 0, 1, 1], [], []>} : vector<17x64xf32>, vector<64x16xf32>, vector<17x16xf32> -> vector<17x16xf32>
    %c0_104 = arith.constant 0 : index
    %c2_105 = arith.constant 2 : index
    %c0_106 = arith.constant 0 : index
    %c0_107 = arith.constant 0 : index
    %139 = vector.load %arg9[%c0_104, %c2_105, %c0_106, %c0_107] : memref<3x4x1x16xf32, #tpu.memory_space<vmem>>, vector<1x1x1x16xf32>
    %140 = vector.shape_cast %139 : vector<1x1x1x16xf32> to vector<1x16xf32>
    %141 = vector.broadcast %140 : vector<1x16xf32> to vector<17x16xf32>
    %142 = arith.addf %138, %141 : vector<17x16xf32>
    %c0_108 = arith.constant 0 : index
    %c2_109 = arith.constant 2 : index
    %c0_110 = arith.constant 0 : index
    %c0_111 = arith.constant 0 : index
    %143 = vector.load %arg10[%c0_108, %c2_109, %c0_110, %c0_111] : memref<3x4x16x64xf32, #tpu.memory_space<vmem>>, vector<1x1x16x64xf32>
    %144 = vector.shape_cast %143 : vector<1x1x16x64xf32> to vector<16x64xf32>
    %cst_112 = arith.constant dense<0.000000e+00> : vector<16x17xf32>
    %145 = tpu.matmul %144, %56, %cst_112 {dimension_numbers = #tpu.dot_dimension_numbers<[1], [0], [0], [1], [0, 0, 1, 1], [], []>} : vector<16x64xf32>, vector<64x17xf32>, vector<16x17xf32> -> vector<16x17xf32>
    %c0_113 = arith.constant 0 : index
    %c2_114 = arith.constant 2 : index
    %c0_115 = arith.constant 0 : index
    %c0_116 = arith.constant 0 : index
    %146 = vector.load %arg11[%c0_113, %c2_114, %c0_115, %c0_116] : memref<3x4x16x1xf32, #tpu.memory_space<vmem>>, vector<1x1x16x1xf32>
    %147 = vector.shape_cast %146 : vector<1x1x16x1xf32> to vector<16x1xf32>
    %148 = vector.broadcast %147 : vector<16x1xf32> to vector<16x17xf32>
    %149 = arith.addf %145, %148 : vector<16x17xf32>
    %c0_117 = arith.constant 0 : index
    %c2_118 = arith.constant 2 : index
    %c0_119 = arith.constant 0 : index
    %c0_120 = arith.constant 0 : index
    %150 = vector.load %arg12[%c0_117, %c2_118, %c0_119, %c0_120] : memref<3x4x64x16xf32, #tpu.memory_space<vmem>>, vector<1x1x64x16xf32>
    %151 = vector.shape_cast %150 : vector<1x1x64x16xf32> to vector<64x16xf32>
    %cst_121 = arith.constant dense<0.000000e+00> : vector<17x16xf32>
    %152 = tpu.matmul %55, %151, %cst_121 {dimension_numbers = #tpu.dot_dimension_numbers<[1], [0], [0], [1], [0, 0, 1, 1], [], []>} : vector<17x64xf32>, vector<64x16xf32>, vector<17x16xf32> -> vector<17x16xf32>
    %c0_122 = arith.constant 0 : index
    %c2_123 = arith.constant 2 : index
    %c0_124 = arith.constant 0 : index
    %c0_125 = arith.constant 0 : index
    %153 = vector.load %arg13[%c0_122, %c2_123, %c0_124, %c0_125] : memref<3x4x1x16xf32, #tpu.memory_space<vmem>>, vector<1x1x1x16xf32>
    %154 = vector.shape_cast %153 : vector<1x1x1x16xf32> to vector<1x16xf32>
    %155 = vector.broadcast %154 : vector<1x16xf32> to vector<17x16xf32>
    %156 = arith.addf %152, %155 : vector<17x16xf32>
    %cst_126 = arith.constant dense<0.000000e+00> : vector<17x17xf32>
    %157 = tpu.matmul %142, %149, %cst_126 {dimension_numbers = #tpu.dot_dimension_numbers<[1], [0], [0], [1], [0, 0, 1, 1], [], []>} : vector<17x16xf32>, vector<16x17xf32>, vector<17x17xf32> -> vector<17x17xf32>
    %cst_127 = arith.constant 2.500000e-01 : f32
    %158 = vector.broadcast %cst_127 : f32 to vector<17x17xf32>
    %159 = arith.mulf %157, %158 : vector<17x17xf32>
    %cst_128 = arith.constant dense<0xFF800000> : vector<17xf32>
    %160 = vector.multi_reduction <maximumf>, %159, %cst_128 [1] : vector<17x17xf32> to vector<17xf32>
    %161 = vector.shape_cast %160 : vector<17xf32> to vector<17x1xf32>
    %162 = vector.broadcast %161 : vector<17x1xf32> to vector<17x17xf32>
    %163 = arith.subf %159, %162 : vector<17x17xf32>
    %164 = math.exp %163 : vector<17x17xf32>
    %cst_129 = arith.constant dense<0.000000e+00> : vector<17xf32>
    %165 = vector.multi_reduction <add>, %164, %cst_129 [1] : vector<17x17xf32> to vector<17xf32>
    %166 = vector.shape_cast %165 : vector<17xf32> to vector<17x1xf32>
    %167 = tpu.reciprocal %166 {approx = true} : vector<17x1xf32> -> vector<17x1xf32>
    %168 = vector.broadcast %167 : vector<17x1xf32> to vector<17x17xf32>
    %169 = arith.mulf %164, %168 : vector<17x17xf32>
    %cst_130 = arith.constant dense<0.000000e+00> : vector<17x16xf32>
    %170 = tpu.matmul %169, %156, %cst_130 {dimension_numbers = #tpu.dot_dimension_numbers<[1], [0], [0], [1], [0, 0, 1, 1], [], []>} : vector<17x17xf32>, vector<17x16xf32>, vector<17x16xf32> -> vector<17x16xf32>
    %c0_131 = arith.constant 0 : index
    %c2_132 = arith.constant 2 : index
    %c0_133 = arith.constant 0 : index
    %c0_134 = arith.constant 0 : index
    %171 = vector.load %arg14[%c0_131, %c2_132, %c0_133, %c0_134] : memref<3x4x16x64xf32, #tpu.memory_space<vmem>>, vector<1x1x16x64xf32>
    %172 = vector.shape_cast %171 : vector<1x1x16x64xf32> to vector<16x64xf32>
    %cst_135 = arith.constant dense<0.000000e+00> : vector<17x64xf32>
    %173 = tpu.matmul %170, %172, %cst_135 {dimension_numbers = #tpu.dot_dimension_numbers<[1], [0], [0], [1], [0, 0, 1, 1], [], []>} : vector<17x16xf32>, vector<16x64xf32>, vector<17x64xf32> -> vector<17x64xf32>
    %174 = arith.addf %135, %173 : vector<17x64xf32>
    %c0_136 = arith.constant 0 : index
    %c3 = arith.constant 3 : index
    %c0_137 = arith.constant 0 : index
    %c0_138 = arith.constant 0 : index
    %175 = vector.load %arg8[%c0_136, %c3, %c0_137, %c0_138] : memref<3x4x64x16xf32, #tpu.memory_space<vmem>>, vector<1x1x64x16xf32>
    %176 = vector.shape_cast %175 : vector<1x1x64x16xf32> to vector<64x16xf32>
    %cst_139 = arith.constant dense<0.000000e+00> : vector<17x16xf32>
    %177 = tpu.matmul %55, %176, %cst_139 {dimension_numbers = #tpu.dot_dimension_numbers<[1], [0], [0], [1], [0, 0, 1, 1], [], []>} : vector<17x64xf32>, vector<64x16xf32>, vector<17x16xf32> -> vector<17x16xf32>
    %c0_140 = arith.constant 0 : index
    %c3_141 = arith.constant 3 : index
    %c0_142 = arith.constant 0 : index
    %c0_143 = arith.constant 0 : index
    %178 = vector.load %arg9[%c0_140, %c3_141, %c0_142, %c0_143] : memref<3x4x1x16xf32, #tpu.memory_space<vmem>>, vector<1x1x1x16xf32>
    %179 = vector.shape_cast %178 : vector<1x1x1x16xf32> to vector<1x16xf32>
    %180 = vector.broadcast %179 : vector<1x16xf32> to vector<17x16xf32>
    %181 = arith.addf %177, %180 : vector<17x16xf32>
    %c0_144 = arith.constant 0 : index
    %c3_145 = arith.constant 3 : index
    %c0_146 = arith.constant 0 : index
    %c0_147 = arith.constant 0 : index
    %182 = vector.load %arg10[%c0_144, %c3_145, %c0_146, %c0_147] : memref<3x4x16x64xf32, #tpu.memory_space<vmem>>, vector<1x1x16x64xf32>
    %183 = vector.shape_cast %182 : vector<1x1x16x64xf32> to vector<16x64xf32>
    %cst_148 = arith.constant dense<0.000000e+00> : vector<16x17xf32>
    %184 = tpu.matmul %183, %56, %cst_148 {dimension_numbers = #tpu.dot_dimension_numbers<[1], [0], [0], [1], [0, 0, 1, 1], [], []>} : vector<16x64xf32>, vector<64x17xf32>, vector<16x17xf32> -> vector<16x17xf32>
    %c0_149 = arith.constant 0 : index
    %c3_150 = arith.constant 3 : index
    %c0_151 = arith.constant 0 : index
    %c0_152 = arith.constant 0 : index
    %185 = vector.load %arg11[%c0_149, %c3_150, %c0_151, %c0_152] : memref<3x4x16x1xf32, #tpu.memory_space<vmem>>, vector<1x1x16x1xf32>
    %186 = vector.shape_cast %185 : vector<1x1x16x1xf32> to vector<16x1xf32>
    %187 = vector.broadcast %186 : vector<16x1xf32> to vector<16x17xf32>
    %188 = arith.addf %184, %187 : vector<16x17xf32>
    %c0_153 = arith.constant 0 : index
    %c3_154 = arith.constant 3 : index
    %c0_155 = arith.constant 0 : index
    %c0_156 = arith.constant 0 : index
    %189 = vector.load %arg12[%c0_153, %c3_154, %c0_155, %c0_156] : memref<3x4x64x16xf32, #tpu.memory_space<vmem>>, vector<1x1x64x16xf32>
    %190 = vector.shape_cast %189 : vector<1x1x64x16xf32> to vector<64x16xf32>
    %cst_157 = arith.constant dense<0.000000e+00> : vector<17x16xf32>
    %191 = tpu.matmul %55, %190, %cst_157 {dimension_numbers = #tpu.dot_dimension_numbers<[1], [0], [0], [1], [0, 0, 1, 1], [], []>} : vector<17x64xf32>, vector<64x16xf32>, vector<17x16xf32> -> vector<17x16xf32>
    %c0_158 = arith.constant 0 : index
    %c3_159 = arith.constant 3 : index
    %c0_160 = arith.constant 0 : index
    %c0_161 = arith.constant 0 : index
    %192 = vector.load %arg13[%c0_158, %c3_159, %c0_160, %c0_161] : memref<3x4x1x16xf32, #tpu.memory_space<vmem>>, vector<1x1x1x16xf32>
    %193 = vector.shape_cast %192 : vector<1x1x1x16xf32> to vector<1x16xf32>
    %194 = vector.broadcast %193 : vector<1x16xf32> to vector<17x16xf32>
    %195 = arith.addf %191, %194 : vector<17x16xf32>
    %cst_162 = arith.constant dense<0.000000e+00> : vector<17x17xf32>
    %196 = tpu.matmul %181, %188, %cst_162 {dimension_numbers = #tpu.dot_dimension_numbers<[1], [0], [0], [1], [0, 0, 1, 1], [], []>} : vector<17x16xf32>, vector<16x17xf32>, vector<17x17xf32> -> vector<17x17xf32>
    %cst_163 = arith.constant 2.500000e-01 : f32
    %197 = vector.broadcast %cst_163 : f32 to vector<17x17xf32>
    %198 = arith.mulf %196, %197 : vector<17x17xf32>
    %cst_164 = arith.constant dense<0xFF800000> : vector<17xf32>
    %199 = vector.multi_reduction <maximumf>, %198, %cst_164 [1] : vector<17x17xf32> to vector<17xf32>
    %200 = vector.shape_cast %199 : vector<17xf32> to vector<17x1xf32>
    %201 = vector.broadcast %200 : vector<17x1xf32> to vector<17x17xf32>
    %202 = arith.subf %198, %201 : vector<17x17xf32>
    %203 = math.exp %202 : vector<17x17xf32>
    %cst_165 = arith.constant dense<0.000000e+00> : vector<17xf32>
    %204 = vector.multi_reduction <add>, %203, %cst_165 [1] : vector<17x17xf32> to vector<17xf32>
    %205 = vector.shape_cast %204 : vector<17xf32> to vector<17x1xf32>
    %206 = tpu.reciprocal %205 {approx = true} : vector<17x1xf32> -> vector<17x1xf32>
    %207 = vector.broadcast %206 : vector<17x1xf32> to vector<17x17xf32>
    %208 = arith.mulf %203, %207 : vector<17x17xf32>
    %cst_166 = arith.constant dense<0.000000e+00> : vector<17x16xf32>
    %209 = tpu.matmul %208, %195, %cst_166 {dimension_numbers = #tpu.dot_dimension_numbers<[1], [0], [0], [1], [0, 0, 1, 1], [], []>} : vector<17x17xf32>, vector<17x16xf32>, vector<17x16xf32> -> vector<17x16xf32>
    %c0_167 = arith.constant 0 : index
    %c3_168 = arith.constant 3 : index
    %c0_169 = arith.constant 0 : index
    %c0_170 = arith.constant 0 : index
    %210 = vector.load %arg14[%c0_167, %c3_168, %c0_169, %c0_170] : memref<3x4x16x64xf32, #tpu.memory_space<vmem>>, vector<1x1x16x64xf32>
    %211 = vector.shape_cast %210 : vector<1x1x16x64xf32> to vector<16x64xf32>
    %cst_171 = arith.constant dense<0.000000e+00> : vector<17x64xf32>
    %212 = tpu.matmul %209, %211, %cst_171 {dimension_numbers = #tpu.dot_dimension_numbers<[1], [0], [0], [1], [0, 0, 1, 1], [], []>} : vector<17x16xf32>, vector<16x64xf32>, vector<17x64xf32> -> vector<17x64xf32>
    %213 = arith.addf %174, %212 : vector<17x64xf32>
    %214 = arith.addf %29, %213 : vector<17x64xf32>
    %c0_172 = arith.constant 0 : index
    %c0_173 = arith.constant 0 : index
    %c0_174 = arith.constant 0 : index
    %215 = vector.load %arg15[%c0_172, %c0_173, %c0_174] : memref<3x1x64xf32, #tpu.memory_space<vmem>>, vector<1x1x64xf32>
    %216 = vector.shape_cast %215 : vector<1x1x64xf32> to vector<1x64xf32>
    %217 = vector.broadcast %216 : vector<1x64xf32> to vector<17x64xf32>
    %218 = arith.addf %214, %217 : vector<17x64xf32>
    %c0_175 = arith.constant 0 : index
    %c0_176 = arith.constant 0 : index
    %c0_177 = arith.constant 0 : index
    %219 = vector.load %arg16[%c0_175, %c0_176, %c0_177] : memref<3x1x64xf32, #tpu.memory_space<vmem>>, vector<1x1x64xf32>
    %220 = vector.shape_cast %219 : vector<1x1x64xf32> to vector<1x64xf32>
    %c0_178 = arith.constant 0 : index
    %c0_179 = arith.constant 0 : index
    %c0_180 = arith.constant 0 : index
    %221 = vector.load %arg17[%c0_178, %c0_179, %c0_180] : memref<3x1x64xf32, #tpu.memory_space<vmem>>, vector<1x1x64xf32>
    %222 = vector.shape_cast %221 : vector<1x1x64xf32> to vector<1x64xf32>
    %cst_181 = arith.constant dense<0.000000e+00> : vector<17xf32>
    %223 = vector.multi_reduction <add>, %218, %cst_181 [1] : vector<17x64xf32> to vector<17xf32>
    %224 = vector.shape_cast %223 : vector<17xf32> to vector<17x1xf32>
    %cst_182 = arith.constant 6.400000e+01 : f32
    %225 = vector.broadcast %cst_182 : f32 to vector<17x1xf32>
    %226 = arith.divf %224, %225 : vector<17x1xf32>
    %227 = vector.broadcast %226 : vector<17x1xf32> to vector<17x64xf32>
    %228 = arith.subf %218, %227 : vector<17x64xf32>
    %229 = arith.mulf %228, %228 : vector<17x64xf32>
    %cst_183 = arith.constant dense<0.000000e+00> : vector<17xf32>
    %230 = vector.multi_reduction <add>, %229, %cst_183 [1] : vector<17x64xf32> to vector<17xf32>
    %231 = vector.shape_cast %230 : vector<17xf32> to vector<17x1xf32>
    %cst_184 = arith.constant 6.400000e+01 : f32
    %232 = vector.broadcast %cst_184 : f32 to vector<17x1xf32>
    %233 = arith.divf %231, %232 : vector<17x1xf32>
    %234 = vector.broadcast %226 : vector<17x1xf32> to vector<17x64xf32>
    %235 = arith.subf %218, %234 : vector<17x64xf32>
    %cst_185 = arith.constant 9.99999974E-6 : f32
    %236 = vector.broadcast %cst_185 : f32 to vector<17x1xf32>
    %237 = arith.addf %233, %236 : vector<17x1xf32>
    %238 = math.rsqrt %237 : vector<17x1xf32>
    %239 = vector.broadcast %238 : vector<17x1xf32> to vector<17x64xf32>
    %240 = arith.mulf %235, %239 : vector<17x64xf32>
    %241 = vector.broadcast %220 : vector<1x64xf32> to vector<17x64xf32>
    %242 = arith.mulf %240, %241 : vector<17x64xf32>
    %243 = vector.broadcast %222 : vector<1x64xf32> to vector<17x64xf32>
    %244 = arith.addf %242, %243 : vector<17x64xf32>
    %c0_186 = arith.constant 0 : index
    %c0_187 = arith.constant 0 : index
    %c0_188 = arith.constant 0 : index
    %245 = vector.load %arg18[%c0_186, %c0_187, %c0_188] : memref<3x64x256xf32, #tpu.memory_space<vmem>>, vector<1x64x256xf32>
    %246 = vector.shape_cast %245 : vector<1x64x256xf32> to vector<64x256xf32>
    %cst_189 = arith.constant dense<0.000000e+00> : vector<17x256xf32>
    %247 = tpu.matmul %244, %246, %cst_189 {dimension_numbers = #tpu.dot_dimension_numbers<[1], [0], [0], [1], [0, 0, 1, 1], [], []>} : vector<17x64xf32>, vector<64x256xf32>, vector<17x256xf32> -> vector<17x256xf32>
    %c0_190 = arith.constant 0 : index
    %c0_191 = arith.constant 0 : index
    %c0_192 = arith.constant 0 : index
    %248 = vector.load %arg19[%c0_190, %c0_191, %c0_192] : memref<3x1x256xf32, #tpu.memory_space<vmem>>, vector<1x1x256xf32>
    %249 = vector.shape_cast %248 : vector<1x1x256xf32> to vector<1x256xf32>
    %250 = vector.broadcast %249 : vector<1x256xf32> to vector<17x256xf32>
    %251 = arith.addf %247, %250 : vector<17x256xf32>
    %cst_193 = arith.constant 1.702000e+00 : f32
    %252 = vector.broadcast %cst_193 : f32 to vector<17x256xf32>
    %253 = arith.mulf %252, %251 : vector<17x256xf32>
    %254 = arith.negf %253 : vector<17x256xf32>
    %255 = math.exp %254 : vector<17x256xf32>
    %cst_194 = arith.constant 1.000000e+00 : f32
    %256 = vector.broadcast %cst_194 : f32 to vector<17x256xf32>
    %257 = arith.addf %256, %255 : vector<17x256xf32>
    %258 = arith.divf %256, %257 : vector<17x256xf32>
    %259 = arith.mulf %251, %258 : vector<17x256xf32>
    %c0_195 = arith.constant 0 : index
    %c0_196 = arith.constant 0 : index
    %c0_197 = arith.constant 0 : index
    %260 = vector.load %arg20[%c0_195, %c0_196, %c0_197] : memref<3x256x64xf32, #tpu.memory_space<vmem>>, vector<1x256x64xf32>
    %261 = vector.shape_cast %260 : vector<1x256x64xf32> to vector<256x64xf32>
    %cst_198 = arith.constant dense<0.000000e+00> : vector<17x64xf32>
    %262 = tpu.matmul %259, %261, %cst_198 {dimension_numbers = #tpu.dot_dimension_numbers<[1], [0], [0], [1], [0, 0, 1, 1], [], []>} : vector<17x256xf32>, vector<256x64xf32>, vector<17x64xf32> -> vector<17x64xf32>
    %263 = arith.addf %218, %262 : vector<17x64xf32>
    %c0_199 = arith.constant 0 : index
    %c0_200 = arith.constant 0 : index
    %c0_201 = arith.constant 0 : index
    %264 = vector.load %arg21[%c0_199, %c0_200, %c0_201] : memref<3x1x64xf32, #tpu.memory_space<vmem>>, vector<1x1x64xf32>
    %265 = vector.shape_cast %264 : vector<1x1x64xf32> to vector<1x64xf32>
    %266 = vector.broadcast %265 : vector<1x64xf32> to vector<17x64xf32>
    %267 = arith.addf %263, %266 : vector<17x64xf32>
    %c1_202 = arith.constant 1 : index
    %c0_203 = arith.constant 0 : index
    %c0_204 = arith.constant 0 : index
    %268 = vector.load %arg6[%c1_202, %c0_203, %c0_204] : memref<3x1x64xf32, #tpu.memory_space<vmem>>, vector<1x1x64xf32>
    %269 = vector.shape_cast %268 : vector<1x1x64xf32> to vector<1x64xf32>
    %c1_205 = arith.constant 1 : index
    %c0_206 = arith.constant 0 : index
    %c0_207 = arith.constant 0 : index
    %270 = vector.load %arg7[%c1_205, %c0_206, %c0_207] : memref<3x1x64xf32, #tpu.memory_space<vmem>>, vector<1x1x64xf32>
    %271 = vector.shape_cast %270 : vector<1x1x64xf32> to vector<1x64xf32>
    %cst_208 = arith.constant dense<0.000000e+00> : vector<17xf32>
    %272 = vector.multi_reduction <add>, %267, %cst_208 [1] : vector<17x64xf32> to vector<17xf32>
    %273 = vector.shape_cast %272 : vector<17xf32> to vector<17x1xf32>
    %cst_209 = arith.constant 6.400000e+01 : f32
    %274 = vector.broadcast %cst_209 : f32 to vector<17x1xf32>
    %275 = arith.divf %273, %274 : vector<17x1xf32>
    %276 = vector.broadcast %275 : vector<17x1xf32> to vector<17x64xf32>
    %277 = arith.subf %267, %276 : vector<17x64xf32>
    %278 = arith.mulf %277, %277 : vector<17x64xf32>
    %cst_210 = arith.constant dense<0.000000e+00> : vector<17xf32>
    %279 = vector.multi_reduction <add>, %278, %cst_210 [1] : vector<17x64xf32> to vector<17xf32>
    %280 = vector.shape_cast %279 : vector<17xf32> to vector<17x1xf32>
    %cst_211 = arith.constant 6.400000e+01 : f32
    %281 = vector.broadcast %cst_211 : f32 to vector<17x1xf32>
    %282 = arith.divf %280, %281 : vector<17x1xf32>
    %283 = vector.broadcast %275 : vector<17x1xf32> to vector<17x64xf32>
    %284 = arith.subf %267, %283 : vector<17x64xf32>
    %cst_212 = arith.constant 9.99999974E-6 : f32
    %285 = vector.broadcast %cst_212 : f32 to vector<17x1xf32>
    %286 = arith.addf %282, %285 : vector<17x1xf32>
    %287 = math.rsqrt %286 : vector<17x1xf32>
    %288 = vector.broadcast %287 : vector<17x1xf32> to vector<17x64xf32>
    %289 = arith.mulf %284, %288 : vector<17x64xf32>
    %290 = vector.broadcast %269 : vector<1x64xf32> to vector<17x64xf32>
    %291 = arith.mulf %289, %290 : vector<17x64xf32>
    %292 = vector.broadcast %271 : vector<1x64xf32> to vector<17x64xf32>
    %293 = arith.addf %291, %292 : vector<17x64xf32>
    %294 = tpu.transpose %293, [1, 0] : vector<17x64xf32> -> vector<64x17xf32>
    %cst_213 = arith.constant 0.000000e+00 : f32
    %295 = vector.broadcast %cst_213 : f32 to vector<17x64xf32>
    %cst_214 = arith.constant 0.000000e+00 : f32
    %296 = vector.broadcast %cst_214 : f32 to vector<17x17xf32>
    %c1_215 = arith.constant 1 : index
    %c0_216 = arith.constant 0 : index
    %c0_217 = arith.constant 0 : index
    %c0_218 = arith.constant 0 : index
    %297 = vector.load %arg8[%c1_215, %c0_216, %c0_217, %c0_218] : memref<3x4x64x16xf32, #tpu.memory_space<vmem>>, vector<1x1x64x16xf32>
    %298 = vector.shape_cast %297 : vector<1x1x64x16xf32> to vector<64x16xf32>
    %cst_219 = arith.constant dense<0.000000e+00> : vector<17x16xf32>
    %299 = tpu.matmul %293, %298, %cst_219 {dimension_numbers = #tpu.dot_dimension_numbers<[1], [0], [0], [1], [0, 0, 1, 1], [], []>} : vector<17x64xf32>, vector<64x16xf32>, vector<17x16xf32> -> vector<17x16xf32>
    %c1_220 = arith.constant 1 : index
    %c0_221 = arith.constant 0 : index
    %c0_222 = arith.constant 0 : index
    %c0_223 = arith.constant 0 : index
    %300 = vector.load %arg9[%c1_220, %c0_221, %c0_222, %c0_223] : memref<3x4x1x16xf32, #tpu.memory_space<vmem>>, vector<1x1x1x16xf32>
    %301 = vector.shape_cast %300 : vector<1x1x1x16xf32> to vector<1x16xf32>
    %302 = vector.broadcast %301 : vector<1x16xf32> to vector<17x16xf32>
    %303 = arith.addf %299, %302 : vector<17x16xf32>
    %c1_224 = arith.constant 1 : index
    %c0_225 = arith.constant 0 : index
    %c0_226 = arith.constant 0 : index
    %c0_227 = arith.constant 0 : index
    %304 = vector.load %arg10[%c1_224, %c0_225, %c0_226, %c0_227] : memref<3x4x16x64xf32, #tpu.memory_space<vmem>>, vector<1x1x16x64xf32>
    %305 = vector.shape_cast %304 : vector<1x1x16x64xf32> to vector<16x64xf32>
    %cst_228 = arith.constant dense<0.000000e+00> : vector<16x17xf32>
    %306 = tpu.matmul %305, %294, %cst_228 {dimension_numbers = #tpu.dot_dimension_numbers<[1], [0], [0], [1], [0, 0, 1, 1], [], []>} : vector<16x64xf32>, vector<64x17xf32>, vector<16x17xf32> -> vector<16x17xf32>
    %c1_229 = arith.constant 1 : index
    %c0_230 = arith.constant 0 : index
    %c0_231 = arith.constant 0 : index
    %c0_232 = arith.constant 0 : index
    %307 = vector.load %arg11[%c1_229, %c0_230, %c0_231, %c0_232] : memref<3x4x16x1xf32, #tpu.memory_space<vmem>>, vector<1x1x16x1xf32>
    %308 = vector.shape_cast %307 : vector<1x1x16x1xf32> to vector<16x1xf32>
    %309 = vector.broadcast %308 : vector<16x1xf32> to vector<16x17xf32>
    %310 = arith.addf %306, %309 : vector<16x17xf32>
    %c1_233 = arith.constant 1 : index
    %c0_234 = arith.constant 0 : index
    %c0_235 = arith.constant 0 : index
    %c0_236 = arith.constant 0 : index
    %311 = vector.load %arg12[%c1_233, %c0_234, %c0_235, %c0_236] : memref<3x4x64x16xf32, #tpu.memory_space<vmem>>, vector<1x1x64x16xf32>
    %312 = vector.shape_cast %311 : vector<1x1x64x16xf32> to vector<64x16xf32>
    %cst_237 = arith.constant dense<0.000000e+00> : vector<17x16xf32>
    %313 = tpu.matmul %293, %312, %cst_237 {dimension_numbers = #tpu.dot_dimension_numbers<[1], [0], [0], [1], [0, 0, 1, 1], [], []>} : vector<17x64xf32>, vector<64x16xf32>, vector<17x16xf32> -> vector<17x16xf32>
    %c1_238 = arith.constant 1 : index
    %c0_239 = arith.constant 0 : index
    %c0_240 = arith.constant 0 : index
    %c0_241 = arith.constant 0 : index
    %314 = vector.load %arg13[%c1_238, %c0_239, %c0_240, %c0_241] : memref<3x4x1x16xf32, #tpu.memory_space<vmem>>, vector<1x1x1x16xf32>
    %315 = vector.shape_cast %314 : vector<1x1x1x16xf32> to vector<1x16xf32>
    %316 = vector.broadcast %315 : vector<1x16xf32> to vector<17x16xf32>
    %317 = arith.addf %313, %316 : vector<17x16xf32>
    %cst_242 = arith.constant dense<0.000000e+00> : vector<17x17xf32>
    %318 = tpu.matmul %303, %310, %cst_242 {dimension_numbers = #tpu.dot_dimension_numbers<[1], [0], [0], [1], [0, 0, 1, 1], [], []>} : vector<17x16xf32>, vector<16x17xf32>, vector<17x17xf32> -> vector<17x17xf32>
    %cst_243 = arith.constant 2.500000e-01 : f32
    %319 = vector.broadcast %cst_243 : f32 to vector<17x17xf32>
    %320 = arith.mulf %318, %319 : vector<17x17xf32>
    %cst_244 = arith.constant dense<0xFF800000> : vector<17xf32>
    %321 = vector.multi_reduction <maximumf>, %320, %cst_244 [1] : vector<17x17xf32> to vector<17xf32>
    %322 = vector.shape_cast %321 : vector<17xf32> to vector<17x1xf32>
    %323 = vector.broadcast %322 : vector<17x1xf32> to vector<17x17xf32>
    %324 = arith.subf %320, %323 : vector<17x17xf32>
    %325 = math.exp %324 : vector<17x17xf32>
    %cst_245 = arith.constant dense<0.000000e+00> : vector<17xf32>
    %326 = vector.multi_reduction <add>, %325, %cst_245 [1] : vector<17x17xf32> to vector<17xf32>
    %327 = vector.shape_cast %326 : vector<17xf32> to vector<17x1xf32>
    %328 = tpu.reciprocal %327 {approx = true} : vector<17x1xf32> -> vector<17x1xf32>
    %329 = vector.broadcast %328 : vector<17x1xf32> to vector<17x17xf32>
    %330 = arith.mulf %325, %329 : vector<17x17xf32>
    %331 = arith.addf %296, %330 : vector<17x17xf32>
    %cst_246 = arith.constant dense<0.000000e+00> : vector<17x16xf32>
    %332 = tpu.matmul %330, %317, %cst_246 {dimension_numbers = #tpu.dot_dimension_numbers<[1], [0], [0], [1], [0, 0, 1, 1], [], []>} : vector<17x17xf32>, vector<17x16xf32>, vector<17x16xf32> -> vector<17x16xf32>
    %c1_247 = arith.constant 1 : index
    %c0_248 = arith.constant 0 : index
    %c0_249 = arith.constant 0 : index
    %c0_250 = arith.constant 0 : index
    %333 = vector.load %arg14[%c1_247, %c0_248, %c0_249, %c0_250] : memref<3x4x16x64xf32, #tpu.memory_space<vmem>>, vector<1x1x16x64xf32>
    %334 = vector.shape_cast %333 : vector<1x1x16x64xf32> to vector<16x64xf32>
    %cst_251 = arith.constant dense<0.000000e+00> : vector<17x64xf32>
    %335 = tpu.matmul %332, %334, %cst_251 {dimension_numbers = #tpu.dot_dimension_numbers<[1], [0], [0], [1], [0, 0, 1, 1], [], []>} : vector<17x16xf32>, vector<16x64xf32>, vector<17x64xf32> -> vector<17x64xf32>
    %336 = arith.addf %295, %335 : vector<17x64xf32>
    %c1_252 = arith.constant 1 : index
    %c1_253 = arith.constant 1 : index
    %c0_254 = arith.constant 0 : index
    %c0_255 = arith.constant 0 : index
    %337 = vector.load %arg8[%c1_252, %c1_253, %c0_254, %c0_255] : memref<3x4x64x16xf32, #tpu.memory_space<vmem>>, vector<1x1x64x16xf32>
    %338 = vector.shape_cast %337 : vector<1x1x64x16xf32> to vector<64x16xf32>
    %cst_256 = arith.constant dense<0.000000e+00> : vector<17x16xf32>
    %339 = tpu.matmul %293, %338, %cst_256 {dimension_numbers = #tpu.dot_dimension_numbers<[1], [0], [0], [1], [0, 0, 1, 1], [], []>} : vector<17x64xf32>, vector<64x16xf32>, vector<17x16xf32> -> vector<17x16xf32>
    %c1_257 = arith.constant 1 : index
    %c1_258 = arith.constant 1 : index
    %c0_259 = arith.constant 0 : index
    %c0_260 = arith.constant 0 : index
    %340 = vector.load %arg9[%c1_257, %c1_258, %c0_259, %c0_260] : memref<3x4x1x16xf32, #tpu.memory_space<vmem>>, vector<1x1x1x16xf32>
    %341 = vector.shape_cast %340 : vector<1x1x1x16xf32> to vector<1x16xf32>
    %342 = vector.broadcast %341 : vector<1x16xf32> to vector<17x16xf32>
    %343 = arith.addf %339, %342 : vector<17x16xf32>
    %c1_261 = arith.constant 1 : index
    %c1_262 = arith.constant 1 : index
    %c0_263 = arith.constant 0 : index
    %c0_264 = arith.constant 0 : index
    %344 = vector.load %arg10[%c1_261, %c1_262, %c0_263, %c0_264] : memref<3x4x16x64xf32, #tpu.memory_space<vmem>>, vector<1x1x16x64xf32>
    %345 = vector.shape_cast %344 : vector<1x1x16x64xf32> to vector<16x64xf32>
    %cst_265 = arith.constant dense<0.000000e+00> : vector<16x17xf32>
    %346 = tpu.matmul %345, %294, %cst_265 {dimension_numbers = #tpu.dot_dimension_numbers<[1], [0], [0], [1], [0, 0, 1, 1], [], []>} : vector<16x64xf32>, vector<64x17xf32>, vector<16x17xf32> -> vector<16x17xf32>
    %c1_266 = arith.constant 1 : index
    %c1_267 = arith.constant 1 : index
    %c0_268 = arith.constant 0 : index
    %c0_269 = arith.constant 0 : index
    %347 = vector.load %arg11[%c1_266, %c1_267, %c0_268, %c0_269] : memref<3x4x16x1xf32, #tpu.memory_space<vmem>>, vector<1x1x16x1xf32>
    %348 = vector.shape_cast %347 : vector<1x1x16x1xf32> to vector<16x1xf32>
    %349 = vector.broadcast %348 : vector<16x1xf32> to vector<16x17xf32>
    %350 = arith.addf %346, %349 : vector<16x17xf32>
    %c1_270 = arith.constant 1 : index
    %c1_271 = arith.constant 1 : index
    %c0_272 = arith.constant 0 : index
    %c0_273 = arith.constant 0 : index
    %351 = vector.load %arg12[%c1_270, %c1_271, %c0_272, %c0_273] : memref<3x4x64x16xf32, #tpu.memory_space<vmem>>, vector<1x1x64x16xf32>
    %352 = vector.shape_cast %351 : vector<1x1x64x16xf32> to vector<64x16xf32>
    %cst_274 = arith.constant dense<0.000000e+00> : vector<17x16xf32>
    %353 = tpu.matmul %293, %352, %cst_274 {dimension_numbers = #tpu.dot_dimension_numbers<[1], [0], [0], [1], [0, 0, 1, 1], [], []>} : vector<17x64xf32>, vector<64x16xf32>, vector<17x16xf32> -> vector<17x16xf32>
    %c1_275 = arith.constant 1 : index
    %c1_276 = arith.constant 1 : index
    %c0_277 = arith.constant 0 : index
    %c0_278 = arith.constant 0 : index
    %354 = vector.load %arg13[%c1_275, %c1_276, %c0_277, %c0_278] : memref<3x4x1x16xf32, #tpu.memory_space<vmem>>, vector<1x1x1x16xf32>
    %355 = vector.shape_cast %354 : vector<1x1x1x16xf32> to vector<1x16xf32>
    %356 = vector.broadcast %355 : vector<1x16xf32> to vector<17x16xf32>
    %357 = arith.addf %353, %356 : vector<17x16xf32>
    %cst_279 = arith.constant dense<0.000000e+00> : vector<17x17xf32>
    %358 = tpu.matmul %343, %350, %cst_279 {dimension_numbers = #tpu.dot_dimension_numbers<[1], [0], [0], [1], [0, 0, 1, 1], [], []>} : vector<17x16xf32>, vector<16x17xf32>, vector<17x17xf32> -> vector<17x17xf32>
    %cst_280 = arith.constant 2.500000e-01 : f32
    %359 = vector.broadcast %cst_280 : f32 to vector<17x17xf32>
    %360 = arith.mulf %358, %359 : vector<17x17xf32>
    %cst_281 = arith.constant dense<0xFF800000> : vector<17xf32>
    %361 = vector.multi_reduction <maximumf>, %360, %cst_281 [1] : vector<17x17xf32> to vector<17xf32>
    %362 = vector.shape_cast %361 : vector<17xf32> to vector<17x1xf32>
    %363 = vector.broadcast %362 : vector<17x1xf32> to vector<17x17xf32>
    %364 = arith.subf %360, %363 : vector<17x17xf32>
    %365 = math.exp %364 : vector<17x17xf32>
    %cst_282 = arith.constant dense<0.000000e+00> : vector<17xf32>
    %366 = vector.multi_reduction <add>, %365, %cst_282 [1] : vector<17x17xf32> to vector<17xf32>
    %367 = vector.shape_cast %366 : vector<17xf32> to vector<17x1xf32>
    %368 = tpu.reciprocal %367 {approx = true} : vector<17x1xf32> -> vector<17x1xf32>
    %369 = vector.broadcast %368 : vector<17x1xf32> to vector<17x17xf32>
    %370 = arith.mulf %365, %369 : vector<17x17xf32>
    %371 = arith.addf %331, %370 : vector<17x17xf32>
    %cst_283 = arith.constant dense<0.000000e+00> : vector<17x16xf32>
    %372 = tpu.matmul %370, %357, %cst_283 {dimension_numbers = #tpu.dot_dimension_numbers<[1], [0], [0], [1], [0, 0, 1, 1], [], []>} : vector<17x17xf32>, vector<17x16xf32>, vector<17x16xf32> -> vector<17x16xf32>
    %c1_284 = arith.constant 1 : index
    %c1_285 = arith.constant 1 : index
    %c0_286 = arith.constant 0 : index
    %c0_287 = arith.constant 0 : index
    %373 = vector.load %arg14[%c1_284, %c1_285, %c0_286, %c0_287] : memref<3x4x16x64xf32, #tpu.memory_space<vmem>>, vector<1x1x16x64xf32>
    %374 = vector.shape_cast %373 : vector<1x1x16x64xf32> to vector<16x64xf32>
    %cst_288 = arith.constant dense<0.000000e+00> : vector<17x64xf32>
    %375 = tpu.matmul %372, %374, %cst_288 {dimension_numbers = #tpu.dot_dimension_numbers<[1], [0], [0], [1], [0, 0, 1, 1], [], []>} : vector<17x16xf32>, vector<16x64xf32>, vector<17x64xf32> -> vector<17x64xf32>
    %376 = arith.addf %336, %375 : vector<17x64xf32>
    %c1_289 = arith.constant 1 : index
    %c2_290 = arith.constant 2 : index
    %c0_291 = arith.constant 0 : index
    %c0_292 = arith.constant 0 : index
    %377 = vector.load %arg8[%c1_289, %c2_290, %c0_291, %c0_292] : memref<3x4x64x16xf32, #tpu.memory_space<vmem>>, vector<1x1x64x16xf32>
    %378 = vector.shape_cast %377 : vector<1x1x64x16xf32> to vector<64x16xf32>
    %cst_293 = arith.constant dense<0.000000e+00> : vector<17x16xf32>
    %379 = tpu.matmul %293, %378, %cst_293 {dimension_numbers = #tpu.dot_dimension_numbers<[1], [0], [0], [1], [0, 0, 1, 1], [], []>} : vector<17x64xf32>, vector<64x16xf32>, vector<17x16xf32> -> vector<17x16xf32>
    %c1_294 = arith.constant 1 : index
    %c2_295 = arith.constant 2 : index
    %c0_296 = arith.constant 0 : index
    %c0_297 = arith.constant 0 : index
    %380 = vector.load %arg9[%c1_294, %c2_295, %c0_296, %c0_297] : memref<3x4x1x16xf32, #tpu.memory_space<vmem>>, vector<1x1x1x16xf32>
    %381 = vector.shape_cast %380 : vector<1x1x1x16xf32> to vector<1x16xf32>
    %382 = vector.broadcast %381 : vector<1x16xf32> to vector<17x16xf32>
    %383 = arith.addf %379, %382 : vector<17x16xf32>
    %c1_298 = arith.constant 1 : index
    %c2_299 = arith.constant 2 : index
    %c0_300 = arith.constant 0 : index
    %c0_301 = arith.constant 0 : index
    %384 = vector.load %arg10[%c1_298, %c2_299, %c0_300, %c0_301] : memref<3x4x16x64xf32, #tpu.memory_space<vmem>>, vector<1x1x16x64xf32>
    %385 = vector.shape_cast %384 : vector<1x1x16x64xf32> to vector<16x64xf32>
    %cst_302 = arith.constant dense<0.000000e+00> : vector<16x17xf32>
    %386 = tpu.matmul %385, %294, %cst_302 {dimension_numbers = #tpu.dot_dimension_numbers<[1], [0], [0], [1], [0, 0, 1, 1], [], []>} : vector<16x64xf32>, vector<64x17xf32>, vector<16x17xf32> -> vector<16x17xf32>
    %c1_303 = arith.constant 1 : index
    %c2_304 = arith.constant 2 : index
    %c0_305 = arith.constant 0 : index
    %c0_306 = arith.constant 0 : index
    %387 = vector.load %arg11[%c1_303, %c2_304, %c0_305, %c0_306] : memref<3x4x16x1xf32, #tpu.memory_space<vmem>>, vector<1x1x16x1xf32>
    %388 = vector.shape_cast %387 : vector<1x1x16x1xf32> to vector<16x1xf32>
    %389 = vector.broadcast %388 : vector<16x1xf32> to vector<16x17xf32>
    %390 = arith.addf %386, %389 : vector<16x17xf32>
    %c1_307 = arith.constant 1 : index
    %c2_308 = arith.constant 2 : index
    %c0_309 = arith.constant 0 : index
    %c0_310 = arith.constant 0 : index
    %391 = vector.load %arg12[%c1_307, %c2_308, %c0_309, %c0_310] : memref<3x4x64x16xf32, #tpu.memory_space<vmem>>, vector<1x1x64x16xf32>
    %392 = vector.shape_cast %391 : vector<1x1x64x16xf32> to vector<64x16xf32>
    %cst_311 = arith.constant dense<0.000000e+00> : vector<17x16xf32>
    %393 = tpu.matmul %293, %392, %cst_311 {dimension_numbers = #tpu.dot_dimension_numbers<[1], [0], [0], [1], [0, 0, 1, 1], [], []>} : vector<17x64xf32>, vector<64x16xf32>, vector<17x16xf32> -> vector<17x16xf32>
    %c1_312 = arith.constant 1 : index
    %c2_313 = arith.constant 2 : index
    %c0_314 = arith.constant 0 : index
    %c0_315 = arith.constant 0 : index
    %394 = vector.load %arg13[%c1_312, %c2_313, %c0_314, %c0_315] : memref<3x4x1x16xf32, #tpu.memory_space<vmem>>, vector<1x1x1x16xf32>
    %395 = vector.shape_cast %394 : vector<1x1x1x16xf32> to vector<1x16xf32>
    %396 = vector.broadcast %395 : vector<1x16xf32> to vector<17x16xf32>
    %397 = arith.addf %393, %396 : vector<17x16xf32>
    %cst_316 = arith.constant dense<0.000000e+00> : vector<17x17xf32>
    %398 = tpu.matmul %383, %390, %cst_316 {dimension_numbers = #tpu.dot_dimension_numbers<[1], [0], [0], [1], [0, 0, 1, 1], [], []>} : vector<17x16xf32>, vector<16x17xf32>, vector<17x17xf32> -> vector<17x17xf32>
    %cst_317 = arith.constant 2.500000e-01 : f32
    %399 = vector.broadcast %cst_317 : f32 to vector<17x17xf32>
    %400 = arith.mulf %398, %399 : vector<17x17xf32>
    %cst_318 = arith.constant dense<0xFF800000> : vector<17xf32>
    %401 = vector.multi_reduction <maximumf>, %400, %cst_318 [1] : vector<17x17xf32> to vector<17xf32>
    %402 = vector.shape_cast %401 : vector<17xf32> to vector<17x1xf32>
    %403 = vector.broadcast %402 : vector<17x1xf32> to vector<17x17xf32>
    %404 = arith.subf %400, %403 : vector<17x17xf32>
    %405 = math.exp %404 : vector<17x17xf32>
    %cst_319 = arith.constant dense<0.000000e+00> : vector<17xf32>
    %406 = vector.multi_reduction <add>, %405, %cst_319 [1] : vector<17x17xf32> to vector<17xf32>
    %407 = vector.shape_cast %406 : vector<17xf32> to vector<17x1xf32>
    %408 = tpu.reciprocal %407 {approx = true} : vector<17x1xf32> -> vector<17x1xf32>
    %409 = vector.broadcast %408 : vector<17x1xf32> to vector<17x17xf32>
    %410 = arith.mulf %405, %409 : vector<17x17xf32>
    %411 = arith.addf %371, %410 : vector<17x17xf32>
    %cst_320 = arith.constant dense<0.000000e+00> : vector<17x16xf32>
    %412 = tpu.matmul %410, %397, %cst_320 {dimension_numbers = #tpu.dot_dimension_numbers<[1], [0], [0], [1], [0, 0, 1, 1], [], []>} : vector<17x17xf32>, vector<17x16xf32>, vector<17x16xf32> -> vector<17x16xf32>
    %c1_321 = arith.constant 1 : index
    %c2_322 = arith.constant 2 : index
    %c0_323 = arith.constant 0 : index
    %c0_324 = arith.constant 0 : index
    %413 = vector.load %arg14[%c1_321, %c2_322, %c0_323, %c0_324] : memref<3x4x16x64xf32, #tpu.memory_space<vmem>>, vector<1x1x16x64xf32>
    %414 = vector.shape_cast %413 : vector<1x1x16x64xf32> to vector<16x64xf32>
    %cst_325 = arith.constant dense<0.000000e+00> : vector<17x64xf32>
    %415 = tpu.matmul %412, %414, %cst_325 {dimension_numbers = #tpu.dot_dimension_numbers<[1], [0], [0], [1], [0, 0, 1, 1], [], []>} : vector<17x16xf32>, vector<16x64xf32>, vector<17x64xf32> -> vector<17x64xf32>
    %416 = arith.addf %376, %415 : vector<17x64xf32>
    %c1_326 = arith.constant 1 : index
    %c3_327 = arith.constant 3 : index
    %c0_328 = arith.constant 0 : index
    %c0_329 = arith.constant 0 : index
    %417 = vector.load %arg8[%c1_326, %c3_327, %c0_328, %c0_329] : memref<3x4x64x16xf32, #tpu.memory_space<vmem>>, vector<1x1x64x16xf32>
    %418 = vector.shape_cast %417 : vector<1x1x64x16xf32> to vector<64x16xf32>
    %cst_330 = arith.constant dense<0.000000e+00> : vector<17x16xf32>
    %419 = tpu.matmul %293, %418, %cst_330 {dimension_numbers = #tpu.dot_dimension_numbers<[1], [0], [0], [1], [0, 0, 1, 1], [], []>} : vector<17x64xf32>, vector<64x16xf32>, vector<17x16xf32> -> vector<17x16xf32>
    %c1_331 = arith.constant 1 : index
    %c3_332 = arith.constant 3 : index
    %c0_333 = arith.constant 0 : index
    %c0_334 = arith.constant 0 : index
    %420 = vector.load %arg9[%c1_331, %c3_332, %c0_333, %c0_334] : memref<3x4x1x16xf32, #tpu.memory_space<vmem>>, vector<1x1x1x16xf32>
    %421 = vector.shape_cast %420 : vector<1x1x1x16xf32> to vector<1x16xf32>
    %422 = vector.broadcast %421 : vector<1x16xf32> to vector<17x16xf32>
    %423 = arith.addf %419, %422 : vector<17x16xf32>
    %c1_335 = arith.constant 1 : index
    %c3_336 = arith.constant 3 : index
    %c0_337 = arith.constant 0 : index
    %c0_338 = arith.constant 0 : index
    %424 = vector.load %arg10[%c1_335, %c3_336, %c0_337, %c0_338] : memref<3x4x16x64xf32, #tpu.memory_space<vmem>>, vector<1x1x16x64xf32>
    %425 = vector.shape_cast %424 : vector<1x1x16x64xf32> to vector<16x64xf32>
    %cst_339 = arith.constant dense<0.000000e+00> : vector<16x17xf32>
    %426 = tpu.matmul %425, %294, %cst_339 {dimension_numbers = #tpu.dot_dimension_numbers<[1], [0], [0], [1], [0, 0, 1, 1], [], []>} : vector<16x64xf32>, vector<64x17xf32>, vector<16x17xf32> -> vector<16x17xf32>
    %c1_340 = arith.constant 1 : index
    %c3_341 = arith.constant 3 : index
    %c0_342 = arith.constant 0 : index
    %c0_343 = arith.constant 0 : index
    %427 = vector.load %arg11[%c1_340, %c3_341, %c0_342, %c0_343] : memref<3x4x16x1xf32, #tpu.memory_space<vmem>>, vector<1x1x16x1xf32>
    %428 = vector.shape_cast %427 : vector<1x1x16x1xf32> to vector<16x1xf32>
    %429 = vector.broadcast %428 : vector<16x1xf32> to vector<16x17xf32>
    %430 = arith.addf %426, %429 : vector<16x17xf32>
    %c1_344 = arith.constant 1 : index
    %c3_345 = arith.constant 3 : index
    %c0_346 = arith.constant 0 : index
    %c0_347 = arith.constant 0 : index
    %431 = vector.load %arg12[%c1_344, %c3_345, %c0_346, %c0_347] : memref<3x4x64x16xf32, #tpu.memory_space<vmem>>, vector<1x1x64x16xf32>
    %432 = vector.shape_cast %431 : vector<1x1x64x16xf32> to vector<64x16xf32>
    %cst_348 = arith.constant dense<0.000000e+00> : vector<17x16xf32>
    %433 = tpu.matmul %293, %432, %cst_348 {dimension_numbers = #tpu.dot_dimension_numbers<[1], [0], [0], [1], [0, 0, 1, 1], [], []>} : vector<17x64xf32>, vector<64x16xf32>, vector<17x16xf32> -> vector<17x16xf32>
    %c1_349 = arith.constant 1 : index
    %c3_350 = arith.constant 3 : index
    %c0_351 = arith.constant 0 : index
    %c0_352 = arith.constant 0 : index
    %434 = vector.load %arg13[%c1_349, %c3_350, %c0_351, %c0_352] : memref<3x4x1x16xf32, #tpu.memory_space<vmem>>, vector<1x1x1x16xf32>
    %435 = vector.shape_cast %434 : vector<1x1x1x16xf32> to vector<1x16xf32>
    %436 = vector.broadcast %435 : vector<1x16xf32> to vector<17x16xf32>
    %437 = arith.addf %433, %436 : vector<17x16xf32>
    %cst_353 = arith.constant dense<0.000000e+00> : vector<17x17xf32>
    %438 = tpu.matmul %423, %430, %cst_353 {dimension_numbers = #tpu.dot_dimension_numbers<[1], [0], [0], [1], [0, 0, 1, 1], [], []>} : vector<17x16xf32>, vector<16x17xf32>, vector<17x17xf32> -> vector<17x17xf32>
    %cst_354 = arith.constant 2.500000e-01 : f32
    %439 = vector.broadcast %cst_354 : f32 to vector<17x17xf32>
    %440 = arith.mulf %438, %439 : vector<17x17xf32>
    %cst_355 = arith.constant dense<0xFF800000> : vector<17xf32>
    %441 = vector.multi_reduction <maximumf>, %440, %cst_355 [1] : vector<17x17xf32> to vector<17xf32>
    %442 = vector.shape_cast %441 : vector<17xf32> to vector<17x1xf32>
    %443 = vector.broadcast %442 : vector<17x1xf32> to vector<17x17xf32>
    %444 = arith.subf %440, %443 : vector<17x17xf32>
    %445 = math.exp %444 : vector<17x17xf32>
    %cst_356 = arith.constant dense<0.000000e+00> : vector<17xf32>
    %446 = vector.multi_reduction <add>, %445, %cst_356 [1] : vector<17x17xf32> to vector<17xf32>
    %447 = vector.shape_cast %446 : vector<17xf32> to vector<17x1xf32>
    %448 = tpu.reciprocal %447 {approx = true} : vector<17x1xf32> -> vector<17x1xf32>
    %449 = vector.broadcast %448 : vector<17x1xf32> to vector<17x17xf32>
    %450 = arith.mulf %445, %449 : vector<17x17xf32>
    %451 = arith.addf %411, %450 : vector<17x17xf32>
    %cst_357 = arith.constant dense<0.000000e+00> : vector<17x16xf32>
    %452 = tpu.matmul %450, %437, %cst_357 {dimension_numbers = #tpu.dot_dimension_numbers<[1], [0], [0], [1], [0, 0, 1, 1], [], []>} : vector<17x17xf32>, vector<17x16xf32>, vector<17x16xf32> -> vector<17x16xf32>
    %c1_358 = arith.constant 1 : index
    %c3_359 = arith.constant 3 : index
    %c0_360 = arith.constant 0 : index
    %c0_361 = arith.constant 0 : index
    %453 = vector.load %arg14[%c1_358, %c3_359, %c0_360, %c0_361] : memref<3x4x16x64xf32, #tpu.memory_space<vmem>>, vector<1x1x16x64xf32>
    %454 = vector.shape_cast %453 : vector<1x1x16x64xf32> to vector<16x64xf32>
    %cst_362 = arith.constant dense<0.000000e+00> : vector<17x64xf32>
    %455 = tpu.matmul %452, %454, %cst_362 {dimension_numbers = #tpu.dot_dimension_numbers<[1], [0], [0], [1], [0, 0, 1, 1], [], []>} : vector<17x16xf32>, vector<16x64xf32>, vector<17x64xf32> -> vector<17x64xf32>
    %456 = arith.addf %416, %455 : vector<17x64xf32>
    %cst_363 = arith.constant 2.500000e-01 : f32
    %457 = vector.broadcast %cst_363 : f32 to vector<17x17xf32>
    %458 = arith.mulf %451, %457 : vector<17x17xf32>
    %c0_364 = arith.constant 0 : index
    %c0_365 = arith.constant 0 : index
    %c0_366 = arith.constant 0 : index
    %459 = vector.load %arg26[%c0_364, %c0_365, %c0_366] : memref<1x17x17xf32, #tpu.memory_space<vmem>>, vector<1x17x17xf32>
    %460 = vector.shape_cast %459 : vector<1x17x17xf32> to vector<17x17xf32>
    %461 = vector.shape_cast %458 : vector<17x17xf32> to vector<1x17x17xf32>
    tpu.vector_store %arg26[%c0_364, %c0_365, %c0_366], %461 {strides = array<i32>} : memref<1x17x17xf32, #tpu.memory_space<vmem>>, vector<1x17x17xf32>,
    %462 = arith.addf %267, %456 : vector<17x64xf32>
    %c1_367 = arith.constant 1 : index
    %c0_368 = arith.constant 0 : index
    %c0_369 = arith.constant 0 : index
    %463 = vector.load %arg15[%c1_367, %c0_368, %c0_369] : memref<3x1x64xf32, #tpu.memory_space<vmem>>, vector<1x1x64xf32>
    %464 = vector.shape_cast %463 : vector<1x1x64xf32> to vector<1x64xf32>
    %465 = vector.broadcast %464 : vector<1x64xf32> to vector<17x64xf32>
    %466 = arith.addf %462, %465 : vector<17x64xf32>
    %c1_370 = arith.constant 1 : index
    %c0_371 = arith.constant 0 : index
    %c0_372 = arith.constant 0 : index
    %467 = vector.load %arg16[%c1_370, %c0_371, %c0_372] : memref<3x1x64xf32, #tpu.memory_space<vmem>>, vector<1x1x64xf32>
    %468 = vector.shape_cast %467 : vector<1x1x64xf32> to vector<1x64xf32>
    %c1_373 = arith.constant 1 : index
    %c0_374 = arith.constant 0 : index
    %c0_375 = arith.constant 0 : index
    %469 = vector.load %arg17[%c1_373, %c0_374, %c0_375] : memref<3x1x64xf32, #tpu.memory_space<vmem>>, vector<1x1x64xf32>
    %470 = vector.shape_cast %469 : vector<1x1x64xf32> to vector<1x64xf32>
    %cst_376 = arith.constant dense<0.000000e+00> : vector<17xf32>
    %471 = vector.multi_reduction <add>, %466, %cst_376 [1] : vector<17x64xf32> to vector<17xf32>
    %472 = vector.shape_cast %471 : vector<17xf32> to vector<17x1xf32>
    %cst_377 = arith.constant 6.400000e+01 : f32
    %473 = vector.broadcast %cst_377 : f32 to vector<17x1xf32>
    %474 = arith.divf %472, %473 : vector<17x1xf32>
    %475 = vector.broadcast %474 : vector<17x1xf32> to vector<17x64xf32>
    %476 = arith.subf %466, %475 : vector<17x64xf32>
    %477 = arith.mulf %476, %476 : vector<17x64xf32>
    %cst_378 = arith.constant dense<0.000000e+00> : vector<17xf32>
    %478 = vector.multi_reduction <add>, %477, %cst_378 [1] : vector<17x64xf32> to vector<17xf32>
    %479 = vector.shape_cast %478 : vector<17xf32> to vector<17x1xf32>
    %cst_379 = arith.constant 6.400000e+01 : f32
    %480 = vector.broadcast %cst_379 : f32 to vector<17x1xf32>
    %481 = arith.divf %479, %480 : vector<17x1xf32>
    %482 = vector.broadcast %474 : vector<17x1xf32> to vector<17x64xf32>
    %483 = arith.subf %466, %482 : vector<17x64xf32>
    %cst_380 = arith.constant 9.99999974E-6 : f32
    %484 = vector.broadcast %cst_380 : f32 to vector<17x1xf32>
    %485 = arith.addf %481, %484 : vector<17x1xf32>
    %486 = math.rsqrt %485 : vector<17x1xf32>
    %487 = vector.broadcast %486 : vector<17x1xf32> to vector<17x64xf32>
    %488 = arith.mulf %483, %487 : vector<17x64xf32>
    %489 = vector.broadcast %468 : vector<1x64xf32> to vector<17x64xf32>
    %490 = arith.mulf %488, %489 : vector<17x64xf32>
    %491 = vector.broadcast %470 : vector<1x64xf32> to vector<17x64xf32>
    %492 = arith.addf %490, %491 : vector<17x64xf32>
    %c1_381 = arith.constant 1 : index
    %c0_382 = arith.constant 0 : index
    %c0_383 = arith.constant 0 : index
    %493 = vector.load %arg18[%c1_381, %c0_382, %c0_383] : memref<3x64x256xf32, #tpu.memory_space<vmem>>, vector<1x64x256xf32>
    %494 = vector.shape_cast %493 : vector<1x64x256xf32> to vector<64x256xf32>
    %cst_384 = arith.constant dense<0.000000e+00> : vector<17x256xf32>
    %495 = tpu.matmul %492, %494, %cst_384 {dimension_numbers = #tpu.dot_dimension_numbers<[1], [0], [0], [1], [0, 0, 1, 1], [], []>} : vector<17x64xf32>, vector<64x256xf32>, vector<17x256xf32> -> vector<17x256xf32>
    %c1_385 = arith.constant 1 : index
    %c0_386 = arith.constant 0 : index
    %c0_387 = arith.constant 0 : index
    %496 = vector.load %arg19[%c1_385, %c0_386, %c0_387] : memref<3x1x256xf32, #tpu.memory_space<vmem>>, vector<1x1x256xf32>
    %497 = vector.shape_cast %496 : vector<1x1x256xf32> to vector<1x256xf32>
    %498 = vector.broadcast %497 : vector<1x256xf32> to vector<17x256xf32>
    %499 = arith.addf %495, %498 : vector<17x256xf32>
    %cst_388 = arith.constant 1.702000e+00 : f32
    %500 = vector.broadcast %cst_388 : f32 to vector<17x256xf32>
    %501 = arith.mulf %500, %499 : vector<17x256xf32>
    %502 = arith.negf %501 : vector<17x256xf32>
    %503 = math.exp %502 : vector<17x256xf32>
    %cst_389 = arith.constant 1.000000e+00 : f32
    %504 = vector.broadcast %cst_389 : f32 to vector<17x256xf32>
    %505 = arith.addf %504, %503 : vector<17x256xf32>
    %506 = arith.divf %504, %505 : vector<17x256xf32>
    %507 = arith.mulf %499, %506 : vector<17x256xf32>
    %c1_390 = arith.constant 1 : index
    %c0_391 = arith.constant 0 : index
    %c0_392 = arith.constant 0 : index
    %508 = vector.load %arg20[%c1_390, %c0_391, %c0_392] : memref<3x256x64xf32, #tpu.memory_space<vmem>>, vector<1x256x64xf32>
    %509 = vector.shape_cast %508 : vector<1x256x64xf32> to vector<256x64xf32>
    %cst_393 = arith.constant dense<0.000000e+00> : vector<17x64xf32>
    %510 = tpu.matmul %507, %509, %cst_393 {dimension_numbers = #tpu.dot_dimension_numbers<[1], [0], [0], [1], [0, 0, 1, 1], [], []>} : vector<17x256xf32>, vector<256x64xf32>, vector<17x64xf32> -> vector<17x64xf32>
    %511 = arith.addf %466, %510 : vector<17x64xf32>
    %c1_394 = arith.constant 1 : index
    %c0_395 = arith.constant 0 : index
    %c0_396 = arith.constant 0 : index
    %512 = vector.load %arg21[%c1_394, %c0_395, %c0_396] : memref<3x1x64xf32, #tpu.memory_space<vmem>>, vector<1x1x64xf32>
    %513 = vector.shape_cast %512 : vector<1x1x64xf32> to vector<1x64xf32>
    %514 = vector.broadcast %513 : vector<1x64xf32> to vector<17x64xf32>
    %515 = arith.addf %511, %514 : vector<17x64xf32>
    %c2_397 = arith.constant 2 : index
    %c0_398 = arith.constant 0 : index
    %c0_399 = arith.constant 0 : index
    %516 = vector.load %arg6[%c2_397, %c0_398, %c0_399] : memref<3x1x64xf32, #tpu.memory_space<vmem>>, vector<1x1x64xf32>
    %517 = vector.shape_cast %516 : vector<1x1x64xf32> to vector<1x64xf32>
    %c2_400 = arith.constant 2 : index
    %c0_401 = arith.constant 0 : index
    %c0_402 = arith.constant 0 : index
    %518 = vector.load %arg7[%c2_400, %c0_401, %c0_402] : memref<3x1x64xf32, #tpu.memory_space<vmem>>, vector<1x1x64xf32>
    %519 = vector.shape_cast %518 : vector<1x1x64xf32> to vector<1x64xf32>
    %cst_403 = arith.constant dense<0.000000e+00> : vector<17xf32>
    %520 = vector.multi_reduction <add>, %515, %cst_403 [1] : vector<17x64xf32> to vector<17xf32>
    %521 = vector.shape_cast %520 : vector<17xf32> to vector<17x1xf32>
    %cst_404 = arith.constant 6.400000e+01 : f32
    %522 = vector.broadcast %cst_404 : f32 to vector<17x1xf32>
    %523 = arith.divf %521, %522 : vector<17x1xf32>
    %524 = vector.broadcast %523 : vector<17x1xf32> to vector<17x64xf32>
    %525 = arith.subf %515, %524 : vector<17x64xf32>
    %526 = arith.mulf %525, %525 : vector<17x64xf32>
    %cst_405 = arith.constant dense<0.000000e+00> : vector<17xf32>
    %527 = vector.multi_reduction <add>, %526, %cst_405 [1] : vector<17x64xf32> to vector<17xf32>
    %528 = vector.shape_cast %527 : vector<17xf32> to vector<17x1xf32>
    %cst_406 = arith.constant 6.400000e+01 : f32
    %529 = vector.broadcast %cst_406 : f32 to vector<17x1xf32>
    %530 = arith.divf %528, %529 : vector<17x1xf32>
    %531 = vector.broadcast %523 : vector<17x1xf32> to vector<17x64xf32>
    %532 = arith.subf %515, %531 : vector<17x64xf32>
    %cst_407 = arith.constant 9.99999974E-6 : f32
    %533 = vector.broadcast %cst_407 : f32 to vector<17x1xf32>
    %534 = arith.addf %530, %533 : vector<17x1xf32>
    %535 = math.rsqrt %534 : vector<17x1xf32>
    %536 = vector.broadcast %535 : vector<17x1xf32> to vector<17x64xf32>
    %537 = arith.mulf %532, %536 : vector<17x64xf32>
    %538 = vector.broadcast %517 : vector<1x64xf32> to vector<17x64xf32>
    %539 = arith.mulf %537, %538 : vector<17x64xf32>
    %540 = vector.broadcast %519 : vector<1x64xf32> to vector<17x64xf32>
    %541 = arith.addf %539, %540 : vector<17x64xf32>
    %542 = tpu.transpose %541, [1, 0] : vector<17x64xf32> -> vector<64x17xf32>
    %cst_408 = arith.constant 0.000000e+00 : f32
    %543 = vector.broadcast %cst_408 : f32 to vector<17x64xf32>
    %c2_409 = arith.constant 2 : index
    %c0_410 = arith.constant 0 : index
    %c0_411 = arith.constant 0 : index
    %c0_412 = arith.constant 0 : index
    %544 = vector.load %arg8[%c2_409, %c0_410, %c0_411, %c0_412] : memref<3x4x64x16xf32, #tpu.memory_space<vmem>>, vector<1x1x64x16xf32>
    %545 = vector.shape_cast %544 : vector<1x1x64x16xf32> to vector<64x16xf32>
    %cst_413 = arith.constant dense<0.000000e+00> : vector<17x16xf32>
    %546 = tpu.matmul %541, %545, %cst_413 {dimension_numbers = #tpu.dot_dimension_numbers<[1], [0], [0], [1], [0, 0, 1, 1], [], []>} : vector<17x64xf32>, vector<64x16xf32>, vector<17x16xf32> -> vector<17x16xf32>
    %c2_414 = arith.constant 2 : index
    %c0_415 = arith.constant 0 : index
    %c0_416 = arith.constant 0 : index
    %c0_417 = arith.constant 0 : index
    %547 = vector.load %arg9[%c2_414, %c0_415, %c0_416, %c0_417] : memref<3x4x1x16xf32, #tpu.memory_space<vmem>>, vector<1x1x1x16xf32>
    %548 = vector.shape_cast %547 : vector<1x1x1x16xf32> to vector<1x16xf32>
    %549 = vector.broadcast %548 : vector<1x16xf32> to vector<17x16xf32>
    %550 = arith.addf %546, %549 : vector<17x16xf32>
    %c2_418 = arith.constant 2 : index
    %c0_419 = arith.constant 0 : index
    %c0_420 = arith.constant 0 : index
    %c0_421 = arith.constant 0 : index
    %551 = vector.load %arg10[%c2_418, %c0_419, %c0_420, %c0_421] : memref<3x4x16x64xf32, #tpu.memory_space<vmem>>, vector<1x1x16x64xf32>
    %552 = vector.shape_cast %551 : vector<1x1x16x64xf32> to vector<16x64xf32>
    %cst_422 = arith.constant dense<0.000000e+00> : vector<16x17xf32>
    %553 = tpu.matmul %552, %542, %cst_422 {dimension_numbers = #tpu.dot_dimension_numbers<[1], [0], [0], [1], [0, 0, 1, 1], [], []>} : vector<16x64xf32>, vector<64x17xf32>, vector<16x17xf32> -> vector<16x17xf32>
    %c2_423 = arith.constant 2 : index
    %c0_424 = arith.constant 0 : index
    %c0_425 = arith.constant 0 : index
    %c0_426 = arith.constant 0 : index
    %554 = vector.load %arg11[%c2_423, %c0_424, %c0_425, %c0_426] : memref<3x4x16x1xf32, #tpu.memory_space<vmem>>, vector<1x1x16x1xf32>
    %555 = vector.shape_cast %554 : vector<1x1x16x1xf32> to vector<16x1xf32>
    %556 = vector.broadcast %555 : vector<16x1xf32> to vector<16x17xf32>
    %557 = arith.addf %553, %556 : vector<16x17xf32>
    %c2_427 = arith.constant 2 : index
    %c0_428 = arith.constant 0 : index
    %c0_429 = arith.constant 0 : index
    %c0_430 = arith.constant 0 : index
    %558 = vector.load %arg12[%c2_427, %c0_428, %c0_429, %c0_430] : memref<3x4x64x16xf32, #tpu.memory_space<vmem>>, vector<1x1x64x16xf32>
    %559 = vector.shape_cast %558 : vector<1x1x64x16xf32> to vector<64x16xf32>
    %cst_431 = arith.constant dense<0.000000e+00> : vector<17x16xf32>
    %560 = tpu.matmul %541, %559, %cst_431 {dimension_numbers = #tpu.dot_dimension_numbers<[1], [0], [0], [1], [0, 0, 1, 1], [], []>} : vector<17x64xf32>, vector<64x16xf32>, vector<17x16xf32> -> vector<17x16xf32>
    %c2_432 = arith.constant 2 : index
    %c0_433 = arith.constant 0 : index
    %c0_434 = arith.constant 0 : index
    %c0_435 = arith.constant 0 : index
    %561 = vector.load %arg13[%c2_432, %c0_433, %c0_434, %c0_435] : memref<3x4x1x16xf32, #tpu.memory_space<vmem>>, vector<1x1x1x16xf32>
    %562 = vector.shape_cast %561 : vector<1x1x1x16xf32> to vector<1x16xf32>
    %563 = vector.broadcast %562 : vector<1x16xf32> to vector<17x16xf32>
    %564 = arith.addf %560, %563 : vector<17x16xf32>
    %cst_436 = arith.constant dense<0.000000e+00> : vector<17x17xf32>
    %565 = tpu.matmul %550, %557, %cst_436 {dimension_numbers = #tpu.dot_dimension_numbers<[1], [0], [0], [1], [0, 0, 1, 1], [], []>} : vector<17x16xf32>, vector<16x17xf32>, vector<17x17xf32> -> vector<17x17xf32>
    %cst_437 = arith.constant 2.500000e-01 : f32
    %566 = vector.broadcast %cst_437 : f32 to vector<17x17xf32>
    %567 = arith.mulf %565, %566 : vector<17x17xf32>
    %cst_438 = arith.constant dense<0xFF800000> : vector<17xf32>
    %568 = vector.multi_reduction <maximumf>, %567, %cst_438 [1] : vector<17x17xf32> to vector<17xf32>
    %569 = vector.shape_cast %568 : vector<17xf32> to vector<17x1xf32>
    %570 = vector.broadcast %569 : vector<17x1xf32> to vector<17x17xf32>
    %571 = arith.subf %567, %570 : vector<17x17xf32>
    %572 = math.exp %571 : vector<17x17xf32>
    %cst_439 = arith.constant dense<0.000000e+00> : vector<17xf32>
    %573 = vector.multi_reduction <add>, %572, %cst_439 [1] : vector<17x17xf32> to vector<17xf32>
    %574 = vector.shape_cast %573 : vector<17xf32> to vector<17x1xf32>
    %575 = tpu.reciprocal %574 {approx = true} : vector<17x1xf32> -> vector<17x1xf32>
    %576 = vector.broadcast %575 : vector<17x1xf32> to vector<17x17xf32>
    %577 = arith.mulf %572, %576 : vector<17x17xf32>
    %cst_440 = arith.constant dense<0.000000e+00> : vector<17x16xf32>
    %578 = tpu.matmul %577, %564, %cst_440 {dimension_numbers = #tpu.dot_dimension_numbers<[1], [0], [0], [1], [0, 0, 1, 1], [], []>} : vector<17x17xf32>, vector<17x16xf32>, vector<17x16xf32> -> vector<17x16xf32>
    %c2_441 = arith.constant 2 : index
    %c0_442 = arith.constant 0 : index
    %c0_443 = arith.constant 0 : index
    %c0_444 = arith.constant 0 : index
    %579 = vector.load %arg14[%c2_441, %c0_442, %c0_443, %c0_444] : memref<3x4x16x64xf32, #tpu.memory_space<vmem>>, vector<1x1x16x64xf32>
    %580 = vector.shape_cast %579 : vector<1x1x16x64xf32> to vector<16x64xf32>
    %cst_445 = arith.constant dense<0.000000e+00> : vector<17x64xf32>
    %581 = tpu.matmul %578, %580, %cst_445 {dimension_numbers = #tpu.dot_dimension_numbers<[1], [0], [0], [1], [0, 0, 1, 1], [], []>} : vector<17x16xf32>, vector<16x64xf32>, vector<17x64xf32> -> vector<17x64xf32>
    %582 = arith.addf %543, %581 : vector<17x64xf32>
    %c2_446 = arith.constant 2 : index
    %c1_447 = arith.constant 1 : index
    %c0_448 = arith.constant 0 : index
    %c0_449 = arith.constant 0 : index
    %583 = vector.load %arg8[%c2_446, %c1_447, %c0_448, %c0_449] : memref<3x4x64x16xf32, #tpu.memory_space<vmem>>, vector<1x1x64x16xf32>
    %584 = vector.shape_cast %583 : vector<1x1x64x16xf32> to vector<64x16xf32>
    %cst_450 = arith.constant dense<0.000000e+00> : vector<17x16xf32>
    %585 = tpu.matmul %541, %584, %cst_450 {dimension_numbers = #tpu.dot_dimension_numbers<[1], [0], [0], [1], [0, 0, 1, 1], [], []>} : vector<17x64xf32>, vector<64x16xf32>, vector<17x16xf32> -> vector<17x16xf32>
    %c2_451 = arith.constant 2 : index
    %c1_452 = arith.constant 1 : index
    %c0_453 = arith.constant 0 : index
    %c0_454 = arith.constant 0 : index
    %586 = vector.load %arg9[%c2_451, %c1_452, %c0_453, %c0_454] : memref<3x4x1x16xf32, #tpu.memory_space<vmem>>, vector<1x1x1x16xf32>
    %587 = vector.shape_cast %586 : vector<1x1x1x16xf32> to vector<1x16xf32>
    %588 = vector.broadcast %587 : vector<1x16xf32> to vector<17x16xf32>
    %589 = arith.addf %585, %588 : vector<17x16xf32>
    %c2_455 = arith.constant 2 : index
    %c1_456 = arith.constant 1 : index
    %c0_457 = arith.constant 0 : index
    %c0_458 = arith.constant 0 : index
    %590 = vector.load %arg10[%c2_455, %c1_456, %c0_457, %c0_458] : memref<3x4x16x64xf32, #tpu.memory_space<vmem>>, vector<1x1x16x64xf32>
    %591 = vector.shape_cast %590 : vector<1x1x16x64xf32> to vector<16x64xf32>
    %cst_459 = arith.constant dense<0.000000e+00> : vector<16x17xf32>
    %592 = tpu.matmul %591, %542, %cst_459 {dimension_numbers = #tpu.dot_dimension_numbers<[1], [0], [0], [1], [0, 0, 1, 1], [], []>} : vector<16x64xf32>, vector<64x17xf32>, vector<16x17xf32> -> vector<16x17xf32>
    %c2_460 = arith.constant 2 : index
    %c1_461 = arith.constant 1 : index
    %c0_462 = arith.constant 0 : index
    %c0_463 = arith.constant 0 : index
    %593 = vector.load %arg11[%c2_460, %c1_461, %c0_462, %c0_463] : memref<3x4x16x1xf32, #tpu.memory_space<vmem>>, vector<1x1x16x1xf32>
    %594 = vector.shape_cast %593 : vector<1x1x16x1xf32> to vector<16x1xf32>
    %595 = vector.broadcast %594 : vector<16x1xf32> to vector<16x17xf32>
    %596 = arith.addf %592, %595 : vector<16x17xf32>
    %c2_464 = arith.constant 2 : index
    %c1_465 = arith.constant 1 : index
    %c0_466 = arith.constant 0 : index
    %c0_467 = arith.constant 0 : index
    %597 = vector.load %arg12[%c2_464, %c1_465, %c0_466, %c0_467] : memref<3x4x64x16xf32, #tpu.memory_space<vmem>>, vector<1x1x64x16xf32>
    %598 = vector.shape_cast %597 : vector<1x1x64x16xf32> to vector<64x16xf32>
    %cst_468 = arith.constant dense<0.000000e+00> : vector<17x16xf32>
    %599 = tpu.matmul %541, %598, %cst_468 {dimension_numbers = #tpu.dot_dimension_numbers<[1], [0], [0], [1], [0, 0, 1, 1], [], []>} : vector<17x64xf32>, vector<64x16xf32>, vector<17x16xf32> -> vector<17x16xf32>
    %c2_469 = arith.constant 2 : index
    %c1_470 = arith.constant 1 : index
    %c0_471 = arith.constant 0 : index
    %c0_472 = arith.constant 0 : index
    %600 = vector.load %arg13[%c2_469, %c1_470, %c0_471, %c0_472] : memref<3x4x1x16xf32, #tpu.memory_space<vmem>>, vector<1x1x1x16xf32>
    %601 = vector.shape_cast %600 : vector<1x1x1x16xf32> to vector<1x16xf32>
    %602 = vector.broadcast %601 : vector<1x16xf32> to vector<17x16xf32>
    %603 = arith.addf %599, %602 : vector<17x16xf32>
    %cst_473 = arith.constant dense<0.000000e+00> : vector<17x17xf32>
    %604 = tpu.matmul %589, %596, %cst_473 {dimension_numbers = #tpu.dot_dimension_numbers<[1], [0], [0], [1], [0, 0, 1, 1], [], []>} : vector<17x16xf32>, vector<16x17xf32>, vector<17x17xf32> -> vector<17x17xf32>
    %cst_474 = arith.constant 2.500000e-01 : f32
    %605 = vector.broadcast %cst_474 : f32 to vector<17x17xf32>
    %606 = arith.mulf %604, %605 : vector<17x17xf32>
    %cst_475 = arith.constant dense<0xFF800000> : vector<17xf32>
    %607 = vector.multi_reduction <maximumf>, %606, %cst_475 [1] : vector<17x17xf32> to vector<17xf32>
    %608 = vector.shape_cast %607 : vector<17xf32> to vector<17x1xf32>
    %609 = vector.broadcast %608 : vector<17x1xf32> to vector<17x17xf32>
    %610 = arith.subf %606, %609 : vector<17x17xf32>
    %611 = math.exp %610 : vector<17x17xf32>
    %cst_476 = arith.constant dense<0.000000e+00> : vector<17xf32>
    %612 = vector.multi_reduction <add>, %611, %cst_476 [1] : vector<17x17xf32> to vector<17xf32>
    %613 = vector.shape_cast %612 : vector<17xf32> to vector<17x1xf32>
    %614 = tpu.reciprocal %613 {approx = true} : vector<17x1xf32> -> vector<17x1xf32>
    %615 = vector.broadcast %614 : vector<17x1xf32> to vector<17x17xf32>
    %616 = arith.mulf %611, %615 : vector<17x17xf32>
    %cst_477 = arith.constant dense<0.000000e+00> : vector<17x16xf32>
    %617 = tpu.matmul %616, %603, %cst_477 {dimension_numbers = #tpu.dot_dimension_numbers<[1], [0], [0], [1], [0, 0, 1, 1], [], []>} : vector<17x17xf32>, vector<17x16xf32>, vector<17x16xf32> -> vector<17x16xf32>
    %c2_478 = arith.constant 2 : index
    %c1_479 = arith.constant 1 : index
    %c0_480 = arith.constant 0 : index
    %c0_481 = arith.constant 0 : index
    %618 = vector.load %arg14[%c2_478, %c1_479, %c0_480, %c0_481] : memref<3x4x16x64xf32, #tpu.memory_space<vmem>>, vector<1x1x16x64xf32>
    %619 = vector.shape_cast %618 : vector<1x1x16x64xf32> to vector<16x64xf32>
    %cst_482 = arith.constant dense<0.000000e+00> : vector<17x64xf32>
    %620 = tpu.matmul %617, %619, %cst_482 {dimension_numbers = #tpu.dot_dimension_numbers<[1], [0], [0], [1], [0, 0, 1, 1], [], []>} : vector<17x16xf32>, vector<16x64xf32>, vector<17x64xf32> -> vector<17x64xf32>
    %621 = arith.addf %582, %620 : vector<17x64xf32>
    %c2_483 = arith.constant 2 : index
    %c2_484 = arith.constant 2 : index
    %c0_485 = arith.constant 0 : index
    %c0_486 = arith.constant 0 : index
    %622 = vector.load %arg8[%c2_483, %c2_484, %c0_485, %c0_486] : memref<3x4x64x16xf32, #tpu.memory_space<vmem>>, vector<1x1x64x16xf32>
    %623 = vector.shape_cast %622 : vector<1x1x64x16xf32> to vector<64x16xf32>
    %cst_487 = arith.constant dense<0.000000e+00> : vector<17x16xf32>
    %624 = tpu.matmul %541, %623, %cst_487 {dimension_numbers = #tpu.dot_dimension_numbers<[1], [0], [0], [1], [0, 0, 1, 1], [], []>} : vector<17x64xf32>, vector<64x16xf32>, vector<17x16xf32> -> vector<17x16xf32>
    %c2_488 = arith.constant 2 : index
    %c2_489 = arith.constant 2 : index
    %c0_490 = arith.constant 0 : index
    %c0_491 = arith.constant 0 : index
    %625 = vector.load %arg9[%c2_488, %c2_489, %c0_490, %c0_491] : memref<3x4x1x16xf32, #tpu.memory_space<vmem>>, vector<1x1x1x16xf32>
    %626 = vector.shape_cast %625 : vector<1x1x1x16xf32> to vector<1x16xf32>
    %627 = vector.broadcast %626 : vector<1x16xf32> to vector<17x16xf32>
    %628 = arith.addf %624, %627 : vector<17x16xf32>
    %c2_492 = arith.constant 2 : index
    %c2_493 = arith.constant 2 : index
    %c0_494 = arith.constant 0 : index
    %c0_495 = arith.constant 0 : index
    %629 = vector.load %arg10[%c2_492, %c2_493, %c0_494, %c0_495] : memref<3x4x16x64xf32, #tpu.memory_space<vmem>>, vector<1x1x16x64xf32>
    %630 = vector.shape_cast %629 : vector<1x1x16x64xf32> to vector<16x64xf32>
    %cst_496 = arith.constant dense<0.000000e+00> : vector<16x17xf32>
    %631 = tpu.matmul %630, %542, %cst_496 {dimension_numbers = #tpu.dot_dimension_numbers<[1], [0], [0], [1], [0, 0, 1, 1], [], []>} : vector<16x64xf32>, vector<64x17xf32>, vector<16x17xf32> -> vector<16x17xf32>
    %c2_497 = arith.constant 2 : index
    %c2_498 = arith.constant 2 : index
    %c0_499 = arith.constant 0 : index
    %c0_500 = arith.constant 0 : index
    %632 = vector.load %arg11[%c2_497, %c2_498, %c0_499, %c0_500] : memref<3x4x16x1xf32, #tpu.memory_space<vmem>>, vector<1x1x16x1xf32>
    %633 = vector.shape_cast %632 : vector<1x1x16x1xf32> to vector<16x1xf32>
    %634 = vector.broadcast %633 : vector<16x1xf32> to vector<16x17xf32>
    %635 = arith.addf %631, %634 : vector<16x17xf32>
    %c2_501 = arith.constant 2 : index
    %c2_502 = arith.constant 2 : index
    %c0_503 = arith.constant 0 : index
    %c0_504 = arith.constant 0 : index
    %636 = vector.load %arg12[%c2_501, %c2_502, %c0_503, %c0_504] : memref<3x4x64x16xf32, #tpu.memory_space<vmem>>, vector<1x1x64x16xf32>
    %637 = vector.shape_cast %636 : vector<1x1x64x16xf32> to vector<64x16xf32>
    %cst_505 = arith.constant dense<0.000000e+00> : vector<17x16xf32>
    %638 = tpu.matmul %541, %637, %cst_505 {dimension_numbers = #tpu.dot_dimension_numbers<[1], [0], [0], [1], [0, 0, 1, 1], [], []>} : vector<17x64xf32>, vector<64x16xf32>, vector<17x16xf32> -> vector<17x16xf32>
    %c2_506 = arith.constant 2 : index
    %c2_507 = arith.constant 2 : index
    %c0_508 = arith.constant 0 : index
    %c0_509 = arith.constant 0 : index
    %639 = vector.load %arg13[%c2_506, %c2_507, %c0_508, %c0_509] : memref<3x4x1x16xf32, #tpu.memory_space<vmem>>, vector<1x1x1x16xf32>
    %640 = vector.shape_cast %639 : vector<1x1x1x16xf32> to vector<1x16xf32>
    %641 = vector.broadcast %640 : vector<1x16xf32> to vector<17x16xf32>
    %642 = arith.addf %638, %641 : vector<17x16xf32>
    %cst_510 = arith.constant dense<0.000000e+00> : vector<17x17xf32>
    %643 = tpu.matmul %628, %635, %cst_510 {dimension_numbers = #tpu.dot_dimension_numbers<[1], [0], [0], [1], [0, 0, 1, 1], [], []>} : vector<17x16xf32>, vector<16x17xf32>, vector<17x17xf32> -> vector<17x17xf32>
    %cst_511 = arith.constant 2.500000e-01 : f32
    %644 = vector.broadcast %cst_511 : f32 to vector<17x17xf32>
    %645 = arith.mulf %643, %644 : vector<17x17xf32>
    %cst_512 = arith.constant dense<0xFF800000> : vector<17xf32>
    %646 = vector.multi_reduction <maximumf>, %645, %cst_512 [1] : vector<17x17xf32> to vector<17xf32>
    %647 = vector.shape_cast %646 : vector<17xf32> to vector<17x1xf32>
    %648 = vector.broadcast %647 : vector<17x1xf32> to vector<17x17xf32>
    %649 = arith.subf %645, %648 : vector<17x17xf32>
    %650 = math.exp %649 : vector<17x17xf32>
    %cst_513 = arith.constant dense<0.000000e+00> : vector<17xf32>
    %651 = vector.multi_reduction <add>, %650, %cst_513 [1] : vector<17x17xf32> to vector<17xf32>
    %652 = vector.shape_cast %651 : vector<17xf32> to vector<17x1xf32>
    %653 = tpu.reciprocal %652 {approx = true} : vector<17x1xf32> -> vector<17x1xf32>
    %654 = vector.broadcast %653 : vector<17x1xf32> to vector<17x17xf32>
    %655 = arith.mulf %650, %654 : vector<17x17xf32>
    %cst_514 = arith.constant dense<0.000000e+00> : vector<17x16xf32>
    %656 = tpu.matmul %655, %642, %cst_514 {dimension_numbers = #tpu.dot_dimension_numbers<[1], [0], [0], [1], [0, 0, 1, 1], [], []>} : vector<17x17xf32>, vector<17x16xf32>, vector<17x16xf32> -> vector<17x16xf32>
    %c2_515 = arith.constant 2 : index
    %c2_516 = arith.constant 2 : index
    %c0_517 = arith.constant 0 : index
    %c0_518 = arith.constant 0 : index
    %657 = vector.load %arg14[%c2_515, %c2_516, %c0_517, %c0_518] : memref<3x4x16x64xf32, #tpu.memory_space<vmem>>, vector<1x1x16x64xf32>
    %658 = vector.shape_cast %657 : vector<1x1x16x64xf32> to vector<16x64xf32>
    %cst_519 = arith.constant dense<0.000000e+00> : vector<17x64xf32>
    %659 = tpu.matmul %656, %658, %cst_519 {dimension_numbers = #tpu.dot_dimension_numbers<[1], [0], [0], [1], [0, 0, 1, 1], [], []>} : vector<17x16xf32>, vector<16x64xf32>, vector<17x64xf32> -> vector<17x64xf32>
    %660 = arith.addf %621, %659 : vector<17x64xf32>
    %c2_520 = arith.constant 2 : index
    %c3_521 = arith.constant 3 : index
    %c0_522 = arith.constant 0 : index
    %c0_523 = arith.constant 0 : index
    %661 = vector.load %arg8[%c2_520, %c3_521, %c0_522, %c0_523] : memref<3x4x64x16xf32, #tpu.memory_space<vmem>>, vector<1x1x64x16xf32>
    %662 = vector.shape_cast %661 : vector<1x1x64x16xf32> to vector<64x16xf32>
    %cst_524 = arith.constant dense<0.000000e+00> : vector<17x16xf32>
    %663 = tpu.matmul %541, %662, %cst_524 {dimension_numbers = #tpu.dot_dimension_numbers<[1], [0], [0], [1], [0, 0, 1, 1], [], []>} : vector<17x64xf32>, vector<64x16xf32>, vector<17x16xf32> -> vector<17x16xf32>
    %c2_525 = arith.constant 2 : index
    %c3_526 = arith.constant 3 : index
    %c0_527 = arith.constant 0 : index
    %c0_528 = arith.constant 0 : index
    %664 = vector.load %arg9[%c2_525, %c3_526, %c0_527, %c0_528] : memref<3x4x1x16xf32, #tpu.memory_space<vmem>>, vector<1x1x1x16xf32>
    %665 = vector.shape_cast %664 : vector<1x1x1x16xf32> to vector<1x16xf32>
    %666 = vector.broadcast %665 : vector<1x16xf32> to vector<17x16xf32>
    %667 = arith.addf %663, %666 : vector<17x16xf32>
    %c2_529 = arith.constant 2 : index
    %c3_530 = arith.constant 3 : index
    %c0_531 = arith.constant 0 : index
    %c0_532 = arith.constant 0 : index
    %668 = vector.load %arg10[%c2_529, %c3_530, %c0_531, %c0_532] : memref<3x4x16x64xf32, #tpu.memory_space<vmem>>, vector<1x1x16x64xf32>
    %669 = vector.shape_cast %668 : vector<1x1x16x64xf32> to vector<16x64xf32>
    %cst_533 = arith.constant dense<0.000000e+00> : vector<16x17xf32>
    %670 = tpu.matmul %669, %542, %cst_533 {dimension_numbers = #tpu.dot_dimension_numbers<[1], [0], [0], [1], [0, 0, 1, 1], [], []>} : vector<16x64xf32>, vector<64x17xf32>, vector<16x17xf32> -> vector<16x17xf32>
    %c2_534 = arith.constant 2 : index
    %c3_535 = arith.constant 3 : index
    %c0_536 = arith.constant 0 : index
    %c0_537 = arith.constant 0 : index
    %671 = vector.load %arg11[%c2_534, %c3_535, %c0_536, %c0_537] : memref<3x4x16x1xf32, #tpu.memory_space<vmem>>, vector<1x1x16x1xf32>
    %672 = vector.shape_cast %671 : vector<1x1x16x1xf32> to vector<16x1xf32>
    %673 = vector.broadcast %672 : vector<16x1xf32> to vector<16x17xf32>
    %674 = arith.addf %670, %673 : vector<16x17xf32>
    %c2_538 = arith.constant 2 : index
    %c3_539 = arith.constant 3 : index
    %c0_540 = arith.constant 0 : index
    %c0_541 = arith.constant 0 : index
    %675 = vector.load %arg12[%c2_538, %c3_539, %c0_540, %c0_541] : memref<3x4x64x16xf32, #tpu.memory_space<vmem>>, vector<1x1x64x16xf32>
    %676 = vector.shape_cast %675 : vector<1x1x64x16xf32> to vector<64x16xf32>
    %cst_542 = arith.constant dense<0.000000e+00> : vector<17x16xf32>
    %677 = tpu.matmul %541, %676, %cst_542 {dimension_numbers = #tpu.dot_dimension_numbers<[1], [0], [0], [1], [0, 0, 1, 1], [], []>} : vector<17x64xf32>, vector<64x16xf32>, vector<17x16xf32> -> vector<17x16xf32>
    %c2_543 = arith.constant 2 : index
    %c3_544 = arith.constant 3 : index
    %c0_545 = arith.constant 0 : index
    %c0_546 = arith.constant 0 : index
    %678 = vector.load %arg13[%c2_543, %c3_544, %c0_545, %c0_546] : memref<3x4x1x16xf32, #tpu.memory_space<vmem>>, vector<1x1x1x16xf32>
    %679 = vector.shape_cast %678 : vector<1x1x1x16xf32> to vector<1x16xf32>
    %680 = vector.broadcast %679 : vector<1x16xf32> to vector<17x16xf32>
    %681 = arith.addf %677, %680 : vector<17x16xf32>
    %cst_547 = arith.constant dense<0.000000e+00> : vector<17x17xf32>
    %682 = tpu.matmul %667, %674, %cst_547 {dimension_numbers = #tpu.dot_dimension_numbers<[1], [0], [0], [1], [0, 0, 1, 1], [], []>} : vector<17x16xf32>, vector<16x17xf32>, vector<17x17xf32> -> vector<17x17xf32>
    %cst_548 = arith.constant 2.500000e-01 : f32
    %683 = vector.broadcast %cst_548 : f32 to vector<17x17xf32>
    %684 = arith.mulf %682, %683 : vector<17x17xf32>
    %cst_549 = arith.constant dense<0xFF800000> : vector<17xf32>
    %685 = vector.multi_reduction <maximumf>, %684, %cst_549 [1] : vector<17x17xf32> to vector<17xf32>
    %686 = vector.shape_cast %685 : vector<17xf32> to vector<17x1xf32>
    %687 = vector.broadcast %686 : vector<17x1xf32> to vector<17x17xf32>
    %688 = arith.subf %684, %687 : vector<17x17xf32>
    %689 = math.exp %688 : vector<17x17xf32>
    %cst_550 = arith.constant dense<0.000000e+00> : vector<17xf32>
    %690 = vector.multi_reduction <add>, %689, %cst_550 [1] : vector<17x17xf32> to vector<17xf32>
    %691 = vector.shape_cast %690 : vector<17xf32> to vector<17x1xf32>
    %692 = tpu.reciprocal %691 {approx = true} : vector<17x1xf32> -> vector<17x1xf32>
    %693 = vector.broadcast %692 : vector<17x1xf32> to vector<17x17xf32>
    %694 = arith.mulf %689, %693 : vector<17x17xf32>
    %cst_551 = arith.constant dense<0.000000e+00> : vector<17x16xf32>
    %695 = tpu.matmul %694, %681, %cst_551 {dimension_numbers = #tpu.dot_dimension_numbers<[1], [0], [0], [1], [0, 0, 1, 1], [], []>} : vector<17x17xf32>, vector<17x16xf32>, vector<17x16xf32> -> vector<17x16xf32>
    %c2_552 = arith.constant 2 : index
    %c3_553 = arith.constant 3 : index
    %c0_554 = arith.constant 0 : index
    %c0_555 = arith.constant 0 : index
    %696 = vector.load %arg14[%c2_552, %c3_553, %c0_554, %c0_555] : memref<3x4x16x64xf32, #tpu.memory_space<vmem>>, vector<1x1x16x64xf32>
    %697 = vector.shape_cast %696 : vector<1x1x16x64xf32> to vector<16x64xf32>
    %cst_556 = arith.constant dense<0.000000e+00> : vector<17x64xf32>
    %698 = tpu.matmul %695, %697, %cst_556 {dimension_numbers = #tpu.dot_dimension_numbers<[1], [0], [0], [1], [0, 0, 1, 1], [], []>} : vector<17x16xf32>, vector<16x64xf32>, vector<17x64xf32> -> vector<17x64xf32>
    %699 = arith.addf %660, %698 : vector<17x64xf32>
    %700 = arith.addf %515, %699 : vector<17x64xf32>
    %c2_557 = arith.constant 2 : index
    %c0_558 = arith.constant 0 : index
    %c0_559 = arith.constant 0 : index
    %701 = vector.load %arg15[%c2_557, %c0_558, %c0_559] : memref<3x1x64xf32, #tpu.memory_space<vmem>>, vector<1x1x64xf32>
    %702 = vector.shape_cast %701 : vector<1x1x64xf32> to vector<1x64xf32>
    %703 = vector.broadcast %702 : vector<1x64xf32> to vector<17x64xf32>
    %704 = arith.addf %700, %703 : vector<17x64xf32>
    %c2_560 = arith.constant 2 : index
    %c0_561 = arith.constant 0 : index
    %c0_562 = arith.constant 0 : index
    %705 = vector.load %arg16[%c2_560, %c0_561, %c0_562] : memref<3x1x64xf32, #tpu.memory_space<vmem>>, vector<1x1x64xf32>
    %706 = vector.shape_cast %705 : vector<1x1x64xf32> to vector<1x64xf32>
    %c2_563 = arith.constant 2 : index
    %c0_564 = arith.constant 0 : index
    %c0_565 = arith.constant 0 : index
    %707 = vector.load %arg17[%c2_563, %c0_564, %c0_565] : memref<3x1x64xf32, #tpu.memory_space<vmem>>, vector<1x1x64xf32>
    %708 = vector.shape_cast %707 : vector<1x1x64xf32> to vector<1x64xf32>
    %cst_566 = arith.constant dense<0.000000e+00> : vector<17xf32>
    %709 = vector.multi_reduction <add>, %704, %cst_566 [1] : vector<17x64xf32> to vector<17xf32>
    %710 = vector.shape_cast %709 : vector<17xf32> to vector<17x1xf32>
    %cst_567 = arith.constant 6.400000e+01 : f32
    %711 = vector.broadcast %cst_567 : f32 to vector<17x1xf32>
    %712 = arith.divf %710, %711 : vector<17x1xf32>
    %713 = vector.broadcast %712 : vector<17x1xf32> to vector<17x64xf32>
    %714 = arith.subf %704, %713 : vector<17x64xf32>
    %715 = arith.mulf %714, %714 : vector<17x64xf32>
    %cst_568 = arith.constant dense<0.000000e+00> : vector<17xf32>
    %716 = vector.multi_reduction <add>, %715, %cst_568 [1] : vector<17x64xf32> to vector<17xf32>
    %717 = vector.shape_cast %716 : vector<17xf32> to vector<17x1xf32>
    %cst_569 = arith.constant 6.400000e+01 : f32
    %718 = vector.broadcast %cst_569 : f32 to vector<17x1xf32>
    %719 = arith.divf %717, %718 : vector<17x1xf32>
    %720 = vector.broadcast %712 : vector<17x1xf32> to vector<17x64xf32>
    %721 = arith.subf %704, %720 : vector<17x64xf32>
    %cst_570 = arith.constant 9.99999974E-6 : f32
    %722 = vector.broadcast %cst_570 : f32 to vector<17x1xf32>
    %723 = arith.addf %719, %722 : vector<17x1xf32>
    %724 = math.rsqrt %723 : vector<17x1xf32>
    %725 = vector.broadcast %724 : vector<17x1xf32> to vector<17x64xf32>
    %726 = arith.mulf %721, %725 : vector<17x64xf32>
    %727 = vector.broadcast %706 : vector<1x64xf32> to vector<17x64xf32>
    %728 = arith.mulf %726, %727 : vector<17x64xf32>
    %729 = vector.broadcast %708 : vector<1x64xf32> to vector<17x64xf32>
    %730 = arith.addf %728, %729 : vector<17x64xf32>
    %c2_571 = arith.constant 2 : index
    %c0_572 = arith.constant 0 : index
    %c0_573 = arith.constant 0 : index
    %731 = vector.load %arg18[%c2_571, %c0_572, %c0_573] : memref<3x64x256xf32, #tpu.memory_space<vmem>>, vector<1x64x256xf32>
    %732 = vector.shape_cast %731 : vector<1x64x256xf32> to vector<64x256xf32>
    %cst_574 = arith.constant dense<0.000000e+00> : vector<17x256xf32>
    %733 = tpu.matmul %730, %732, %cst_574 {dimension_numbers = #tpu.dot_dimension_numbers<[1], [0], [0], [1], [0, 0, 1, 1], [], []>} : vector<17x64xf32>, vector<64x256xf32>, vector<17x256xf32> -> vector<17x256xf32>
    %c2_575 = arith.constant 2 : index
    %c0_576 = arith.constant 0 : index
    %c0_577 = arith.constant 0 : index
    %734 = vector.load %arg19[%c2_575, %c0_576, %c0_577] : memref<3x1x256xf32, #tpu.memory_space<vmem>>, vector<1x1x256xf32>
    %735 = vector.shape_cast %734 : vector<1x1x256xf32> to vector<1x256xf32>
    %736 = vector.broadcast %735 : vector<1x256xf32> to vector<17x256xf32>
    %737 = arith.addf %733, %736 : vector<17x256xf32>
    %cst_578 = arith.constant 1.702000e+00 : f32
    %738 = vector.broadcast %cst_578 : f32 to vector<17x256xf32>
    %739 = arith.mulf %738, %737 : vector<17x256xf32>
    %740 = arith.negf %739 : vector<17x256xf32>
    %741 = math.exp %740 : vector<17x256xf32>
    %cst_579 = arith.constant 1.000000e+00 : f32
    %742 = vector.broadcast %cst_579 : f32 to vector<17x256xf32>
    %743 = arith.addf %742, %741 : vector<17x256xf32>
    %744 = arith.divf %742, %743 : vector<17x256xf32>
    %745 = arith.mulf %737, %744 : vector<17x256xf32>
    %c2_580 = arith.constant 2 : index
    %c0_581 = arith.constant 0 : index
    %c0_582 = arith.constant 0 : index
    %746 = vector.load %arg20[%c2_580, %c0_581, %c0_582] : memref<3x256x64xf32, #tpu.memory_space<vmem>>, vector<1x256x64xf32>
    %747 = vector.shape_cast %746 : vector<1x256x64xf32> to vector<256x64xf32>
    %cst_583 = arith.constant dense<0.000000e+00> : vector<17x64xf32>
    %748 = tpu.matmul %745, %747, %cst_583 {dimension_numbers = #tpu.dot_dimension_numbers<[1], [0], [0], [1], [0, 0, 1, 1], [], []>} : vector<17x256xf32>, vector<256x64xf32>, vector<17x64xf32> -> vector<17x64xf32>
    %749 = arith.addf %704, %748 : vector<17x64xf32>
    %c2_584 = arith.constant 2 : index
    %c0_585 = arith.constant 0 : index
    %c0_586 = arith.constant 0 : index
    %750 = vector.load %arg21[%c2_584, %c0_585, %c0_586] : memref<3x1x64xf32, #tpu.memory_space<vmem>>, vector<1x1x64xf32>
    %751 = vector.shape_cast %750 : vector<1x1x64xf32> to vector<1x64xf32>
    %752 = vector.broadcast %751 : vector<1x64xf32> to vector<17x64xf32>
    %753 = arith.addf %749, %752 : vector<17x64xf32>
    %c0_587 = arith.constant 0 : index
    %c0_588 = arith.constant 0 : index
    %754 = vector.load %arg22[%c0_587, %c0_588] : memref<1x64xf32, #tpu.memory_space<vmem>>, vector<1x64xf32>
    %c0_589 = arith.constant 0 : index
    %c0_590 = arith.constant 0 : index
    %755 = vector.load %arg23[%c0_589, %c0_590] : memref<1x64xf32, #tpu.memory_space<vmem>>, vector<1x64xf32>
    %cst_591 = arith.constant dense<0.000000e+00> : vector<17xf32>
    %756 = vector.multi_reduction <add>, %753, %cst_591 [1] : vector<17x64xf32> to vector<17xf32>
    %757 = vector.shape_cast %756 : vector<17xf32> to vector<17x1xf32>
    %cst_592 = arith.constant 6.400000e+01 : f32
    %758 = vector.broadcast %cst_592 : f32 to vector<17x1xf32>
    %759 = arith.divf %757, %758 : vector<17x1xf32>
    %760 = vector.broadcast %759 : vector<17x1xf32> to vector<17x64xf32>
    %761 = arith.subf %753, %760 : vector<17x64xf32>
    %762 = arith.mulf %761, %761 : vector<17x64xf32>
    %cst_593 = arith.constant dense<0.000000e+00> : vector<17xf32>
    %763 = vector.multi_reduction <add>, %762, %cst_593 [1] : vector<17x64xf32> to vector<17xf32>
    %764 = vector.shape_cast %763 : vector<17xf32> to vector<17x1xf32>
    %cst_594 = arith.constant 6.400000e+01 : f32
    %765 = vector.broadcast %cst_594 : f32 to vector<17x1xf32>
    %766 = arith.divf %764, %765 : vector<17x1xf32>
    %767 = vector.broadcast %759 : vector<17x1xf32> to vector<17x64xf32>
    %768 = arith.subf %753, %767 : vector<17x64xf32>
    %cst_595 = arith.constant 9.99999974E-6 : f32
    %769 = vector.broadcast %cst_595 : f32 to vector<17x1xf32>
    %770 = arith.addf %766, %769 : vector<17x1xf32>
    %771 = math.rsqrt %770 : vector<17x1xf32>
    %772 = vector.broadcast %771 : vector<17x1xf32> to vector<17x64xf32>
    %773 = arith.mulf %768, %772 : vector<17x64xf32>
    %774 = vector.broadcast %754 : vector<1x64xf32> to vector<17x64xf32>
    %775 = arith.mulf %773, %774 : vector<17x64xf32>
    %776 = vector.broadcast %755 : vector<1x64xf32> to vector<17x64xf32>
    %777 = arith.addf %775, %776 : vector<17x64xf32>
    %c0_596 = arith.constant 0 : index
    %c0_597 = arith.constant 0 : index
    %778 = vector.load %arg24[%c0_596, %c0_597] : memref<64x32xf32, #tpu.memory_space<vmem>>, vector<64x32xf32>
    %cst_598 = arith.constant dense<0.000000e+00> : vector<17x32xf32>
    %779 = tpu.matmul %777, %778, %cst_598 {dimension_numbers = #tpu.dot_dimension_numbers<[1], [0], [0], [1], [0, 0, 1, 1], [], []>} : vector<17x64xf32>, vector<64x32xf32>, vector<17x32xf32> -> vector<17x32xf32>
    %c0_599 = arith.constant 0 : index
    %c0_600 = arith.constant 0 : index
    %c0_601 = arith.constant 0 : index
    %780 = vector.load %arg25[%c0_599, %c0_600, %c0_601] : memref<1x17x32xf32, #tpu.memory_space<vmem>>, vector<1x17x32xf32>
    %781 = vector.shape_cast %780 : vector<1x17x32xf32> to vector<17x32xf32>
    %782 = vector.shape_cast %779 : vector<17x32xf32> to vector<1x17x32xf32>
    tpu.vector_store %arg25[%c0_599, %c0_600, %c0_601], %782 {strides = array<i32>} : memref<1x17x32xf32, #tpu.memory_space<vmem>>, vector<1x17x32xf32>,
    return
  }
  func.func @transform_0(%arg0: i32) -> (i32, i32, i32) {
    %c0_i32 = arith.constant 0 : i32
    %c0_i32_0 = arith.constant 0 : i32
    %c0_i32_1 = arith.constant 0 : i32
    return %arg0, %c0_i32, %c0_i32_0 : i32, i32, i32
  }
  func.func @transform_1(%arg0: i32) -> (i32, i32) {
    %c0_i32 = arith.constant 0 : i32
    %c0_i32_0 = arith.constant 0 : i32
    %c0_i32_1 = arith.constant 0 : i32
    return %c0_i32, %c0_i32_0 : i32, i32
  }
  func.func @transform_2(%arg0: i32) -> (i32, i32) {
    %c0_i32 = arith.constant 0 : i32
    %c0_i32_0 = arith.constant 0 : i32
    %c0_i32_1 = arith.constant 0 : i32
    return %c0_i32, %c0_i32_0 : i32, i32
  }
  func.func @transform_3(%arg0: i32) -> (i32, i32) {
    %c0_i32 = arith.constant 0 : i32
    %c0_i32_0 = arith.constant 0 : i32
    %c0_i32_1 = arith.constant 0 : i32
    return %c0_i32, %c0_i32_0 : i32, i32
  }
  func.func @transform_4(%arg0: i32) -> (i32, i32) {
    %c0_i32 = arith.constant 0 : i32
    %c0_i32_0 = arith.constant 0 : i32
    %c0_i32_1 = arith.constant 0 : i32
    return %c0_i32, %c0_i32_0 : i32, i32
  }
  func.func @transform_5(%arg0: i32) -> (i32, i32, i32) {
    %c0_i32 = arith.constant 0 : i32
    %c0_i32_0 = arith.constant 0 : i32
    %c0_i32_1 = arith.constant 0 : i32
    %c0_i32_2 = arith.constant 0 : i32
    return %c0_i32, %c0_i32_0, %c0_i32_1 : i32, i32, i32
  }
  func.func @transform_6(%arg0: i32) -> (i32, i32, i32) {
    %c0_i32 = arith.constant 0 : i32
    %c0_i32_0 = arith.constant 0 : i32
    %c0_i32_1 = arith.constant 0 : i32
    %c0_i32_2 = arith.constant 0 : i32
    return %c0_i32, %c0_i32_0, %c0_i32_1 : i32, i32, i32
  }
  func.func @transform_7(%arg0: i32) -> (i32, i32, i32, i32) {
    %c0_i32 = arith.constant 0 : i32
    %c0_i32_0 = arith.constant 0 : i32
    %c0_i32_1 = arith.constant 0 : i32
    %c0_i32_2 = arith.constant 0 : i32
    %c0_i32_3 = arith.constant 0 : i32
    return %c0_i32, %c0_i32_0, %c0_i32_1, %c0_i32_2 : i32, i32, i32, i32
  }
  func.func @transform_8(%arg0: i32) -> (i32, i32, i32, i32) {
    %c0_i32 = arith.constant 0 : i32
    %c0_i32_0 = arith.constant 0 : i32
    %c0_i32_1 = arith.constant 0 : i32
    %c0_i32_2 = arith.constant 0 : i32
    %c0_i32_3 = arith.constant 0 : i32
    return %c0_i32, %c0_i32_0, %c0_i32_1, %c0_i32_2 : i32, i32, i32, i32
  }
  func.func @transform_9(%arg0: i32) -> (i32, i32, i32, i32) {
    %c0_i32 = arith.constant 0 : i32
    %c0_i32_0 = arith.constant 0 : i32
    %c0_i32_1 = arith.constant 0 : i32
    %c0_i32_2 = arith.constant 0 : i32
    %c0_i32_3 = arith.constant 0 : i32
    return %c0_i32, %c0_i32_0, %c0_i32_1, %c0_i32_2 : i32, i32, i32, i32
  }
  func.func @transform_10(%arg0: i32) -> (i32, i32, i32, i32) {
    %c0_i32 = arith.constant 0 : i32
    %c0_i32_0 = arith.constant 0 : i32
    %c0_i32_1 = arith.constant 0 : i32
    %c0_i32_2 = arith.constant 0 : i32
    %c0_i32_3 = arith.constant 0 : i32
    return %c0_i32, %c0_i32_0, %c0_i32_1, %c0_i32_2 : i32, i32, i32, i32
  }
  func.func @transform_11(%arg0: i32) -> (i32, i32, i32, i32) {
    %c0_i32 = arith.constant 0 : i32
    %c0_i32_0 = arith.constant 0 : i32
    %c0_i32_1 = arith.constant 0 : i32
    %c0_i32_2 = arith.constant 0 : i32
    %c0_i32_3 = arith.constant 0 : i32
    return %c0_i32, %c0_i32_0, %c0_i32_1, %c0_i32_2 : i32, i32, i32, i32
  }
  func.func @transform_12(%arg0: i32) -> (i32, i32, i32, i32) {
    %c0_i32 = arith.constant 0 : i32
    %c0_i32_0 = arith.constant 0 : i32
    %c0_i32_1 = arith.constant 0 : i32
    %c0_i32_2 = arith.constant 0 : i32
    %c0_i32_3 = arith.constant 0 : i32
    return %c0_i32, %c0_i32_0, %c0_i32_1, %c0_i32_2 : i32, i32, i32, i32
  }
  func.func @transform_13(%arg0: i32) -> (i32, i32, i32, i32) {
    %c0_i32 = arith.constant 0 : i32
    %c0_i32_0 = arith.constant 0 : i32
    %c0_i32_1 = arith.constant 0 : i32
    %c0_i32_2 = arith.constant 0 : i32
    %c0_i32_3 = arith.constant 0 : i32
    return %c0_i32, %c0_i32_0, %c0_i32_1, %c0_i32_2 : i32, i32, i32, i32
  }
  func.func @transform_14(%arg0: i32) -> (i32, i32, i32) {
    %c0_i32 = arith.constant 0 : i32
    %c0_i32_0 = arith.constant 0 : i32
    %c0_i32_1 = arith.constant 0 : i32
    %c0_i32_2 = arith.constant 0 : i32
    return %c0_i32, %c0_i32_0, %c0_i32_1 : i32, i32, i32
  }
  func.func @transform_15(%arg0: i32) -> (i32, i32, i32) {
    %c0_i32 = arith.constant 0 : i32
    %c0_i32_0 = arith.constant 0 : i32
    %c0_i32_1 = arith.constant 0 : i32
    %c0_i32_2 = arith.constant 0 : i32
    return %c0_i32, %c0_i32_0, %c0_i32_1 : i32, i32, i32
  }
  func.func @transform_16(%arg0: i32) -> (i32, i32, i32) {
    %c0_i32 = arith.constant 0 : i32
    %c0_i32_0 = arith.constant 0 : i32
    %c0_i32_1 = arith.constant 0 : i32
    %c0_i32_2 = arith.constant 0 : i32
    return %c0_i32, %c0_i32_0, %c0_i32_1 : i32, i32, i32
  }
  func.func @transform_17(%arg0: i32) -> (i32, i32, i32) {
    %c0_i32 = arith.constant 0 : i32
    %c0_i32_0 = arith.constant 0 : i32
    %c0_i32_1 = arith.constant 0 : i32
    %c0_i32_2 = arith.constant 0 : i32
    return %c0_i32, %c0_i32_0, %c0_i32_1 : i32, i32, i32
  }
  func.func @transform_18(%arg0: i32) -> (i32, i32, i32) {
    %c0_i32 = arith.constant 0 : i32
    %c0_i32_0 = arith.constant 0 : i32
    %c0_i32_1 = arith.constant 0 : i32
    %c0_i32_2 = arith.constant 0 : i32
    return %c0_i32, %c0_i32_0, %c0_i32_1 : i32, i32, i32
  }
  func.func @transform_19(%arg0: i32) -> (i32, i32, i32) {
    %c0_i32 = arith.constant 0 : i32
    %c0_i32_0 = arith.constant 0 : i32
    %c0_i32_1 = arith.constant 0 : i32
    %c0_i32_2 = arith.constant 0 : i32
    return %c0_i32, %c0_i32_0, %c0_i32_1 : i32, i32, i32
  }
  func.func @transform_20(%arg0: i32) -> (i32, i32, i32) {
    %c0_i32 = arith.constant 0 : i32
    %c0_i32_0 = arith.constant 0 : i32
    %c0_i32_1 = arith.constant 0 : i32
    %c0_i32_2 = arith.constant 0 : i32
    return %c0_i32, %c0_i32_0, %c0_i32_1 : i32, i32, i32
  }
  func.func @transform_21(%arg0: i32) -> (i32, i32) {
    %c0_i32 = arith.constant 0 : i32
    %c0_i32_0 = arith.constant 0 : i32
    %c0_i32_1 = arith.constant 0 : i32
    return %c0_i32, %c0_i32_0 : i32, i32
  }
  func.func @transform_22(%arg0: i32) -> (i32, i32) {
    %c0_i32 = arith.constant 0 : i32
    %c0_i32_0 = arith.constant 0 : i32
    %c0_i32_1 = arith.constant 0 : i32
    return %c0_i32, %c0_i32_0 : i32, i32
  }
  func.func @transform_23(%arg0: i32) -> (i32, i32) {
    %c0_i32 = arith.constant 0 : i32
    %c0_i32_0 = arith.constant 0 : i32
    %c0_i32_1 = arith.constant 0 : i32
    return %c0_i32, %c0_i32_0 : i32, i32
  }
  func.func @transform_24(%arg0: i32) -> (i32, i32, i32) {
    %c0_i32 = arith.constant 0 : i32
    %c0_i32_0 = arith.constant 0 : i32
    %c0_i32_1 = arith.constant 0 : i32
    return %arg0, %c0_i32, %c0_i32_0 : i32, i32, i32
  }
  func.func @transform_25(%arg0: i32) -> (i32, i32, i32) {
    %c0_i32 = arith.constant 0 : i32
    %c0_i32_0 = arith.constant 0 : i32
    %c0_i32_1 = arith.constant 0 : i32
    return %arg0, %c0_i32, %c0_i32_0 : i32, i32, i32
  }
}

module attributes {stable_mosaic.version = 11 : i64} {
  func.func @_tail_kernel(%arg0: memref<17x17xf32, #tpu.memory_space<vmem>>, %arg1: memref<17x32xf32, #tpu.memory_space<vmem>>, %arg2: memref<8x32xf32, #tpu.memory_space<vmem>>, %arg3: memref<16x16xf32, #tpu.memory_space<vmem>>, %arg4: memref<8x16xf32, #tpu.memory_space<vmem>>) attributes {dimension_semantics = [], scalar_prefetch = 0 : i64, scratch_operands = 0 : i64, tpu.core_type = #tpu.core_type<tc>} {
    %c0 = arith.constant 0 : index
    %c0_0 = arith.constant 0 : index
    %0 = vector.load %arg0[%c0, %c0_0] : memref<17x17xf32, #tpu.memory_space<vmem>>, vector<17x17xf32>
    %1 = vector.extract_strided_slice %0 {offsets = [0, 1], sizes = [1, 16], strides = [1, 1]} : vector<17x17xf32> to vector<1x16xf32>
    %2 = vector.extract_strided_slice %0 {offsets = [1, 1], sizes = [16, 16], strides = [1, 1]} : vector<17x17xf32> to vector<16x16xf32>
    %3 = vector.broadcast %1 : vector<1x16xf32> to vector<16x16xf32>
    %4 = arith.subf %2, %3 : vector<16x16xf32>
    %cst = arith.constant 0.000000e+00 : f32
    %5 = vector.broadcast %cst : f32 to vector<16x16xf32>
    %6 = arith.maximumf %4, %5 : vector<16x16xf32>
    %c0_1 = arith.constant 0 : index
    %c0_2 = arith.constant 0 : index
    %7 = vector.load %arg3[%c0_1, %c0_2] : memref<16x16xf32, #tpu.memory_space<vmem>>, vector<16x16xf32>
    tpu.vector_store %arg3[%c0_1, %c0_2], %6 {strides = array<i32>} : memref<16x16xf32, #tpu.memory_space<vmem>>, vector<16x16xf32>,
    %c0_3 = arith.constant 0 : index
    %c0_4 = arith.constant 0 : index
    %8 = vector.load %arg2[%c0_3, %c0_4] : memref<8x32xf32, #tpu.memory_space<vmem>>, vector<8x32xf32>
    %c0_5 = arith.constant 0 : index
    %c0_6 = arith.constant 0 : index
    %9 = vector.load %arg1[%c0_5, %c0_6] : memref<17x32xf32, #tpu.memory_space<vmem>>, vector<17x32xf32>
    %cst_7 = arith.constant dense<0.000000e+00> : vector<8x17xf32>
    %10 = tpu.matmul %8, %9, %cst_7 {dimension_numbers = #tpu.dot_dimension_numbers<[1], [1], [0], [0], [0, 0, 1, 0], [], []>} : vector<8x32xf32>, vector<17x32xf32>, vector<8x17xf32> -> vector<8x17xf32>
    %11 = vector.extract_strided_slice %10 {offsets = [0, 1], sizes = [8, 16], strides = [1, 1]} : vector<8x17xf32> to vector<8x16xf32>
    %12 = vector.extract_strided_slice %10 {offsets = [0, 0], sizes = [8, 1], strides = [1, 1]} : vector<8x17xf32> to vector<8x1xf32>
    %13 = vector.broadcast %12 : vector<8x1xf32> to vector<8x16xf32>
    %14 = arith.mulf %11, %13 : vector<8x16xf32>
    %c0_8 = arith.constant 0 : index
    %c0_9 = arith.constant 0 : index
    %15 = vector.load %arg4[%c0_8, %c0_9] : memref<8x16xf32, #tpu.memory_space<vmem>>, vector<8x16xf32>
    tpu.vector_store %arg4[%c0_8, %c0_9], %14 {strides = array<i32>} : memref<8x16xf32, #tpu.memory_space<vmem>>, vector<8x16xf32>,
    return
  }
}

</mosaic_0001>

<bundles_post_ra>
// kernel: neg.4
= control target key start
LH: loop header
LB: loop body
LE: loop exit
PB: predicated region body
PF: predicated region fallthrough
CT: control target
= control target key end

     0   :  { %s24_s0 = inlined_call_operand.vmem [shape: f32[64], index: 0, kind: input, shape index: {}]   ;;  %s25_s1 = inlined_call_operand.vmem [shape: f32[64], index: 1, kind: output, shape index: {}]  }
   0x1   :  { %v2_v0 = vld [vmem:[%s24_s0] sm:$0x1] }
   0x2   :  { %v5_v1 = vxor.u32 2147483648, %v2_v0 }
   0x4   :  { %7 = vst [vmem:[%s25_s1] sm:$0x1] %v5_v1 }

// kernel: cliptrase_forward.3
= control target key start
LH: loop header
LB: loop body
LE: loop exit
PB: predicated region body
PF: predicated region fallthrough
CT: control target
= control target key end

     0   :  { %vm52_vm0 = vcmask 261120   ;;  %v213_v1 = vmov 0.0   ;;  %s278_s0 = inlined_call_operand.vmem [shape: f32[17,17], index: 0, kind: input, shape index: {}]   ;;  %s279_s1 = inlined_call_operand.vmem [shape: f32[17,32], index: 1, kind: input, shape index: {}]   ;;  %s280_s2 = inlined_call_operand.vmem [shape: f32[8,32], index: 2, kind: input, shape index: {}]   ;;  %s281_s3 = inlined_call_operand.hbm [shape: f32[16,16], index: 3, kind: output, shape index: {0}]   ;;  %s282_s4 = inlined_call_operand.vmem [shape: f32[8,16], index: 4, kind: output, shape index: {1}]  }
   0x1   :  { %v51_v0 = vld [vmem:[%s279_s1 + $0x10] sm:$0x1]  ;;  %174 = vmatprep.subr.mxu0 %v213_v1 }
   0x2   :  { %10 = vsyncpa [#allocation3], 0  ;;  %175 = vmatpush3.xpose.msk.msra.mxu0 %vm52_vm0, %v51_v0  ;;  %vm214_vm1 = vmmov 0   ;;  %v50_v2 = vld [vmem:[%s279_s1 + $0x8] sm:$0xff]  ;;  %v215_v3 = vmov 0   ;;  %v49_v4 = vld [vmem:[%s279_s1] sm:$0xff]  ;;  %v20_v6 = vlaneseq }
   0x3   :  { %180 = vmatprep.mubr.msk.f32.mxu0 %vm214_vm1, %v213_v1  ;;  %176 = vmatprep.subr.mxu0 %v213_v1  ;;  %v48_v5 = vld [vmem:[%s280_s2] sm:$0xff]  ;;  %v18_v10 = vld [vmem:[%s278_s0 + $0x8] sm:$0xff]  ;;  %s216_s1 = smov 127   ;;  %v19_v14 = vld [vmem:[%s278_s0 + $0x10] sm:$0x1]  ;;  %vm44_vm2 = vcmask 130048  }
   0x4   :  { %190 = vset.pattern.permute.xlu0 %v215_v3  ;;  %v21_v7 = vshrl.u32 %v20_v6, 7  ;;  %v17_v8 = vld [vmem:[%s278_s0] sm:$0xff]  ;;  %vm46_vm3 = vcmask 122880   ;;  %s217_s28 = smov [#allocation2]   ;;  %vm42_vm4 = vcmask 130049  }
   0x5   :  { %s151_s29 = sshll.u32 %s217_s28, 4  ;;  %s152_s29 = int_to_ptr.vmem [resolvable:$true] %s151_s29 }
   0x6   :  { %177 = vmatpush3.xpose.msk.msra.mxu0 %vm52_vm0, %v50_v2  ;;  %v22_v9 = vsub.s32 0, %v21_v7  ;;  %s191_s0 = scalar_lea.vmem %s152_s29, 256  ;;  %p196_p1 = scmp.lt.s32.totalorder %s152_s29, %s152_s29 }
   0x7   :  { %178 = vmatprep.subr.mxu0 %v213_v1  ;;  %p192_p0 = scmp.ne.s32.totalorder %s152_s29, %s191_s0  ;;  %p197_p2 = scmp.lt.s32.totalorder %s191_s0, %s191_s0 }
   0x8   :  { %v23_v11 = vrot.slane %v17_v8, %v22_v9 }
   0x9   :  { %p198_p3 = por %p197_p2, %p196_p1 }
   0xa   :  { %179 = vmatpush3.xpose.msk.msra.mxu0 %vm52_vm0, %v49_v4  ;;  %v25_v12 = vsub.f32 %v18_v10, %v23_v11  ;;  %v26_v15 = vsub.f32 %v19_v14, %v23_v11  ;;  %v24_v17 = vsub.f32 %v17_v8, %v23_v11 }
   0xb   :  { %p199_p4 = pnand %p198_p3, %p192_p0 }
   0xc   :  { %v28_v13 = vmax.f32 %v25_v12, 0.0  ;;  %v29_v16 = vmax.f32 %v26_v15, 0.0  ;;  %v27_v20 = vmax.f32 %v24_v17, 0.0 }
   0xd   :  { %181 = vmatmul.mubr.msk.f32.vlgmr.msra.gmra.mxu0 %vm52_vm0, %v48_v5 }
   0xe   :  { %35 = vrot.lane.b32.xlu1 %v28_v13, %s216_s1 }
  0x12   :  { %37 = vrot.lane.b32.xlu1 %v29_v16, %s216_s1 }
  0x80   :  { %v36_v19 = vpop.permute.xlu1 %35 }
  0x81   :  { %45 = vst.msk [vmem:[#allocation2 + $0x7] sm:$0xff] %vm44_vm2, %v36_v19 }
  0x84   :  { %v38_v22 = vpop.permute.xlu1 %37 }
  0x85   :  { %47 = vst.msk [vmem:[#allocation2 + $0xf] sm:$0x1] %vm46_vm3, %v38_v22 }
  0xcd   :  { %v131_v18 = vpop.f32.mrf.mxu0 }
  0xce   :  { %137 = vperm.xlu0 %190, %v131_v18  }
  0xcf   :  { %v182_v21 = vpop.f32.mrf.mxu0 }
  0xd2   :  { %33 = vrot.lane.b32.xlu0 %v27_v20, %s216_s1 }
 0x149   :  { %v138_v23 = vpop.permute.xlu0 %137 }
 0x14a   :  { %v140_v24 = vmul.f32 %v138_v23, %v131_v18 }
 0x14c   :  { %142 = vrot.lane.b32.xlu0 %v140_v24, %s216_s1 }
 0x14d   :  { %v34_v25 = vpop.permute.xlu0 %33 }
 0x14e   :  { %43 = vst.msk [vmem:[#allocation2 - $0x1] sm:$0xfe] %vm42_vm4, %v34_v25 }
 0x14f   :  { %202 = shalt.err (!%p199_p4)
}
 0x150   :  { %s218_s30 = smov 128   ;;  %s219_s5 = smov 8  }
 0x151   :  { %157 = dma.vmem_to_hbm [thread:$0]  %s152_s29, 256, %s281_s3, [#allocation3], %s218_s30, %s218_s30, %s219_s5  }
 0x1be   :  { %v143_v26 = vpop.permute.xlu0 %142 }
 0x1bf   :  { %145 = vst.msk [vmem:[%s282_s4] sm:$0xff] %vm44_vm2, %v143_v26 }
 0x1c0   :  { %211 = dma.done.wait [#allocation3], 256  }
 0x1c1   :  { %212 = vsyncadd [#allocation3], 4294967040 }
 0x1c2   :  { %165 = vsyncpa [#allocation3], 1 }

// kernel: cliptrase_forward.2
= control target key start
LH: loop header
LB: loop body
LE: loop exit
PB: predicated region body
PF: predicated region fallthrough
CT: control target
= control target key end

     0   :  { %s14561_s29 = smov 0   ;;  %s18875_s0 = inlined_call_operand.vmem [shape: f32[2,17,3072], index: 0, kind: input, shape index: {}]   ;;  %s18876_s1 = inlined_call_operand.vmem [shape: f32[3072,64], index: 1, kind: input, shape index: {}]   ;;  %s18877_s2 = inlined_call_operand.vmem [shape: f32[17,64], index: 2, kind: input, shape index: {}]   ;;  %s18878_s3 = inlined_call_operand.vmem [shape: f32[1,64], index: 3, kind: input, shape index: {}]   ;;  %s18879_s4 = inlined_call_operand.vmem [shape: f32[1,64], index: 4, kind: input, shape index: {}]   ;;  %s18880_s5 = inlined_call_operand.vmem [shape: f32[3,1,64], index: 5, kind: input, shape index: {}]   ;;  %s18881_s6 = inlined_call_operand.vmem [shape: f32[3,1,64], index: 6, kind: input, shape index: {}]   ;;  %s18882_s7 = inlined_call_operand.vmem [shape: f32[3,4,64,16], index: 7, kind: input, shape index: {}]   ;;  %s18883_s8 = inlined_call_operand.vmem [shape: f32[3,4,1,16], index: 8, kind: input, shape index: {}]   ;;  %s18884_s9 = inlined_call_operand.vmem [shape: f32[3,4,16,64], index: 9, kind: input, shape index: {}]   ;;  %s18885_s10 = inlined_call_operand.vmem [shape: f32[3,4,16,1], index: 10, kind: input, shape index: {}]   ;;  %s18886_s11 = inlined_call_operand.vmem [shape: f32[3,4,64,16], index: 11, kind: input, shape index: {}]   ;;  %s18887_s12 = inlined_call_operand.vmem [shape: f32[3,4,1,16], index: 12, kind: input, shape index: {}]   ;;  %s18888_s13 = inlined_call_operand.vmem [shape: f32[3,4,16,64], index: 13, kind: input, shape index: {}]   ;;  %s18889_s14 = inlined_call_operand.vmem [shape: f32[3,1,64], index: 14, kind: input, shape index: {}]   ;;  %s18890_s15 = inlined_call_operand.vmem [shape: f32[3,1,64], index: 15, kind: input, shape index: {}]   ;;  %s18891_s16 = inlined_call_operand.vmem [shape: f32[3,1,64], index: 16, kind: input, shape index: {}]   ;;  %s18892_s17 = inlined_call_operand.vmem [shape: f32[3,64,256], index: 17, kind: input, shape index: {}]   ;;  %s18893_s18 = inlined_call_operand.vmem [shape: f32[3,1,256], index: 18, kind: input, shape index: {}]   ;;  %s18894_s19 = inlined_call_operand.vmem [shape: f32[3,256,64], index: 19, kind: input, shape index: {}]   ;;  %s18895_s20 = inlined_call_operand.vmem [shape: f32[3,1,64], index: 20, kind: input, shape index: {}]   ;;  %s18896_s21 = inlined_call_operand.vmem [shape: f32[1,64], index: 21, kind: input, shape index: {}]   ;;  %s18897_s22 = inlined_call_operand.vmem [shape: f32[1,64], index: 22, kind: input, shape index: {}]   ;;  %s18898_s23 = inlined_call_operand.vmem [shape: f32[64,32], index: 23, kind: input, shape index: {}]   ;;  %s18899_s24 = inlined_call_operand.vmem [shape: f32[2,17,32], index: 24, kind: output, shape index: {0}]   ;;  %s18900_s25 = inlined_call_operand.vmem [shape: f32[2,17,17], index: 25, kind: output, shape index: {1}]  }
   0x1   :  { %18912 = sst [smem:[#allocation5_spill]] %s18875_s0 }
   0x2   :  { %18913 = sst [smem:[#allocation6_spill]] %s18876_s1 }
   0x3   :  { %18914 = sst [smem:[#allocation7_spill]] %s18877_s2 }
   0x4   :  { %18915 = sst [smem:[#allocation8_spill]] %s18878_s3 }
   0x5   :  { %18916 = sst [smem:[#allocation9_spill]] %s18879_s4 }
   0x6   :  { %18917 = sst [smem:[#allocation10_spill]] %s18880_s5 }
   0x7   :  { %18918 = sst [smem:[#allocation11_spill]] %s18881_s6 }
   0x8   :  { %18919 = sst [smem:[#allocation12_spill]] %s18882_s7 }
   0x9   :  { %18920 = sst [smem:[#allocation13_spill]] %s18883_s8 }
   0xa   :  { %18921 = sst [smem:[#allocation14_spill]] %s18884_s9 }
   0xb   :  { %18922 = sst [smem:[#allocation15_spill]] %s18899_s24 }
   0xc LB: > { %18923 = sst [smem:[#allocation2_spill]] %s14426_s29  ;;  %s11058_s2 = sadd.s32 4294967295, %s14426_s29   ;;  %s14426_s29 = sphi %s14561_s29, %s36_s29  }
   0xd   : > { %p11062_p0 = scmp.ge.s32.totalorder %s14426_s29, 1  ;;  %p690_p1 = scmp.lt.s32.totalorder %s14426_s29, 3 }
   0xf   : > { %p691_p2 = pnand %p11062_p0, %p690_p1 }
  0x11   : > { %694 = sbr.rel (%p691_p2) target bundleno = 15398 (0x3c26), region = 116 }
  0x16   : > { %s18924_s7 = sld [smem:[#allocation6_spill]]  ;;  %p14673_p3 = scmp.lt.s32.totalorder %s11058_s2, 1  ;;  %vm2199_vm0 = vcmask 523264   ;;  %vm2206_vm1 = vcmask 516096   ;;  %vm14429_vm2 = vmmov 0   ;;  %vm2612_vm3 = vcmask 130048  }
  0x17   : > { %s18926_s3 = sld [smem:[#allocation5_spill]]  ;;  %vm2749_vm4 = vcmask 1040384   ;;  %vm2705_vm5 = vcmask 138240   ;;  %vm2712_vm6 = vcmask 131072   ;;  %vm10965_vm7 = vcmask 261120  }
  0x18   : > { %s18943_s2 = smov (!%p14673_p3, %s11058_s2), 1  ;;  %s18928_s9 = sld [smem:[#allocation7_spill]]  ;;  %vm10968_vm8 = vcmask 253952  }
  0x19   : > { %s14141_s27 = smul.u32 576, %s18943_s2  ;;  %s18932_s26 = sld [smem:[#allocation8_spill]] }
  0x1a   : > { %s18933_s4 = sld [smem:[#allocation9_spill]]  ;;  %s18911_s24 = smul.u32 24, %s18943_s2 }
  0x1b   : > { %s18936_s0 = sld [smem:[#allocation10_spill]]  ;;  %s18939_s8 = smul.u32 24, %s18943_s2 }
  0x1c   : > { %v881_v0 = vld [vmem:[%s18924_s7 + $0xf8] sm:$0xff]  ;;  %v880_v4 = vld [vmem:[%s18924_s7 + $0xf0] sm:$0xff]  ;;  %v879_v8 = vld [vmem:[%s18924_s7 + $0xe8] sm:$0xff]  ;;  %s18938_s28 = sld [smem:[#allocation13_spill]]  ;;  %s777_s30 = scalar_lea.vmem %s18900_s25, %s18911_s24 }
  0x1d   : > { %v913_v1 = vld [vmem:[%s18924_s7 + $0x1f8] sm:$0xff]  ;;  %11770 = vmatprep.subr.mxu0 %v881_v0  ;;  %v912_v5 = vld [vmem:[%s18924_s7 + $0x1f0] sm:$0xff]  ;;  %v911_v9 = vld [vmem:[%s18924_s7 + $0x1e8] sm:$0xff]  ;;  %s14759_s29 = scalar_lea.vmem %s18926_s3, %s14141_s27  ;;  %s18934_s27 = sld [smem:[#allocation12_spill]] }
  0x1e   : > { %v865_v2 = vld [vmem:[%s18924_s7 + $0x78] sm:$0xff]  ;;  %11811 = vmatprep.subr.mxu1 %v913_v1  ;;  %v864_v6 = vld [vmem:[%s18924_s7 + $0x70] sm:$0xff]  ;;  %v863_v10 = vld [vmem:[%s18924_s7 + $0x68] sm:$0xff]  ;;  %s18937_s3 = sld [smem:[#allocation11_spill]] }
  0x1f   : > { %v897_v3 = vld [vmem:[%s18924_s7 + $0x178] sm:$0xff]  ;;  %11771 = vmatpush3.msra.mxu0 %v865_v2  ;;  %v896_v7 = vld [vmem:[%s18924_s7 + $0x170] sm:$0xff]  ;;  %v895_v11 = vld [vmem:[%s18924_s7 + $0x168] sm:$0xff] }
  0x20   : > { %11812 = vmatpush3.msra.mxu1 %v897_v3  ;;  %11772 = vmatprep.subr.mxu0 %v880_v4  ;;  %v878_v12 = vld [vmem:[%s18924_s7 + $0xe0] sm:$0xff]  ;;  %v877_v16 = vld [vmem:[%s18924_s7 + $0xd8] sm:$0xff]  ;;  %v876_v20 = vld [vmem:[%s18924_s7 + $0xd0] sm:$0xff] }
  0x21   : > { %11813 = vmatprep.subr.mxu1 %v912_v5  ;;  %11773 = vmatpush3.msra.mxu0 %v864_v6  ;;  %v910_v13 = vld [vmem:[%s18924_s7 + $0x1e0] sm:$0xff]  ;;  %v909_v17 = vld [vmem:[%s18924_s7 + $0x1d8] sm:$0xff]  ;;  %v908_v21 = vld [vmem:[%s18924_s7 + $0x1d0] sm:$0xff] }
  0x22   : > { %11814 = vmatpush3.msra.mxu1 %v896_v7  ;;  %11774 = vmatprep.subr.mxu0 %v879_v8  ;;  %v862_v14 = vld [vmem:[%s18924_s7 + $0x60] sm:$0xff]  ;;  %v861_v18 = vld [vmem:[%s18924_s7 + $0x58] sm:$0xff]  ;;  %v860_v22 = vld [vmem:[%s18924_s7 + $0x50] sm:$0xff] }
  0x23   : > { %11815 = vmatprep.subr.mxu1 %v911_v9  ;;  %v894_v15 = vld [vmem:[%s18924_s7 + $0x160] sm:$0xff]  ;;  %11775 = vmatpush3.msra.mxu0 %v863_v10  ;;  %v893_v19 = vld [vmem:[%s18924_s7 + $0x158] sm:$0xff]  ;;  %v892_v23 = vld [vmem:[%s18924_s7 + $0x150] sm:$0xff] }
  0x24   : > { %11816 = vmatpush3.msra.mxu1 %v895_v11  ;;  %11776 = vmatprep.subr.mxu0 %v878_v12  ;;  %v875_v24 = vld [vmem:[%s18924_s7 + $0xc8] sm:$0xff]  ;;  %v874_v28 = vld [vmem:[%s18924_s7 + $0xc0] sm:$0xff]  ;;  %v873_v32 = vld [vmem:[%s18924_s7 + $0xb8] sm:$0xff] }
  0x25   : > { %11817 = vmatprep.subr.mxu1 %v910_v13  ;;  %11777 = vmatpush3.msra.mxu0 %v862_v14  ;;  %v907_v25 = vld [vmem:[%s18924_s7 + $0x1c8] sm:$0xff]  ;;  %v906_v29 = vld [vmem:[%s18924_s7 + $0x1c0] sm:$0xff]  ;;  %v905_v33 = vld [vmem:[%s18924_s7 + $0x1b8] sm:$0xff] }
  0x26   : > { %11818 = vmatpush3.msra.mxu1 %v894_v15  ;;  %11778 = vmatprep.subr.mxu0 %v877_v16  ;;  %v859_v26 = vld [vmem:[%s18924_s7 + $0x48] sm:$0xff]  ;;  %v858_v30 = vld [vmem:[%s18924_s7 + $0x40] sm:$0xff]  ;;  %v857_v34 = vld [vmem:[%s18924_s7 + $0x38] sm:$0xff] }
  0x27   : > { %11819 = vmatprep.subr.mxu1 %v909_v17  ;;  %11779 = vmatpush3.msra.mxu0 %v861_v18  ;;  %v891_v27 = vld [vmem:[%s18924_s7 + $0x148] sm:$0xff]  ;;  %v890_v31 = vld [vmem:[%s18924_s7 + $0x140] sm:$0xff]  ;;  %v889_v35 = vld [vmem:[%s18924_s7 + $0x138] sm:$0xff] }
  0x28   : > { %11820 = vmatpush3.msra.mxu1 %v893_v19  ;;  %11780 = vmatprep.subr.mxu0 %v876_v20  ;;  %v872_v36 = vld [vmem:[%s18924_s7 + $0xb0] sm:$0xff]  ;;  %v871_v40 = vld [vmem:[%s18924_s7 + $0xa8] sm:$0xff]  ;;  %v870_v44 = vld [vmem:[%s18924_s7 + $0xa0] sm:$0xff] }
  0x29   : > { %11821 = vmatprep.subr.mxu1 %v908_v21  ;;  %11781 = vmatpush3.msra.mxu0 %v860_v22  ;;  %v904_v37 = vld [vmem:[%s18924_s7 + $0x1b0] sm:$0xff]  ;;  %v903_v41 = vld [vmem:[%s18924_s7 + $0x1a8] sm:$0xff]  ;;  %v902_v45 = vld [vmem:[%s18924_s7 + $0x1a0] sm:$0xff] }
  0x2a   : > { %11822 = vmatpush3.msra.mxu1 %v892_v23  ;;  %11782 = vmatprep.subr.mxu0 %v875_v24  ;;  %v856_v38 = vld [vmem:[%s18924_s7 + $0x30] sm:$0xff]  ;;  %v855_v42 = vld [vmem:[%s18924_s7 + $0x28] sm:$0xff]  ;;  %v854_v46 = vld [vmem:[%s18924_s7 + $0x20] sm:$0xff] }
  0x2b   : > { %11823 = vmatprep.subr.mxu1 %v907_v25  ;;  %11783 = vmatpush3.msra.mxu0 %v859_v26  ;;  %v888_v39 = vld [vmem:[%s18924_s7 + $0x130] sm:$0xff]  ;;  %v887_v43 = vld [vmem:[%s18924_s7 + $0x128] sm:$0xff]  ;;  %v886_v47 = vld [vmem:[%s18924_s7 + $0x120] sm:$0xff] }
  0x2c   : > { %11824 = vmatpush3.msra.mxu1 %v891_v27  ;;  %11784 = vmatprep.subr.mxu0 %v874_v28  ;;  %v869_v48 = vld [vmem:[%s18924_s7 + $0x98] sm:$0xff]  ;;  %v868_v52 = vld [vmem:[%s18924_s7 + $0x90] sm:$0xff]  ;;  %v867_v56 = vld [vmem:[%s18924_s7 + $0x88] sm:$0xff] }
  0x2d   : > { %11825 = vmatprep.subr.mxu1 %v906_v29  ;;  %11785 = vmatpush3.msra.mxu0 %v858_v30  ;;  %v901_v49 = vld [vmem:[%s18924_s7 + $0x198] sm:$0xff]  ;;  %v900_v53 = vld [vmem:[%s18924_s7 + $0x190] sm:$0xff]  ;;  %v899_v57 = vld [vmem:[%s18924_s7 + $0x188] sm:$0xff] }
  0x2e   : > { %11826 = vmatpush3.msra.mxu1 %v890_v31  ;;  %11786 = vmatprep.subr.mxu0 %v873_v32  ;;  %v853_v50 = vld [vmem:[%s18924_s7 + $0x18] sm:$0xff]  ;;  %v852_v54 = vld [vmem:[%s18924_s7 + $0x10] sm:$0xff]  ;;  %v851_v58 = vld [vmem:[%s18924_s7 + $0x8] sm:$0xff] }
  0x2f   : > { %11827 = vmatprep.subr.mxu1 %v905_v33  ;;  %11787 = vmatpush3.msra.mxu0 %v857_v34  ;;  %v885_v51 = vld [vmem:[%s18924_s7 + $0x118] sm:$0xff]  ;;  %v884_v55 = vld [vmem:[%s18924_s7 + $0x110] sm:$0xff]  ;;  %v883_v59 = vld [vmem:[%s18924_s7 + $0x108] sm:$0xff] }
  0x30   : > { %11828 = vmatpush3.msra.mxu1 %v889_v35  ;;  %11788 = vmatprep.subr.mxu0 %v872_v36  ;;  %v866_v60 = vld [vmem:[%s18924_s7 + $0x80] sm:$0xff]  ;;  %v779_v63 = vld [vmem:[%s14759_s29 + $0x8] sm:$0xff]  ;;  %v781_v2 = vld [vmem:[%s14759_s29 + $0x18] sm:$0xff] }
  0x31   : > { %11829 = vmatprep.subr.mxu1 %v904_v37  ;;  %11789 = vmatpush3.msra.mxu0 %v856_v38  ;;  %v898_v61 = vld [vmem:[%s18924_s7 + $0x180] sm:$0xff]  ;;  %v945_v3 = vld [vmem:[%s18924_s7 + $0x2f8] sm:$0xff]  ;;  %v780_v5 = vld [vmem:[%s14759_s29 + $0x10] sm:$0xff] }
  0x32   : > { %11830 = vmatpush3.msra.mxu1 %v888_v39  ;;  %11790 = vmatprep.subr.mxu0 %v871_v40  ;;  %v850_v62 = vld [vmem:[%s18924_s7] sm:$0xff]  ;;  %v977_v4 = vld [vmem:[%s18924_s7 + $0x3f8] sm:$0xff]  ;;  %v944_v8 = vld [vmem:[%s18924_s7 + $0x2f0] sm:$0xff] }
  0x33   : > { %11831 = vmatprep.subr.mxu1 %v903_v41  ;;  %11791 = vmatpush3.msra.mxu0 %v855_v42  ;;  %v882_v0 = vld [vmem:[%s18924_s7 + $0x100] sm:$0xff]  ;;  %v929_v6 = vld [vmem:[%s18924_s7 + $0x278] sm:$0xff]  ;;  %v976_v9 = vld [vmem:[%s18924_s7 + $0x3f0] sm:$0xff] }
  0x34   : > { %11832 = vmatpush3.msra.mxu1 %v887_v43  ;;  %11792 = vmatprep.subr.mxu0 %v870_v44  ;;  %v778_v1 = vld [vmem:[%s14759_s29] sm:$0xff]  ;;  %v961_v7 = vld [vmem:[%s18924_s7 + $0x378] sm:$0xff]  ;;  %v928_v10 = vld [vmem:[%s18924_s7 + $0x270] sm:$0xff] }
  0x35   : > { %11833 = vmatprep.subr.mxu1 %v902_v45  ;;  %11793 = vmatpush3.msra.mxu0 %v854_v46  ;;  %v960_v11 = vld [vmem:[%s18924_s7 + $0x370] sm:$0xff]  ;;  %v943_v12 = vld [vmem:[%s18924_s7 + $0x2e8] sm:$0xff]  ;;  %v942_v16 = vld [vmem:[%s18924_s7 + $0x2e0] sm:$0xff] }
  0x36   : > { %11834 = vmatpush3.msra.mxu1 %v886_v47  ;;  %11794 = vmatprep.subr.mxu0 %v869_v48  ;;  %v975_v13 = vld [vmem:[%s18924_s7 + $0x3e8] sm:$0xff]  ;;  %v974_v17 = vld [vmem:[%s18924_s7 + $0x3e0] sm:$0xff]  ;;  %v941_v20 = vld [vmem:[%s18924_s7 + $0x2d8] sm:$0xff] }
  0x37   : > { %11835 = vmatprep.subr.mxu1 %v901_v49  ;;  %11795 = vmatpush3.msra.mxu0 %v853_v50  ;;  %v927_v14 = vld [vmem:[%s18924_s7 + $0x268] sm:$0xff]  ;;  %v926_v18 = vld [vmem:[%s18924_s7 + $0x260] sm:$0xff]  ;;  %v973_v21 = vld [vmem:[%s18924_s7 + $0x3d8] sm:$0xff] }
  0x38   : > { %11836 = vmatpush3.msra.mxu1 %v885_v51  ;;  %11796 = vmatprep.subr.mxu0 %v868_v52  ;;  %v959_v15 = vld [vmem:[%s18924_s7 + $0x368] sm:$0xff]  ;;  %v958_v19 = vld [vmem:[%s18924_s7 + $0x360] sm:$0xff]  ;;  %v925_v22 = vld [vmem:[%s18924_s7 + $0x258] sm:$0xff] }
  0x39   : > { %11837 = vmatprep.subr.mxu1 %v900_v53  ;;  %11797 = vmatpush3.msra.mxu0 %v852_v54  ;;  %v957_v23 = vld [vmem:[%s18924_s7 + $0x358] sm:$0xff]  ;;  %v940_v24 = vld [vmem:[%s18924_s7 + $0x2d0] sm:$0xff]  ;;  %v939_v28 = vld [vmem:[%s18924_s7 + $0x2c8] sm:$0xff] }
  0x3a   : > { %11838 = vmatpush3.msra.mxu1 %v884_v55  ;;  %11798 = vmatprep.subr.mxu0 %v867_v56  ;;  %v972_v25 = vld [vmem:[%s18924_s7 + $0x3d0] sm:$0xff]  ;;  %v971_v29 = vld [vmem:[%s18924_s7 + $0x3c8] sm:$0xff]  ;;  %v938_v32 = vld [vmem:[%s18924_s7 + $0x2c0] sm:$0xff] }
  0x3b   : > { %11839 = vmatprep.subr.mxu1 %v899_v57  ;;  %11799 = vmatpush3.msra.mxu0 %v851_v58  ;;  %v924_v26 = vld [vmem:[%s18924_s7 + $0x250] sm:$0xff]  ;;  %v923_v30 = vld [vmem:[%s18924_s7 + $0x248] sm:$0xff]  ;;  %v970_v33 = vld [vmem:[%s18924_s7 + $0x3c0] sm:$0xff] }
  0x3c   : > { %11840 = vmatpush3.msra.mxu1 %v883_v59  ;;  %11800 = vmatprep.subr.mxu0 %v866_v60  ;;  %v956_v27 = vld [vmem:[%s18924_s7 + $0x350] sm:$0xff]  ;;  %v955_v31 = vld [vmem:[%s18924_s7 + $0x348] sm:$0xff]  ;;  %v922_v34 = vld [vmem:[%s18924_s7 + $0x240] sm:$0xff] }
  0x3d   : > { %11841 = vmatprep.subr.mxu1 %v898_v61  ;;  %11801 = vmatpush3.msra.mxu0 %v850_v62  ;;  %v954_v35 = vld [vmem:[%s18924_s7 + $0x340] sm:$0xff]  ;;  %v937_v36 = vld [vmem:[%s18924_s7 + $0x2b8] sm:$0xff]  ;;  %v936_v40 = vld [vmem:[%s18924_s7 + $0x2b0] sm:$0xff] }
  0x3e   : > { %1301 = vmatprep.mubr.f32.mxu0 %v779_v63  ;;  %11842 = vmatpush3.msra.mxu1 %v882_v0  ;;  %v969_v37 = vld [vmem:[%s18924_s7 + $0x3b8] sm:$0xff]  ;;  %v968_v41 = vld [vmem:[%s18924_s7 + $0x3b0] sm:$0xff]  ;;  %v935_v44 = vld [vmem:[%s18924_s7 + $0x2a8] sm:$0xff] }
  0x3f   : > { %1302 = vmatmul.mubr.f32.vlgmr.msra.gmra.mxu0 %v778_v1  ;;  %1381 = vmatprep.mubr.f32.mxu1 %v781_v2  ;;  %v921_v38 = vld [vmem:[%s18924_s7 + $0x238] sm:$0xff]  ;;  %v920_v42 = vld [vmem:[%s18924_s7 + $0x230] sm:$0xff]  ;;  %v967_v45 = vld [vmem:[%s18924_s7 + $0x3a8] sm:$0xff] }
  0x40   : > { %11852 = vmatprep.subr.mxu0 %v945_v3  ;;  %11893 = vmatprep.subr.mxu1 %v977_v4  ;;  %v953_v39 = vld [vmem:[%s18924_s7 + $0x338] sm:$0xff]  ;;  %v952_v43 = vld [vmem:[%s18924_s7 + $0x330] sm:$0xff]  ;;  %v919_v46 = vld [vmem:[%s18924_s7 + $0x228] sm:$0xff] }
  0x41   : > { %1382 = vmatmul.mubr.f32.vlgmr.msra.gmra.mxu1 %v780_v5  ;;  %11853 = vmatpush3.msra.mxu0 %v929_v6  ;;  %v951_v47 = vld [vmem:[%s18924_s7 + $0x328] sm:$0xff]  ;;  %v934_v49 = vld [vmem:[%s18924_s7 + $0x2a0] sm:$0xff]  ;;  %v805_v54 = vld [vmem:[%s14759_s29 + $0xd8] sm:$0xff] }
  0x42   : > { %11894 = vmatpush3.msra.mxu1 %v961_v7  ;;  %11854 = vmatprep.subr.mxu0 %v944_v8  ;;  %v803_v48 = vld [vmem:[%s14759_s29 + $0xc8] sm:$0xff]  ;;  %v966_v50 = vld [vmem:[%s18924_s7 + $0x3a0] sm:$0xff]  ;;  %v933_v55 = vld [vmem:[%s18924_s7 + $0x298] sm:$0xff] }
  0x43   : > { %11895 = vmatprep.subr.mxu1 %v976_v9  ;;  %11855 = vmatpush3.msra.mxu0 %v928_v10  ;;  %v802_v51 = vld [vmem:[%s14759_s29 + $0xc0] sm:$0xff]  ;;  %v965_v56 = vld [vmem:[%s18924_s7 + $0x398] sm:$0xff]  ;;  %v804_v57 = vld [vmem:[%s14759_s29 + $0xd0] sm:$0xff] }
  0x44   : > { %11896 = vmatpush3.msra.mxu1 %v960_v11  ;;  %11856 = vmatprep.subr.mxu0 %v943_v12  ;;  %v918_v52 = vld [vmem:[%s18924_s7 + $0x220] sm:$0xff]  ;;  %v917_v58 = vld [vmem:[%s18924_s7 + $0x218] sm:$0xff]  ;;  %v827_v60 = vld [vmem:[%s14759_s29 + $0x188] sm:$0x1] }
  0x45   : > { %11897 = vmatprep.subr.mxu1 %v975_v13  ;;  %11857 = vmatpush3.msra.mxu0 %v927_v14  ;;  %v950_v53 = vld [vmem:[%s18924_s7 + $0x320] sm:$0xff]  ;;  %v949_v59 = vld [vmem:[%s18924_s7 + $0x318] sm:$0xff]  ;;  %v932_v61 = vld [vmem:[%s18924_s7 + $0x290] sm:$0xff] }
  0x46   : > { %11898 = vmatpush3.msra.mxu1 %v959_v15  ;;  %11858 = vmatprep.subr.mxu0 %v942_v16  ;;  %v964_v62 = vld [vmem:[%s18924_s7 + $0x390] sm:$0xff]  ;;  %v826_v63 = vld [vmem:[%s14759_s29 + $0x180] sm:$0x1]  ;;  %v829_v2 = vld [vmem:[%s14759_s29 + $0x198] sm:$0x1] }
  0x47   : > { %11899 = vmatprep.subr.mxu1 %v974_v17  ;;  %11859 = vmatpush3.msra.mxu0 %v926_v18  ;;  %v916_v0 = vld [vmem:[%s18924_s7 + $0x210] sm:$0xff]  ;;  %v931_v3 = vld [vmem:[%s18924_s7 + $0x288] sm:$0xff]  ;;  %v930_v8 = vld [vmem:[%s18924_s7 + $0x280] sm:$0xff] }
  0x48   : > { %11900 = vmatpush3.msra.mxu1 %v958_v19  ;;  %11860 = vmatprep.subr.mxu0 %v941_v20  ;;  %v948_v1 = vld [vmem:[%s18924_s7 + $0x310] sm:$0xff]  ;;  %v963_v4 = vld [vmem:[%s18924_s7 + $0x388] sm:$0xff]  ;;  %v962_v9 = vld [vmem:[%s18924_s7 + $0x380] sm:$0xff] }
  0x49   : > { %11901 = vmatprep.subr.mxu1 %v973_v21  ;;  %11861 = vmatpush3.msra.mxu0 %v925_v22  ;;  %v828_v5 = vld [vmem:[%s14759_s29 + $0x190] sm:$0x1]  ;;  %v915_v6 = vld [vmem:[%s18924_s7 + $0x208] sm:$0xff]  ;;  %v914_v10 = vld [vmem:[%s18924_s7 + $0x200] sm:$0xff] }
  0x4a   : > { %11902 = vmatpush3.msra.mxu1 %v957_v23  ;;  %11862 = vmatprep.subr.mxu0 %v940_v24  ;;  %v947_v7 = vld [vmem:[%s18924_s7 + $0x308] sm:$0xff]  ;;  %v946_v12 = vld [vmem:[%s18924_s7 + $0x300] sm:$0xff]  ;;  %v785_v14 = vld [vmem:[%s14759_s29 + $0x38] sm:$0xff] }
  0x4b   : > { %11903 = vmatprep.subr.mxu1 %v972_v25  ;;  %11863 = vmatpush3.msra.mxu0 %v924_v26  ;;  %v783_v11 = vld [vmem:[%s14759_s29 + $0x28] sm:$0xff]  ;;  %v782_v13 = vld [vmem:[%s14759_s29 + $0x20] sm:$0xff]  ;;  %v1009_v15 = vld [vmem:[%s18924_s7 + $0x4f8] sm:$0xff] }
  0x4c   : > { %11904 = vmatpush3.msra.mxu1 %v956_v27  ;;  %11864 = vmatprep.subr.mxu0 %v939_v28  ;;  %v1041_v16 = vld [vmem:[%s18924_s7 + $0x5f8] sm:$0xff]  ;;  %v784_v17 = vld [vmem:[%s14759_s29 + $0x30] sm:$0xff]  ;;  %v807_v22 = vld [vmem:[%s14759_s29 + $0xe8] sm:$0xff] }
  0x4d   : > { %11905 = vmatprep.subr.mxu1 %v971_v29  ;;  %11865 = vmatpush3.msra.mxu0 %v923_v30  ;;  %v993_v18 = vld [vmem:[%s18924_s7 + $0x478] sm:$0xff]  ;;  %v1008_v20 = vld [vmem:[%s18924_s7 + $0x4f0] sm:$0xff]  ;;  %v806_v25 = vld [vmem:[%s14759_s29 + $0xe0] sm:$0xff] }
  0x4e   : > { %11906 = vmatpush3.msra.mxu1 %v955_v31  ;;  %11866 = vmatprep.subr.mxu0 %v938_v32  ;;  %v1025_v19 = vld [vmem:[%s18924_s7 + $0x578] sm:$0xff]  ;;  %v1040_v21 = vld [vmem:[%s18924_s7 + $0x5f0] sm:$0xff]  ;;  %v1007_v26 = vld [vmem:[%s18924_s7 + $0x4e8] sm:$0xff] }
  0x4f   : > { %11907 = vmatprep.subr.mxu1 %v970_v33  ;;  %11867 = vmatpush3.msra.mxu0 %v922_v34  ;;  %v992_v23 = vld [vmem:[%s18924_s7 + $0x470] sm:$0xff]  ;;  %v1039_v27 = vld [vmem:[%s18924_s7 + $0x5e8] sm:$0xff]  ;;  %v809_v28 = vld [vmem:[%s14759_s29 + $0xf8] sm:$0xff] }
  0x50   : > { %11908 = vmatpush3.msra.mxu1 %v954_v35  ;;  %11868 = vmatprep.subr.mxu0 %v937_v36  ;;  %v1024_v24 = vld [vmem:[%s18924_s7 + $0x570] sm:$0xff]  ;;  %v991_v29 = vld [vmem:[%s18924_s7 + $0x468] sm:$0xff]  ;;  %v1006_v31 = vld [vmem:[%s18924_s7 + $0x4e0] sm:$0xff] }
  0x51   : > { %11909 = vmatprep.subr.mxu1 %v969_v37  ;;  %11869 = vmatpush3.msra.mxu0 %v921_v38  ;;  %v1023_v30 = vld [vmem:[%s18924_s7 + $0x568] sm:$0xff]  ;;  %v808_v32 = vld [vmem:[%s14759_s29 + $0xf0] sm:$0xff]  ;;  %v1038_v33 = vld [vmem:[%s18924_s7 + $0x5e0] sm:$0xff] }
  0x52   : > { %11910 = vmatpush3.msra.mxu1 %v953_v39  ;;  %11870 = vmatprep.subr.mxu0 %v936_v40  ;;  %v831_v34 = vld [vmem:[%s14759_s29 + $0x1a8] sm:$0x1]  ;;  %v990_v35 = vld [vmem:[%s18924_s7 + $0x460] sm:$0xff]  ;;  %v1005_v38 = vld [vmem:[%s18924_s7 + $0x4d8] sm:$0xff] }
  0x53   : > { %11911 = vmatprep.subr.mxu1 %v968_v41  ;;  %11871 = vmatpush3.msra.mxu0 %v920_v42  ;;  %v1022_v36 = vld [vmem:[%s18924_s7 + $0x560] sm:$0xff]  ;;  %v1037_v39 = vld [vmem:[%s18924_s7 + $0x5d8] sm:$0xff] }
  0x54   : > { %11912 = vmatpush3.msra.mxu1 %v952_v43  ;;  %11872 = vmatprep.subr.mxu0 %v935_v44  ;;  %v830_v37 = vld [vmem:[%s14759_s29 + $0x1a0] sm:$0x1]  ;;  %v833_v40 = vld [vmem:[%s14759_s29 + $0x1b8] sm:$0x1]  ;;  %v1004_v43 = vld [vmem:[%s18924_s7 + $0x4d0] sm:$0xff] }
  0x55   : > { %11913 = vmatprep.subr.mxu1 %v967_v45  ;;  %11873 = vmatpush3.msra.mxu0 %v919_v46  ;;  %v989_v41 = vld [vmem:[%s18924_s7 + $0x458] sm:$0xff]  ;;  %v832_v44 = vld [vmem:[%s14759_s29 + $0x1b0] sm:$0x1] }
  0x56   : > { %11914 = vmatpush3.msra.mxu1 %v951_v47  ;;  %1306 = vmatprep.mubr.f32.mxu0 %v803_v48  ;;  %v1021_v42 = vld [vmem:[%s18924_s7 + $0x558] sm:$0xff]  ;;  %v1036_v45 = vld [vmem:[%s18924_s7 + $0x5d0] sm:$0xff]  ;;  %v1003_v48 = vld [vmem:[%s18924_s7 + $0x4c8] sm:$0xff] }
  0x57   : > { %11874 = vmatprep.subr.mxu0 %v934_v49  ;;  %11915 = vmatprep.subr.mxu1 %v966_v50  ;;  %v988_v46 = vld [vmem:[%s18924_s7 + $0x450] sm:$0xff]  ;;  %v1035_v49 = vld [vmem:[%s18924_s7 + $0x5c8] sm:$0xff] }
  0x58   : > { %1307 = vmatmul.mubr.f32.gmra.mxu0 %v802_v51  ;;  %11916 = vmatpush3.msra.mxu1 %v950_v53  ;;  %v1020_v47 = vld [vmem:[%s18924_s7 + $0x550] sm:$0xff]  ;;  %v987_v50 = vld [vmem:[%s18924_s7 + $0x448] sm:$0xff]  ;;  %v1034_v53 = vld [vmem:[%s18924_s7 + $0x5c0] sm:$0xff] }
  0x59   : > { %11875 = vmatpush3.msra.mxu0 %v918_v52  ;;  %1386 = vmatprep.mubr.f32.mxu1 %v805_v54  ;;  %v1019_v51 = vld [vmem:[%s18924_s7 + $0x548] sm:$0xff]  ;;  %v1002_v52 = vld [vmem:[%s18924_s7 + $0x4c0] sm:$0xff] }
  0x5a   : > { %11876 = vmatprep.subr.mxu0 %v933_v55  ;;  %11917 = vmatprep.subr.mxu1 %v965_v56  ;;  %v986_v54 = vld [vmem:[%s18924_s7 + $0x440] sm:$0xff]  ;;  %v1001_v56 = vld [vmem:[%s18924_s7 + $0x4b8] sm:$0xff] }
  0x5b   : > { %1387 = vmatmul.mubr.f32.gmra.mxu1 %v804_v57  ;;  %11877 = vmatpush3.msra.mxu0 %v917_v58  ;;  %v1018_v55 = vld [vmem:[%s18924_s7 + $0x540] sm:$0xff]  ;;  %v1033_v57 = vld [vmem:[%s18924_s7 + $0x5b8] sm:$0xff] }
  0x5c   : > { %11918 = vmatpush3.msra.mxu1 %v949_v59  ;;  %1311 = vmatprep.mubr.f32.mxu0 %v827_v60  ;;  %v985_v58 = vld [vmem:[%s18924_s7 + $0x438] sm:$0xff]  ;;  %v1000_v60 = vld [vmem:[%s18924_s7 + $0x4b0] sm:$0xff] }
  0x5d   : > { %11878 = vmatprep.subr.mxu0 %v932_v61  ;;  %11919 = vmatprep.subr.mxu1 %v964_v62  ;;  %v1017_v59 = vld [vmem:[%s18924_s7 + $0x538] sm:$0xff]  ;;  %v1032_v61 = vld [vmem:[%s18924_s7 + $0x5b0] sm:$0xff] }
  0x5e   : > { %1312 = vmatmul.mubr.f32.gmra.mxu0 %v826_v63  ;;  %11920 = vmatpush3.msra.mxu1 %v948_v1  ;;  %v984_v62 = vld [vmem:[%s18924_s7 + $0x430] sm:$0xff]  ;;  %v1031_v1 = vld [vmem:[%s18924_s7 + $0x5a8] sm:$0xff] }
  0x5f   : > { %11879 = vmatpush3.msra.mxu0 %v916_v0  ;;  %1391 = vmatprep.mubr.f32.mxu1 %v829_v2  ;;  %v1016_v63 = vld [vmem:[%s18924_s7 + $0x530] sm:$0xff]  ;;  %v999_v0 = vld [vmem:[%s18924_s7 + $0x4a8] sm:$0xff] }
  0x60   : > { %11880 = vmatprep.subr.mxu0 %v931_v3  ;;  %11921 = vmatprep.subr.mxu1 %v963_v4  ;;  %v983_v2 = vld [vmem:[%s18924_s7 + $0x428] sm:$0xff]  ;;  %v998_v4 = vld [vmem:[%s18924_s7 + $0x4a0] sm:$0xff] }
  0x61   : > { %1392 = vmatmul.mubr.f32.gmra.mxu1 %v828_v5  ;;  %11881 = vmatpush3.msra.mxu0 %v915_v6  ;;  %v1015_v3 = vld [vmem:[%s18924_s7 + $0x528] sm:$0xff]  ;;  %v1030_v5 = vld [vmem:[%s18924_s7 + $0x5a0] sm:$0xff] }
  0x62   : > { %11922 = vmatpush3.msra.mxu1 %v947_v7  ;;  %11882 = vmatprep.subr.mxu0 %v930_v8  ;;  %v982_v6 = vld [vmem:[%s18924_s7 + $0x420] sm:$0xff]  ;;  %v997_v8 = vld [vmem:[%s18924_s7 + $0x498] sm:$0xff] }
  0x63   : > { %11923 = vmatprep.subr.mxu1 %v962_v9  ;;  %11883 = vmatpush3.msra.mxu0 %v914_v10  ;;  %v1014_v7 = vld [vmem:[%s18924_s7 + $0x520] sm:$0xff]  ;;  %v1029_v9 = vld [vmem:[%s18924_s7 + $0x598] sm:$0xff] }
  0x64   : > { %1461 = vmatprep.mubr.f32.mxu0 %v783_v11  ;;  %11924 = vmatpush3.msra.mxu1 %v946_v12  ;;  %v981_v10 = vld [vmem:[%s18924_s7 + $0x418] sm:$0xff]  ;;  %v996_v12 = vld [vmem:[%s18924_s7 + $0x490] sm:$0xff] }
  0x65   : > { %1462 = vmatmul.mubr.f32.vlgmr.msra.gmra.mxu0 %v782_v13  ;;  %1541 = vmatprep.mubr.f32.mxu1 %v785_v14  ;;  %v1013_v11 = vld [vmem:[%s18924_s7 + $0x518] sm:$0xff]  ;;  %v1028_v13 = vld [vmem:[%s18924_s7 + $0x590] sm:$0xff] }
  0x66   : > { %11934 = vmatprep.subr.mxu0 %v1009_v15  ;;  %11975 = vmatprep.subr.mxu1 %v1041_v16  ;;  %v980_v14 = vld [vmem:[%s18924_s7 + $0x410] sm:$0xff]  ;;  %v995_v16 = vld [vmem:[%s18924_s7 + $0x488] sm:$0xff] }
  0x67   : > { %1542 = vmatmul.mubr.f32.vlgmr.msra.gmra.mxu1 %v784_v17  ;;  %11935 = vmatpush3.msra.mxu0 %v993_v18  ;;  %v1012_v15 = vld [vmem:[%s18924_s7 + $0x510] sm:$0xff]  ;;  %v1027_v17 = vld [vmem:[%s18924_s7 + $0x588] sm:$0xff] }
  0x68   : > { %11976 = vmatpush3.msra.mxu1 %v1025_v19  ;;  %11936 = vmatprep.subr.mxu0 %v1008_v20  ;;  %v979_v18 = vld [vmem:[%s18924_s7 + $0x408] sm:$0xff]  ;;  %v994_v20 = vld [vmem:[%s18924_s7 + $0x480] sm:$0xff] }
  0x69   : > { %11977 = vmatprep.subr.mxu1 %v1040_v21  ;;  %1466 = vmatprep.mubr.f32.mxu0 %v807_v22  ;;  %v1011_v19 = vld [vmem:[%s18924_s7 + $0x508] sm:$0xff]  ;;  %v1026_v21 = vld [vmem:[%s18924_s7 + $0x580] sm:$0xff] }
  0x6a   : > { %11937 = vmatpush3.msra.mxu0 %v992_v23  ;;  %11978 = vmatpush3.msra.mxu1 %v1024_v24  ;;  %v978_v22 = vld [vmem:[%s18924_s7 + $0x400] sm:$0xff]  ;;  %v787_v23 = vld [vmem:[%s14759_s29 + $0x48] sm:$0xff] }
  0x6b   : > { %1467 = vmatmul.mubr.f32.gmra.mxu0 %v806_v25  ;;  %11938 = vmatprep.subr.mxu0 %v1007_v26  ;;  %v1010_v24 = vld [vmem:[%s18924_s7 + $0x500] sm:$0xff]  ;;  %v789_v26 = vld [vmem:[%s14759_s29 + $0x58] sm:$0xff] }
  0x6c   : > { %11979 = vmatprep.subr.mxu1 %v1039_v27  ;;  %1546 = vmatprep.mubr.f32.mxu1 %v809_v28  ;;  %v786_v25 = vld [vmem:[%s14759_s29 + $0x40] sm:$0xff]  ;;  %v1073_v27 = vld [vmem:[%s18924_s7 + $0x6f8] sm:$0xff] }
  0x6d   : > { %11939 = vmatpush3.msra.mxu0 %v991_v29  ;;  %11980 = vmatpush3.msra.mxu1 %v1023_v30  ;;  %v1105_v28 = vld [vmem:[%s18924_s7 + $0x7f8] sm:$0xff]  ;;  %v788_v29 = vld [vmem:[%s14759_s29 + $0x50] sm:$0xff] }
  0x6e   : > { %11940 = vmatprep.subr.mxu0 %v1006_v31  ;;  %1547 = vmatmul.mubr.f32.gmra.mxu1 %v808_v32  ;;  %v1057_v30 = vld [vmem:[%s18924_s7 + $0x678] sm:$0xff]  ;;  %v1072_v32 = vld [vmem:[%s18924_s7 + $0x6f0] sm:$0xff] }
  0x6f   : > { %11981 = vmatprep.subr.mxu1 %v1038_v33  ;;  %1471 = vmatprep.mubr.f32.mxu0 %v831_v34  ;;  %v1089_v31 = vld [vmem:[%s18924_s7 + $0x778] sm:$0xff]  ;;  %v1104_v33 = vld [vmem:[%s18924_s7 + $0x7f0] sm:$0xff]  ;;  %v811_v34 = vld [vmem:[%s14759_s29 + $0x108] sm:$0xff] }
  0x70   : > { %11941 = vmatpush3.msra.mxu0 %v990_v35  ;;  %11982 = vmatpush3.msra.mxu1 %v1022_v36  ;;  %v1056_v35 = vld [vmem:[%s18924_s7 + $0x670] sm:$0xff] }
  0x71   : > { %1472 = vmatmul.mubr.f32.gmra.mxu0 %v830_v37  ;;  %11942 = vmatprep.subr.mxu0 %v1005_v38  ;;  %v1088_v36 = vld [vmem:[%s18924_s7 + $0x770] sm:$0xff]  ;;  %v810_v37 = vld [vmem:[%s14759_s29 + $0x100] sm:$0xff]  ;;  %v1071_v38 = vld [vmem:[%s18924_s7 + $0x6e8] sm:$0xff] }
  0x72   : > { %11983 = vmatprep.subr.mxu1 %v1037_v39  ;;  %1551 = vmatprep.mubr.f32.mxu1 %v833_v40  ;;  %v1103_v39 = vld [vmem:[%s18924_s7 + $0x7e8] sm:$0xff]  ;;  %v813_v40 = vld [vmem:[%s14759_s29 + $0x118] sm:$0xff] }
  0x73   : > { %11943 = vmatpush3.msra.mxu0 %v989_v41  ;;  %11984 = vmatpush3.msra.mxu1 %v1021_v42  ;;  %v1055_v41 = vld [vmem:[%s18924_s7 + $0x668] sm:$0xff] }
  0x74   : > { %11944 = vmatprep.subr.mxu0 %v1004_v43  ;;  %1552 = vmatmul.mubr.f32.gmra.mxu1 %v832_v44  ;;  %v1087_v42 = vld [vmem:[%s18924_s7 + $0x768] sm:$0xff]  ;;  %v1070_v43 = vld [vmem:[%s18924_s7 + $0x6e0] sm:$0xff]  ;;  %v812_v44 = vld [vmem:[%s14759_s29 + $0x110] sm:$0xff] }
  0x75   : > { %11985 = vmatprep.subr.mxu1 %v1036_v45  ;;  %11945 = vmatpush3.msra.mxu0 %v988_v46  ;;  %v1102_v45 = vld [vmem:[%s18924_s7 + $0x7e0] sm:$0xff]  ;;  %v835_v46 = vld [vmem:[%s14759_s29 + $0x1c8] sm:$0x1] }
  0x76   : > { %11986 = vmatpush3.msra.mxu1 %v1020_v47  ;;  %11946 = vmatprep.subr.mxu0 %v1003_v48  ;;  %v1054_v47 = vld [vmem:[%s18924_s7 + $0x660] sm:$0xff] }
  0x77   : > { %11987 = vmatprep.subr.mxu1 %v1035_v49  ;;  %11947 = vmatpush3.msra.mxu0 %v987_v50  ;;  %v1086_v48 = vld [vmem:[%s18924_s7 + $0x760] sm:$0xff]  ;;  %v1069_v50 = vld [vmem:[%s18924_s7 + $0x6d8] sm:$0xff] }
  0x78   : > { %11988 = vmatpush3.msra.mxu1 %v1019_v51  ;;  %11948 = vmatprep.subr.mxu0 %v1002_v52  ;;  %v834_v49 = vld [vmem:[%s14759_s29 + $0x1c0] sm:$0x1]  ;;  %v1101_v51 = vld [vmem:[%s18924_s7 + $0x7d8] sm:$0xff] }
  0x79   : > { %11989 = vmatprep.subr.mxu1 %v1034_v53  ;;  %11949 = vmatpush3.msra.mxu0 %v986_v54  ;;  %v837_v52 = vld [vmem:[%s14759_s29 + $0x1d8] sm:$0x1] }
  0x7a   : > { %11990 = vmatpush3.msra.mxu1 %v1018_v55  ;;  %11950 = vmatprep.subr.mxu0 %v1001_v56  ;;  %v1053_v53 = vld [vmem:[%s18924_s7 + $0x658] sm:$0xff]  ;;  %v1068_v55 = vld [vmem:[%s18924_s7 + $0x6d0] sm:$0xff] }
  0x7b   : > { %11991 = vmatprep.subr.mxu1 %v1033_v57  ;;  %11951 = vmatpush3.msra.mxu0 %v985_v58  ;;  %v1085_v54 = vld [vmem:[%s18924_s7 + $0x758] sm:$0xff]  ;;  %v836_v56 = vld [vmem:[%s14759_s29 + $0x1d0] sm:$0x1] }
  0x7c   : > { %11992 = vmatpush3.msra.mxu1 %v1017_v59  ;;  %11952 = vmatprep.subr.mxu0 %v1000_v60  ;;  %v1100_v57 = vld [vmem:[%s18924_s7 + $0x7d0] sm:$0xff]  ;;  %v1067_v60 = vld [vmem:[%s18924_s7 + $0x6c8] sm:$0xff] }
  0x7d   : > { %11993 = vmatprep.subr.mxu1 %v1032_v61  ;;  %11953 = vmatpush3.msra.mxu0 %v984_v62  ;;  %v1052_v58 = vld [vmem:[%s18924_s7 + $0x650] sm:$0xff]  ;;  %v1099_v61 = vld [vmem:[%s18924_s7 + $0x7c8] sm:$0xff] }
  0x7e   : > { %11994 = vmatpush3.msra.mxu1 %v1016_v63  ;;  %11954 = vmatprep.subr.mxu0 %v999_v0  ;;  %v1084_v59 = vld [vmem:[%s18924_s7 + $0x750] sm:$0xff]  ;;  %v1051_v62 = vld [vmem:[%s18924_s7 + $0x648] sm:$0xff]  ;;  %v1066_v0 = vld [vmem:[%s18924_s7 + $0x6c0] sm:$0xff] }
  0x7f   : > { %11995 = vmatprep.subr.mxu1 %v1031_v1  ;;  %11955 = vmatpush3.msra.mxu0 %v983_v2  ;;  %v1083_v63 = vld [vmem:[%s18924_s7 + $0x748] sm:$0xff]  ;;  %v1098_v1 = vld [vmem:[%s18924_s7 + $0x7c0] sm:$0xff] }
  0x80   : > { %11996 = vmatpush3.msra.mxu1 %v1015_v3  ;;  %11956 = vmatprep.subr.mxu0 %v998_v4  ;;  %v1050_v2 = vld [vmem:[%s18924_s7 + $0x640] sm:$0xff]  ;;  %v1065_v4 = vld [vmem:[%s18924_s7 + $0x6b8] sm:$0xff] }
  0x81   : > { %11997 = vmatprep.subr.mxu1 %v1030_v5  ;;  %11957 = vmatpush3.msra.mxu0 %v982_v6  ;;  %v1082_v3 = vld [vmem:[%s18924_s7 + $0x740] sm:$0xff]  ;;  %v1097_v5 = vld [vmem:[%s18924_s7 + $0x7b8] sm:$0xff] }
  0x82   : > { %11998 = vmatpush3.msra.mxu1 %v1014_v7  ;;  %11958 = vmatprep.subr.mxu0 %v997_v8  ;;  %v1049_v6 = vld [vmem:[%s18924_s7 + $0x638] sm:$0xff]  ;;  %v1064_v8 = vld [vmem:[%s18924_s7 + $0x6b0] sm:$0xff] }
  0x83   : > { %11999 = vmatprep.subr.mxu1 %v1029_v9  ;;  %11959 = vmatpush3.msra.mxu0 %v981_v10  ;;  %v1081_v7 = vld [vmem:[%s18924_s7 + $0x738] sm:$0xff]  ;;  %v1096_v9 = vld [vmem:[%s18924_s7 + $0x7b0] sm:$0xff] }
  0x84   : > { %12000 = vmatpush3.msra.mxu1 %v1013_v11  ;;  %11960 = vmatprep.subr.mxu0 %v996_v12  ;;  %v1048_v10 = vld [vmem:[%s18924_s7 + $0x630] sm:$0xff]  ;;  %v1063_v12 = vld [vmem:[%s18924_s7 + $0x6a8] sm:$0xff] }
  0x85   : > { %12001 = vmatprep.subr.mxu1 %v1028_v13  ;;  %11961 = vmatpush3.msra.mxu0 %v980_v14  ;;  %v1080_v11 = vld [vmem:[%s18924_s7 + $0x730] sm:$0xff]  ;;  %v1095_v13 = vld [vmem:[%s18924_s7 + $0x7a8] sm:$0xff] }
  0x86   : > { %12002 = vmatpush3.msra.mxu1 %v1012_v15  ;;  %11962 = vmatprep.subr.mxu0 %v995_v16  ;;  %v1047_v14 = vld [vmem:[%s18924_s7 + $0x628] sm:$0xff]  ;;  %v1062_v16 = vld [vmem:[%s18924_s7 + $0x6a0] sm:$0xff] }
  0x87   : > { %12003 = vmatprep.subr.mxu1 %v1027_v17  ;;  %11963 = vmatpush3.msra.mxu0 %v979_v18  ;;  %v1079_v15 = vld [vmem:[%s18924_s7 + $0x728] sm:$0xff]  ;;  %v1094_v17 = vld [vmem:[%s18924_s7 + $0x7a0] sm:$0xff] }
  0x88   : > { %12004 = vmatpush3.msra.mxu1 %v1011_v19  ;;  %11964 = vmatprep.subr.mxu0 %v994_v20  ;;  %v1046_v18 = vld [vmem:[%s18924_s7 + $0x620] sm:$0xff]  ;;  %v1061_v20 = vld [vmem:[%s18924_s7 + $0x698] sm:$0xff] }
  0x89   : > { %12005 = vmatprep.subr.mxu1 %v1026_v21  ;;  %11965 = vmatpush3.msra.mxu0 %v978_v22  ;;  %v1078_v19 = vld [vmem:[%s18924_s7 + $0x720] sm:$0xff]  ;;  %v1093_v21 = vld [vmem:[%s18924_s7 + $0x798] sm:$0xff] }
  0x8a   : > { %1621 = vmatprep.mubr.f32.mxu0 %v787_v23  ;;  %12006 = vmatpush3.msra.mxu1 %v1010_v24  ;;  %v1045_v22 = vld [vmem:[%s18924_s7 + $0x618] sm:$0xff]  ;;  %v1060_v24 = vld [vmem:[%s18924_s7 + $0x690] sm:$0xff] }
  0x8b   : > { %1622 = vmatmul.mubr.f32.vlgmr.msra.gmra.mxu0 %v786_v25  ;;  %1701 = vmatprep.mubr.f32.mxu1 %v789_v26  ;;  %v1077_v23 = vld [vmem:[%s18924_s7 + $0x718] sm:$0xff]  ;;  %v1092_v25 = vld [vmem:[%s18924_s7 + $0x790] sm:$0xff] }
  0x8c   : > { %12016 = vmatprep.subr.mxu0 %v1073_v27  ;;  %12057 = vmatprep.subr.mxu1 %v1105_v28  ;;  %v1044_v26 = vld [vmem:[%s18924_s7 + $0x610] sm:$0xff]  ;;  %v1059_v28 = vld [vmem:[%s18924_s7 + $0x688] sm:$0xff] }
  0x8d   : > { %1702 = vmatmul.mubr.f32.vlgmr.msra.gmra.mxu1 %v788_v29  ;;  %12017 = vmatpush3.msra.mxu0 %v1057_v30  ;;  %v1076_v27 = vld [vmem:[%s18924_s7 + $0x710] sm:$0xff]  ;;  %v1091_v29 = vld [vmem:[%s18924_s7 + $0x788] sm:$0xff] }
  0x8e   : > { %12058 = vmatpush3.msra.mxu1 %v1089_v31  ;;  %12018 = vmatprep.subr.mxu0 %v1072_v32  ;;  %v1043_v30 = vld [vmem:[%s18924_s7 + $0x608] sm:$0xff]  ;;  %v1058_v32 = vld [vmem:[%s18924_s7 + $0x680] sm:$0xff] }
  0x8f   : > { %12059 = vmatprep.subr.mxu1 %v1104_v33  ;;  %1626 = vmatprep.mubr.f32.mxu0 %v811_v34  ;;  %v1075_v31 = vld [vmem:[%s18924_s7 + $0x708] sm:$0xff]  ;;  %v1090_v33 = vld [vmem:[%s18924_s7 + $0x780] sm:$0xff] }
  0x90   : > { %12019 = vmatpush3.msra.mxu0 %v1056_v35  ;;  %12060 = vmatpush3.msra.mxu1 %v1088_v36  ;;  %v1042_v34 = vld [vmem:[%s18924_s7 + $0x600] sm:$0xff]  ;;  %v791_v35 = vld [vmem:[%s14759_s29 + $0x68] sm:$0xff] }
  0x91   : > { %1627 = vmatmul.mubr.f32.gmra.mxu0 %v810_v37  ;;  %12020 = vmatprep.subr.mxu0 %v1071_v38  ;;  %v1074_v36 = vld [vmem:[%s18924_s7 + $0x700] sm:$0xff]  ;;  %v793_v38 = vld [vmem:[%s14759_s29 + $0x78] sm:$0xff] }
  0x92   : > { %12061 = vmatprep.subr.mxu1 %v1103_v39  ;;  %1706 = vmatprep.mubr.f32.mxu1 %v813_v40  ;;  %v790_v37 = vld [vmem:[%s14759_s29 + $0x60] sm:$0xff]  ;;  %v1137_v39 = vld [vmem:[%s18924_s7 + $0x8f8] sm:$0xff] }
  0x93   : > { %12021 = vmatpush3.msra.mxu0 %v1055_v41  ;;  %12062 = vmatpush3.msra.mxu1 %v1087_v42  ;;  %v1169_v40 = vld [vmem:[%s18924_s7 + $0x9f8] sm:$0xff]  ;;  %v792_v41 = vld [vmem:[%s14759_s29 + $0x70] sm:$0xff] }
  0x94   : > { %12022 = vmatprep.subr.mxu0 %v1070_v43  ;;  %1707 = vmatmul.mubr.f32.gmra.mxu1 %v812_v44  ;;  %v1121_v42 = vld [vmem:[%s18924_s7 + $0x878] sm:$0xff]  ;;  %v1136_v44 = vld [vmem:[%s18924_s7 + $0x8f0] sm:$0xff] }
  0x95   : > { %12063 = vmatprep.subr.mxu1 %v1102_v45  ;;  %1631 = vmatprep.mubr.f32.mxu0 %v835_v46  ;;  %v1153_v43 = vld [vmem:[%s18924_s7 + $0x978] sm:$0xff]  ;;  %v1168_v45 = vld [vmem:[%s18924_s7 + $0x9f0] sm:$0xff]  ;;  %v815_v46 = vld [vmem:[%s14759_s29 + $0x128] sm:$0xff] }
  0x96   : > { %12023 = vmatpush3.msra.mxu0 %v1054_v47  ;;  %12064 = vmatpush3.msra.mxu1 %v1086_v48  ;;  %v1120_v47 = vld [vmem:[%s18924_s7 + $0x870] sm:$0xff] }
  0x97   : > { %1632 = vmatmul.mubr.f32.gmra.mxu0 %v834_v49  ;;  %12024 = vmatprep.subr.mxu0 %v1069_v50  ;;  %v1152_v48 = vld [vmem:[%s18924_s7 + $0x970] sm:$0xff]  ;;  %v814_v49 = vld [vmem:[%s14759_s29 + $0x120] sm:$0xff]  ;;  %v1135_v50 = vld [vmem:[%s18924_s7 + $0x8e8] sm:$0xff] }
  0x98   : > { %12065 = vmatprep.subr.mxu1 %v1101_v51  ;;  %1711 = vmatprep.mubr.f32.mxu1 %v837_v52  ;;  %v1167_v51 = vld [vmem:[%s18924_s7 + $0x9e8] sm:$0xff]  ;;  %v817_v52 = vld [vmem:[%s14759_s29 + $0x138] sm:$0xff] }
  0x99   : > { %12025 = vmatpush3.msra.mxu0 %v1053_v53  ;;  %12066 = vmatpush3.msra.mxu1 %v1085_v54  ;;  %v1119_v53 = vld [vmem:[%s18924_s7 + $0x868] sm:$0xff] }
  0x9a   : > { %12026 = vmatprep.subr.mxu0 %v1068_v55  ;;  %1712 = vmatmul.mubr.f32.gmra.mxu1 %v836_v56  ;;  %v1151_v54 = vld [vmem:[%s18924_s7 + $0x968] sm:$0xff]  ;;  %v1134_v55 = vld [vmem:[%s18924_s7 + $0x8e0] sm:$0xff]  ;;  %v816_v56 = vld [vmem:[%s14759_s29 + $0x130] sm:$0xff] }
  0x9b   : > { %12067 = vmatprep.subr.mxu1 %v1100_v57  ;;  %12027 = vmatpush3.msra.mxu0 %v1052_v58  ;;  %v1166_v57 = vld [vmem:[%s18924_s7 + $0x9e0] sm:$0xff]  ;;  %v839_v58 = vld [vmem:[%s14759_s29 + $0x1e8] sm:$0x1] }
  0x9c   : > { %12068 = vmatpush3.msra.mxu1 %v1084_v59  ;;  %12028 = vmatprep.subr.mxu0 %v1067_v60  ;;  %v1118_v59 = vld [vmem:[%s18924_s7 + $0x860] sm:$0xff] }
  0x9d   : > { %12069 = vmatprep.subr.mxu1 %v1099_v61  ;;  %12029 = vmatpush3.msra.mxu0 %v1051_v62  ;;  %v1150_v60 = vld [vmem:[%s18924_s7 + $0x960] sm:$0xff]  ;;  %v1133_v62 = vld [vmem:[%s18924_s7 + $0x8d8] sm:$0xff] }
  0x9e   : > { %12070 = vmatpush3.msra.mxu1 %v1083_v63  ;;  %12030 = vmatprep.subr.mxu0 %v1066_v0  ;;  %v838_v61 = vld [vmem:[%s14759_s29 + $0x1e0] sm:$0x1]  ;;  %v1165_v63 = vld [vmem:[%s18924_s7 + $0x9d8] sm:$0xff] }
  0x9f   : > { %12071 = vmatprep.subr.mxu1 %v1098_v1  ;;  %12031 = vmatpush3.msra.mxu0 %v1050_v2  ;;  %v841_v0 = vld [vmem:[%s14759_s29 + $0x1f8] sm:$0x1] }
  0xa0   : > { %12072 = vmatpush3.msra.mxu1 %v1082_v3  ;;  %12032 = vmatprep.subr.mxu0 %v1065_v4  ;;  %v1117_v1 = vld [vmem:[%s18924_s7 + $0x858] sm:$0xff]  ;;  %v1132_v3 = vld [vmem:[%s18924_s7 + $0x8d0] sm:$0xff] }
  0xa1   : > { %12073 = vmatprep.subr.mxu1 %v1097_v5  ;;  %12033 = vmatpush3.msra.mxu0 %v1049_v6  ;;  %v1149_v2 = vld [vmem:[%s18924_s7 + $0x958] sm:$0xff]  ;;  %v840_v4 = vld [vmem:[%s14759_s29 + $0x1f0] sm:$0x1] }
  0xa2   : > { %12074 = vmatpush3.msra.mxu1 %v1081_v7  ;;  %12034 = vmatprep.subr.mxu0 %v1064_v8  ;;  %v1164_v5 = vld [vmem:[%s18924_s7 + $0x9d0] sm:$0xff]  ;;  %v1131_v8 = vld [vmem:[%s18924_s7 + $0x8c8] sm:$0xff] }
  0xa3   : > { %12075 = vmatprep.subr.mxu1 %v1096_v9  ;;  %12035 = vmatpush3.msra.mxu0 %v1048_v10  ;;  %v1116_v6 = vld [vmem:[%s18924_s7 + $0x850] sm:$0xff]  ;;  %v1163_v9 = vld [vmem:[%s18924_s7 + $0x9c8] sm:$0xff] }
  0xa4   : > { %12076 = vmatpush3.msra.mxu1 %v1080_v11  ;;  %12036 = vmatprep.subr.mxu0 %v1063_v12  ;;  %v1148_v7 = vld [vmem:[%s18924_s7 + $0x950] sm:$0xff]  ;;  %v1115_v10 = vld [vmem:[%s18924_s7 + $0x848] sm:$0xff]  ;;  %v1130_v12 = vld [vmem:[%s18924_s7 + $0x8c0] sm:$0xff] }
  0xa5   : > { %12077 = vmatprep.subr.mxu1 %v1095_v13  ;;  %12037 = vmatpush3.msra.mxu0 %v1047_v14  ;;  %v1147_v11 = vld [vmem:[%s18924_s7 + $0x948] sm:$0xff]  ;;  %v1162_v13 = vld [vmem:[%s18924_s7 + $0x9c0] sm:$0xff] }
  0xa6   : > { %12078 = vmatpush3.msra.mxu1 %v1079_v15  ;;  %12038 = vmatprep.subr.mxu0 %v1062_v16  ;;  %v1114_v14 = vld [vmem:[%s18924_s7 + $0x840] sm:$0xff]  ;;  %v1129_v16 = vld [vmem:[%s18924_s7 + $0x8b8] sm:$0xff] }
  0xa7   : > { %12079 = vmatprep.subr.mxu1 %v1094_v17  ;;  %12039 = vmatpush3.msra.mxu0 %v1046_v18  ;;  %v1146_v15 = vld [vmem:[%s18924_s7 + $0x940] sm:$0xff]  ;;  %v1161_v17 = vld [vmem:[%s18924_s7 + $0x9b8] sm:$0xff] }
  0xa8   : > { %12080 = vmatpush3.msra.mxu1 %v1078_v19  ;;  %12040 = vmatprep.subr.mxu0 %v1061_v20  ;;  %v1113_v18 = vld [vmem:[%s18924_s7 + $0x838] sm:$0xff]  ;;  %v1128_v20 = vld [vmem:[%s18924_s7 + $0x8b0] sm:$0xff] }
  0xa9   : > { %12081 = vmatprep.subr.mxu1 %v1093_v21  ;;  %12041 = vmatpush3.msra.mxu0 %v1045_v22  ;;  %v1145_v19 = vld [vmem:[%s18924_s7 + $0x938] sm:$0xff]  ;;  %v1160_v21 = vld [vmem:[%s18924_s7 + $0x9b0] sm:$0xff] }
  0xaa   : > { %12082 = vmatpush3.msra.mxu1 %v1077_v23  ;;  %12042 = vmatprep.subr.mxu0 %v1060_v24  ;;  %v1112_v22 = vld [vmem:[%s18924_s7 + $0x830] sm:$0xff]  ;;  %v1127_v24 = vld [vmem:[%s18924_s7 + $0x8a8] sm:$0xff] }
  0xab   : > { %12083 = vmatprep.subr.mxu1 %v1092_v25  ;;  %12043 = vmatpush3.msra.mxu0 %v1044_v26  ;;  %v1144_v23 = vld [vmem:[%s18924_s7 + $0x930] sm:$0xff]  ;;  %v1159_v25 = vld [vmem:[%s18924_s7 + $0x9a8] sm:$0xff] }
  0xac   : > { %12084 = vmatpush3.msra.mxu1 %v1076_v27  ;;  %12044 = vmatprep.subr.mxu0 %v1059_v28  ;;  %v1111_v26 = vld [vmem:[%s18924_s7 + $0x828] sm:$0xff]  ;;  %v1126_v28 = vld [vmem:[%s18924_s7 + $0x8a0] sm:$0xff] }
  0xad   : > { %12085 = vmatprep.subr.mxu1 %v1091_v29  ;;  %12045 = vmatpush3.msra.mxu0 %v1043_v30  ;;  %v1143_v27 = vld [vmem:[%s18924_s7 + $0x928] sm:$0xff]  ;;  %v1158_v29 = vld [vmem:[%s18924_s7 + $0x9a0] sm:$0xff] }
  0xae   : > { %12086 = vmatpush3.msra.mxu1 %v1075_v31  ;;  %12046 = vmatprep.subr.mxu0 %v1058_v32  ;;  %v1110_v30 = vld [vmem:[%s18924_s7 + $0x820] sm:$0xff]  ;;  %v1125_v32 = vld [vmem:[%s18924_s7 + $0x898] sm:$0xff] }
  0xaf   : > { %12087 = vmatprep.subr.mxu1 %v1090_v33  ;;  %12047 = vmatpush3.msra.mxu0 %v1042_v34  ;;  %v1142_v31 = vld [vmem:[%s18924_s7 + $0x920] sm:$0xff]  ;;  %v1157_v33 = vld [vmem:[%s18924_s7 + $0x998] sm:$0xff] }
  0xb0   : > { %1781 = vmatprep.mubr.f32.mxu0 %v791_v35  ;;  %12088 = vmatpush3.msra.mxu1 %v1074_v36  ;;  %v1109_v34 = vld [vmem:[%s18924_s7 + $0x818] sm:$0xff]  ;;  %v1124_v36 = vld [vmem:[%s18924_s7 + $0x890] sm:$0xff] }
  0xb1   : > { %1782 = vmatmul.mubr.f32.vlgmr.msra.gmra.mxu0 %v790_v37  ;;  %1861 = vmatprep.mubr.f32.mxu1 %v793_v38  ;;  %v1141_v35 = vld [vmem:[%s18924_s7 + $0x918] sm:$0xff]  ;;  %v1156_v37 = vld [vmem:[%s18924_s7 + $0x990] sm:$0xff] }
  0xb2   : > { %12098 = vmatprep.subr.mxu0 %v1137_v39  ;;  %12139 = vmatprep.subr.mxu1 %v1169_v40  ;;  %v1108_v38 = vld [vmem:[%s18924_s7 + $0x810] sm:$0xff]  ;;  %v1123_v40 = vld [vmem:[%s18924_s7 + $0x888] sm:$0xff] }
  0xb3   : > { %1862 = vmatmul.mubr.f32.vlgmr.msra.gmra.mxu1 %v792_v41  ;;  %12099 = vmatpush3.msra.mxu0 %v1121_v42  ;;  %v1140_v39 = vld [vmem:[%s18924_s7 + $0x910] sm:$0xff]  ;;  %v1155_v41 = vld [vmem:[%s18924_s7 + $0x988] sm:$0xff] }
  0xb4   : > { %12140 = vmatpush3.msra.mxu1 %v1153_v43  ;;  %12100 = vmatprep.subr.mxu0 %v1136_v44  ;;  %v1107_v42 = vld [vmem:[%s18924_s7 + $0x808] sm:$0xff]  ;;  %v1122_v44 = vld [vmem:[%s18924_s7 + $0x880] sm:$0xff] }
  0xb5   : > { %12141 = vmatprep.subr.mxu1 %v1168_v45  ;;  %1786 = vmatprep.mubr.f32.mxu0 %v815_v46  ;;  %v1139_v43 = vld [vmem:[%s18924_s7 + $0x908] sm:$0xff]  ;;  %v1154_v45 = vld [vmem:[%s18924_s7 + $0x980] sm:$0xff] }
  0xb6   : > { %12101 = vmatpush3.msra.mxu0 %v1120_v47  ;;  %12142 = vmatpush3.msra.mxu1 %v1152_v48  ;;  %v1106_v46 = vld [vmem:[%s18924_s7 + $0x800] sm:$0xff]  ;;  %v795_v47 = vld [vmem:[%s14759_s29 + $0x88] sm:$0xff] }
  0xb7   : > { %1787 = vmatmul.mubr.f32.gmra.mxu0 %v814_v49  ;;  %12102 = vmatprep.subr.mxu0 %v1135_v50  ;;  %v1138_v48 = vld [vmem:[%s18924_s7 + $0x900] sm:$0xff]  ;;  %v797_v50 = vld [vmem:[%s14759_s29 + $0x98] sm:$0xff] }
  0xb8   : > { %12143 = vmatprep.subr.mxu1 %v1167_v51  ;;  %1866 = vmatprep.mubr.f32.mxu1 %v817_v52  ;;  %v794_v49 = vld [vmem:[%s14759_s29 + $0x80] sm:$0xff]  ;;  %v1201_v51 = vld [vmem:[%s18924_s7 + $0xaf8] sm:$0xff] }
  0xb9   : > { %12103 = vmatpush3.msra.mxu0 %v1119_v53  ;;  %12144 = vmatpush3.msra.mxu1 %v1151_v54  ;;  %v1233_v52 = vld [vmem:[%s18924_s7 + $0xbf8] sm:$0xff]  ;;  %v796_v53 = vld [vmem:[%s14759_s29 + $0x90] sm:$0xff] }
  0xba   : > { %12104 = vmatprep.subr.mxu0 %v1134_v55  ;;  %1867 = vmatmul.mubr.f32.gmra.mxu1 %v816_v56  ;;  %v1185_v54 = vld [vmem:[%s18924_s7 + $0xa78] sm:$0xff]  ;;  %v1200_v56 = vld [vmem:[%s18924_s7 + $0xaf0] sm:$0xff] }
  0xbb   : > { %12145 = vmatprep.subr.mxu1 %v1166_v57  ;;  %1791 = vmatprep.mubr.f32.mxu0 %v839_v58  ;;  %v1217_v55 = vld [vmem:[%s18924_s7 + $0xb78] sm:$0xff]  ;;  %v1232_v57 = vld [vmem:[%s18924_s7 + $0xbf0] sm:$0xff]  ;;  %v819_v58 = vld [vmem:[%s14759_s29 + $0x148] sm:$0xff] }
  0xbc   : > { %12105 = vmatpush3.msra.mxu0 %v1118_v59  ;;  %12146 = vmatpush3.msra.mxu1 %v1150_v60  ;;  %v1184_v59 = vld [vmem:[%s18924_s7 + $0xa70] sm:$0xff] }
  0xbd   : > { %1792 = vmatmul.mubr.f32.gmra.mxu0 %v838_v61  ;;  %12106 = vmatprep.subr.mxu0 %v1133_v62  ;;  %v1216_v60 = vld [vmem:[%s18924_s7 + $0xb70] sm:$0xff]  ;;  %v818_v61 = vld [vmem:[%s14759_s29 + $0x140] sm:$0xff]  ;;  %v1199_v62 = vld [vmem:[%s18924_s7 + $0xae8] sm:$0xff] }
  0xbe   : > { %12147 = vmatprep.subr.mxu1 %v1165_v63  ;;  %1871 = vmatprep.mubr.f32.mxu1 %v841_v0  ;;  %v1231_v63 = vld [vmem:[%s18924_s7 + $0xbe8] sm:$0xff]  ;;  %v821_v0 = vld [vmem:[%s14759_s29 + $0x158] sm:$0xff] }
  0xbf   : > { %12107 = vmatpush3.msra.mxu0 %v1117_v1  ;;  %12148 = vmatpush3.msra.mxu1 %v1149_v2  ;;  %v1183_v1 = vld [vmem:[%s18924_s7 + $0xa68] sm:$0xff] }
  0xc0   : > { %12108 = vmatprep.subr.mxu0 %v1132_v3  ;;  %1872 = vmatmul.mubr.f32.gmra.mxu1 %v840_v4  ;;  %v1215_v2 = vld [vmem:[%s18924_s7 + $0xb68] sm:$0xff]  ;;  %v1198_v3 = vld [vmem:[%s18924_s7 + $0xae0] sm:$0xff]  ;;  %v820_v4 = vld [vmem:[%s14759_s29 + $0x150] sm:$0xff] }
  0xc1   : > { %12149 = vmatprep.subr.mxu1 %v1164_v5  ;;  %12109 = vmatpush3.msra.mxu0 %v1116_v6  ;;  %v1230_v5 = vld [vmem:[%s18924_s7 + $0xbe0] sm:$0xff]  ;;  %v843_v6 = vld [vmem:[%s14759_s29 + $0x208] sm:$0x1] }
  0xc2   : > { %12150 = vmatpush3.msra.mxu1 %v1148_v7  ;;  %12110 = vmatprep.subr.mxu0 %v1131_v8  ;;  %v1182_v7 = vld [vmem:[%s18924_s7 + $0xa60] sm:$0xff] }
  0xc3   : > { %12151 = vmatprep.subr.mxu1 %v1163_v9  ;;  %12111 = vmatpush3.msra.mxu0 %v1115_v10  ;;  %v1214_v8 = vld [vmem:[%s18924_s7 + $0xb60] sm:$0xff]  ;;  %v1197_v10 = vld [vmem:[%s18924_s7 + $0xad8] sm:$0xff] }
  0xc4   : > { %12152 = vmatpush3.msra.mxu1 %v1147_v11  ;;  %12112 = vmatprep.subr.mxu0 %v1130_v12  ;;  %v842_v9 = vld [vmem:[%s14759_s29 + $0x200] sm:$0x1]  ;;  %v1229_v11 = vld [vmem:[%s18924_s7 + $0xbd8] sm:$0xff] }
  0xc5   : > { %12153 = vmatprep.subr.mxu1 %v1162_v13  ;;  %12113 = vmatpush3.msra.mxu0 %v1114_v14  ;;  %v845_v12 = vld [vmem:[%s14759_s29 + $0x218] sm:$0x1] }
  0xc6   : > { %12154 = vmatpush3.msra.mxu1 %v1146_v15  ;;  %12114 = vmatprep.subr.mxu0 %v1129_v16  ;;  %v1181_v13 = vld [vmem:[%s18924_s7 + $0xa58] sm:$0xff]  ;;  %v1196_v15 = vld [vmem:[%s18924_s7 + $0xad0] sm:$0xff] }
  0xc7   : > { %12155 = vmatprep.subr.mxu1 %v1161_v17  ;;  %12115 = vmatpush3.msra.mxu0 %v1113_v18  ;;  %v1213_v14 = vld [vmem:[%s18924_s7 + $0xb58] sm:$0xff]  ;;  %v844_v16 = vld [vmem:[%s14759_s29 + $0x210] sm:$0x1] }
  0xc8   : > { %12156 = vmatpush3.msra.mxu1 %v1145_v19  ;;  %12116 = vmatprep.subr.mxu0 %v1128_v20  ;;  %v1228_v17 = vld [vmem:[%s18924_s7 + $0xbd0] sm:$0xff]  ;;  %v1195_v20 = vld [vmem:[%s18924_s7 + $0xac8] sm:$0xff] }
  0xc9   : > { %12157 = vmatprep.subr.mxu1 %v1160_v21  ;;  %12117 = vmatpush3.msra.mxu0 %v1112_v22  ;;  %v1180_v18 = vld [vmem:[%s18924_s7 + $0xa50] sm:$0xff]  ;;  %v1227_v21 = vld [vmem:[%s18924_s7 + $0xbc8] sm:$0xff] }
  0xca   : > { %12158 = vmatpush3.msra.mxu1 %v1144_v23  ;;  %12118 = vmatprep.subr.mxu0 %v1127_v24  ;;  %v1212_v19 = vld [vmem:[%s18924_s7 + $0xb50] sm:$0xff]  ;;  %v1179_v22 = vld [vmem:[%s18924_s7 + $0xa48] sm:$0xff]  ;;  %v1194_v24 = vld [vmem:[%s18924_s7 + $0xac0] sm:$0xff] }
  0xcb   : > { %12159 = vmatprep.subr.mxu1 %v1159_v25  ;;  %12119 = vmatpush3.msra.mxu0 %v1111_v26  ;;  %v1211_v23 = vld [vmem:[%s18924_s7 + $0xb48] sm:$0xff]  ;;  %v1226_v25 = vld [vmem:[%s18924_s7 + $0xbc0] sm:$0xff] }
  0xcc   : > { %12160 = vmatpush3.msra.mxu1 %v1143_v27  ;;  %12120 = vmatprep.subr.mxu0 %v1126_v28  ;;  %v1178_v26 = vld [vmem:[%s18924_s7 + $0xa40] sm:$0xff]  ;;  %v1193_v28 = vld [vmem:[%s18924_s7 + $0xab8] sm:$0xff] }
  0xcd   : > { %12161 = vmatprep.subr.mxu1 %v1158_v29  ;;  %12121 = vmatpush3.msra.mxu0 %v1110_v30  ;;  %v1210_v27 = vld [vmem:[%s18924_s7 + $0xb40] sm:$0xff]  ;;  %v1225_v29 = vld [vmem:[%s18924_s7 + $0xbb8] sm:$0xff] }
  0xce   : > { %12162 = vmatpush3.msra.mxu1 %v1142_v31  ;;  %12122 = vmatprep.subr.mxu0 %v1125_v32  ;;  %v1177_v30 = vld [vmem:[%s18924_s7 + $0xa38] sm:$0xff]  ;;  %v1192_v32 = vld [vmem:[%s18924_s7 + $0xab0] sm:$0xff] }
  0xcf   : > { %12163 = vmatprep.subr.mxu1 %v1157_v33  ;;  %12123 = vmatpush3.msra.mxu0 %v1109_v34  ;;  %v1209_v31 = vld [vmem:[%s18924_s7 + $0xb38] sm:$0xff]  ;;  %v1224_v33 = vld [vmem:[%s18924_s7 + $0xbb0] sm:$0xff] }
  0xd0   : > { %12164 = vmatpush3.msra.mxu1 %v1141_v35  ;;  %12124 = vmatprep.subr.mxu0 %v1124_v36  ;;  %v1176_v34 = vld [vmem:[%s18924_s7 + $0xa30] sm:$0xff]  ;;  %v1191_v36 = vld [vmem:[%s18924_s7 + $0xaa8] sm:$0xff] }
  0xd1   : > { %12165 = vmatprep.subr.mxu1 %v1156_v37  ;;  %12125 = vmatpush3.msra.mxu0 %v1108_v38  ;;  %v1208_v35 = vld [vmem:[%s18924_s7 + $0xb30] sm:$0xff]  ;;  %v1223_v37 = vld [vmem:[%s18924_s7 + $0xba8] sm:$0xff] }
  0xd2   : > { %12166 = vmatpush3.msra.mxu1 %v1140_v39  ;;  %12126 = vmatprep.subr.mxu0 %v1123_v40  ;;  %v1175_v38 = vld [vmem:[%s18924_s7 + $0xa28] sm:$0xff]  ;;  %v1190_v40 = vld [vmem:[%s18924_s7 + $0xaa0] sm:$0xff] }
  0xd3   : > { %12167 = vmatprep.subr.mxu1 %v1155_v41  ;;  %12127 = vmatpush3.msra.mxu0 %v1107_v42  ;;  %v1207_v39 = vld [vmem:[%s18924_s7 + $0xb28] sm:$0xff]  ;;  %v1222_v41 = vld [vmem:[%s18924_s7 + $0xba0] sm:$0xff] }
  0xd4   : > { %12168 = vmatpush3.msra.mxu1 %v1139_v43  ;;  %12128 = vmatprep.subr.mxu0 %v1122_v44  ;;  %v1174_v42 = vld [vmem:[%s18924_s7 + $0xa20] sm:$0xff]  ;;  %v1189_v44 = vld [vmem:[%s18924_s7 + $0xa98] sm:$0xff] }
  0xd5   : > { %12169 = vmatprep.subr.mxu1 %v1154_v45  ;;  %12129 = vmatpush3.msra.mxu0 %v1106_v46  ;;  %v1206_v43 = vld [vmem:[%s18924_s7 + $0xb20] sm:$0xff]  ;;  %v1221_v45 = vld [vmem:[%s18924_s7 + $0xb98] sm:$0xff] }
  0xd6   : > { %1941 = vmatprep.mubr.f32.mxu0 %v795_v47  ;;  %12170 = vmatpush3.msra.mxu1 %v1138_v48  ;;  %v1173_v46 = vld [vmem:[%s18924_s7 + $0xa18] sm:$0xff]  ;;  %v1188_v48 = vld [vmem:[%s18924_s7 + $0xa90] sm:$0xff] }
  0xd7   : > { %1942 = vmatmul.mubr.f32.vlgmr.msra.gmra.mxu0 %v794_v49  ;;  %2021 = vmatprep.mubr.f32.mxu1 %v797_v50  ;;  %v1205_v47 = vld [vmem:[%s18924_s7 + $0xb18] sm:$0xff]  ;;  %v1220_v49 = vld [vmem:[%s18924_s7 + $0xb90] sm:$0xff] }
  0xd8   : > { %12180 = vmatprep.subr.mxu0 %v1201_v51  ;;  %12221 = vmatprep.subr.mxu1 %v1233_v52  ;;  %v1172_v50 = vld [vmem:[%s18924_s7 + $0xa10] sm:$0xff]  ;;  %v1187_v52 = vld [vmem:[%s18924_s7 + $0xa88] sm:$0xff] }
  0xd9   : > { %2022 = vmatmul.mubr.f32.vlgmr.msra.gmra.mxu1 %v796_v53  ;;  %12181 = vmatpush3.msra.mxu0 %v1185_v54  ;;  %v1204_v51 = vld [vmem:[%s18924_s7 + $0xb10] sm:$0xff]  ;;  %v1219_v53 = vld [vmem:[%s18924_s7 + $0xb88] sm:$0xff] }
  0xda   : > { %12222 = vmatpush3.msra.mxu1 %v1217_v55  ;;  %12182 = vmatprep.subr.mxu0 %v1200_v56  ;;  %v1171_v54 = vld [vmem:[%s18924_s7 + $0xa08] sm:$0xff]  ;;  %v1186_v56 = vld [vmem:[%s18924_s7 + $0xa80] sm:$0xff] }
  0xdb   : > { %12223 = vmatprep.subr.mxu1 %v1232_v57  ;;  %1946 = vmatprep.mubr.f32.mxu0 %v819_v58  ;;  %v1203_v55 = vld [vmem:[%s18924_s7 + $0xb08] sm:$0xff]  ;;  %v1218_v57 = vld [vmem:[%s18924_s7 + $0xb80] sm:$0xff] }
  0xdc   : > { %12183 = vmatpush3.msra.mxu0 %v1184_v59  ;;  %12224 = vmatpush3.msra.mxu1 %v1216_v60  ;;  %v1170_v58 = vld [vmem:[%s18924_s7 + $0xa00] sm:$0xff]  ;;  %v799_v59 = vld [vmem:[%s14759_s29 + $0xa8] sm:$0xff] }
  0xdd   : > { %1947 = vmatmul.mubr.f32.gmra.mxu0 %v818_v61  ;;  %12184 = vmatprep.subr.mxu0 %v1199_v62  ;;  %v1202_v60 = vld [vmem:[%s18924_s7 + $0xb00] sm:$0xff]  ;;  %v801_v61 = vld [vmem:[%s14759_s29 + $0xb8] sm:$0xff] }
  0xde   : > { %12225 = vmatprep.subr.mxu1 %v1231_v63  ;;  %2026 = vmatprep.mubr.f32.mxu1 %v821_v0  ;;  %v798_v62 = vld [vmem:[%s14759_s29 + $0xa0] sm:$0xff]  ;;  %v800_v63 = vld [vmem:[%s14759_s29 + $0xb0] sm:$0xff]  ;;  %v823_v0 = vld [vmem:[%s14759_s29 + $0x168] sm:$0xff] }
  0xdf   : > { %12185 = vmatpush3.msra.mxu0 %v1183_v1  ;;  %12226 = vmatpush3.msra.mxu1 %v1215_v2  ;;  %v825_v1 = vld [vmem:[%s14759_s29 + $0x178] sm:$0xff]  ;;  %v822_v2 = vld [vmem:[%s14759_s29 + $0x160] sm:$0xff] }
  0xe0   : > { %12186 = vmatprep.subr.mxu0 %v1198_v3  ;;  %2027 = vmatmul.mubr.f32.gmra.mxu1 %v820_v4  ;;  %v824_v3 = vld [vmem:[%s14759_s29 + $0x170] sm:$0xff]  ;;  %v847_v4 = vld [vmem:[%s14759_s29 + $0x228] sm:$0x1] }
  0xe1   : > { %12227 = vmatprep.subr.mxu1 %v1230_v5  ;;  %1951 = vmatprep.mubr.f32.mxu0 %v843_v6  ;;  %v849_v5 = vld [vmem:[%s14759_s29 + $0x238] sm:$0x1]  ;;  %v846_v6 = vld [vmem:[%s14759_s29 + $0x220] sm:$0x1] }
  0xe2   : > { %12187 = vmatpush3.msra.mxu0 %v1182_v7  ;;  %12228 = vmatpush3.msra.mxu1 %v1214_v8  ;;  %v848_v7 = vld [vmem:[%s14759_s29 + $0x230] sm:$0x1]  ;;  %s18940_s29 = sld [smem:[#allocation15_spill]] }
  0xe3   : > { %1952 = vmatmul.mubr.f32.gmra.mxu0 %v842_v9  ;;  %12188 = vmatprep.subr.mxu0 %v1197_v10 }
  0xe4   : > { %12229 = vmatprep.subr.mxu1 %v1229_v11  ;;  %2031 = vmatprep.mubr.f32.mxu1 %v845_v12 }
  0xe5   : > { %12189 = vmatpush3.msra.mxu0 %v1181_v13  ;;  %12230 = vmatpush3.msra.mxu1 %v1213_v14 }
  0xe6   : > { %12190 = vmatprep.subr.mxu0 %v1196_v15  ;;  %2032 = vmatmul.mubr.f32.gmra.mxu1 %v844_v16 }
  0xe7   : > { %12231 = vmatprep.subr.mxu1 %v1228_v17  ;;  %12191 = vmatpush3.msra.mxu0 %v1180_v18 }
  0xe8   : > { %12232 = vmatpush3.msra.mxu1 %v1212_v19  ;;  %12192 = vmatprep.subr.mxu0 %v1195_v20  ;;  %s772_s5 = scalar_lea.vmem %s18940_s29, %s18939_s8 }
  0xe9   : > { %12233 = vmatprep.subr.mxu1 %v1227_v21  ;;  %12193 = vmatpush3.msra.mxu0 %v1179_v22 }
  0xea   : > { %12234 = vmatpush3.msra.mxu1 %v1211_v23  ;;  %12194 = vmatprep.subr.mxu0 %v1194_v24 }
  0xeb   : > { %12235 = vmatprep.subr.mxu1 %v1226_v25  ;;  %12195 = vmatpush3.msra.mxu0 %v1178_v26 }
  0xec   : > { %12236 = vmatpush3.msra.mxu1 %v1210_v27  ;;  %12196 = vmatprep.subr.mxu0 %v1193_v28 }
  0xed   : > { %12237 = vmatprep.subr.mxu1 %v1225_v29  ;;  %12197 = vmatpush3.msra.mxu0 %v1177_v30 }
  0xee   : > { %12238 = vmatpush3.msra.mxu1 %v1209_v31  ;;  %12198 = vmatprep.subr.mxu0 %v1192_v32 }
  0xef   : > { %12239 = vmatprep.subr.mxu1 %v1224_v33  ;;  %12199 = vmatpush3.msra.mxu0 %v1176_v34 }
  0xf0   : > { %12240 = vmatpush3.msra.mxu1 %v1208_v35  ;;  %12200 = vmatprep.subr.mxu0 %v1191_v36 }
  0xf1   : > { %12241 = vmatprep.subr.mxu1 %v1223_v37  ;;  %12201 = vmatpush3.msra.mxu0 %v1175_v38 }
  0xf2   : > { %12242 = vmatpush3.msra.mxu1 %v1207_v39  ;;  %12202 = vmatprep.subr.mxu0 %v1190_v40 }
  0xf3   : > { %12243 = vmatprep.subr.mxu1 %v1222_v41  ;;  %12203 = vmatpush3.msra.mxu0 %v1174_v42 }
  0xf4   : > { %12244 = vmatpush3.msra.mxu1 %v1206_v43  ;;  %12204 = vmatprep.subr.mxu0 %v1189_v44 }
  0xf5   : > { %12245 = vmatprep.subr.mxu1 %v1221_v45  ;;  %12205 = vmatpush3.msra.mxu0 %v1173_v46 }
  0xf6   : > { %12246 = vmatpush3.msra.mxu1 %v1205_v47  ;;  %12206 = vmatprep.subr.mxu0 %v1188_v48 }
  0xf7   : > { %12247 = vmatprep.subr.mxu1 %v1220_v49  ;;  %12207 = vmatpush3.msra.mxu0 %v1172_v50 }
  0xf8   : > { %12248 = vmatpush3.msra.mxu1 %v1204_v51  ;;  %12208 = vmatprep.subr.mxu0 %v1187_v52 }
  0xf9   : > { %12249 = vmatprep.subr.mxu1 %v1219_v53  ;;  %12209 = vmatpush3.msra.mxu0 %v1171_v54  ;;  %v1234_v53 = vld [vmem:[%s18928_s9] sm:$0xff] }
  0xfa   : > { %12250 = vmatpush3.msra.mxu1 %v1203_v55  ;;  %12210 = vmatprep.subr.mxu0 %v1186_v56 }
  0xfb   : > { %12251 = vmatprep.subr.mxu1 %v1218_v57  ;;  %12211 = vmatpush3.msra.mxu0 %v1170_v58 }
  0xfc   : > { %2101 = vmatprep.mubr.f32.mxu0 %v799_v59  ;;  %12252 = vmatpush3.msra.mxu1 %v1202_v60 }
  0xfd   : > { %2181 = vmatprep.mubr.f32.mxu1 %v801_v61  ;;  %2102 = vmatmul.mubr.f32.vlgmr.msra.gmra.mxu0 %v798_v62 }
  0xfe   : > { %2182 = vmatmul.mubr.f32.vlgmr.msra.gmra.mxu1 %v800_v63  ;;  %2106 = vmatprep.mubr.f32.mxu0 %v823_v0 }
  0xff   : > { %2186 = vmatprep.mubr.f32.mxu1 %v825_v1  ;;  %v11802_v8 = vpop.f32.mrf.mxu0  ;;  %v1235_v1 = vld [vmem:[%s18928_s9 + $0x8] sm:$0xff] }
 0x101   : > { %2107 = vmatmul.mubr.f32.gmra.mxu0 %v822_v2  ;;  %v11843_v9 = vpop.f32.mrf.mxu1  ;;  %v11803_v10 = vpop.f32.mrf.mxu0 }
 0x102   : > { %2187 = vmatmul.mubr.f32.gmra.mxu1 %v824_v3  ;;  %2111 = vmatprep.mubr.f32.mxu0 %v847_v4  ;;  %v11804_v52 = vadd.f32 %v11803_v10, %v11802_v8  ;;  %v1236_v3 = vld [vmem:[%s18928_s9 + $0x10] sm:$0x1] }
 0x103   : > { %2191 = vmatprep.mubr.f32.mxu1 %v849_v5  ;;  %v11844_v11 = vpop.f32.mrf.mxu1 }
 0x104   : > { %v1304_v56 = vadd.f32 %v11804_v52, %v1234_v53  ;;  %v11845_v57 = vadd.f32 %v11844_v11, %v11843_v9 }
 0x105   : > { %2112 = vmatmul.mubr.f32.gmra.mxu0 %v846_v6 }
 0x106   : > { %2192 = vmatmul.mubr.f32.gmra.mxu1 %v848_v7  ;;  %v1384_v0 = vadd.f32 %v11845_v57, %v1304_v56 }
 0x118   : > { %v11805_v12 = vpop.f32.mrf.mxu0 }
 0x11a   : > { %v11806_v14 = vpop.f32.mrf.mxu0 }
 0x11b   : > { %v11846_v13 = vpop.f32.mrf.mxu1  ;;  %v11807_v61 = vadd.f32 %v11806_v14, %v11805_v12 }
 0x11d   : > { %v11847_v15 = vpop.f32.mrf.mxu1  ;;  %v1309_v6 = vadd.f32 %v11807_v61, %v1235_v1 }
 0x11e   : > { %v11808_v16 = vpop.f32.mrf.mxu0  ;;  %v11848_v7 = vadd.f32 %v11847_v15, %v11846_v13 }
 0x120   : > { %v11809_v18 = vpop.f32.mrf.mxu0  ;;  %v1389_v52 = vadd.f32 %v11848_v7, %v1309_v6 }
 0x121   : > { %v11849_v17 = vpop.f32.mrf.mxu1  ;;  %v11810_v2 = vadd.f32 %v11809_v18, %v11808_v16 }
 0x123   : > { %v11850_v19 = vpop.f32.mrf.mxu1  ;;  %v1314_v10 = vadd.f32 %v11810_v2, %v1236_v3 }
 0x124   : > { %v11851_v11 = vadd.f32 %v11850_v19, %v11849_v17 }
 0x125   : > { %v11884_v20 = vpop.f32.mrf.mxu0 }
 0x126   : > { %v1394_v16 = vadd.f32 %v11851_v11, %v1314_v10 }
 0x127   : > { %v11925_v21 = vpop.f32.mrf.mxu1  ;;  %v11885_v22 = vpop.f32.mrf.mxu0 }
 0x128   : > { %v11886_v60 = vadd.f32 %v11885_v22, %v11884_v20 }
 0x129   : > { %v11926_v23 = vpop.f32.mrf.mxu1 }
 0x12a   : > { %v1464_v4 = vadd.f32 %v11886_v60, %v1384_v0  ;;  %v11927_v5 = vadd.f32 %v11926_v23, %v11925_v21 }
 0x12b   : > { %v11887_v24 = vpop.f32.mrf.mxu0 }
 0x12c   : > { %v1544_v20 = vadd.f32 %v11927_v5, %v1464_v4 }
 0x12d   : > { %v11888_v26 = vpop.f32.mrf.mxu0 }
 0x12e   : > { %v11928_v25 = vpop.f32.mrf.mxu1  ;;  %v11889_v14 = vadd.f32 %v11888_v26, %v11887_v24 }
 0x130   : > { %v11929_v27 = vpop.f32.mrf.mxu1 }
 0x131   : > { %v11890_v28 = vpop.f32.mrf.mxu0 }
 0x133   : > { %v11891_v30 = vpop.f32.mrf.mxu0 }
 0x134   : > { %v11931_v29 = vpop.f32.mrf.mxu1  ;;  %v11892_v22 = vadd.f32 %v11891_v30, %v11890_v28 }
 0x136   : > { %v11932_v31 = vpop.f32.mrf.mxu1  ;;  %v1474_v60 = vadd.f32 %v11892_v22, %v1394_v16 }
 0x137   : > { %v11933_v21 = vadd.f32 %v11932_v31, %v11931_v29 }
 0x139   : > { %v1554_v24 = vadd.f32 %v11933_v21, %v1474_v60 }
 0x14b   : > { %v11966_v32 = vpop.f32.mrf.mxu0 }
 0x14d   : > { %v12007_v33 = vpop.f32.mrf.mxu1  ;;  %v11967_v34 = vpop.f32.mrf.mxu0 }
 0x14e   : > { %v11968_v12 = vadd.f32 %v11967_v34, %v11966_v32 }
 0x14f   : > { %v12008_v35 = vpop.f32.mrf.mxu1 }
 0x150   : > { %v1624_v18 = vadd.f32 %v11968_v12, %v1544_v20  ;;  %v12009_v57 = vadd.f32 %v12008_v35, %v12007_v33 }
 0x151   : > { %v11969_v36 = vpop.f32.mrf.mxu0 }
 0x152   : > { %v1704_v0 = vadd.f32 %v12009_v57, %v1624_v18 }
 0x153   : > { %v11970_v38 = vpop.f32.mrf.mxu0 }
 0x154   : > { %v15811_v37 = vpop.f32.mrf.mxu1  ;;  %v11971_v13 = vadd.f32 %v11970_v38, %v11969_v36 }
 0x156   : > { %v12011_v39 = vpop.f32.mrf.mxu1 }
 0x157   : > { %v11972_v40 = vpop.f32.mrf.mxu0  ;;  %v12012_v32 = vadd.f32 %v12011_v39, %v15811_v37 }
 0x159   : > { %v11973_v42 = vpop.f32.mrf.mxu0 }
 0x15a   : > { %v15813_v41 = vpop.f32.mrf.mxu1  ;;  %v11974_v17 = vadd.f32 %v11973_v42, %v11972_v40 }
 0x15c   : > { %v12014_v43 = vpop.f32.mrf.mxu1  ;;  %v1634_v33 = vadd.f32 %v11974_v17, %v1554_v24 }
 0x171   : > { %v12048_v44 = vpop.f32.mrf.mxu0 }
 0x173   : > { %v12089_v45 = vpop.f32.mrf.mxu1  ;;  %v12049_v46 = vpop.f32.mrf.mxu0 }
 0x174   : > { %v12050_v23 = vadd.f32 %v12049_v46, %v12048_v44 }
 0x175   : > { %v12090_v47 = vpop.f32.mrf.mxu1 }
 0x176   : > { %v1784_v26 = vadd.f32 %v12050_v23, %v1704_v0  ;;  %v12091_v28 = vadd.f32 %v12090_v47, %v12089_v45 }
 0x177   : > { %v12051_v48 = vpop.f32.mrf.mxu0 }
 0x178   : > { %v1864_v31 = vadd.f32 %v12091_v28, %v1784_v26 }
 0x179   : > { %v12052_v50 = vpop.f32.mrf.mxu0 }
 0x17a   : > { %v15815_v49 = vpop.f32.mrf.mxu1  ;;  %v12053_v29 = vadd.f32 %v12052_v50, %v12051_v48 }
 0x17c   : > { %v15817_v51 = vpop.f32.mrf.mxu1 }
 0x17d   : > { %18927 = vst [vmem:[#allocation3_spill] sm:$0xff] %v15817_v51  ;;  %v12054_v54 = vpop.f32.mrf.mxu0  ;;  %v11930_v51 = vadd.f32 %v11929_v27, %v11928_v25  ;;  %v12015_v25 = vadd.f32 %v12014_v43, %v15813_v41 }
 0x17f   : > { %v12055_v58 = vpop.f32.mrf.mxu0  ;;  %v1714_v40 = vadd.f32 %v12015_v25, %v1634_v33 }
 0x180   : > { %v15822_v55 = vpop.f32.mrf.mxu1  ;;  %v12056_v35 = vadd.f32 %v12055_v58, %v12054_v54 }
 0x181   : > { %18929 = vst [vmem:[#allocation4_spill] sm:$0xff] %v15822_v55  ;;  %v1469_v55 = vadd.f32 %v11889_v14, %v1389_v52 }
 0x182   : > { %v12096_v59 = vpop.f32.mrf.mxu1 }
 0x183   : > { %v1549_v19 = vadd.f32 %v11930_v51, %v1469_v55  ;;  %v1794_v55 = vadd.f32 %v12056_v35, %v1714_v40 }
 0x184   : > { %v18930_v45 = vld [vmem:[#allocation3_spill] sm:$0xff] }
 0x185   : > { %v1629_v30 = vadd.f32 %v11971_v13, %v1549_v19  ;;  %v12094_v47 = vadd.f32 %v18930_v45, %v15815_v49 }
 0x187   : > { %v1709_v36 = vadd.f32 %v12012_v32, %v1629_v30 }
 0x188   : > { %v18931_v2 = vld [vmem:[#allocation4_spill] sm:$0xff] }
 0x189   : > { %v1789_v51 = vadd.f32 %v12053_v29, %v1709_v36  ;;  %v12097_v3 = vadd.f32 %v12096_v59, %v18931_v2 }
 0x18b   : > { %v1874_v6 = vadd.f32 %v12097_v3, %v1794_v55  ;;  %v11066_v55 = vld [vmem:[%s18932_s26] ss:$0 sm:$0xff]  ;;  %s18935_s26 = sld [smem:[#allocation14_spill]] }
 0x18c   : > { %v11067_v3 = vld [vmem:[%s18933_s4] ss:$0 sm:$0xff] }
 0x197   : > { %v12130_v62 = vpop.f32.mrf.mxu0 }
 0x199   : > { %v12171_v63 = vpop.f32.mrf.mxu1  ;;  %v12131_v8 = vpop.f32.mrf.mxu0 }
 0x19a   : > { %v12132_v27 = vadd.f32 %v12131_v8, %v12130_v62  ;;  %v1869_v62 = vadd.f32 %v12094_v47, %v1789_v51 }
 0x19b   : > { %v12172_v9 = vpop.f32.mrf.mxu1 }
 0x19c   : > { %v1944_v42 = vadd.f32 %v12132_v27, %v1864_v31  ;;  %v12173_v46 = vadd.f32 %v12172_v9, %v12171_v63 }
 0x19d   : > { %v12133_v53 = vpop.f32.mrf.mxu0 }
 0x19e   : > { %v2024_v50 = vadd.f32 %v12173_v46, %v1944_v42 }
 0x19f   : > { %v12134_v15 = vpop.f32.mrf.mxu0 }
 0x1a0   : > { %v12174_v56 = vpop.f32.mrf.mxu1  ;;  %v12135_v41 = vadd.f32 %v12134_v15, %v12133_v53 }
 0x1a2   : > { %v12175_v61 = vpop.f32.mrf.mxu1  ;;  %v1949_v8 = vadd.f32 %v12135_v41, %v1869_v62 }
 0x1a3   : > { %v12136_v34 = vpop.f32.mrf.mxu0  ;;  %v12176_v10 = vadd.f32 %v12175_v61, %v12174_v56 }
 0x1a5   : > { %v12137_v38 = vpop.f32.mrf.mxu0  ;;  %v2029_v18 = vadd.f32 %v12176_v10, %v1949_v8 }
 0x1a6   : > { %v12177_v1 = vpop.f32.mrf.mxu1  ;;  %v12138_v54 = vadd.f32 %v12137_v38, %v12136_v34 }
 0x1a8   : > { %v12178_v44 = vpop.f32.mrf.mxu1  ;;  %v1954_v11 = vadd.f32 %v12138_v54, %v1874_v6 }
 0x1a9   : > { %v12179_v12 = vadd.f32 %v12178_v44, %v12177_v1 }
 0x1ab   : > { %v2034_v57 = vadd.f32 %v12179_v12, %v1954_v11 }
 0x1bd   : > { %v12212_v37 = vpop.f32.mrf.mxu0 }
 0x1be   : > { %v12253_v39 = vpop.f32.mrf.mxu1 }
 0x1bf   : > { %v12213_v43 = vpop.f32.mrf.mxu0 }
 0x1c0   : > { %v12254_v48 = vpop.f32.mrf.mxu1  ;;  %v12214_v58 = vadd.f32 %v12213_v43, %v12212_v37 }
 0x1c1   : > { %v12215_v4 = vpop.f32.mrf.mxu0  ;;  %v12255_v63 = vadd.f32 %v12254_v48, %v12253_v39 }
 0x1c2   : > { %v12256_v5 = vpop.f32.mrf.mxu1  ;;  %v2104_v7 = vadd.f32 %v12214_v58, %v2024_v50 }
 0x1c3   : > { %v12216_v9 = vpop.f32.mrf.mxu0 }
 0x1c4   : > { %v12257_v49 = vpop.f32.mrf.mxu1  ;;  %v2184_v59 = vadd.f32 %v12255_v63, %v2104_v7  ;;  %v12217_v22 = vadd.f32 %v12216_v9, %v12215_v4 }
 0x1c5   : > { %v12218_v14 = vpop.f32.mrf.mxu0  ;;  %v12258_v15 = vadd.f32 %v12257_v49, %v12256_v5 }
 0x1c6   : > { %v12259_v20 = vpop.f32.mrf.mxu1  ;;  %v2200_v52 = vsel %vm2199_vm0, %v2184_v59, 0.0  ;;  %v2109_v21 = vadd.f32 %v12217_v22, %v2029_v18 }
 0x1c7   : > { %v12219_v53 = vpop.f32.mrf.mxu0  ;;  %2201 = vadd.xlane.f32.xlu1 %v2200_v52 }
 0x1c8   : > { %v12260_v16 = vpop.f32.mrf.mxu1  ;;  %v12220_v60 = vadd.f32 %v12219_v53, %v12218_v14  ;;  %v2189_v0 = vadd.f32 %v12258_v15, %v2109_v21  ;;  %v14428_v21 = vmov 0.0   ;;  %v2323_v15 = vld [vmem:[%s18934_s27 + $0x28] sm:$0xff] }
 0x1c9   : > { %v12261_v23 = vadd.f32 %v12260_v16, %v12259_v20  ;;  %12912 = vmatprep.subr.mxu0 %v14428_v21  ;;  %12928 = vmatprep.mubr.msk.f32.mxu0 %vm14429_vm2, %v14428_v21 }
 0x1ca   : > { %v2114_v13 = vadd.f32 %v12220_v60, %v2034_v57  ;;  %v2203_v17 = vsel %vm2199_vm0, %v2189_v0, 0.0 }
 0x1cc   : > { %v2194_v56 = vadd.f32 %v12261_v23, %v2114_v13  ;;  %v2325_v23 = vld [vmem:[%s18934_s27 + $0x38] sm:$0xff]  ;;  %v2324_v13 = vld [vmem:[%s18934_s27 + $0x30] sm:$0xff] }
 0x1cd   : > { %12913 = vmatpush3.msra.mxu0 %v2325_v23 }
 0x1ce   : > { %v2207_v61 = vsel %vm2206_vm1, %v2194_v56, 0.0  ;;  %12914 = vmatprep.subr.mxu0 %v14428_v21 }
 0x1cf   : > { %2208 = vadd.xlane.f32.xlu0 %v2207_v61  ;;  %12915 = vmatpush3.msra.mxu0 %v2324_v13  ;;  %v2321_v61 = vld [vmem:[%s18934_s27 + $0x18] sm:$0xff] }
 0x1d0   : > { %12916 = vmatprep.subr.mxu0 %v14428_v21 }
 0x1d1   : > { %12917 = vmatpush3.msra.mxu0 %v2323_v15 }
 0x1d2   : > { %12918 = vmatprep.subr.mxu0 %v14428_v21 }
 0x1d3   : > { %2204 = vadd.xlane.f32.xlu0 %v2203_v17  ;;  %v2319_v17 = vld [vmem:[%s18934_s27 + $0x8] sm:$0xff] }
 0x250   : > { %v2202_v19 = vpop.xlane.xlu1 %2201 }
 0x251   : > { %v2211_v24 = vmul.f32 0.015625, %v2202_v19  ;;  %v2318_v19 = vld [vmem:[%s18934_s27] sm:$0xff] }
 0x253   : > { %v2214_v30 = vsub.f32 %v2184_v59, %v2211_v24  ;;  %v2422_v24 = vld [vmem:[%s18935_s26] sm:$0xff] }
 0x254   : > { %12943 = vmatprep.mubr.msk.f32.mxu1 %vm2199_vm0, %v2422_v24 }
 0x255   : > { %v2217_v29 = vmul.f32 %v2214_v30, %v2214_v30 }
 0x257   : > { %v2220_v36 = vsel %vm2199_vm0, %v2217_v29, 0.0 }
 0x258   : > { %v2209_v26 = vpop.xlane.xlu0 %2208 }
 0x259   : > { %v2213_v28 = vmul.f32 0.015625, %v2209_v26  ;;  %v2425_v26 = vld [vmem:[%s18885_s10 + $0x8] sm:$0xff] }
 0x25b   : > { %v2216_v32 = vsub.f32 %v2194_v56, %v2213_v28  ;;  %v2322_v56 = vld [vmem:[%s18934_s27 + $0x20] sm:$0xff] }
 0x25c   : > { %v2205_v34 = vpop.xlane.xlu0 %2204  ;;  %12919 = vmatpush3.msra.mxu0 %v2322_v56  ;;  %v2424_v28 = vld [vmem:[%s18885_s10] sm:$0xff] }
 0x25d   : > { %v2212_v1 = vmul.f32 0.015625, %v2205_v34  ;;  %v2219_v33 = vmul.f32 %v2216_v32, %v2216_v32  ;;  %12920 = vmatprep.subr.mxu0 %v14428_v21 }
 0x25e   : > { %12921 = vmatpush3.msra.mxu0 %v2321_v61 }
 0x25f   : > { %v2215_v25 = vsub.f32 %v2189_v0, %v2212_v1  ;;  %v2226_v27 = vsel %vm2206_vm1, %v2219_v33, 0.0  ;;  %12922 = vmatprep.subr.mxu0 %v14428_v21  ;;  %v2320_v0 = vld [vmem:[%s18934_s27 + $0x10] sm:$0xff] }
 0x260   : > { %2227 = vadd.xlane.f32.xlu1 %v2226_v27  ;;  %12923 = vmatpush3.msra.mxu0 %v2320_v0 }
 0x261   : > { %v2218_v31 = vmul.f32 %v2215_v25, %v2215_v25  ;;  %12924 = vmatprep.subr.mxu0 %v14428_v21 }
 0x262   : > { %12925 = vmatpush3.msra.mxu0 %v2319_v17 }
 0x263   : > { %v2223_v35 = vsel %vm2199_vm0, %v2218_v31, 0.0  ;;  %12926 = vmatprep.subr.mxu0 %v14428_v21 }
 0x264   : > { %2224 = vadd.xlane.f32.xlu0 %v2223_v35  ;;  %2221 = vadd.xlane.f32.xlu1 %v2220_v36 }
 0x265   : > { %12927 = vmatpush3.msra.mxu0 %v2318_v19  ;;  %v11070_v19 = vld [vmem:[%s18938_s28] ss:$0 sm:$0xff] }
 0x266   : > { %12971 = vmatprep.subr.mxu0 %v14428_v21 }
 0x2e9   : > { %v2228_v38 = vpop.xlane.xlu1 %2227 }
 0x2ea   : > { %v2231_v44 = vmul.f32 0.015625, %v2228_v38  ;;  %v11068_v38 = vld [vmem:[%s18936_s0] ss:$0 sm:$0xff] }
 0x2ec   : > { %v2234_v40 = vadd.f32 1e-05, %v2231_v44 }
 0x2ed   : > { %v2225_v42 = vpop.xlane.xlu0 %2224  ;;  %v2222_v46 = vpop.xlane.xlu1 %2221 }
 0x2ee   : > { %14156 = vrsqrt.f32 %v2234_v40  ;;  %v2230_v51 = vmul.f32 0.015625, %v2225_v42  ;;  %v2229_v45 = vmul.f32 0.015625, %v2222_v46  ;;  %v11069_v40 = vld [vmem:[%s18937_s3] ss:$0 sm:$0xff] }
 0x2f0   : > { %v2233_v47 = vadd.f32 1e-05, %v2230_v51  ;;  %v2232_v37 = vadd.f32 1e-05, %v2229_v45 }
 0x2f2   : > { %14158 = vrsqrt.f32 %v2233_v47 }
 0x2f3   : > { %14160 = vrsqrt.f32 %v2232_v37 }
 0x2fb   : > { %v14157_v39 = vpop.eup %14156 }
 0x2fc   : > { %v2240_v2 = vmul.f32 %v14157_v39, %v2216_v32 }
 0x2fe   : > { %v2249_v41 = vmul.f32 %v11066_v55, %v2240_v2 }
 0x2ff   : > { %v14159_v43 = vpop.eup %14158 }
 0x300   : > { %v14161_v48 = vpop.eup %14160  ;;  %v15847_v50 = vadd.f32 %v11067_v3, %v2249_v41  ;;  %v2239_v54 = vmul.f32 %v14159_v43, %v2215_v25  ;;  %v2423_v41 = vld [vmem:[%s18935_s26 + $0x8] sm:$0xff]  ;;  %v2524_v43 = vld [vmem:[%s18886_s11 + $0x38] sm:$0xff] }
 0x301   : > { %v2238_v58 = vmul.f32 %v14161_v48, %v2214_v30  ;;  %v14430_v30 = vmov 0   ;;  %v2523_v48 = vld [vmem:[%s18886_s11 + $0x30] sm:$0xff] }
 0x302   : > { %v2267_v62 = vsel %vm2206_vm1, %v15847_v50, 0.0  ;;  %v2248_v4 = vmul.f32 %v11066_v55, %v2239_v54  ;;  %14154 = vset.pattern.permute.xlu0 %v14430_v30  ;;  %14155 = vset.pattern.permute.xlu1 %v14430_v30  ;;  %v2522_v54 = vld [vmem:[%s18886_s11 + $0x28] sm:$0xff] }
 0x303   : > { %2268 = vadd.xlane.f32.xlu0 %v2267_v62  ;;  %v2247_v5 = vmul.f32 %v11066_v55, %v2238_v58  ;;  %v2521_v58 = vld [vmem:[%s18886_s11 + $0x20] sm:$0xff]  ;;  %v2520_v62 = vld [vmem:[%s18886_s11 + $0x18] sm:$0xff] }
 0x304   : > { %v15851_v6 = vadd.f32 %v11067_v3, %v2248_v4  ;;  %v2519_v4 = vld [vmem:[%s18886_s11 + $0x10] sm:$0xff] }
 0x305   : > { %v15853_v63 = vadd.f32 %v11067_v3, %v2247_v5  ;;  %v2518_v5 = vld [vmem:[%s18886_s11 + $0x8] sm:$0xff] }
 0x306   : > { %v2264_v7 = vsel %vm2199_vm0, %v15851_v6, 0.0 }
 0x307   : > { %2265 = vadd.xlane.f32.xlu1 %v2264_v7  ;;  %v2261_v8 = vsel %vm2199_vm0, %v15853_v63, 0.0  ;;  %v2517_v7 = vld [vmem:[%s18886_s11] sm:$0xff] }
 0x308   : > { %2262 = vadd.xlane.f32.xlu0 %v2261_v8  ;;  %v11097_v8 = vld [vmem:[%s18934_s27 + $0x78] sm:$0xff] }
 0x38c   : > { %v2269_v9 = vpop.xlane.xlu0 %2268 }
 0x38d   : > { %v2272_v49 = vmul.f32 0.015625, %v2269_v9  ;;  %v11096_v9 = vld [vmem:[%s18934_s27 + $0x70] sm:$0xff] }
 0x38f   : > { %v15860_v10 = vsub.f32 %v15847_v50, %v2272_v49  ;;  %v11095_v49 = vld [vmem:[%s18934_s27 + $0x68] sm:$0xff] }
 0x390   : > { %v2266_v11 = vpop.xlane.xlu1 %2265 }
 0x391   : > { %v2263_v12 = vpop.xlane.xlu0 %2262  ;;  %v2271_v59 = vmul.f32 0.015625, %v2266_v11  ;;  %v2278_v14 = vmul.f32 %v15860_v10, %v15860_v10  ;;  %v11093_v11 = vld [vmem:[%s18934_s27 + $0x58] sm:$0xff] }
 0x392   : > { %v2270_v20 = vmul.f32 0.015625, %v2263_v12  ;;  %v11092_v12 = vld [vmem:[%s18934_s27 + $0x50] sm:$0xff] }
 0x393   : > { %v15865_v22 = vsub.f32 %v15851_v6, %v2271_v59  ;;  %v2285_v52 = vsel %vm2206_vm1, %v2278_v14, 0.0  ;;  %v11091_v59 = vld [vmem:[%s18934_s27 + $0x48] sm:$0xff]  ;;  %v11090_v14 = vld [vmem:[%s18934_s27 + $0x40] sm:$0xff] }
 0x394   : > { %v15869_v53 = vsub.f32 %v15853_v63, %v2270_v20  ;;  %2286 = vadd.xlane.f32.xlu1 %v2285_v52  ;;  %v11119_v20 = vld [vmem:[%s18886_s11 + $0x78] sm:$0xff]  ;;  %v11117_v52 = vld [vmem:[%s18886_s11 + $0x68] sm:$0xff] }
 0x395   : > { %v2277_v16 = vmul.f32 %v15865_v22, %v15865_v22 }
 0x396   : > { %v2276_v18 = vmul.f32 %v15869_v53, %v15869_v53 }
 0x397   : > { %v2282_v57 = vsel %vm2199_vm0, %v2277_v16, 0.0  ;;  %v11115_v16 = vld [vmem:[%s18886_s11 + $0x58] sm:$0xff] }
 0x398   : > { %v2279_v60 = vsel %vm2199_vm0, %v2276_v18, 0.0  ;;  %2283 = vadd.xlane.f32.xlu0 %v2282_v57  ;;  %v11114_v18 = vld [vmem:[%s18886_s11 + $0x50] sm:$0xff]  ;;  %v11113_v57 = vld [vmem:[%s18886_s11 + $0x48] sm:$0xff] }
 0x399   : > { %2280 = vadd.xlane.f32.xlu1 %v2279_v60  ;;  %v11112_v60 = vld [vmem:[%s18886_s11 + $0x40] sm:$0xff] }
 0x3aa   : > { %2428 = vperm.xlu1 %14155, %v2424_v28  }
 0x3ae   : > { %2433 = vperm.xlu0 %14154, %v2425_v26  }
 0x41d   : > { %v2287_v32 = vpop.xlane.xlu1 %2286 }
 0x41e   : > { %v2290_v34 = vmul.f32 0.015625, %v2287_v32 }
 0x420   : > { %v2293_v1 = vadd.f32 1e-05, %v2290_v34 }
 0x421   : > { %v2284_v33 = vpop.xlane.xlu0 %2283 }
 0x422   : > { %14162 = vrsqrt.f32 %v2293_v1  ;;  %v2289_v25 = vmul.f32 0.015625, %v2284_v33  ;;  %v2281_v27 = vpop.xlane.xlu1 %2280 }
 0x423   : > { %v2288_v29 = vmul.f32 0.015625, %v2281_v27 }
 0x424   : > { %v2292_v31 = vadd.f32 1e-05, %v2289_v25 }
 0x425   : > { %v2291_v35 = vadd.f32 1e-05, %v2288_v29 }
 0x426   : > { %14164 = vrsqrt.f32 %v2292_v31  ;;  %v2429_v17 = vpop.permute.xlu1 %2428 }
 0x427   : > { %14166 = vrsqrt.f32 %v2291_v35  ;;  %v11079_v35 = vld [vmem:[%s18887_s12] ss:$0 sm:$0xff] }
 0x429   : > { %v2434_v56 = vpop.permute.xlu0 %2433 }
 0x42f   : > { %v14163_v36 = vpop.eup %14162 }
 0x430   : > { %v2299_v44 = vmul.f32 %v14163_v36, %v15860_v10  ;;  %v11094_v10 = vld [vmem:[%s18934_s27 + $0x60] sm:$0xff] }
 0x432   : > { %v2308_v42 = vmul.f32 %v11068_v38, %v2299_v44 }
 0x433   : > { %v14165_v46 = vpop.eup %14164 }
 0x434   : > { %v14167_v51 = vpop.eup %14166  ;;  %v15929_v45 = vadd.f32 %v11069_v40, %v2308_v42  ;;  %v2298_v47 = vmul.f32 %v14165_v46, %v15865_v22  ;;  %v11118_v22 = vld [vmem:[%s18886_s11 + $0x70] sm:$0xff] }
 0x435   : > { %v2297_v37 = vmul.f32 %v14167_v51, %v15869_v53  ;;  %v11116_v53 = vld [vmem:[%s18886_s11 + $0x60] sm:$0xff] }
 0x436   : > { %v2307_v39 = vmul.f32 %v11068_v38, %v2298_v47  ;;  %12937 = vmatprep.subr.msk.mxu1 %vm2199_vm0, %v15929_v45 }
 0x437   : > { %v2306_v55 = vmul.f32 %v11068_v38, %v2297_v37  ;;  %12938 = vmatpush3.xpose.msk.msra.mxu1 %vm2199_vm0, %v15929_v45 }
 0x438   : > { %v15937_v2 = vadd.f32 %v11069_v40, %v2307_v39 }
 0x439   : > { %v15939_v3 = vadd.f32 %v11069_v40, %v2306_v55 }
 0x43a   : > { %12939 = vmatprep.subr.msk.mxu1 %vm2199_vm0, %v15937_v2 }
 0x43b   : > { %12929 = vmatmul.mubr.msk.f32.vlgmr.msra.gmra.mxu0 %vm2199_vm0, %v15939_v3  ;;  %12940 = vmatpush3.xpose.msk.msra.mxu1 %vm2199_vm0, %v15937_v2 }
 0x43c   : > { %12941 = vmatprep.subr.msk.mxu1 %vm2199_vm0, %v15939_v3  ;;  %12931 = vmatprep.mubr.msk.f32.mxu0 %vm14429_vm2, %v14428_v21 }
 0x43f   : > { %12932 = vmatmul.mubr.msk.f32.gmra.mxu0 %vm2199_vm0, %v15937_v2  ;;  %12942 = vmatpush3.xpose.msk.msra.mxu1 %vm2199_vm0, %v15939_v3 }
 0x440   : > { %12934 = vmatprep.mubr.msk.f32.mxu0 %vm14429_vm2, %v14428_v21  ;;  %12946 = vmatprep.subr.mxu1 %v14428_v21 }
 0x442   : > { %12944 = vmatmul.mubr.msk.f32.vlgmr.msra.gmra.mxu1 %vm2199_vm0, %v2423_v41 }
 0x443   : > { %12935 = vmatmul.mubr.msk.f32.gmra.mxu0 %vm2199_vm0, %v15929_v45  ;;  %12947 = vmatpush3.msra.mxu1 %v2524_v43 }
 0x444   : > { %12948 = vmatprep.subr.mxu1 %v14428_v21  ;;  %12962 = vmatprep.mubr.msk.f32.mxu1 %vm14429_vm2, %v14428_v21 }
 0x445   : > { %12949 = vmatpush3.msra.mxu1 %v2523_v48  ;;  %12975 = vmatprep.mubr.msk.f32.mxu0 %vm14429_vm2, %v14428_v21 }
 0x446   : > { %12950 = vmatprep.subr.mxu1 %v14428_v21 }
 0x447   : > { %12951 = vmatpush3.msra.mxu1 %v2522_v54 }
 0x448   : > { %12952 = vmatprep.subr.mxu1 %v14428_v21 }
 0x449   : > { %12953 = vmatpush3.msra.mxu1 %v2521_v58 }
 0x44a   : > { %12954 = vmatprep.subr.mxu1 %v14428_v21 }
 0x44b   : > { %12955 = vmatpush3.msra.mxu1 %v2520_v62 }
 0x44c   : > { %12956 = vmatprep.subr.mxu1 %v14428_v21 }
 0x44d   : > { %12957 = vmatpush3.msra.mxu1 %v2519_v4 }
 0x44e   : > { %12958 = vmatprep.subr.mxu1 %v14428_v21 }
 0x44f   : > { %12959 = vmatpush3.msra.mxu1 %v2518_v5 }
 0x450   : > { %12960 = vmatprep.subr.mxu1 %v14428_v21 }
 0x451   : > { %12961 = vmatpush3.msra.mxu1 %v2517_v7 }
 0x452   : > { %12963 = vmatmul.mubr.msk.f32.vlgmr.msra.gmra.mxu1 %vm2199_vm0, %v15939_v3  ;;  %12999 = vmatprep.subr.mxu1 %v14428_v21 }
 0x453   : > { %13000 = vmatpush3.msra.mxu1 %v11097_v8  ;;  %12965 = vmatprep.mubr.msk.f32.mxu1 %vm14429_vm2, %v14428_v21 }
 0x454   : > { %13001 = vmatprep.subr.mxu1 %v14428_v21 }
 0x455   : > { %13002 = vmatpush3.msra.mxu1 %v11096_v9 }
 0x456   : > { %12966 = vmatmul.mubr.msk.f32.gmra.mxu1 %vm2199_vm0, %v15937_v2  ;;  %13003 = vmatprep.subr.mxu1 %v14428_v21 }
 0x457   : > { %13004 = vmatpush3.msra.mxu1 %v11095_v49  ;;  %12968 = vmatprep.mubr.msk.f32.mxu1 %vm14429_vm2, %v14428_v21 }
 0x458   : > { %13005 = vmatprep.subr.mxu1 %v14428_v21 }
 0x459   : > { %13006 = vmatpush3.msra.mxu1 %v11094_v10 }
 0x45a   : > { %12969 = vmatmul.mubr.msk.f32.gmra.mxu1 %vm2199_vm0, %v15929_v45  ;;  %13007 = vmatprep.subr.mxu1 %v14428_v21 }
 0x45b   : > { %13008 = vmatpush3.msra.mxu1 %v11093_v11  ;;  %13015 = vmatprep.mubr.msk.f32.mxu1 %vm14429_vm2, %v14428_v21 }
 0x45c   : > { %13009 = vmatprep.subr.mxu1 %v14428_v21 }
 0x45d   : > { %13010 = vmatpush3.msra.mxu1 %v11092_v12 }
 0x45e   : > { %13011 = vmatprep.subr.mxu1 %v14428_v21 }
 0x45f   : > { %13012 = vmatpush3.msra.mxu1 %v11091_v59 }
 0x460   : > { %13013 = vmatprep.subr.mxu1 %v14428_v21 }
 0x461   : > { %13014 = vmatpush3.msra.mxu1 %v11090_v14 }
 0x462   : > { %13016 = vmatmul.mubr.msk.f32.vlgmr.msra.gmra.mxu1 %vm2199_vm0, %v15939_v3  ;;  %13033 = vmatprep.subr.mxu1 %v14428_v21 }
 0x463   : > { %13034 = vmatpush3.msra.mxu1 %v11119_v20  ;;  %13018 = vmatprep.mubr.msk.f32.mxu1 %vm14429_vm2, %v14428_v21 }
 0x464   : > { %13035 = vmatprep.subr.mxu1 %v14428_v21 }
 0x465   : > { %13036 = vmatpush3.msra.mxu1 %v11118_v22  ;;  %v11105_v22 = vld [vmem:[%s18885_s10 + $0x10] sm:$0xff] }
 0x466   : > { %13019 = vmatmul.mubr.msk.f32.gmra.mxu1 %vm2199_vm0, %v15937_v2  ;;  %13037 = vmatprep.subr.mxu1 %v14428_v21 }
 0x467   : > { %13038 = vmatpush3.msra.mxu1 %v11117_v52  ;;  %13021 = vmatprep.mubr.msk.f32.mxu1 %vm14429_vm2, %v14428_v21 }
 0x468   : > { %13039 = vmatprep.subr.mxu1 %v14428_v21 }
 0x469   : > { %13040 = vmatpush3.msra.mxu1 %v11116_v53 }
 0x46a   : > { %13022 = vmatmul.mubr.msk.f32.gmra.mxu1 %vm2199_vm0, %v15929_v45  ;;  %13041 = vmatprep.subr.mxu1 %v14428_v21 }
 0x46b   : > { %13042 = vmatpush3.msra.mxu1 %v11115_v16  ;;  %13049 = vmatprep.mubr.msk.f32.mxu1 %vm14429_vm2, %v14428_v21 }
 0x46c   : > { %13043 = vmatprep.subr.mxu1 %v14428_v21 }
 0x46d   : > { %13044 = vmatpush3.msra.mxu1 %v11114_v18 }
 0x46e   : > { %13045 = vmatprep.subr.mxu1 %v14428_v21 }
 0x46f   : > { %13046 = vmatpush3.msra.mxu1 %v11113_v57 }
 0x470   : > { %13047 = vmatprep.subr.mxu1 %v14428_v21 }
 0x471   : > { %13048 = vmatpush3.msra.mxu1 %v11112_v60 }
 0x472   : > { %13050 = vmatmul.mubr.msk.f32.vlgmr.msra.gmra.mxu1 %vm2199_vm0, %v15939_v3  ;;  %14137 = vmatprep.subr.mxu1 %v14428_v21 }
 0x473   : > { %13052 = vmatprep.mubr.msk.f32.mxu1 %vm14429_vm2, %v14428_v21 }
 0x476   : > { %13053 = vmatmul.mubr.msk.f32.gmra.mxu1 %vm2199_vm0, %v15937_v2 }
 0x477   : > { %13055 = vmatprep.mubr.msk.f32.mxu1 %vm14429_vm2, %v14428_v21 }
 0x47a   : > { %13056 = vmatmul.mubr.msk.f32.gmra.mxu1 %vm2199_vm0, %v15929_v45 }
 0x47b   : > { %13068 = vmatprep.mubr.msk.f32.mxu1 %vm14429_vm2, %v14428_v21 }
 0x4fb   : > { %v2408_v23 = vpop.f32.mrf.mxu0 }
 0x4fc   : > { %v2409_v34 = vadd.f32 %v11070_v19, %v2408_v23 }
 0x4fd   : > { %v12930_v13 = vpop.f32.mrf.mxu0 }
 0x4ff   : > { %v2413_v15 = vpop.f32.mrf.mxu0 }
 0x500   : > { %v2414_v1 = vadd.f32 %v11070_v19, %v2413_v15 }
 0x501   : > { %v12933_v61 = vpop.f32.mrf.mxu0 }
 0x502   : > { %v12945_v0 = vpop.f32.mrf.mxu1 }
 0x503   : > { %v2418_v24 = vpop.f32.mrf.mxu0  ;;  %v2514_v26 = vadd.f32 %v12945_v0, %v2434_v56 }
 0x504   : > { %v2508_v28 = vpop.f32.mrf.mxu1  ;;  %v2419_v33 = vadd.f32 %v11070_v19, %v2418_v24 }
 0x505   : > { %v12936_v30 = vpop.f32.mrf.mxu0  ;;  %v2509_v32 = vadd.f32 %v2508_v28, %v2429_v17  ;;  %12972 = vmatpush3.msra.mxu0 %v2514_v26  ;;  %v11106_v26 = vld [vmem:[%s18885_s10 + $0x18] sm:$0xff] }
 0x506   : > { %12973 = vmatprep.subr.mxu0 %v14428_v21 }
 0x507   : > { %12974 = vmatpush3.msra.mxu0 %v2509_v32 }
 0x508   : > { %12976 = vmatmul.mubr.msk.f32.vlgmr.msra.gmra.mxu0 %vm2612_vm3, %v2409_v34  ;;  %12984 = vmatprep.subr.mxu0 %v14428_v21 }
 0x509   : > { %12978 = vmatprep.mubr.msk.f32.mxu0 %vm14429_vm2, %v14428_v21 }
 0x50c   : > { %12979 = vmatmul.mubr.msk.f32.gmra.mxu0 %vm2612_vm3, %v2414_v1 }
 0x50d   : > { %12981 = vmatprep.mubr.msk.f32.mxu0 %vm14429_vm2, %v14428_v21 }
 0x510   : > { %12982 = vmatmul.mubr.msk.f32.gmra.mxu0 %vm2612_vm3, %v2419_v33 }
 0x511   : > { %12990 = vmatprep.mubr.msk.f32.mxu0 %vm14429_vm2, %v14428_v21 }
 0x512   : > { %v2598_v25 = vpop.f32.mrf.mxu1 }
 0x513   : > { %v2599_v42 = vadd.f32 %v11079_v35, %v2598_v25 }
 0x514   : > { %v12964_v27 = vpop.f32.mrf.mxu1 }
 0x516   : > { %v2603_v29 = vpop.f32.mrf.mxu1 }
 0x517   : > { %v2604_v40 = vadd.f32 %v11079_v35, %v2603_v29 }
 0x518   : > { %v12967_v31 = vpop.f32.mrf.mxu1 }
 0x519   : > { %v11103_v31 = vld [vmem:[%s18935_s26 + $0x10] sm:$0xff] }
 0x51a   : > { %v2608_v36 = vpop.f32.mrf.mxu1 }
 0x51b   : > { %v2609_v38 = vadd.f32 %v11079_v35, %v2608_v36  ;;  %v11104_v35 = vld [vmem:[%s18935_s26 + $0x18] sm:$0xff] }
 0x51c   : > { %v12970_v44 = vpop.f32.mrf.mxu1 }
 0x51d   : > { %12985 = vmatpush3.msk.msra.mxu0 %vm2749_vm4, %v2609_v38 }
 0x51e   : > { %12986 = vmatprep.subr.mxu0 %v14428_v21 }
 0x51f   : > { %12987 = vmatpush3.msra.mxu0 %v2604_v40 }
 0x520   : > { %12988 = vmatprep.subr.mxu0 %v14428_v21 }
 0x521   : > { %12989 = vmatpush3.msra.mxu0 %v2599_v42 }
 0x522   : > { %v16120_v46 = vpop.f32.mrf.mxu1  ;;  %13024 = vmatprep.subr.msk.mxu0 %vm2199_vm0, %v15929_v45 }
 0x524   : > { %v13017_v51 = vpop.f32.mrf.mxu1 }
 0x526   : > { %v16124_v47 = vpop.f32.mrf.mxu1 }
 0x528   : > { %v13020_v37 = vpop.f32.mrf.mxu1 }
 0x52a   : > { %v16126_v39 = vpop.f32.mrf.mxu1 }
 0x52c   : > { %v13023_v55 = vpop.f32.mrf.mxu1 }
 0x532   : > { %v16128_v41 = vpop.f32.mrf.mxu1 }
 0x534   : > { %v13051_v43 = vpop.f32.mrf.mxu1 }
 0x535   : > { %v11099_v43 = vld [vmem:[%s18938_s28 + $0x1] ss:$0 sm:$0xff] }
 0x536   : > { %v16130_v48 = vpop.f32.mrf.mxu1 }
 0x538   : > { %v13054_v54 = vpop.f32.mrf.mxu1 }
 0x53a   : > { %v16132_v58 = vpop.f32.mrf.mxu1 }
 0x53c   : > { %v13057_v62 = vpop.f32.mrf.mxu1 }
 0x5c8   : > { %v2688_v4 = vpop.f32.mrf.mxu0 }
 0x5c9   : > { %v2702_v5 = vmul.f32 0.25, %v2688_v4 }
 0x5ca   : > { %v12977_v7 = vpop.f32.mrf.mxu0 }
 0x5cb   : > { %v2706_v8 = vsel %vm2705_vm5, %v2702_v5, -inf  ;;  %v2919_v7 = vadd.f32 %v11099_v43, %v16120_v46 }
 0x5cc   : > { %2707 = vmax.xlane.f32.xlu1 %v2706_v8  ;;  %v2693_v9 = vpop.f32.mrf.mxu0  ;;  %v2929_v8 = vadd.f32 %v11099_v43, %v16126_v39  ;;  %v2924_v39 = vadd.f32 %v11099_v43, %v16124_v47 }
 0x5cd   : > { %v2703_v49 = vmul.f32 0.25, %v2693_v9  ;;  %v11121_v9 = vld [vmem:[%s18887_s12 + $0x1] ss:$0 sm:$0xff] }
 0x5ce   : > { %v12980_v10 = vpop.f32.mrf.mxu0  ;;  %v3118_v46 = vadd.f32 %v11121_v9, %v16130_v48 }
 0x5cf   : > { %v2709_v11 = vsel %vm2705_vm5, %v2703_v49, -inf }
 0x5d0   : > { %2710 = vmax.xlane.f32.xlu0 %v2709_v11  ;;  %v2698_v12 = vpop.f32.mrf.mxu0 }
 0x5d1   : > { %v2704_v59 = vmul.f32 0.25, %v2698_v12 }
 0x5d2   : > { %v12983_v14 = vpop.f32.mrf.mxu0 }
 0x5d3   : > { %v2713_v20 = vsel %vm2712_vm6, %v2704_v59, -inf }
 0x5d4   : > { %2714 = vmax.xlane.f32.xlu1 %v2713_v20 }
 0x5e6   : > { %2940 = vperm.xlu0 %14154, %v11105_v22  }
 0x655   : > { %v2708_v52 = vpop.xlane.xlu1 %2707 }
 0x656   : > { %v2716_v53 = vsub.f32 %v2702_v5, %v2708_v52 }
 0x658   : > { %v2719_v16 = vmul.f32 1.442695, %v2716_v53 }
 0x659   : > { %v2711_v18 = vpop.xlane.xlu0 %2710 }
 0x65a   : > { %14168 = vpow2.f32 %v2719_v16  ;;  %v2717_v57 = vsub.f32 %v2703_v49, %v2711_v18  ;;  %v3123_v49 = vadd.f32 %v11121_v9, %v16132_v58  ;;  %v3113_v58 = vadd.f32 %v11121_v9, %v16128_v41  ;;  %v11143_v9 = vld [vmem:[%s18934_s27 + $0x98] sm:$0xff] }
 0x65c   : > { %v2721_v60 = vmul.f32 1.442695, %v2717_v57 }
 0x65d   : > { %v2715_v23 = vpop.xlane.xlu1 %2714 }
 0x65e   : > { %14170 = vpow2.f32 %v2721_v60  ;;  %v2718_v13 = vsub.f32 %v2704_v59, %v2715_v23 }
 0x660   : > { %v2723_v15 = vmul.f32 1.442695, %v2718_v13 }
 0x661   : > { %v2941_v62 = vpop.permute.xlu0 %2940 }
 0x662   : > { %14172 = vpow2.f32 %v2723_v15 }
 0x667   : > { %v14169_v56 = vpop.eup %14168 }
 0x668   : > { %v2725_v61 = vsel %vm2705_vm5, %v14169_v56, 0.0 }
 0x669   : > { %2726 = vadd.xlane.f32.xlu1 %v2725_v61 }
 0x66b   : > { %v14171_v0 = vpop.eup %14170 }
 0x66c   : > { %v2728_v17 = vsel %vm2705_vm5, %v14171_v0, 0.0 }
 0x66d   : > { %2729 = vadd.xlane.f32.xlu1 %v2728_v17 }
 0x66f   : > { %v14173_v19 = vpop.eup %14172 }
 0x670   : > { %v2731_v24 = vsel %vm2712_vm6, %v14173_v19, 0.0 }
 0x671   : > { %2732 = vadd.xlane.f32.xlu1 %v2731_v24 }
 0x682   : > { %2945 = vperm.xlu1 %14155, %v11106_v26  }
 0x6f2   : > { %v2727_v28 = vpop.xlane.xlu1 %2726 }
 0x6f3   : > { %14174 = vrcp.f32 %v2727_v28 }
 0x6f6   : > { %v2730_v30 = vpop.xlane.xlu1 %2729 }
 0x6f7   : > { %14176 = vrcp.f32 %v2730_v30  ;;  %v11155_v30 = vld [vmem:[%s18885_s10 + $0x20] sm:$0xff] }
 0x6fa   : > { %v2733_v32 = vpop.xlane.xlu1 %2732 }
 0x6fb   : > { %14178 = vrcp.f32 %v2733_v32  ;;  %v11156_v32 = vld [vmem:[%s18885_s10 + $0x28] sm:$0xff] }
 0x6fe   : > { %v2946_v37 = vpop.permute.xlu1 %2945 }
 0x700   : > { %v14175_v34 = vpop.eup %14174 }
 0x701   : > { %v2737_v1 = vmul.f32 %v14175_v34, %v14169_v56  ;;  %v11133_v34 = vld [vmem:[%s18888_s13 + $0x18] sm:$0xff] }
 0x703   : > { %12991 = vmatmul.mubr.msk.f32.vlgmr.msra.gmra.mxu0 %vm2705_vm5, %v2737_v1  ;;  %v11132_v1 = vld [vmem:[%s18888_s13 + $0x10] sm:$0xff] }
 0x704   : > { %v14177_v33 = vpop.eup %14176  ;;  %13025 = vmatpush3.xpose.msk.msra.mxu0 %vm2199_vm0, %v15929_v45  ;;  %12993 = vmatprep.mubr.msk.f32.mxu0 %vm14429_vm2, %v14428_v21 }
 0x705   : > { %13026 = vmatprep.subr.msk.mxu0 %vm2199_vm0, %v15937_v2  ;;  %v2738_v25 = vmul.f32 %v14177_v33, %v14171_v0 }
 0x707   : > { %12994 = vmatmul.mubr.msk.f32.gmra.mxu0 %vm2705_vm5, %v2738_v25 }
 0x708   : > { %v14179_v27 = vpop.eup %14178  ;;  %13027 = vmatpush3.xpose.msk.msra.mxu0 %vm2199_vm0, %v15937_v2  ;;  %12996 = vmatprep.mubr.msk.f32.mxu0 %vm14429_vm2, %v14428_v21 }
 0x709   : > { %13028 = vmatprep.subr.msk.mxu0 %vm2199_vm0, %v15939_v3  ;;  %v2739_v29 = vmul.f32 %v14179_v27, %v14173_v19 }
 0x70b   : > { %12997 = vmatmul.mubr.msk.f32.gmra.mxu0 %vm2705_vm5, %v2739_v29 }
 0x70c   : > { %13029 = vmatpush3.xpose.msk.msra.mxu0 %vm2199_vm0, %v15939_v3  ;;  %13030 = vmatprep.mubr.msk.f32.mxu0 %vm2199_vm0, %v11103_v31 }
 0x70d   : > { %13058 = vmatprep.subr.mxu0 %v14428_v21 }
 0x70f   : > { %13031 = vmatmul.mubr.msk.f32.vlgmr.msra.gmra.mxu0 %vm2199_vm0, %v11104_v35  ;;  %v2834_v35 = vld [vmem:[%s18888_s13 + $0x8] sm:$0xff] }
 0x710   : > { %13062 = vmatprep.mubr.msk.f32.mxu0 %vm14429_vm2, %v14428_v21 }
 0x7c3   : > { %v16174_v36 = vpop.f32.mrf.mxu0 }
 0x7c5   : > { %v12992_v38 = vpop.f32.mrf.mxu0 }
 0x7c6   : > { %v2833_v38 = vld [vmem:[%s18888_s13] sm:$0xff] }
 0x7c7   : > { %v16176_v44 = vpop.f32.mrf.mxu0 }
 0x7c9   : > { %v12995_v40 = vpop.f32.mrf.mxu0 }
 0x7cb   : > { %v16178_v42 = vpop.f32.mrf.mxu0 }
 0x7cd   : > { %v12998_v51 = vpop.f32.mrf.mxu0 }
 0x7cf   : > { %v13032_v55 = vpop.f32.mrf.mxu0 }
 0x7d0   : > { %v3026_v54 = vadd.f32 %v13032_v55, %v2946_v37 }
 0x7d1   : > { %v3020_v4 = vpop.f32.mrf.mxu0 }
 0x7d2   : > { %v3021_v5 = vadd.f32 %v3020_v4, %v2941_v62  ;;  %13059 = vmatpush3.msra.mxu0 %v3026_v54  ;;  %14139 = vmatpush3.msra.mxu1 %v3026_v54  ;;  %v11146_v54 = vld [vmem:[%s18934_s27 + $0xb0] sm:$0xff]  ;;  %v11145_v4 = vld [vmem:[%s18934_s27 + $0xa8] sm:$0xff] }
 0x7d3   : > { %13060 = vmatprep.subr.mxu0 %v14428_v21  ;;  %14138 = vmatprep.subr.mxu1 %v14428_v21 }
 0x7d4   : > { %13061 = vmatpush3.msra.mxu0 %v3021_v5  ;;  %14140 = vmatpush3.msra.mxu1 %v3021_v5 }
 0x7d5   : > { %13063 = vmatmul.mubr.msk.f32.vlgmr.msra.gmra.mxu0 %vm2612_vm3, %v2919_v7  ;;  %13069 = vmatmul.mubr.msk.f32.vlgmr.msra.gmra.mxu1 %vm2612_vm3, %v2929_v8  ;;  %v11144_v7 = vld [vmem:[%s18934_s27 + $0xa0] sm:$0xff] }
 0x7d6   : > { %13071 = vmatprep.subr.mxu0 %v14428_v21  ;;  %13065 = vmatprep.mubr.msk.f32.mxu0 %vm14429_vm2, %v14428_v21 }
 0x7d7   : > { %13072 = vmatpush3.msk.msra.mxu0 %vm2749_vm4, %v3123_v49  ;;  %13086 = vmatprep.subr.mxu1 %v14428_v21 }
 0x7d8   : > { %13073 = vmatprep.subr.mxu0 %v14428_v21  ;;  %13090 = vmatprep.mubr.msk.f32.mxu1 %vm14429_vm2, %v14428_v21 }
 0x7d9   : > { %13074 = vmatpush3.msra.mxu0 %v3118_v46  ;;  %13087 = vmatpush3.msra.mxu1 %v11133_v34  ;;  %v11142_v46 = vld [vmem:[%s18934_s27 + $0x90] sm:$0xff]  ;;  %v11149_v34 = vld [vmem:[%s18938_s28 + $0x2] ss:$0 sm:$0xff] }
 0x7da   : > { %13066 = vmatmul.mubr.msk.f32.gmra.mxu0 %vm2612_vm3, %v2924_v39  ;;  %13075 = vmatprep.subr.mxu0 %v14428_v21 }
 0x7db   : > { %13076 = vmatpush3.msra.mxu0 %v3113_v58  ;;  %13077 = vmatprep.mubr.msk.f32.mxu0 %vm14429_vm2, %v14428_v21  ;;  %v11141_v58 = vld [vmem:[%s18934_s27 + $0x88] sm:$0xff] }
 0x7dc   : > { %13099 = vmatprep.subr.mxu0 %v14428_v21  ;;  %13088 = vmatprep.subr.mxu1 %v14428_v21 }
 0x7dd   : > { %13089 = vmatpush3.msra.mxu1 %v11132_v1 }
 0x7de   : > { %13112 = vmatprep.subr.mxu1 %v14428_v21 }
 0x895   : > { %v3201_v48 = vpop.f32.mrf.mxu0  ;;  %v3211_v47 = vpop.f32.mrf.mxu1 }
 0x896   : > { %v3215_v10 = vmul.f32 0.25, %v3201_v48  ;;  %v3217_v59 = vmul.f32 0.25, %v3211_v47  ;;  %v11140_v47 = vld [vmem:[%s18934_s27 + $0x80] sm:$0xff] }
 0x897   : > { %v13064_v11 = vpop.f32.mrf.mxu0  ;;  %v13070_v12 = vpop.f32.mrf.mxu1 }
 0x898   : > { %v3218_v14 = vsel %vm2705_vm5, %v3215_v10, -inf  ;;  %v3224_v52 = vsel %vm2712_vm6, %v3217_v59, -inf  ;;  %v11169_v11 = vld [vmem:[%s18886_s11 + $0xb8] sm:$0xff] }
 0x899   : > { %3219 = vmax.xlane.f32.xlu1 %v3218_v14 }
 0x89a   : > { %v3206_v41 = vpop.f32.mrf.mxu0 }
 0x89b   : > { %v3216_v20 = vmul.f32 0.25, %v3206_v41  ;;  %v11167_v41 = vld [vmem:[%s18886_s11 + $0xa8] sm:$0xff] }
 0x89c   : > { %v13067_v22 = vpop.f32.mrf.mxu0 }
 0x89d   : > { %3225 = vmax.xlane.f32.xlu1 %v3224_v52  ;;  %v3221_v53 = vsel %vm2705_vm5, %v3216_v20, -inf  ;;  %v11166_v22 = vld [vmem:[%s18886_s11 + $0xa0] sm:$0xff] }
 0x89e   : > { %3222 = vmax.xlane.f32.xlu0 %v3221_v53  ;;  %v11165_v53 = vld [vmem:[%s18886_s11 + $0x98] sm:$0xff] }
 0x922   : > { %v3220_v16 = vpop.xlane.xlu1 %3219 }
 0x923   : > { %v3227_v18 = vsub.f32 %v3215_v10, %v3220_v16 }
 0x925   : > { %v3230_v57 = vmul.f32 1.442695, %v3227_v18 }
 0x926   : > { %v3226_v60 = vpop.xlane.xlu1 %3225 }
 0x927   : > { %14180 = vpow2.f32 %v3230_v57  ;;  %v3229_v23 = vsub.f32 %v3217_v59, %v3226_v60  ;;  %v3223_v13 = vpop.xlane.xlu0 %3222  ;;  %v11168_v59 = vld [vmem:[%s18886_s11 + $0xb0] sm:$0xff] }
 0x928   : > { %v3228_v15 = vsub.f32 %v3216_v20, %v3223_v13  ;;  %v11164_v60 = vld [vmem:[%s18886_s11 + $0x90] sm:$0xff] }
 0x929   : > { %v3234_v56 = vmul.f32 1.442695, %v3229_v23 }
 0x92a   : > { %v3232_v61 = vmul.f32 1.442695, %v3228_v15 }
 0x92b   : > { %14182 = vpow2.f32 %v3234_v56  ;;  %v11163_v56 = vld [vmem:[%s18886_s11 + $0x88] sm:$0xff] }
 0x92c   : > { %14184 = vpow2.f32 %v3232_v61  ;;  %v11162_v61 = vld [vmem:[%s18886_s11 + $0x80] sm:$0xff] }
 0x934   : > { %v14181_v0 = vpop.eup %14180 }
 0x935   : > { %v3236_v17 = vsel %vm2705_vm5, %v14181_v0, 0.0 }
 0x936   : > { %3237 = vadd.xlane.f32.xlu1 %v3236_v17  ;;  %v11182_v17 = vld [vmem:[%s18888_s13 + $0x20] sm:$0xff] }
 0x938   : > { %v14183_v19 = vpop.eup %14182 }
 0x939   : > { %v14185_v24 = vpop.eup %14184  ;;  %v3242_v26 = vsel %vm2712_vm6, %v14183_v19, 0.0 }
 0x93a   : > { %3243 = vadd.xlane.f32.xlu1 %v3242_v26  ;;  %v3239_v28 = vsel %vm2705_vm5, %v14185_v24, 0.0 }
 0x93b   : > { %3240 = vadd.xlane.f32.xlu0 %v3239_v28 }
 0x94b   : > { %3629 = vperm.xlu1 %14155, %v11155_v30  }
 0x951   : > { %3634 = vperm.xlu0 %14154, %v11156_v32  }
 0x9bf   : > { %v3238_v33 = vpop.xlane.xlu1 %3237 }
 0x9c0   : > { %14186 = vrcp.f32 %v3238_v33 }
 0x9c3   : > { %v3244_v25 = vpop.xlane.xlu1 %3243 }
 0x9c4   : > { %v3241_v27 = vpop.xlane.xlu0 %3240 }
 0x9c5   : > { %14188 = vrcp.f32 %v3241_v27 }
 0x9c6   : > { %14190 = vrcp.f32 %v3244_v25 }
 0x9c7   : > { %v3630_v23 = vpop.permute.xlu1 %3629 }
 0x9cc   : > { %v3635_v16 = vpop.permute.xlu0 %3634 }
 0x9cd   : > { %v14187_v29 = vpop.eup %14186 }
 0x9ce   : > { %v3248_v31 = vmul.f32 %v14187_v29, %v14181_v0  ;;  %v11183_v0 = vld [vmem:[%s18888_s13 + $0x28] sm:$0xff] }
 0x9d0   : > { %13078 = vmatmul.mubr.msk.f32.vlgmr.msra.gmra.mxu0 %vm2705_vm5, %v3248_v31 }
 0x9d1   : > { %13100 = vmatpush3.msra.mxu0 %v2834_v35  ;;  %13080 = vmatprep.mubr.msk.f32.mxu0 %vm14429_vm2, %v14428_v21 }
 0x9d2   : > { %v14189_v40 = vpop.eup %14188  ;;  %13101 = vmatprep.subr.mxu0 %v14428_v21 }
 0x9d3   : > { %13102 = vmatpush3.msra.mxu0 %v2833_v38  ;;  %v3249_v51 = vmul.f32 %v14189_v40, %v14185_v24  ;;  %v14191_v37 = vpop.eup %14190 }
 0x9d4   : > { %13137 = vmatprep.subr.msk.mxu0 %vm2199_vm0, %v15929_v45  ;;  %v3250_v55 = vmul.f32 %v14191_v37, %v14183_v19 }
 0x9d5   : > { %13081 = vmatmul.mubr.msk.f32.gmra.mxu0 %vm2705_vm5, %v3249_v51 }
 0x9d6   : > { %13083 = vmatprep.mubr.msk.f32.mxu0 %vm14429_vm2, %v14428_v21 }
 0x9d9   : > { %13084 = vmatmul.mubr.msk.f32.gmra.mxu0 %vm2705_vm5, %v3250_v55 }
 0x9da   : > { %13103 = vmatprep.mubr.msk.f32.mxu0 %vm14429_vm2, %v14428_v21 }
 0x9dd   : > { %13104 = vmatmul.mubr.msk.f32.vlgmr.msra.gmra.mxu0 %vm2612_vm3, %v16174_v36  ;;  %v11153_v36 = vld [vmem:[%s18935_s26 + $0x20] sm:$0xff] }
 0x9de   : > { %13138 = vmatpush3.xpose.msk.msra.mxu0 %vm2199_vm0, %v15929_v45  ;;  %13106 = vmatprep.mubr.msk.f32.mxu0 %vm14429_vm2, %v14428_v21 }
 0x9df   : > { %13139 = vmatprep.subr.msk.mxu0 %vm2199_vm0, %v15937_v2 }
 0x9e1   : > { %13107 = vmatmul.mubr.msk.f32.gmra.mxu0 %vm2612_vm3, %v16176_v44  ;;  %v11154_v44 = vld [vmem:[%s18935_s26 + $0x28] sm:$0xff] }
 0x9e2   : > { %13140 = vmatpush3.xpose.msk.msra.mxu0 %vm2199_vm0, %v15937_v2  ;;  %13109 = vmatprep.mubr.msk.f32.mxu0 %vm14429_vm2, %v14428_v21 }
 0x9e3   : > { %13141 = vmatprep.subr.msk.mxu0 %vm2199_vm0, %v15939_v3 }
 0x9e5   : > { %13110 = vmatmul.mubr.msk.f32.gmra.mxu0 %vm2612_vm3, %v16178_v42  ;;  %v11147_v42 = vld [vmem:[%s18934_s27 + $0xb8] sm:$0xff] }
 0x9e6   : > { %13142 = vmatpush3.xpose.msk.msra.mxu0 %vm2199_vm0, %v15939_v3  ;;  %13143 = vmatprep.mubr.msk.f32.mxu0 %vm2199_vm0, %v11153_v36 }
 0x9e7   : > { %13171 = vmatprep.subr.mxu0 %v14428_v21 }
 0x9e9   : > { %13144 = vmatmul.mubr.msk.f32.vlgmr.msra.gmra.mxu0 %vm2199_vm0, %v11154_v44  ;;  %v11171_v44 = vld [vmem:[%s18887_s12 + $0x2] ss:$0 sm:$0xff] }
 0x9ea   : > { %13175 = vmatprep.mubr.msk.f32.mxu0 %vm14429_vm2, %v14428_v21 }
 0xa90   : > { %v3329_v43 = vpop.f32.mrf.mxu0 }
 0xa91   : > { %13091 = vmatmul.mubr.msk.f32.vlgmr.msra.gmra.mxu1 %vm2612_vm3, %v3329_v43 }
 0xa92   : > { %13113 = vmatpush3.msra.mxu1 %v11147_v42  ;;  %v13079_v62 = vpop.f32.mrf.mxu0  ;;  %13093 = vmatprep.mubr.msk.f32.mxu1 %vm14429_vm2, %v14428_v21 }
 0xa93   : > { %13114 = vmatprep.subr.mxu1 %v14428_v21 }
 0xa94   : > { %13115 = vmatpush3.msra.mxu1 %v11146_v54 }
 0xa95   : > { %v3334_v5 = vpop.f32.mrf.mxu0  ;;  %13116 = vmatprep.subr.mxu1 %v14428_v21 }
 0xa96   : > { %13094 = vmatmul.mubr.msk.f32.gmra.mxu1 %vm2612_vm3, %v3334_v5 }
 0xa97   : > { %13117 = vmatpush3.msra.mxu1 %v11145_v4  ;;  %v13082_v8 = vpop.f32.mrf.mxu0  ;;  %13096 = vmatprep.mubr.msk.f32.mxu1 %vm14429_vm2, %v14428_v21 }
 0xa98   : > { %13118 = vmatprep.subr.mxu1 %v14428_v21 }
 0xa99   : > { %13119 = vmatpush3.msra.mxu1 %v11144_v7  ;;  %v3339_v49 = vpop.f32.mrf.mxu0 }
 0xa9a   : > { %13120 = vmatprep.subr.mxu1 %v14428_v21  ;;  %13097 = vmatmul.mubr.msk.f32.gmra.mxu1 %vm2612_vm3, %v3339_v49 }
 0xa9b   : > { %13121 = vmatpush3.msra.mxu1 %v11143_v9  ;;  %v13085_v39 = vpop.f32.mrf.mxu0  ;;  %13128 = vmatprep.mubr.msk.f32.mxu1 %vm14429_vm2, %v14428_v21 }
 0xa9c   : > { %13122 = vmatprep.subr.mxu1 %v14428_v21 }
 0xa9d   : > { %13123 = vmatpush3.msra.mxu1 %v11142_v46  ;;  %v16313_v48 = vpop.f32.mrf.mxu0 }
 0xa9e   : > { %13124 = vmatprep.subr.mxu1 %v14428_v21 }
 0xa9f   : > { %13125 = vmatpush3.msra.mxu1 %v11141_v58  ;;  %v13105_v10 = vpop.f32.mrf.mxu0 }
 0xaa0   : > { %13126 = vmatprep.subr.mxu1 %v14428_v21 }
 0xaa1   : > { %13127 = vmatpush3.msra.mxu1 %v11140_v47  ;;  %v16323_v12 = vpop.f32.mrf.mxu0 }
 0xaa2   : > { %13129 = vmatmul.mubr.msk.f32.vlgmr.msra.gmra.mxu1 %vm2199_vm0, %v15939_v3  ;;  %13146 = vmatprep.subr.mxu1 %v14428_v21 }
 0xaa3   : > { %13147 = vmatpush3.msra.mxu1 %v11169_v11  ;;  %v13108_v14 = vpop.f32.mrf.mxu0  ;;  %13131 = vmatprep.mubr.msk.f32.mxu1 %vm14429_vm2, %v14428_v21 }
 0xaa4   : > { %13148 = vmatprep.subr.mxu1 %v14428_v21 }
 0xaa5   : > { %13149 = vmatpush3.msra.mxu1 %v11168_v59  ;;  %v16337_v20 = vpop.f32.mrf.mxu0 }
 0xaa6   : > { %13132 = vmatmul.mubr.msk.f32.gmra.mxu1 %vm2199_vm0, %v15937_v2  ;;  %13150 = vmatprep.subr.mxu1 %v14428_v21 }
 0xaa7   : > { %13151 = vmatpush3.msra.mxu1 %v11167_v41  ;;  %v13111_v52 = vpop.f32.mrf.mxu0  ;;  %13134 = vmatprep.mubr.msk.f32.mxu1 %vm14429_vm2, %v14428_v21 }
 0xaa8   : > { %13152 = vmatprep.subr.mxu1 %v14428_v21 }
 0xaa9   : > { %13153 = vmatpush3.msra.mxu1 %v11166_v22  ;;  %v13145_v18 = vpop.f32.mrf.mxu0 }
 0xaaa   : > { %13135 = vmatmul.mubr.msk.f32.gmra.mxu1 %vm2199_vm0, %v15929_v45  ;;  %v3715_v57 = vadd.f32 %v13145_v18, %v3635_v16  ;;  %13154 = vmatprep.subr.mxu1 %v14428_v21 }
 0xaab   : > { %13155 = vmatpush3.msra.mxu1 %v11165_v53  ;;  %v3709_v13 = vpop.f32.mrf.mxu0  ;;  %13162 = vmatprep.mubr.msk.f32.mxu1 %vm14429_vm2, %v14428_v21 }
 0xaac   : > { %v3710_v15 = vadd.f32 %v3709_v13, %v3630_v23  ;;  %13156 = vmatprep.subr.mxu1 %v14428_v21  ;;  %13172 = vmatpush3.msra.mxu0 %v3715_v57 }
 0xaad   : > { %13157 = vmatpush3.msra.mxu1 %v11164_v60  ;;  %13173 = vmatprep.subr.mxu0 %v14428_v21 }
 0xaae   : > { %13158 = vmatprep.subr.mxu1 %v14428_v21  ;;  %13174 = vmatpush3.msra.mxu0 %v3710_v15 }
 0xaaf   : > { %13159 = vmatpush3.msra.mxu1 %v11163_v56  ;;  %13184 = vmatprep.subr.mxu0 %v14428_v21 }
 0xab0   : > { %13160 = vmatprep.subr.mxu1 %v14428_v21 }
 0xab1   : > { %13161 = vmatpush3.msra.mxu1 %v11162_v61 }
 0xab2   : > { %13163 = vmatmul.mubr.msk.f32.vlgmr.msra.gmra.mxu1 %vm2199_vm0, %v15939_v3  ;;  %13199 = vmatprep.subr.mxu1 %v14428_v21 }
 0xab3   : > { %13200 = vmatpush3.msra.mxu1 %v11183_v0  ;;  %13165 = vmatprep.mubr.msk.f32.mxu1 %vm14429_vm2, %v14428_v21 }
 0xab4   : > { %13201 = vmatprep.subr.mxu1 %v14428_v21 }
 0xab5   : > { %13202 = vmatpush3.msra.mxu1 %v11182_v17  ;;  %v11202_v17 = vld [vmem:[%s18885_s10 + $0x30] sm:$0xff] }
 0xab6   : > { %13166 = vmatmul.mubr.msk.f32.gmra.mxu1 %vm2199_vm0, %v15937_v2  ;;  %13237 = vmatprep.subr.msk.mxu1 %vm2199_vm0, %v15929_v45 }
 0xab7   : > { %13168 = vmatprep.mubr.msk.f32.mxu1 %vm14429_vm2, %v14428_v21 }
 0xaba   : > { %13169 = vmatmul.mubr.msk.f32.gmra.mxu1 %vm2199_vm0, %v15929_v45 }
 0xabb   : > { %13203 = vmatprep.mubr.msk.f32.mxu1 %vm14429_vm2, %v14428_v21 }
 0xb51   : > { %v16392_v19 = vpop.f32.mrf.mxu1 }
 0xb53   : > { %v13092_v24 = vpop.f32.mrf.mxu1 }
 0xb54   : > { %v11203_v24 = vld [vmem:[%s18885_s10 + $0x38] sm:$0xff] }
 0xb56   : > { %v16394_v26 = vpop.f32.mrf.mxu1 }
 0xb58   : > { %v13095_v28 = vpop.f32.mrf.mxu1 }
 0xb5a   : > { %v16396_v30 = vpop.f32.mrf.mxu1 }
 0xb5c   : > { %v13098_v32 = vpop.f32.mrf.mxu1 }
 0xb62   : > { %v3607_v1 = vpop.f32.mrf.mxu1 }
 0xb63   : > { %v3608_v33 = vadd.f32 %v11149_v34, %v3607_v1 }
 0xb64   : > { %v13130_v25 = vpop.f32.mrf.mxu1 }
 0xb65   : > { %13176 = vmatmul.mubr.msk.f32.vlgmr.msra.gmra.mxu0 %vm2612_vm3, %v3608_v33  ;;  %v11194_v25 = vld [vmem:[%s18934_s27 + $0xf8] sm:$0xff] }
 0xb66   : > { %v3612_v27 = vpop.f32.mrf.mxu1  ;;  %13178 = vmatprep.mubr.msk.f32.mxu0 %vm14429_vm2, %v14428_v21 }
 0xb67   : > { %v3613_v29 = vadd.f32 %v11149_v34, %v3612_v27  ;;  %v11193_v27 = vld [vmem:[%s18934_s27 + $0xf0] sm:$0xff] }
 0xb68   : > { %v13133_v31 = vpop.f32.mrf.mxu1 }
 0xb69   : > { %13179 = vmatmul.mubr.msk.f32.gmra.mxu0 %vm2612_vm3, %v3613_v29 }
 0xb6a   : > { %v3617_v35 = vpop.f32.mrf.mxu1  ;;  %13181 = vmatprep.mubr.msk.f32.mxu0 %vm14429_vm2, %v14428_v21 }
 0xb6b   : > { %v3618_v38 = vadd.f32 %v11149_v34, %v3617_v35  ;;  %v11192_v35 = vld [vmem:[%s18934_s27 + $0xe8] sm:$0xff] }
 0xb6c   : > { %v13136_v40 = vpop.f32.mrf.mxu1 }
 0xb6d   : > { %13182 = vmatmul.mubr.msk.f32.gmra.mxu0 %vm2612_vm3, %v3618_v38  ;;  %v11191_v38 = vld [vmem:[%s18934_s27 + $0xe0] sm:$0xff] }
 0xb6e   : > { %13190 = vmatprep.mubr.msk.f32.mxu0 %vm14429_vm2, %v14428_v21 }
 0xb72   : > { %v3801_v51 = vpop.f32.mrf.mxu1 }
 0xb73   : > { %v3802_v4 = vadd.f32 %v11171_v44, %v3801_v51 }
 0xb74   : > { %v13164_v37 = vpop.f32.mrf.mxu1 }
 0xb75   : > { %v11190_v37 = vld [vmem:[%s18934_s27 + $0xd8] sm:$0xff] }
 0xb76   : > { %v3806_v55 = vpop.f32.mrf.mxu1 }
 0xb77   : > { %v3807_v62 = vadd.f32 %v11171_v44, %v3806_v55  ;;  %v11189_v55 = vld [vmem:[%s18934_s27 + $0xd0] sm:$0xff] }
 0xb78   : > { %v13167_v36 = vpop.f32.mrf.mxu1 }
 0xb79   : > { %v11188_v36 = vld [vmem:[%s18934_s27 + $0xc8] sm:$0xff] }
 0xb7a   : > { %v3811_v42 = vpop.f32.mrf.mxu1 }
 0xb7b   : > { %v3812_v43 = vadd.f32 %v11171_v44, %v3811_v42  ;;  %v11187_v44 = vld [vmem:[%s18934_s27 + $0xc0] sm:$0xff]  ;;  %v11216_v42 = vld [vmem:[%s18886_s11 + $0xf8] sm:$0xff] }
 0xb7c   : > { %v13170_v54 = vpop.f32.mrf.mxu1 }
 0xb7d   : > { %13185 = vmatpush3.msk.msra.mxu0 %vm2749_vm4, %v3812_v43  ;;  %v11215_v43 = vld [vmem:[%s18886_s11 + $0xf0] sm:$0xff]  ;;  %v11214_v54 = vld [vmem:[%s18886_s11 + $0xe8] sm:$0xff] }
 0xb7e   : > { %13186 = vmatprep.subr.mxu0 %v14428_v21 }
 0xb7f   : > { %13187 = vmatpush3.msra.mxu0 %v3807_v62  ;;  %v11213_v62 = vld [vmem:[%s18886_s11 + $0xe0] sm:$0xff] }
 0xb80   : > { %13188 = vmatprep.subr.mxu0 %v14428_v21 }
 0xb81   : > { %13189 = vmatpush3.msra.mxu0 %v3802_v4  ;;  %v11212_v4 = vld [vmem:[%s18886_s11 + $0xd8] sm:$0xff] }
 0xb82   : > { %13212 = vmatprep.subr.mxu0 %v14428_v21 }
 0xc25   : > { %v3890_v5 = vpop.f32.mrf.mxu0 }
 0xc26   : > { %v3904_v7 = vmul.f32 0.25, %v3890_v5  ;;  %v11211_v5 = vld [vmem:[%s18886_s11 + $0xd0] sm:$0xff] }
 0xc27   : > { %v13177_v8 = vpop.f32.mrf.mxu0 }
 0xc28   : > { %v3907_v9 = vsel %vm2705_vm5, %v3904_v7, -inf  ;;  %v11209_v8 = vld [vmem:[%s18886_s11 + $0xc0] sm:$0xff] }
 0xc29   : > { %3908 = vmax.xlane.f32.xlu1 %v3907_v9  ;;  %v3895_v49 = vpop.f32.mrf.mxu0 }
 0xc2a   : > { %v3905_v46 = vmul.f32 0.25, %v3895_v49 }
 0xc2b   : > { %v13180_v39 = vpop.f32.mrf.mxu0 }
 0xc2c   : > { %v3910_v58 = vsel %vm2705_vm5, %v3905_v46, -inf }
 0xc2d   : > { %3911 = vmax.xlane.f32.xlu0 %v3910_v58  ;;  %v3900_v47 = vpop.f32.mrf.mxu0 }
 0xc2e   : > { %v3906_v10 = vmul.f32 0.25, %v3900_v47 }
 0xc2f   : > { %v13183_v11 = vpop.f32.mrf.mxu0 }
 0xc30   : > { %v3913_v59 = vsel %vm2712_vm6, %v3906_v10, -inf }
 0xc31   : > { %3914 = vmax.xlane.f32.xlu0 %v3913_v59 }
 0xcb2   : > { %v3909_v14 = vpop.xlane.xlu1 %3908 }
 0xcb3   : > { %v3916_v41 = vsub.f32 %v3904_v7, %v3909_v14  ;;  %v11210_v7 = vld [vmem:[%s18886_s11 + $0xc8] sm:$0xff] }
 0xcb5   : > { %v3919_v22 = vmul.f32 1.442695, %v3916_v41 }
 0xcb6   : > { %v3912_v52 = vpop.xlane.xlu0 %3911 }
 0xcb7   : > { %14192 = vpow2.f32 %v3919_v22  ;;  %v3917_v53 = vsub.f32 %v3905_v46, %v3912_v52 }
 0xcb9   : > { %v3921_v16 = vmul.f32 1.442695, %v3917_v53 }
 0xcba   : > { %v3915_v18 = vpop.xlane.xlu0 %3914 }
 0xcbb   : > { %14194 = vpow2.f32 %v3921_v16  ;;  %v3918_v57 = vsub.f32 %v3906_v10, %v3915_v18 }
 0xcbd   : > { %v3923_v60 = vmul.f32 1.442695, %v3918_v57 }
 0xcbf   : > { %14196 = vpow2.f32 %v3923_v60  ;;  %v3511_v60 = vadd.f32 %v16313_v48, %v16392_v19  ;;  %v11196_v19 = vld [vmem:[%s18938_s28 + $0x3] ss:$0 sm:$0xff] }
 0xcc4   : > { %v14193_v23 = vpop.eup %14192 }
 0xcc5   : > { %v3925_v13 = vsel %vm2705_vm5, %v14193_v23, 0.0 }
 0xcc6   : > { %3926 = vadd.xlane.f32.xlu1 %v3925_v13 }
 0xcc8   : > { %v14195_v15 = vpop.eup %14194 }
 0xcc9   : > { %v3928_v56 = vsel %vm2705_vm5, %v14195_v15, 0.0 }
 0xcca   : > { %3929 = vadd.xlane.f32.xlu0 %v3928_v56  ;;  %v3516_v56 = vadd.f32 %v16323_v12, %v16394_v26 }
 0xccc   : > { %v14197_v61 = vpop.eup %14196 }
 0xccd   : > { %v3931_v0 = vsel %vm2712_vm6, %v14197_v61, 0.0 }
 0xcce   : > { %3932 = vadd.xlane.f32.xlu1 %v3931_v0 }
 0xcdf   : > { %4232 = vperm.xlu1 %14155, %v11202_v17  }
 0xce0   : > { %4237 = vperm.xlu0 %14154, %v11203_v24   ;;  %v3521_v24 = vadd.f32 %v16337_v20, %v16396_v30  ;;  %v11218_v20 = vld [vmem:[%s18887_s12 + $0x3] ss:$0 sm:$0xff] }
 0xd4f   : > { %v3927_v28 = vpop.xlane.xlu1 %3926 }
 0xd50   : > { %14198 = vrcp.f32 %v3927_v28 }
 0xd53   : > { %v3930_v32 = vpop.xlane.xlu0 %3929 }
 0xd54   : > { %14200 = vrcp.f32 %v3930_v32 }
 0xd57   : > { %v3933_v34 = vpop.xlane.xlu1 %3932 }
 0xd58   : > { %14202 = vrcp.f32 %v3933_v34 }
 0xd5d   : > { %v14199_v1 = vpop.eup %14198 }
 0xd5e   : > { %v3937_v33 = vmul.f32 %v14199_v1, %v14193_v23  ;;  %v4238_v1 = vpop.permute.xlu0 %4237 }
 0xd60   : > { %13191 = vmatmul.mubr.msk.f32.vlgmr.msra.gmra.mxu0 %vm2705_vm5, %v3937_v33 }
 0xd61   : > { %v14201_v29 = vpop.eup %14200  ;;  %13213 = vmatpush3.msra.mxu0 %v11194_v25  ;;  %13193 = vmatprep.mubr.msk.f32.mxu0 %vm14429_vm2, %v14428_v21  ;;  %v4233_v25 = vpop.permute.xlu1 %4232 }
 0xd62   : > { %13214 = vmatprep.subr.mxu0 %v14428_v21  ;;  %v3938_v31 = vmul.f32 %v14201_v29, %v14195_v15 }
 0xd63   : > { %13215 = vmatpush3.msra.mxu0 %v11193_v27 }
 0xd64   : > { %13216 = vmatprep.subr.mxu0 %v14428_v21  ;;  %13194 = vmatmul.mubr.msk.f32.gmra.mxu0 %vm2705_vm5, %v3938_v31 }
 0xd65   : > { %v14203_v40 = vpop.eup %14202  ;;  %13217 = vmatpush3.msra.mxu0 %v11192_v35  ;;  %13196 = vmatprep.mubr.msk.f32.mxu0 %vm14429_vm2, %v14428_v21 }
 0xd66   : > { %13218 = vmatprep.subr.mxu0 %v14428_v21  ;;  %v3939_v51 = vmul.f32 %v14203_v40, %v14197_v61 }
 0xd67   : > { %13219 = vmatpush3.msra.mxu0 %v11191_v38 }
 0xd68   : > { %13220 = vmatprep.subr.mxu0 %v14428_v21  ;;  %13197 = vmatmul.mubr.msk.f32.gmra.mxu0 %vm2705_vm5, %v3939_v51 }
 0xd69   : > { %13221 = vmatpush3.msra.mxu0 %v11190_v37  ;;  %13228 = vmatprep.mubr.msk.f32.mxu0 %vm14429_vm2, %v14428_v21 }
 0xd6a   : > { %13222 = vmatprep.subr.mxu0 %v14428_v21 }
 0xd6b   : > { %13223 = vmatpush3.msra.mxu0 %v11189_v55 }
 0xd6c   : > { %13224 = vmatprep.subr.mxu0 %v14428_v21 }
 0xd6d   : > { %13225 = vmatpush3.msra.mxu0 %v11188_v36 }
 0xd6e   : > { %13226 = vmatprep.subr.mxu0 %v14428_v21 }
 0xd6f   : > { %13227 = vmatpush3.msra.mxu0 %v11187_v44 }
 0xd70   : > { %13229 = vmatmul.mubr.msk.f32.vlgmr.msra.gmra.mxu0 %vm2199_vm0, %v15939_v3  ;;  %13246 = vmatprep.subr.mxu0 %v14428_v21 }
 0xd71   : > { %13247 = vmatpush3.msra.mxu0 %v11216_v42  ;;  %13231 = vmatprep.mubr.msk.f32.mxu0 %vm14429_vm2, %v14428_v21 }
 0xd72   : > { %13248 = vmatprep.subr.mxu0 %v14428_v21 }
 0xd73   : > { %13249 = vmatpush3.msra.mxu0 %v11215_v43 }
 0xd74   : > { %13232 = vmatmul.mubr.msk.f32.gmra.mxu0 %vm2199_vm0, %v15937_v2  ;;  %13250 = vmatprep.subr.mxu0 %v14428_v21 }
 0xd75   : > { %13251 = vmatpush3.msra.mxu0 %v11214_v54  ;;  %13234 = vmatprep.mubr.msk.f32.mxu0 %vm14429_vm2, %v14428_v21 }
 0xd76   : > { %13252 = vmatprep.subr.mxu0 %v14428_v21 }
 0xd77   : > { %13253 = vmatpush3.msra.mxu0 %v11213_v62 }
 0xd78   : > { %13235 = vmatmul.mubr.msk.f32.gmra.mxu0 %vm2199_vm0, %v15929_v45  ;;  %13254 = vmatprep.subr.mxu0 %v14428_v21 }
 0xd79   : > { %13255 = vmatpush3.msra.mxu0 %v11212_v4  ;;  %13262 = vmatprep.mubr.msk.f32.mxu0 %vm14429_vm2, %v14428_v21 }
 0xd7a   : > { %13256 = vmatprep.subr.mxu0 %v14428_v21 }
 0xd7b   : > { %13257 = vmatpush3.msra.mxu0 %v11211_v5 }
 0xd7c   : > { %13258 = vmatprep.subr.mxu0 %v14428_v21 }
 0xd7d   : > { %13259 = vmatpush3.msra.mxu0 %v11210_v7 }
 0xd7e   : > { %13260 = vmatprep.subr.mxu0 %v14428_v21 }
 0xd7f   : > { %13261 = vmatpush3.msra.mxu0 %v11209_v8 }
 0xd80   : > { %13263 = vmatmul.mubr.msk.f32.vlgmr.msra.gmra.mxu0 %vm2199_vm0, %v15939_v3  ;;  %13299 = vmatprep.subr.mxu0 %v14428_v21 }
 0xd81   : > { %13265 = vmatprep.mubr.msk.f32.mxu0 %vm14429_vm2, %v14428_v21 }
 0xd84   : > { %13266 = vmatmul.mubr.msk.f32.gmra.mxu0 %vm2199_vm0, %v15937_v2 }
 0xd85   : > { %13268 = vmatprep.mubr.msk.f32.mxu0 %vm14429_vm2, %v14428_v21 }
 0xd88   : > { %13269 = vmatmul.mubr.msk.f32.gmra.mxu0 %vm2199_vm0, %v15929_v45 }
 0xd89   : > { %13303 = vmatprep.mubr.msk.f32.mxu0 %vm14429_vm2, %v14428_v21 }
 0xe20   : > { %v4018_v9 = vpop.f32.mrf.mxu0 }
 0xe21   : > { %13204 = vmatmul.mubr.msk.f32.vlgmr.msra.gmra.mxu1 %vm2612_vm3, %v4018_v9 }
 0xe22   : > { %13238 = vmatpush3.xpose.msk.msra.mxu1 %vm2199_vm0, %v15929_v45  ;;  %v13192_v49 = vpop.f32.mrf.mxu0  ;;  %13206 = vmatprep.mubr.msk.f32.mxu1 %vm14429_vm2, %v14428_v21  ;;  %v11200_v45 = vld [vmem:[%s18935_s26 + $0x30] sm:$0xff] }
 0xe23   : > { %13239 = vmatprep.subr.msk.mxu1 %vm2199_vm0, %v15937_v2 }
 0xe24   : > { %v4023_v46 = vpop.f32.mrf.mxu0 }
 0xe25   : > { %13207 = vmatmul.mubr.msk.f32.gmra.mxu1 %vm2612_vm3, %v4023_v46 }
 0xe26   : > { %13240 = vmatpush3.xpose.msk.msra.mxu1 %vm2199_vm0, %v15937_v2  ;;  %v13195_v39 = vpop.f32.mrf.mxu0  ;;  %13209 = vmatprep.mubr.msk.f32.mxu1 %vm14429_vm2, %v14428_v21  ;;  %v11201_v2 = vld [vmem:[%s18935_s26 + $0x38] sm:$0xff] }
 0xe27   : > { %13241 = vmatprep.subr.msk.mxu1 %vm2199_vm0, %v15939_v3 }
 0xe28   : > { %v4028_v58 = vpop.f32.mrf.mxu0 }
 0xe29   : > { %13210 = vmatmul.mubr.msk.f32.gmra.mxu1 %vm2612_vm3, %v4028_v58 }
 0xe2a   : > { %13242 = vmatpush3.xpose.msk.msra.mxu1 %vm2199_vm0, %v15939_v3  ;;  %v13198_v47 = vpop.f32.mrf.mxu0  ;;  %13243 = vmatprep.mubr.msk.f32.mxu1 %vm2199_vm0, %v11200_v45 }
 0xe2b   : > { %13271 = vmatprep.subr.mxu1 %v14428_v21 }
 0xe2d   : > { %13244 = vmatmul.mubr.msk.f32.vlgmr.msra.gmra.mxu1 %vm2199_vm0, %v11201_v2 }
 0xe2e   : > { %13275 = vmatprep.mubr.msk.f32.mxu1 %vm14429_vm2, %v14428_v21 }
 0xe30   : > { %v4210_v10 = vpop.f32.mrf.mxu0 }
 0xe31   : > { %v4211_v27 = vadd.f32 %v11196_v19, %v4210_v10 }
 0xe32   : > { %v13230_v11 = vpop.f32.mrf.mxu0 }
 0xe34   : > { %v4215_v59 = vpop.f32.mrf.mxu0 }
 0xe35   : > { %v4216_v31 = vadd.f32 %v11196_v19, %v4215_v59 }
 0xe36   : > { %v13233_v14 = vpop.f32.mrf.mxu0 }
 0xe38   : > { %v4220_v41 = vpop.f32.mrf.mxu0 }
 0xe39   : > { %v4221_v38 = vadd.f32 %v11196_v19, %v4220_v41 }
 0xe3a   : > { %v13236_v3 = vpop.f32.mrf.mxu0 }
 0xe3b   : > { %v11230_v3 = vld [vmem:[%s18888_s13 + $0x38] sm:$0xff] }
 0xe3c   : > { %13300 = vmatpush3.msra.mxu0 %v11230_v3  ;;  %v4805_v3 = vld [vmem:[%s18892_s17 + $0x18] sm:$0xff] }
 0xe3d   : > { %13301 = vmatprep.subr.mxu0 %v14428_v21 }
 0xe40   : > { %v4404_v22 = vpop.f32.mrf.mxu0 }
 0xe41   : > { %v4405_v35 = vadd.f32 %v11218_v20, %v4404_v22 }
 0xe42   : > { %v13264_v52 = vpop.f32.mrf.mxu0 }
 0xe44   : > { %v4409_v53 = vpop.f32.mrf.mxu0 }
 0xe45   : > { %v4410_v29 = vadd.f32 %v11218_v20, %v4409_v53 }
 0xe46   : > { %v13267_v16 = vpop.f32.mrf.mxu0 }
 0xe48   : > { %v4414_v18 = vpop.f32.mrf.mxu0 }
 0xe49   : > { %v4415_v30 = vadd.f32 %v11218_v20, %v4414_v18 }
 0xe4a   : > { %v13270_v57 = vpop.f32.mrf.mxu0 }
 0xee1   : > { %v4110_v23 = vpop.f32.mrf.mxu1 }
 0xee2   : > { %v16556_v13 = vadd.f32 %v4110_v23, %v3511_v60 }
 0xee3   : > { %v13205_v15 = vpop.f32.mrf.mxu1 }
 0xee5   : > { %v4115_v61 = vpop.f32.mrf.mxu1 }
 0xee6   : > { %v16560_v0 = vadd.f32 %v4115_v61, %v3516_v56  ;;  %v11229_v56 = vld [vmem:[%s18888_s13 + $0x30] sm:$0xff] }
 0xee7   : > { %v13208_v17 = vpop.f32.mrf.mxu1  ;;  %13302 = vmatpush3.msra.mxu0 %v11229_v56 }
 0xee9   : > { %v4120_v28 = vpop.f32.mrf.mxu1 }
 0xeea   : > { %v16564_v32 = vadd.f32 %v4120_v28, %v3521_v24 }
 0xeeb   : > { %v13211_v34 = vpop.f32.mrf.mxu1 }
 0xeed   : > { %v13245_v48 = vpop.f32.mrf.mxu1 }
 0xeee   : > { %v4318_v33 = vadd.f32 %v13245_v48, %v4238_v1 }
 0xeef   : > { %v4312_v12 = vpop.f32.mrf.mxu1 }
 0xef0   : > { %v4313_v26 = vadd.f32 %v4312_v12, %v4233_v25  ;;  %13272 = vmatpush3.msra.mxu1 %v4318_v33  ;;  %v11234_v33 = vld [vmem:[%s18889_s14] ss:$0 sm:$0xff] }
 0xef1   : > { %13273 = vmatprep.subr.mxu1 %v14428_v21 }
 0xef2   : > { %13274 = vmatpush3.msra.mxu1 %v4313_v26 }
 0xef3   : > { %13276 = vmatmul.mubr.msk.f32.vlgmr.msra.gmra.mxu1 %vm2612_vm3, %v4211_v27  ;;  %13284 = vmatprep.subr.mxu1 %v14428_v21 }
 0xef4   : > { %13285 = vmatpush3.msk.msra.mxu1 %vm2749_vm4, %v4415_v30  ;;  %13278 = vmatprep.mubr.msk.f32.mxu1 %vm14429_vm2, %v14428_v21 }
 0xef5   : > { %13286 = vmatprep.subr.mxu1 %v14428_v21 }
 0xef6   : > { %13287 = vmatpush3.msra.mxu1 %v4410_v29 }
 0xef7   : > { %13279 = vmatmul.mubr.msk.f32.gmra.mxu1 %vm2612_vm3, %v4216_v31  ;;  %13288 = vmatprep.subr.mxu1 %v14428_v21 }
 0xef8   : > { %13289 = vmatpush3.msra.mxu1 %v4405_v35  ;;  %13281 = vmatprep.mubr.msk.f32.mxu1 %vm14429_vm2, %v14428_v21 }
 0xefb   : > { %13282 = vmatmul.mubr.msk.f32.gmra.mxu1 %vm2612_vm3, %v4221_v38 }
 0xefc   : > { %13290 = vmatprep.mubr.msk.f32.mxu1 %vm14429_vm2, %v14428_v21 }
 0xfb3   : > { %v4493_v40 = vpop.f32.mrf.mxu1 }
 0xfb4   : > { %v4507_v51 = vmul.f32 0.25, %v4493_v40 }
 0xfb5   : > { %v13277_v37 = vpop.f32.mrf.mxu1 }
 0xfb6   : > { %v4510_v55 = vsel %vm2705_vm5, %v4507_v51, -inf }
 0xfb7   : > { %4511 = vmax.xlane.f32.xlu1 %v4510_v55  ;;  %v4498_v36 = vpop.f32.mrf.mxu1 }
 0xfb8   : > { %v4508_v44 = vmul.f32 0.25, %v4498_v36 }
 0xfb9   : > { %v13280_v42 = vpop.f32.mrf.mxu1 }
 0xfba   : > { %v4513_v43 = vsel %vm2705_vm5, %v4508_v44, -inf }
 0xfbb   : > { %4514 = vmax.xlane.f32.xlu0 %v4513_v43  ;;  %v4503_v54 = vpop.f32.mrf.mxu1 }
 0xfbc   : > { %v4509_v62 = vmul.f32 0.25, %v4503_v54 }
 0xfbd   : > { %v13283_v4 = vpop.f32.mrf.mxu1 }
 0xfbe   : > { %v4516_v5 = vsel %vm2712_vm6, %v4509_v62, -inf }
 0xfbf   : > { %4517 = vmax.xlane.f32.xlu0 %v4516_v5 }
0x1040   : > { %v4512_v7 = vpop.xlane.xlu1 %4511 }
0x1041   : > { %v4519_v8 = vsub.f32 %v4507_v51, %v4512_v7 }
0x1043   : > { %v4522_v9 = vmul.f32 1.442695, %v4519_v8 }
0x1044   : > { %v4515_v49 = vpop.xlane.xlu0 %4514 }
0x1045   : > { %14204 = vpow2.f32 %v4522_v9  ;;  %v4520_v46 = vsub.f32 %v4508_v44, %v4515_v49  ;;  %v4817_v49 = vld [vmem:[%s18892_s17 + $0x78] sm:$0xff] }
0x1046   : > { %4855 = vmatprep.subr.mxu1 %v4817_v49  ;;  %v4975_v49 = vld [vmem:[%s18894_s19 + $0x28] sm:$0xff] }
0x1047   : > { %v4524_v39 = vmul.f32 1.442695, %v4520_v46  ;;  %v4816_v46 = vld [vmem:[%s18892_s17 + $0x70] sm:$0xff] }
0x1048   : > { %v4518_v45 = vpop.xlane.xlu0 %4517 }
0x1049   : > { %14206 = vpow2.f32 %v4524_v39  ;;  %v4521_v58 = vsub.f32 %v4509_v62, %v4518_v45  ;;  %v4815_v39 = vld [vmem:[%s18892_s17 + $0x68] sm:$0xff]  ;;  %v4814_v45 = vld [vmem:[%s18892_s17 + $0x60] sm:$0xff] }
0x104b   : > { %v4526_v47 = vmul.f32 1.442695, %v4521_v58  ;;  %v4813_v58 = vld [vmem:[%s18892_s17 + $0x58] sm:$0xff] }
0x104d   : > { %14208 = vpow2.f32 %v4526_v47  ;;  %v4812_v47 = vld [vmem:[%s18892_s17 + $0x50] sm:$0xff] }
0x1052   : > { %v14205_v2 = vpop.eup %14204 }
0x1053   : > { %v4528_v10 = vsel %vm2705_vm5, %v14205_v2, 0.0 }
0x1054   : > { %4529 = vadd.xlane.f32.xlu1 %v4528_v10  ;;  %v4810_v10 = vld [vmem:[%s18892_s17 + $0x40] sm:$0xff] }
0x1056   : > { %v14207_v11 = vpop.eup %14206 }
0x1057   : > { %v4531_v59 = vsel %vm2705_vm5, %v14207_v11, 0.0 }
0x1058   : > { %4532 = vadd.xlane.f32.xlu0 %v4531_v59  ;;  %v4808_v59 = vld [vmem:[%s18892_s17 + $0x30] sm:$0xff] }
0x105a   : > { %v14209_v14 = vpop.eup %14208 }
0x105b   : > { %v4534_v41 = vsel %vm2712_vm6, %v14209_v14, 0.0 }
0x105c   : > { %4535 = vadd.xlane.f32.xlu1 %v4534_v41  ;;  %v4806_v41 = vld [vmem:[%s18892_s17 + $0x20] sm:$0xff] }
0x10dd   : > { %v4530_v22 = vpop.xlane.xlu1 %4529 }
0x10de   : > { %14210 = vrcp.f32 %v4530_v22  ;;  %v4804_v22 = vld [vmem:[%s18892_s17 + $0x10] sm:$0xff] }
0x10e1   : > { %v4533_v52 = vpop.xlane.xlu0 %4532 }
0x10e2   : > { %14212 = vrcp.f32 %v4533_v52  ;;  %v4803_v52 = vld [vmem:[%s18892_s17 + $0x8] sm:$0xff] }
0x10e5   : > { %v4536_v53 = vpop.xlane.xlu1 %4535 }
0x10e6   : > { %14214 = vrcp.f32 %v4536_v53  ;;  %v4802_v53 = vld [vmem:[%s18892_s17] sm:$0xff] }
0x10eb   : > { %v14211_v16 = vpop.eup %14210 }
0x10ec   : > { %v4540_v18 = vmul.f32 %v14211_v16, %v14205_v2  ;;  %v4811_v2 = vld [vmem:[%s18892_s17 + $0x48] sm:$0xff] }
0x10ee   : > { %13291 = vmatmul.mubr.msk.f32.vlgmr.msra.gmra.mxu1 %vm2705_vm5, %v4540_v18 }
0x10ef   : > { %v14213_v57 = vpop.eup %14212  ;;  %13293 = vmatprep.mubr.msk.f32.mxu1 %vm14429_vm2, %v14428_v21  ;;  %4856 = vmatpush1.msra.mxu1 %v4816_v46  ;;  %v4990_v46 = vld [vmem:[%s18894_s19 + $0xa0] sm:$0xff] }
0x10f0   : > { %v4541_v60 = vmul.f32 %v14213_v57, %v14207_v11  ;;  %4857 = vmatprep.subr.mxu1 %v4815_v39  ;;  %v4809_v11 = vld [vmem:[%s18892_s17 + $0x38] sm:$0xff]  ;;  %v4974_v39 = vld [vmem:[%s18894_s19 + $0x20] sm:$0xff] }
0x10f1   : > { %4858 = vmatpush1.msra.mxu1 %v4814_v45  ;;  %v4989_v45 = vld [vmem:[%s18894_s19 + $0x98] sm:$0xff] }
0x10f2   : > { %13294 = vmatmul.mubr.msk.f32.gmra.mxu1 %vm2705_vm5, %v4541_v60  ;;  %4859 = vmatprep.subr.mxu1 %v4813_v58  ;;  %v4973_v58 = vld [vmem:[%s18894_s19 + $0x18] sm:$0xff] }
0x10f3   : > { %v14215_v23 = vpop.eup %14214  ;;  %13296 = vmatprep.mubr.msk.f32.mxu1 %vm14429_vm2, %v14428_v21  ;;  %4860 = vmatpush1.msra.mxu1 %v4812_v47  ;;  %v4988_v47 = vld [vmem:[%s18894_s19 + $0x90] sm:$0xff] }
0x10f4   : > { %v4542_v15 = vmul.f32 %v14215_v23, %v14209_v14  ;;  %4861 = vmatprep.subr.mxu1 %v4811_v2  ;;  %v4807_v14 = vld [vmem:[%s18892_s17 + $0x28] sm:$0xff]  ;;  %v4972_v2 = vld [vmem:[%s18894_s19 + $0x10] sm:$0xff] }
0x10f5   : > { %4862 = vmatpush1.msra.mxu1 %v4810_v10  ;;  %v4987_v10 = vld [vmem:[%s18894_s19 + $0x88] sm:$0xff] }
0x10f6   : > { %13297 = vmatmul.mubr.msk.f32.gmra.mxu1 %vm2705_vm5, %v4542_v15  ;;  %4863 = vmatprep.subr.mxu1 %v4809_v11  ;;  %v4971_v11 = vld [vmem:[%s18894_s19 + $0x8] sm:$0xff] }
0x10f7   : > { %4903 = vmatprep.mubr.f32.mxu1 %v14428_v21  ;;  %4864 = vmatpush1.msra.mxu1 %v4808_v59  ;;  %v4986_v59 = vld [vmem:[%s18894_s19 + $0x80] sm:$0xff] }
0x10f8   : > { %4865 = vmatprep.subr.mxu1 %v4807_v14  ;;  %v4970_v14 = vld [vmem:[%s18894_s19] sm:$0xff] }
0x10f9   : > { %4866 = vmatpush1.msra.mxu1 %v4806_v41  ;;  %v4820_v41 = vlaneseq }
0x10fa   : > { %4867 = vmatprep.subr.mxu1 %v4805_v3 }
0x10fb   : > { %4868 = vmatpush1.msra.mxu1 %v4804_v22  ;;  %v4821_v3 = vshrl.u32 %v4820_v41, 7 }
0x10fc   : > { %4869 = vmatprep.subr.mxu1 %v4803_v52  ;;  %v4818_v52 = vld [vmem:[%s18893_s18] sm:$0x3] }
0x10fd   : > { %4870 = vmatpush1.msra.mxu1 %v4802_v53  ;;  %v16815_v22 = vsub.s32 0, %v4821_v3  ;;  %v16820_v53 = vsub.s32 1, %v4821_v3 }
0x10fe   : > { %13312 = vmatprep.subr.mxu1 %v14428_v21 }
0x11ae   : > { %v4621_v61 = vpop.f32.mrf.mxu1 }
0x11af   : > { %13304 = vmatmul.mubr.msk.f32.vlgmr.msra.gmra.mxu0 %vm2612_vm3, %v4621_v61 }
0x11b0   : > { %v13292_v17 = vpop.f32.mrf.mxu1  ;;  %13306 = vmatprep.mubr.msk.f32.mxu0 %vm14429_vm2, %v14428_v21 }
0x11b2   : > { %v4626_v24 = vpop.f32.mrf.mxu1 }
0x11b3   : > { %13307 = vmatmul.mubr.msk.f32.gmra.mxu0 %vm2612_vm3, %v4626_v24 }
0x11b4   : > { %v13295_v28 = vpop.f32.mrf.mxu1  ;;  %13309 = vmatprep.mubr.msk.f32.mxu0 %vm14429_vm2, %v14428_v21 }
0x11b5   : > { %v11235_v28 = vld [vmem:[%s18890_s15] ss:$0 sm:$0xff] }
0x11b6   : > { %v4631_v34 = vpop.f32.mrf.mxu1 }
0x11b7   : > { %13310 = vmatmul.mubr.msk.f32.gmra.mxu0 %vm2612_vm3, %v4631_v34 }
0x11b8   : > { %v13298_v1 = vpop.f32.mrf.mxu1 }
0x11b9   : > { %v11236_v1 = vld [vmem:[%s18891_s16] ss:$0 sm:$0xff] }
0x126f   : > { %v4713_v48 = vpop.f32.mrf.mxu0 }
0x1270   : > { %v4727_v19 = vadd.f32 %v4713_v48, %v16556_v13 }
0x1271   : > { %v13305_v25 = vpop.f32.mrf.mxu0 }
0x1272   : > { %v4730_v12 = vadd.f32 %v4727_v19, %v15853_v63 }
0x1273   : > { %v4718_v26 = vpop.f32.mrf.mxu0 }
0x1274   : > { %v16619_v27 = vadd.f32 %v11234_v33, %v4730_v12  ;;  %v4728_v20 = vadd.f32 %v4718_v26, %v16560_v0 }
0x1275   : > { %v13308_v30 = vpop.f32.mrf.mxu0 }
0x1276   : > { %v4731_v29 = vadd.f32 %v4728_v20, %v15851_v6  ;;  %v4745_v31 = vsel %vm2199_vm0, %v16619_v27, 0.0 }
0x1277   : > { %4746 = vadd.xlane.f32.xlu0 %v4745_v31  ;;  %v4723_v13 = vpop.f32.mrf.mxu0 }
0x1278   : > { %v16625_v35 = vadd.f32 %v11234_v33, %v4731_v29  ;;  %v4729_v38 = vadd.f32 %v4723_v13, %v16564_v32  ;;  %v5001_v13 = vld [vmem:[%s18894_s19 + $0xf8] sm:$0xff] }
0x1279   : > { %v13311_v40 = vpop.f32.mrf.mxu0  ;;  %12434 = vmatprep.subr.mxu0 %v5001_v13 }
0x127a   : > { %v4732_v63 = vadd.f32 %v4729_v38, %v15847_v50  ;;  %v4748_v51 = vsel %vm2199_vm0, %v16625_v35, 0.0  ;;  %v4985_v38 = vld [vmem:[%s18894_s19 + $0x78] sm:$0xff]  ;;  %v5000_v40 = vld [vmem:[%s18894_s19 + $0xf0] sm:$0xff] }
0x127b   : > { %4749 = vadd.xlane.f32.xlu1 %v4748_v51  ;;  %12435 = vmatpush3.msra.mxu0 %v4985_v38  ;;  %v4999_v51 = vld [vmem:[%s18894_s19 + $0xe8] sm:$0xff] }
0x127c   : > { %v16631_v0 = vadd.f32 %v11234_v33, %v4732_v63  ;;  %12436 = vmatprep.subr.mxu0 %v5000_v40  ;;  %v4984_v63 = vld [vmem:[%s18894_s19 + $0x70] sm:$0xff] }
0x127d   : > { %12437 = vmatpush3.msra.mxu0 %v4984_v63 }
0x127e   : > { %v4751_v6 = vsel %vm2206_vm1, %v16631_v0, 0.0  ;;  %12438 = vmatprep.subr.mxu0 %v4999_v51 }
0x127f   : > { %4752 = vadd.xlane.f32.xlu0 %v4751_v6  ;;  %v4983_v6 = vld [vmem:[%s18894_s19 + $0x68] sm:$0xff] }
0x1280   : > { %12439 = vmatpush3.msra.mxu0 %v4983_v6 }
0x1300   : > { %v4747_v37 = vpop.xlane.xlu0 %4746 }
0x1301   : > { %v4754_v55 = vmul.f32 0.015625, %v4747_v37  ;;  %v4998_v37 = vld [vmem:[%s18894_s19 + $0xe0] sm:$0xff] }
0x1302   : > { %12440 = vmatprep.subr.mxu0 %v4998_v37 }
0x1303   : > { %v16636_v36 = vsub.f32 %v16619_v27, %v4754_v55  ;;  %v4982_v55 = vld [vmem:[%s18894_s19 + $0x60] sm:$0xff] }
0x1304   : > { %v4750_v44 = vpop.xlane.xlu1 %4749  ;;  %12441 = vmatpush3.msra.mxu0 %v4982_v55 }
0x1305   : > { %v4755_v32 = vmul.f32 0.015625, %v4750_v44  ;;  %v4760_v50 = vmul.f32 %v16636_v36, %v16636_v36  ;;  %v4981_v44 = vld [vmem:[%s18894_s19 + $0x58] sm:$0xff] }
0x1307   : > { %v16641_v42 = vsub.f32 %v16625_v35, %v4755_v32  ;;  %v4763_v43 = vsel %vm2199_vm0, %v4760_v50, 0.0  ;;  %v4996_v32 = vld [vmem:[%s18894_s19 + $0xd0] sm:$0xff] }
0x1308   : > { %4764 = vadd.xlane.f32.xlu1 %v4763_v43  ;;  %v4753_v54 = vpop.xlane.xlu0 %4752  ;;  %v4980_v50 = vld [vmem:[%s18894_s19 + $0x50] sm:$0xff]  ;;  %v4979_v43 = vld [vmem:[%s18894_s19 + $0x48] sm:$0xff] }
0x1309   : > { %v4756_v62 = vmul.f32 0.015625, %v4753_v54  ;;  %v4761_v4 = vmul.f32 %v16641_v42, %v16641_v42  ;;  %v4994_v54 = vld [vmem:[%s18894_s19 + $0xc0] sm:$0xff] }
0x130b   : > { %v16647_v5 = vsub.f32 %v16631_v0, %v4756_v62  ;;  %v4766_v7 = vsel %vm2199_vm0, %v4761_v4, 0.0  ;;  %v4978_v62 = vld [vmem:[%s18894_s19 + $0x40] sm:$0xff]  ;;  %v4993_v4 = vld [vmem:[%s18894_s19 + $0xb8] sm:$0xff] }
0x130c   : > { %4767 = vadd.xlane.f32.xlu0 %v4766_v7  ;;  %v4992_v7 = vld [vmem:[%s18894_s19 + $0xb0] sm:$0xff] }
0x130d   : > { %v4762_v8 = vmul.f32 %v16647_v5, %v16647_v5 }
0x130f   : > { %v4769_v9 = vsel %vm2206_vm1, %v4762_v8, 0.0  ;;  %v4976_v8 = vld [vmem:[%s18894_s19 + $0x30] sm:$0xff] }
0x1310   : > { %4770 = vadd.xlane.f32.xlu1 %v4769_v9  ;;  %v4991_v9 = vld [vmem:[%s18894_s19 + $0xa8] sm:$0xff] }
0x1391   : > { %v4765_v16 = vpop.xlane.xlu1 %4764 }
0x1392   : > { %v4772_v18 = vmul.f32 0.015625, %v4765_v16  ;;  %v4823_v16 = vrot.slane %v4818_v52, %v16815_v22 }
0x1394   : > { %v4775_v57 = vadd.f32 1e-05, %v4772_v18  ;;  %v4827_v18 = vrot.slane %v4818_v52, %v16820_v53 }
0x1395   : > { %v4768_v60 = vpop.xlane.xlu0 %4767 }
0x1396   : > { %14216 = vrsqrt.f32 %v4775_v57  ;;  %v4773_v23 = vmul.f32 0.015625, %v4768_v60 }
0x1398   : > { %v4776_v15 = vadd.f32 1e-05, %v4773_v23 }
0x1399   : > { %v4771_v56 = vpop.xlane.xlu1 %4770 }
0x139a   : > { %14218 = vrsqrt.f32 %v4776_v15  ;;  %v4774_v61 = vmul.f32 0.015625, %v4771_v56 }
0x139c   : > { %v4777_v17 = vadd.f32 1e-05, %v4774_v61 }
0x139e   : > { %14220 = vrsqrt.f32 %v4777_v17 }
0x13a3   : > { %v14217_v24 = vpop.eup %14216 }
0x13a4   : > { %v4781_v34 = vmul.f32 %v14217_v24, %v16636_v36  ;;  %v4997_v36 = vld [vmem:[%s18894_s19 + $0xd8] sm:$0xff] }
0x13a5   : > { %12442 = vmatprep.subr.mxu0 %v4997_v36 }
0x13a6   : > { %v4790_v48 = vmul.f32 %v11235_v28, %v4781_v34  ;;  %12443 = vmatpush3.msra.mxu0 %v4981_v44 }
0x13a7   : > { %v14219_v19 = vpop.eup %14218  ;;  %12444 = vmatprep.subr.mxu0 %v4996_v32 }
0x13a8   : > { %v4799_v33 = vadd.f32 %v11236_v1, %v4790_v48  ;;  %v4782_v25 = vmul.f32 %v14219_v19, %v16641_v42  ;;  %12445 = vmatpush3.msra.mxu0 %v4980_v50  ;;  %v4995_v42 = vld [vmem:[%s18894_s19 + $0xc8] sm:$0xff] }
0x13a9   : > { %12446 = vmatprep.subr.mxu0 %v4995_v42 }
0x13aa   : > { %11237 = vmatmul.mubr.msk.f32.vlgmr.msra.gmra.mxu1 %vm2199_vm0, %v4799_v33  ;;  %v4791_v12 = vmul.f32 %v11235_v28, %v4782_v25  ;;  %12447 = vmatpush3.msra.mxu0 %v4979_v43 }
0x13ab   : > { %v14221_v26 = vpop.eup %14220  ;;  %4909 = vmatprep.mubr.f32.mxu1 %v14428_v21  ;;  %12448 = vmatprep.subr.mxu0 %v4994_v54 }
0x13ac   : > { %v4800_v20 = vadd.f32 %v11236_v1, %v4791_v12  ;;  %v4783_v30 = vmul.f32 %v14221_v26, %v16647_v5  ;;  %12449 = vmatpush3.msra.mxu0 %v4978_v62  ;;  %v4977_v5 = vld [vmem:[%s18894_s19 + $0x38] sm:$0xff] }
0x13ad   : > { %12450 = vmatprep.subr.mxu0 %v4993_v4 }
0x13ae   : > { %11238 = vmatmul.mubr.msk.f32.gmra.mxu1 %vm2199_vm0, %v4800_v20  ;;  %v4792_v29 = vmul.f32 %v11235_v28, %v4783_v30  ;;  %12451 = vmatpush3.msra.mxu0 %v4977_v5 }
0x13af   : > { %4915 = vmatprep.mubr.f32.mxu1 %v14428_v21  ;;  %12452 = vmatprep.subr.mxu0 %v4992_v7 }
0x13b0   : > { %v4801_v31 = vadd.f32 %v11236_v1, %v4792_v29  ;;  %12453 = vmatpush3.msra.mxu0 %v4976_v8 }
0x13b1   : > { %12454 = vmatprep.subr.mxu0 %v4991_v9 }
0x13b2   : > { %11239 = vmatmul.mubr.msk.f32.gmra.mxu1 %vm2199_vm0, %v4801_v31  ;;  %12455 = vmatpush3.msra.mxu0 %v4975_v49 }
0x13b3   : > { %13328 = vmatprep.mubr.msk.f32.mxu1 %vm14429_vm2, %v14428_v21  ;;  %12456 = vmatprep.subr.mxu0 %v4990_v46 }
0x13b4   : > { %12457 = vmatpush3.msra.mxu0 %v4974_v39 }
0x13b5   : > { %12458 = vmatprep.subr.mxu0 %v4989_v45 }
0x13b6   : > { %12459 = vmatpush3.msra.mxu0 %v4973_v58 }
0x13b7   : > { %12460 = vmatprep.subr.mxu0 %v4988_v47 }
0x13b8   : > { %12461 = vmatpush3.msra.mxu0 %v4972_v2 }
0x13b9   : > { %12462 = vmatprep.subr.mxu0 %v4987_v10 }
0x13ba   : > { %12463 = vmatpush3.msra.mxu0 %v4971_v11 }
0x13bb   : > { %12464 = vmatprep.subr.mxu0 %v4986_v59 }
0x13bc   : > { %12465 = vmatpush3.msra.mxu0 %v4970_v14  ;;  %v11246_v14 = vld [vmem:[%s18895_s20] ss:$0 sm:$0xff] }
0x13bd   : > { %13346 = vmatprep.subr.mxu0 %v14428_v21 }
0x146a   : > { %v4905_v57 = vpop.f32.mrf.mxu1 }
0x146b   : > { %v4906_v60 = vadd.f32 %v4905_v57, %v4823_v16 }
0x146c   : > { %v4907_v23 = vpop.f32.mrf.mxu1 }
0x146d   : > { %v11240_v15 = vmul.f32 -1.702, %v4906_v60  ;;  %v4908_v56 = vadd.f32 %v4907_v23, %v4827_v18 }
0x146e   : > { %v4911_v61 = vpop.f32.mrf.mxu1 }
0x146f   : > { %v4934_v17 = vmul.f32 1.442695, %v11240_v15  ;;  %v11241_v24 = vmul.f32 -1.702, %v4908_v56  ;;  %v4912_v28 = vadd.f32 %v4911_v61, %v4823_v16 }
0x1470   : > { %v4913_v34 = vpop.f32.mrf.mxu1 }
0x1471   : > { %14222 = vpow2.f32 %v4934_v17  ;;  %v4936_v1 = vmul.f32 1.442695, %v11241_v24  ;;  %v11242_v48 = vmul.f32 -1.702, %v4912_v28  ;;  %v4914_v19 = vadd.f32 %v4913_v34, %v4827_v18 }
0x1472   : > { %v4917_v33 = vpop.f32.mrf.mxu1 }
0x1473   : > { %14224 = vpow2.f32 %v4936_v1  ;;  %v4938_v25 = vmul.f32 1.442695, %v11242_v48  ;;  %v11243_v12 = vmul.f32 -1.702, %v4914_v19  ;;  %v4918_v26 = vadd.f32 %v4917_v33, %v4823_v16 }
0x1474   : > { %v4919_v20 = vpop.f32.mrf.mxu1 }
0x1475   : > { %14226 = vpow2.f32 %v4938_v25  ;;  %v4940_v30 = vmul.f32 1.442695, %v11243_v12  ;;  %v11244_v29 = vmul.f32 -1.702, %v4918_v26  ;;  %v4920_v31 = vadd.f32 %v4919_v20, %v4827_v18 }
0x1477   : > { %14228 = vpow2.f32 %v4940_v30  ;;  %v4942_v13 = vmul.f32 1.442695, %v11244_v29  ;;  %v11245_v38 = vmul.f32 -1.702, %v4920_v31 }
0x1479   : > { %14230 = vpow2.f32 %v4942_v13  ;;  %v4944_v40 = vmul.f32 1.442695, %v11245_v38  ;;  %v11266_v13 = vld [vmem:[%s18885_s10 + $0x40] sm:$0xff]  ;;  %v11280_v38 = vld [vmem:[%s18886_s11 + $0x138] sm:$0xff] }
0x147b   : > { %14232 = vpow2.f32 %v4944_v40  ;;  %v11258_v40 = vld [vmem:[%s18934_s27 + $0x138] sm:$0xff] }
0x147c   : > { %13313 = vmatpush3.msra.mxu1 %v11258_v40 }
0x147d   : > { %13314 = vmatprep.subr.mxu1 %v14428_v21 }
0x147e   : > { %v14223_v63 = vpop.eup %14222 }
0x147f   : > { %v4946_v51 = vadd.f32 1.0, %v14223_v63  ;;  %v11279_v63 = vld [vmem:[%s18886_s11 + $0x130] sm:$0xff] }
0x1480   : > { %v14225_v6 = vpop.eup %14224 }
0x1481   : > { %v4947_v37 = vadd.f32 1.0, %v14225_v6  ;;  %14234 = vrcp.f32 %v4946_v51  ;;  %v11257_v51 = vld [vmem:[%s18934_s27 + $0x130] sm:$0xff]  ;;  %v11278_v6 = vld [vmem:[%s18886_s11 + $0x128] sm:$0xff] }
0x1482   : > { %v14227_v55 = vpop.eup %14226  ;;  %13315 = vmatpush3.msra.mxu1 %v11257_v51 }
0x1483   : > { %14236 = vrcp.f32 %v4947_v37  ;;  %v4948_v36 = vadd.f32 1.0, %v14227_v55  ;;  %13316 = vmatprep.subr.mxu1 %v14428_v21  ;;  %v11256_v37 = vld [vmem:[%s18934_s27 + $0x128] sm:$0xff]  ;;  %v11277_v55 = vld [vmem:[%s18886_s11 + $0x120] sm:$0xff] }
0x1484   : > { %v14229_v44 = vpop.eup %14228  ;;  %13317 = vmatpush3.msra.mxu1 %v11256_v37 }
0x1485   : > { %v4949_v32 = vadd.f32 1.0, %v14229_v44  ;;  %14238 = vrcp.f32 %v4948_v36  ;;  %13318 = vmatprep.subr.mxu1 %v14428_v21  ;;  %v11255_v36 = vld [vmem:[%s18934_s27 + $0x120] sm:$0xff]  ;;  %v11276_v44 = vld [vmem:[%s18886_s11 + $0x118] sm:$0xff] }
0x1486   : > { %v14231_v50 = vpop.eup %14230  ;;  %13319 = vmatpush3.msra.mxu1 %v11255_v36 }
0x1487   : > { %14240 = vrcp.f32 %v4949_v32  ;;  %v4950_v42 = vadd.f32 1.0, %v14231_v50  ;;  %v11267_v32 = vld [vmem:[%s18885_s10 + $0x48] sm:$0xff]  ;;  %13320 = vmatprep.subr.mxu1 %v14428_v21  ;;  %v11254_v50 = vld [vmem:[%s18934_s27 + $0x118] sm:$0xff] }
0x1488   : > { %v14233_v43 = vpop.eup %14232  ;;  %13321 = vmatpush3.msra.mxu1 %v11254_v50 }
0x1489   : > { %v4951_v54 = vadd.f32 1.0, %v14233_v43  ;;  %14242 = vrcp.f32 %v4950_v42  ;;  %v11275_v42 = vld [vmem:[%s18886_s11 + $0x110] sm:$0xff]  ;;  %13322 = vmatprep.subr.mxu1 %v14428_v21 }
0x148a   : > { %v11253_v43 = vld [vmem:[%s18934_s27 + $0x110] sm:$0xff] }
0x148b   : > { %14244 = vrcp.f32 %v4951_v54  ;;  %v11274_v54 = vld [vmem:[%s18886_s11 + $0x108] sm:$0xff]  ;;  %13323 = vmatpush3.msra.mxu1 %v11253_v43 }
0x148c   : > { %13324 = vmatprep.subr.mxu1 %v14428_v21 }
0x148e   : > { %v14235_v62 = vpop.eup %14234 }
0x148f   : > { %v4964_v7 = vmul.f32 %v14235_v62, %v4906_v60  ;;  %v11252_v62 = vld [vmem:[%s18934_s27 + $0x108] sm:$0xff] }
0x1490   : > { %v14237_v4 = vpop.eup %14236  ;;  %13325 = vmatpush3.msra.mxu1 %v11252_v62 }
0x1491   : > { %v4965_v5 = vmul.f32 %v14237_v4, %v4908_v56  ;;  %v11273_v4 = vld [vmem:[%s18886_s11 + $0x100] sm:$0xff]  ;;  %13326 = vmatprep.subr.mxu1 %v14428_v21 }
0x1492   : > { %v14239_v8 = vpop.eup %14238 }
0x1493   : > { %5066 = vmatprep.mubr.f32.mxu0 %v4965_v5  ;;  %v4966_v46 = vmul.f32 %v14239_v8, %v4912_v28  ;;  %v11251_v5 = vld [vmem:[%s18934_s27 + $0x100] sm:$0xff] }
0x1494   : > { %v14241_v9 = vpop.eup %14240  ;;  %5067 = vmatmul.mubr.f32.vlgmr.msra.gmra.mxu0 %v4964_v7  ;;  %13327 = vmatpush3.msra.mxu1 %v11251_v5 }
0x1495   : > { %v4967_v49 = vmul.f32 %v14241_v9, %v4914_v19  ;;  %13347 = vmatpush3.msra.mxu0 %v11280_v38 }
0x1496   : > { %v14243_v39 = vpop.eup %14242  ;;  %13348 = vmatprep.subr.mxu0 %v14428_v21 }
0x1497   : > { %5071 = vmatprep.mubr.f32.mxu0 %v4967_v49  ;;  %v4968_v47 = vmul.f32 %v14243_v39, %v4918_v26  ;;  %13349 = vmatpush3.msra.mxu0 %v11279_v63 }
0x1498   : > { %v14245_v45 = vpop.eup %14244  ;;  %5072 = vmatmul.mubr.f32.gmra.mxu0 %v4966_v46  ;;  %13350 = vmatprep.subr.mxu0 %v14428_v21 }
0x1499   : > { %v4969_v58 = vmul.f32 %v14245_v45, %v4920_v31  ;;  %13351 = vmatpush3.msra.mxu0 %v11278_v6 }
0x149a   : > { %13352 = vmatprep.subr.mxu0 %v14428_v21 }
0x149b   : > { %5076 = vmatprep.mubr.f32.mxu0 %v4969_v58  ;;  %13353 = vmatpush3.msra.mxu0 %v11277_v55 }
0x149c   : > { %5077 = vmatmul.mubr.f32.gmra.mxu0 %v4968_v47  ;;  %13354 = vmatprep.subr.mxu0 %v14428_v21 }
0x149d   : > { %13362 = vmatprep.mubr.msk.f32.mxu0 %vm14429_vm2, %v14428_v21  ;;  %13355 = vmatpush3.msra.mxu0 %v11276_v44 }
0x149e   : > { %13356 = vmatprep.subr.mxu0 %v14428_v21 }
0x149f   : > { %13357 = vmatpush3.msra.mxu0 %v11275_v42 }
0x14a0   : > { %13358 = vmatprep.subr.mxu0 %v14428_v21 }
0x14a1   : > { %13359 = vmatpush3.msra.mxu0 %v11274_v54 }
0x14a2   : > { %13360 = vmatprep.subr.mxu0 %v14428_v21 }
0x14a3   : > { %13361 = vmatpush3.msra.mxu0 %v11273_v4 }
0x14a4   : > { %13399 = vmatprep.subr.mxu0 %v14428_v21 }
0x1554   : > { %v12466_v2 = vpop.f32.mrf.mxu0 }
0x1556   : > { %v12467_v10 = vpop.f32.mrf.mxu0 }
0x1557   : > { %v12468_v11 = vadd.f32 %v12467_v10, %v12466_v2  ;;  %v11249_v10 = vld [vmem:[%s18936_s0 + $0x1] ss:$0 sm:$0xff] }
0x1558   : > { %v12469_v59 = vpop.f32.mrf.mxu0 }
0x1559   : > { %v5082_v41 = vadd.f32 %v12468_v11, %v16619_v27 }
0x155a   : > { %v12470_v3 = vpop.f32.mrf.mxu0 }
0x155b   : > { %v12471_v52 = vadd.f32 %v12470_v3, %v12469_v59  ;;  %v16830_v16 = vadd.f32 %v11246_v14, %v5082_v41  ;;  %v11250_v59 = vld [vmem:[%s18937_s3 + $0x1] ss:$0 sm:$0xff] }
0x155c   : > { %v12472_v18 = vpop.f32.mrf.mxu0 }
0x155d   : > { %v5083_v57 = vadd.f32 %v12471_v52, %v16625_v35  ;;  %v5099_v60 = vsel %vm2199_vm0, %v16830_v16, 0.0 }
0x155e   : > { %v12473_v23 = vpop.f32.mrf.mxu0  ;;  %5100 = vadd.xlane.f32.xlu0 %v5099_v60  ;;  %v11301_v60 = vld [vmem:[%s18934_s27 + $0x170] sm:$0xff] }
0x155f   : > { %v12474_v15 = vadd.f32 %v12473_v23, %v12472_v18  ;;  %v16835_v56 = vadd.f32 %v11246_v14, %v5083_v57  ;;  %v11302_v18 = vld [vmem:[%s18934_s27 + $0x178] sm:$0xff] }
0x1561   : > { %v5084_v61 = vadd.f32 %v12474_v15, %v16631_v0  ;;  %v5102_v27 = vsel %vm2199_vm0, %v16835_v56, 0.0 }
0x1562   : > { %5103 = vadd.xlane.f32.xlu0 %v5102_v27  ;;  %v11300_v27 = vld [vmem:[%s18934_s27 + $0x168] sm:$0xff] }
0x1563   : > { %v16840_v17 = vadd.f32 %v11246_v14, %v5084_v61 }
0x1565   : > { %v5105_v24 = vsel %vm2206_vm1, %v16840_v17, 0.0 }
0x1566   : > { %5106 = vadd.xlane.f32.xlu1 %v5105_v24 }
0x15e7   : > { %v5101_v35 = vpop.xlane.xlu0 %5100 }
0x15e8   : > { %v5108_v28 = vmul.f32 0.015625, %v5101_v35  ;;  %v11299_v35 = vld [vmem:[%s18934_s27 + $0x160] sm:$0xff] }
0x15ea   : > { %v16845_v34 = vsub.f32 %v16830_v16, %v5108_v28 }
0x15eb   : > { %v5104_v1 = vpop.xlane.xlu0 %5103 }
0x15ec   : > { %v5109_v48 = vmul.f32 0.015625, %v5104_v1  ;;  %v5114_v0 = vmul.f32 %v16845_v34, %v16845_v34  ;;  %v11297_v1 = vld [vmem:[%s18934_s27 + $0x150] sm:$0xff] }
0x15ee   : > { %v16850_v19 = vsub.f32 %v16835_v56, %v5109_v48  ;;  %v5117_v33 = vsel %vm2199_vm0, %v5114_v0, 0.0  ;;  %v11264_v48 = vld [vmem:[%s18935_s26 + $0x40] sm:$0xff]  ;;  %v11296_v0 = vld [vmem:[%s18934_s27 + $0x148] sm:$0xff] }
0x15ef   : > { %v5107_v25 = vpop.xlane.xlu1 %5106  ;;  %5118 = vadd.xlane.f32.xlu1 %v5117_v33  ;;  %v11324_v33 = vld [vmem:[%s18886_s11 + $0x178] sm:$0xff] }
0x15f0   : > { %v5110_v12 = vmul.f32 0.015625, %v5107_v25  ;;  %v5115_v26 = vmul.f32 %v16850_v19, %v16850_v19  ;;  %v11323_v25 = vld [vmem:[%s18886_s11 + $0x170] sm:$0xff] }
0x15f2   : > { %v16856_v20 = vsub.f32 %v16840_v17, %v5110_v12  ;;  %v5120_v30 = vsel %vm2199_vm0, %v5115_v26, 0.0  ;;  %v11265_v12 = vld [vmem:[%s18935_s26 + $0x48] sm:$0xff] }
0x15f3   : > { %5121 = vadd.xlane.f32.xlu1 %v5120_v30  ;;  %v11322_v26 = vld [vmem:[%s18886_s11 + $0x168] sm:$0xff]  ;;  %v11320_v30 = vld [vmem:[%s18886_s11 + $0x158] sm:$0xff] }
0x15f4   : > { %v5116_v29 = vmul.f32 %v16856_v20, %v16856_v20 }
0x15f6   : > { %v5123_v31 = vsel %vm2206_vm1, %v5116_v29, 0.0  ;;  %v11319_v29 = vld [vmem:[%s18886_s11 + $0x150] sm:$0xff] }
0x15f7   : > { %5124 = vadd.xlane.f32.xlu0 %v5123_v31  ;;  %v11318_v31 = vld [vmem:[%s18886_s11 + $0x148] sm:$0xff] }
0x1604   : > { %5270 = vperm.xlu1 %14155, %v11266_v13   ;;  %v11317_v13 = vld [vmem:[%s18886_s11 + $0x140] sm:$0xff] }
0x160d   : > { %5275 = vperm.xlu0 %14154, %v11267_v32  }
0x1678   : > { %v5119_v7 = vpop.xlane.xlu1 %5118 }
0x1679   : > { %v5126_v8 = vmul.f32 0.015625, %v5119_v7  ;;  %v11260_v7 = vld [vmem:[%s18938_s28 + $0x4] ss:$0 sm:$0xff] }
0x167b   : > { %v5129_v9 = vadd.f32 1e-05, %v5126_v8 }
0x167c   : > { %v5122_v49 = vpop.xlane.xlu1 %5121 }
0x167d   : > { %14246 = vrsqrt.f32 %v5129_v9  ;;  %v5127_v46 = vmul.f32 0.015625, %v5122_v49 }
0x167f   : > { %v5130_v39 = vadd.f32 1e-05, %v5127_v46 }
0x1680   : > { %v5125_v45 = vpop.xlane.xlu0 %5124  ;;  %v5271_v49 = vpop.permute.xlu1 %5270 }
0x1681   : > { %14248 = vrsqrt.f32 %v5130_v39  ;;  %v5128_v58 = vmul.f32 0.015625, %v5125_v45 }
0x1683   : > { %v5131_v47 = vadd.f32 1e-05, %v5128_v58 }
0x1685   : > { %14250 = vrsqrt.f32 %v5131_v47  ;;  %v11282_v47 = vld [vmem:[%s18887_s12 + $0x4] ss:$0 sm:$0xff] }
0x1688   : > { %v5276_v4 = vpop.permute.xlu0 %5275 }
0x168a   : > { %v14247_v2 = vpop.eup %14246 }
0x168b   : > { %v5135_v11 = vmul.f32 %v14247_v2, %v16845_v34  ;;  %v11298_v34 = vld [vmem:[%s18934_s27 + $0x158] sm:$0xff] }
0x168d   : > { %v5144_v14 = vmul.f32 %v11249_v10, %v5135_v11 }
0x168e   : > { %v14249_v41 = vpop.eup %14248 }
0x168f   : > { %v16938_v3 = vadd.f32 %v11250_v59, %v5144_v14  ;;  %v5136_v52 = vmul.f32 %v14249_v41, %v16850_v19  ;;  %v11295_v19 = vld [vmem:[%s18934_s27 + $0x140] sm:$0xff] }
0x1691   : > { %v5145_v57 = vmul.f32 %v11249_v10, %v5136_v52  ;;  %13329 = vmatmul.mubr.msk.f32.vlgmr.msra.gmra.mxu1 %vm2199_vm0, %v16938_v3  ;;  %13363 = vmatmul.mubr.msk.f32.vlgmr.msra.gmra.mxu0 %vm2199_vm0, %v16938_v3 }
0x1692   : > { %v14251_v23 = vpop.eup %14250  ;;  %13400 = vmatpush3.msra.mxu0 %v11302_v18  ;;  %13331 = vmatprep.mubr.msk.f32.mxu1 %vm14429_vm2, %v14428_v21 }
0x1693   : > { %v16953_v15 = vadd.f32 %v11250_v59, %v5145_v57  ;;  %v5137_v61 = vmul.f32 %v14251_v23, %v16856_v20  ;;  %13401 = vmatprep.subr.mxu0 %v14428_v21  ;;  %13365 = vmatprep.mubr.msk.f32.mxu0 %vm14429_vm2, %v14428_v21  ;;  %v11321_v20 = vld [vmem:[%s18886_s11 + $0x160] sm:$0xff] }
0x1694   : > { %13402 = vmatpush3.msra.mxu0 %v11301_v60 }
0x1695   : > { %v5146_v24 = vmul.f32 %v11249_v10, %v5137_v61  ;;  %13403 = vmatprep.subr.mxu0 %v14428_v21  ;;  %13332 = vmatmul.mubr.msk.f32.gmra.mxu1 %vm2199_vm0, %v16953_v15 }
0x1696   : > { %13366 = vmatmul.mubr.msk.f32.gmra.mxu0 %vm2199_vm0, %v16953_v15  ;;  %13334 = vmatprep.mubr.msk.f32.mxu1 %vm14429_vm2, %v14428_v21 }
0x1697   : > { %v16972_v28 = vadd.f32 %v11250_v59, %v5146_v24  ;;  %13404 = vmatpush3.msra.mxu0 %v11300_v27  ;;  %13368 = vmatprep.mubr.msk.f32.mxu0 %vm14429_vm2, %v14428_v21 }
0x1698   : > { %13405 = vmatprep.subr.mxu0 %v14428_v21 }
0x1699   : > { %13406 = vmatpush3.msra.mxu0 %v11299_v35  ;;  %13335 = vmatmul.mubr.msk.f32.gmra.mxu1 %vm2199_vm0, %v16972_v28 }
0x169a   : > { %13407 = vmatprep.subr.mxu0 %v14428_v21  ;;  %13337 = vmatprep.subr.msk.mxu1 %vm2199_vm0, %v16972_v28 }
0x169b   : > { %13369 = vmatmul.mubr.msk.f32.gmra.mxu0 %vm2199_vm0, %v16972_v28  ;;  %13338 = vmatpush3.xpose.msk.msra.mxu1 %vm2199_vm0, %v16972_v28 }
0x169c   : > { %13408 = vmatpush3.msra.mxu0 %v11298_v34  ;;  %13339 = vmatprep.subr.msk.mxu1 %vm2199_vm0, %v16953_v15 }
0x169d   : > { %13409 = vmatprep.subr.mxu0 %v14428_v21  ;;  %13415 = vmatprep.mubr.msk.f32.mxu0 %vm14429_vm2, %v14428_v21 }
0x169e   : > { %13410 = vmatpush3.msra.mxu0 %v11297_v1  ;;  %13343 = vmatprep.mubr.msk.f32.mxu1 %vm2199_vm0, %v11264_v48 }
0x169f   : > { %13411 = vmatprep.subr.mxu0 %v14428_v21  ;;  %13340 = vmatpush3.xpose.msk.msra.mxu1 %vm2199_vm0, %v16953_v15 }
0x16a0   : > { %13412 = vmatpush3.msra.mxu0 %v11296_v0  ;;  %13341 = vmatprep.subr.msk.mxu1 %vm2199_vm0, %v16938_v3 }
0x16a1   : > { %13413 = vmatprep.subr.mxu0 %v14428_v21 }
0x16a2   : > { %13414 = vmatpush3.msra.mxu0 %v11295_v19 }
0x16a3   : > { %13416 = vmatmul.mubr.msk.f32.vlgmr.msra.gmra.mxu0 %vm2199_vm0, %v16938_v3  ;;  %13433 = vmatprep.subr.mxu0 %v14428_v21 }
0x16a4   : > { %13434 = vmatpush3.msra.mxu0 %v11324_v33  ;;  %13342 = vmatpush3.xpose.msk.msra.mxu1 %vm2199_vm0, %v16938_v3 }
0x16a5   : > { %13435 = vmatprep.subr.mxu0 %v14428_v21  ;;  %13418 = vmatprep.mubr.msk.f32.mxu0 %vm14429_vm2, %v14428_v21 }
0x16a6   : > { %13436 = vmatpush3.msra.mxu0 %v11323_v25  ;;  %13371 = vmatprep.subr.mxu1 %v14428_v21 }
0x16a7   : > { %13419 = vmatmul.mubr.msk.f32.gmra.mxu0 %vm2199_vm0, %v16953_v15  ;;  %13437 = vmatprep.subr.mxu0 %v14428_v21 }
0x16a8   : > { %13344 = vmatmul.mubr.msk.f32.vlgmr.msra.gmra.mxu1 %vm2199_vm0, %v11265_v12  ;;  %13438 = vmatpush3.msra.mxu0 %v11322_v26 }
0x16a9   : > { %13439 = vmatprep.subr.mxu0 %v14428_v21  ;;  %13421 = vmatprep.mubr.msk.f32.mxu0 %vm14429_vm2, %v14428_v21 }
0x16aa   : > { %13440 = vmatpush3.msra.mxu0 %v11321_v20  ;;  %13375 = vmatprep.mubr.msk.f32.mxu1 %vm14429_vm2, %v14428_v21 }
0x16ab   : > { %13422 = vmatmul.mubr.msk.f32.gmra.mxu0 %vm2199_vm0, %v16972_v28  ;;  %13441 = vmatprep.subr.mxu0 %v14428_v21 }
0x16ac   : > { %13442 = vmatpush3.msra.mxu0 %v11320_v30  ;;  %13449 = vmatprep.mubr.msk.f32.mxu0 %vm14429_vm2, %v14428_v21 }
0x16ad   : > { %13443 = vmatprep.subr.mxu0 %v14428_v21 }
0x16ae   : > { %13444 = vmatpush3.msra.mxu0 %v11319_v29 }
0x16af   : > { %13445 = vmatprep.subr.mxu0 %v14428_v21 }
0x16b0   : > { %13446 = vmatpush3.msra.mxu0 %v11318_v31 }
0x16b1   : > { %13447 = vmatprep.subr.mxu0 %v14428_v21 }
0x16b2   : > { %13448 = vmatpush3.msra.mxu0 %v11317_v13 }
0x16b3   : > { %13450 = vmatmul.mubr.msk.f32.vlgmr.msra.gmra.mxu0 %vm2199_vm0, %v16938_v3  ;;  %13486 = vmatprep.subr.mxu0 %v14428_v21 }
0x16b4   : > { %13452 = vmatprep.mubr.msk.f32.mxu0 %vm14429_vm2, %v14428_v21 }
0x16b7   : > { %13453 = vmatmul.mubr.msk.f32.gmra.mxu0 %vm2199_vm0, %v16953_v15 }
0x16b8   : > { %13455 = vmatprep.mubr.msk.f32.mxu0 %vm14429_vm2, %v14428_v21 }
0x16bb   : > { %13456 = vmatmul.mubr.msk.f32.gmra.mxu0 %vm2199_vm0, %v16972_v28 }
0x16bc   : > { %13490 = vmatprep.mubr.msk.f32.mxu0 %vm14429_vm2, %v14428_v21 }
0x1751   : > { %v5248_v38 = vpop.f32.mrf.mxu1  ;;  %v5442_v40 = vpop.f32.mrf.mxu0 }
0x1752   : > { %v5249_v58 = vadd.f32 %v11260_v7, %v5248_v38  ;;  %v5443_v14 = vadd.f32 %v11282_v47, %v5442_v40 }
0x1753   : > { %v13330_v63 = vpop.f32.mrf.mxu1  ;;  %v13364_v51 = vpop.f32.mrf.mxu0 }
0x1755   : > { %v5253_v6 = vpop.f32.mrf.mxu1 }
0x1756   : > { %v5447_v37 = vpop.f32.mrf.mxu0  ;;  %v5254_v59 = vadd.f32 %v11260_v7, %v5253_v6 }
0x1757   : > { %v13333_v55 = vpop.f32.mrf.mxu1  ;;  %v5448_v11 = vadd.f32 %v11282_v47, %v5447_v37 }
0x1758   : > { %v13367_v36 = vpop.f32.mrf.mxu0 }
0x1759   : > { %v5258_v44 = vpop.f32.mrf.mxu1 }
0x175a   : > { %v5259_v52 = vadd.f32 %v11260_v7, %v5258_v44 }
0x175b   : > { %v5452_v32 = vpop.f32.mrf.mxu0  ;;  %v13336_v50 = vpop.f32.mrf.mxu1 }
0x175c   : > { %v5453_v2 = vadd.f32 %v11282_v47, %v5452_v32  ;;  %v11310_v50 = vld [vmem:[%s18885_s10 + $0x50] sm:$0xff]  ;;  %v11309_v47 = vld [vmem:[%s18935_s26 + $0x58] sm:$0xff] }
0x175d   : > { %v13370_v42 = vpop.f32.mrf.mxu0 }
0x175e   : > { %v11311_v42 = vld [vmem:[%s18885_s10 + $0x58] sm:$0xff] }
0x1763   : > { %v17079_v43 = vpop.f32.mrf.mxu0 }
0x1765   : > { %v13417_v54 = vpop.f32.mrf.mxu0 }
0x1767   : > { %v17081_v62 = vpop.f32.mrf.mxu0 }
0x1768   : > { %v13345_v5 = vpop.f32.mrf.mxu1 }
0x1769   : > { %v5356_v8 = vadd.f32 %v13345_v5, %v5276_v4  ;;  %v13420_v9 = vpop.f32.mrf.mxu0 }
0x176a   : > { %v5350_v46 = vpop.f32.mrf.mxu1 }
0x176b   : > { %v5351_v39 = vadd.f32 %v5350_v46, %v5271_v49  ;;  %13372 = vmatpush3.msra.mxu1 %v5356_v8  ;;  %v17086_v45 = vpop.f32.mrf.mxu0 }
0x176c   : > { %13373 = vmatprep.subr.mxu1 %v14428_v21 }
0x176d   : > { %13374 = vmatpush3.msra.mxu1 %v5351_v39  ;;  %v13423_v10 = vpop.f32.mrf.mxu0 }
0x176e   : > { %13376 = vmatmul.mubr.msk.f32.vlgmr.msra.gmra.mxu1 %vm2612_vm3, %v5249_v58  ;;  %13384 = vmatprep.subr.mxu1 %v14428_v21  ;;  %v11308_v58 = vld [vmem:[%s18935_s26 + $0x50] sm:$0xff] }
0x176f   : > { %13385 = vmatpush3.msk.msra.mxu1 %vm2749_vm4, %v5453_v2  ;;  %13378 = vmatprep.mubr.msk.f32.mxu1 %vm14429_vm2, %v14428_v21 }
0x1770   : > { %13386 = vmatprep.subr.mxu1 %v14428_v21 }
0x1771   : > { %13387 = vmatpush3.msra.mxu1 %v5448_v11 }
0x1772   : > { %13379 = vmatmul.mubr.msk.f32.gmra.mxu1 %vm2612_vm3, %v5254_v59  ;;  %13388 = vmatprep.subr.mxu1 %v14428_v21 }
0x1773   : > { %13389 = vmatpush3.msra.mxu1 %v5443_v14  ;;  %v17100_v41 = vpop.f32.mrf.mxu0  ;;  %13381 = vmatprep.mubr.msk.f32.mxu1 %vm14429_vm2, %v14428_v21 }
0x1774   : > { %13424 = vmatprep.subr.msk.mxu1 %vm2199_vm0, %v16972_v28 }
0x1775   : > { %v13451_v18 = vpop.f32.mrf.mxu0 }
0x1776   : > { %13382 = vmatmul.mubr.msk.f32.gmra.mxu1 %vm2612_vm3, %v5259_v52 }
0x1777   : > { %v17107_v57 = vpop.f32.mrf.mxu0  ;;  %13390 = vmatprep.mubr.msk.f32.mxu1 %vm14429_vm2, %v14428_v21 }
0x1779   : > { %v13454_v60 = vpop.f32.mrf.mxu0 }
0x177b   : > { %v17111_v23 = vpop.f32.mrf.mxu0 }
0x177d   : > { %v13457_v61 = vpop.f32.mrf.mxu0 }
0x177e   : > { %v11304_v61 = vld [vmem:[%s18938_s28 + $0x5] ss:$0 sm:$0xff] }
0x182e   : > { %v5531_v27 = vpop.f32.mrf.mxu1 }
0x182f   : > { %v5545_v24 = vmul.f32 0.25, %v5531_v27 }
0x1830   : > { %v13377_v35 = vpop.f32.mrf.mxu1 }
0x1831   : > { %v5548_v34 = vsel %vm2705_vm5, %v5545_v24, -inf }
0x1832   : > { %5549 = vmax.xlane.f32.xlu1 %v5548_v34  ;;  %v5536_v1 = vpop.f32.mrf.mxu1 }
0x1833   : > { %v5546_v48 = vmul.f32 0.25, %v5536_v1  ;;  %v5763_v1 = vadd.f32 %v11304_v61, %v17079_v43  ;;  %v5768_v43 = vadd.f32 %v11304_v61, %v17081_v62 }
0x1834   : > { %v13380_v0 = vpop.f32.mrf.mxu1 }
0x1835   : > { %v5551_v19 = vsel %vm2705_vm5, %v5546_v48, -inf }
0x1836   : > { %5552 = vmax.xlane.f32.xlu0 %v5551_v19  ;;  %v5541_v33 = vpop.f32.mrf.mxu1 }
0x1837   : > { %v5547_v25 = vmul.f32 0.25, %v5541_v33 }
0x1838   : > { %v13383_v12 = vpop.f32.mrf.mxu1 }
0x1839   : > { %v5554_v26 = vsel %vm2712_vm6, %v5547_v25, -inf }
0x183a   : > { %5555 = vmax.xlane.f32.xlu0 %v5554_v26 }
0x18bb   : > { %v5550_v20 = vpop.xlane.xlu1 %5549 }
0x18bc   : > { %v5557_v30 = vsub.f32 %v5545_v24, %v5550_v20 }
0x18be   : > { %v5560_v29 = vmul.f32 1.442695, %v5557_v30 }
0x18bf   : > { %v5553_v31 = vpop.xlane.xlu0 %5552 }
0x18c0   : > { %14252 = vpow2.f32 %v5560_v29  ;;  %v5558_v13 = vsub.f32 %v5546_v48, %v5553_v31  ;;  %v11326_v48 = vld [vmem:[%s18887_s12 + $0x5] ss:$0 sm:$0xff] }
0x18c1   : > { %v5967_v0 = vadd.f32 %v11326_v48, %v17111_v23  ;;  %v5962_v19 = vadd.f32 %v11326_v48, %v17107_v57  ;;  %v5957_v33 = vadd.f32 %v11326_v48, %v17100_v41  ;;  %v5773_v57 = vadd.f32 %v11304_v61, %v17086_v45  ;;  %v11293_v61 = vld [vmem:[%s18888_s13 + $0x40] sm:$0xff]  ;;  %v11372_v48 = vld [vmem:[%s18886_s11 + $0x1a8] sm:$0xff] }
0x18c2   : > { %v5562_v38 = vmul.f32 1.442695, %v5558_v13 }
0x18c3   : > { %v5556_v40 = vpop.xlane.xlu0 %5555 }
0x18c4   : > { %14254 = vpow2.f32 %v5562_v38  ;;  %v5559_v63 = vsub.f32 %v5547_v25, %v5556_v40 }
0x18c6   : > { %v5564_v51 = vmul.f32 1.442695, %v5559_v63 }
0x18c8   : > { %14256 = vpow2.f32 %v5564_v51 }
0x18cd   : > { %v14253_v6 = vpop.eup %14252 }
0x18ce   : > { %v5566_v37 = vsel %vm2705_vm5, %v14253_v6, 0.0 }
0x18cf   : > { %5567 = vadd.xlane.f32.xlu1 %v5566_v37 }
0x18d1   : > { %v14255_v55 = vpop.eup %14254 }
0x18d2   : > { %v5569_v36 = vsel %vm2705_vm5, %v14255_v55, 0.0 }
0x18d3   : > { %5570 = vadd.xlane.f32.xlu0 %v5569_v36 }
0x18d5   : > { %v14257_v44 = vpop.eup %14256 }
0x18d6   : > { %v5572_v32 = vsel %vm2712_vm6, %v14257_v44, 0.0 }
0x18d7   : > { %5573 = vadd.xlane.f32.xlu1 %v5572_v32 }
0x18e8   : > { %5784 = vperm.xlu1 %14155, %v11310_v50  }
0x18e9   : > { %5789 = vperm.xlu0 %14154, %v11311_v42  }
0x1958   : > { %v5568_v54 = vpop.xlane.xlu1 %5567 }
0x1959   : > { %14258 = vrcp.f32 %v5568_v54 }
0x195c   : > { %v5571_v4 = vpop.xlane.xlu0 %5570 }
0x195d   : > { %14260 = vrcp.f32 %v5571_v4 }
0x1960   : > { %v5574_v5 = vpop.xlane.xlu1 %5573 }
0x1961   : > { %14262 = vrcp.f32 %v5574_v5 }
0x1964   : > { %v5790_v18 = vpop.permute.xlu0 %5789  ;;  %v5785_v24 = vpop.permute.xlu1 %5784 }
0x1966   : > { %v14259_v7 = vpop.eup %14258 }
0x1967   : > { %v17125_v8 = vmul.f32 %v14259_v7, %v14253_v6  ;;  %v11360_v7 = vld [vmem:[%s18885_s10 + $0x60] sm:$0xff] }
0x1969   : > { %13391 = vmatmul.mubr.msk.f32.vlgmr.msra.gmra.mxu1 %vm2705_vm5, %v17125_v8 }
0x196a   : > { %v14261_v9 = vpop.eup %14260  ;;  %13425 = vmatpush3.xpose.msk.msra.mxu1 %vm2199_vm0, %v16972_v28  ;;  %13393 = vmatprep.mubr.msk.f32.mxu1 %vm14429_vm2, %v14428_v21 }
0x196b   : > { %13426 = vmatprep.subr.msk.mxu1 %vm2199_vm0, %v16953_v15  ;;  %v17135_v49 = vmul.f32 %v14261_v9, %v14255_v55  ;;  %v11361_v9 = vld [vmem:[%s18885_s10 + $0x68] sm:$0xff] }
0x196d   : > { %13394 = vmatmul.mubr.msk.f32.gmra.mxu1 %vm2705_vm5, %v17135_v49 }
0x196e   : > { %v14263_v46 = vpop.eup %14262  ;;  %13427 = vmatpush3.xpose.msk.msra.mxu1 %vm2199_vm0, %v16953_v15  ;;  %13396 = vmatprep.mubr.msk.f32.mxu1 %vm14429_vm2, %v14428_v21 }
0x196f   : > { %13428 = vmatprep.subr.msk.mxu1 %vm2199_vm0, %v16938_v3  ;;  %v17145_v39 = vmul.f32 %v14263_v46, %v14257_v44  ;;  %v11338_v46 = vld [vmem:[%s18888_s13 + $0x58] sm:$0xff] }
0x1970   : > { %13487 = vmatpush3.msra.mxu0 %v11338_v46 }
0x1971   : > { %13397 = vmatmul.mubr.msk.f32.gmra.mxu1 %vm2705_vm5, %v17145_v39  ;;  %13488 = vmatprep.subr.mxu0 %v14428_v21 }
0x1972   : > { %13429 = vmatpush3.xpose.msk.msra.mxu1 %vm2199_vm0, %v16938_v3  ;;  %13430 = vmatprep.mubr.msk.f32.mxu1 %vm2199_vm0, %v11308_v58  ;;  %v11337_v58 = vld [vmem:[%s18888_s13 + $0x50] sm:$0xff] }
0x1973   : > { %13458 = vmatprep.subr.mxu1 %v14428_v21  ;;  %13489 = vmatpush3.msra.mxu0 %v11337_v58 }
0x1974   : > { %13512 = vmatprep.subr.mxu0 %v14428_v21 }
0x1975   : > { %13431 = vmatmul.mubr.msk.f32.vlgmr.msra.gmra.mxu1 %vm2199_vm0, %v11309_v47 }
0x1976   : > { %13462 = vmatprep.mubr.msk.f32.mxu1 %vm14429_vm2, %v14428_v21 }
0x1a29   : > { %v17162_v2 = vpop.f32.mrf.mxu1 }
0x1a2b   : > { %v13392_v10 = vpop.f32.mrf.mxu1 }
0x1a2d   : > { %v17164_v11 = vpop.f32.mrf.mxu1 }
0x1a2f   : > { %v13395_v59 = vpop.f32.mrf.mxu1 }
0x1a31   : > { %v17166_v14 = vpop.f32.mrf.mxu1 }
0x1a33   : > { %v13398_v52 = vpop.f32.mrf.mxu1 }
0x1a35   : > { %v13432_v60 = vpop.f32.mrf.mxu1 }
0x1a36   : > { %v5870_v27 = vadd.f32 %v13432_v60, %v5790_v18  ;;  %v11294_v60 = vld [vmem:[%s18888_s13 + $0x48] sm:$0xff] }
0x1a37   : > { %v5864_v35 = vpop.f32.mrf.mxu1 }
0x1a38   : > { %v5865_v34 = vadd.f32 %v5864_v35, %v5785_v24  ;;  %13459 = vmatpush3.msra.mxu1 %v5870_v27 }
0x1a39   : > { %13460 = vmatprep.subr.mxu1 %v14428_v21 }
0x1a3a   : > { %13461 = vmatpush3.msra.mxu1 %v5865_v34 }
0x1a3b   : > { %13463 = vmatmul.mubr.msk.f32.vlgmr.msra.gmra.mxu1 %vm2612_vm3, %v5763_v1  ;;  %13471 = vmatprep.subr.mxu1 %v14428_v21  ;;  %v11374_v1 = vld [vmem:[%s18886_s11 + $0x1b8] sm:$0xff] }
0x1a3c   : > { %13472 = vmatpush3.msk.msra.mxu1 %vm2749_vm4, %v5967_v0  ;;  %13465 = vmatprep.mubr.msk.f32.mxu1 %vm14429_vm2, %v14428_v21  ;;  %v11371_v0 = vld [vmem:[%s18886_s11 + $0x1a0] sm:$0xff] }
0x1a3d   : > { %13473 = vmatprep.subr.mxu1 %v14428_v21 }
0x1a3e   : > { %13474 = vmatpush3.msra.mxu1 %v5962_v19  ;;  %v11370_v19 = vld [vmem:[%s18886_s11 + $0x198] sm:$0xff] }
0x1a3f   : > { %13466 = vmatmul.mubr.msk.f32.gmra.mxu1 %vm2612_vm3, %v5768_v43  ;;  %13475 = vmatprep.subr.mxu1 %v14428_v21  ;;  %v11369_v43 = vld [vmem:[%s18886_s11 + $0x190] sm:$0xff] }
0x1a40   : > { %13476 = vmatpush3.msra.mxu1 %v5957_v33  ;;  %13468 = vmatprep.mubr.msk.f32.mxu1 %vm14429_vm2, %v14428_v21  ;;  %v11368_v33 = vld [vmem:[%s18886_s11 + $0x188] sm:$0xff] }
0x1a41   : > { %13499 = vmatprep.subr.mxu1 %v14428_v21 }
0x1a43   : > { %13469 = vmatmul.mubr.msk.f32.gmra.mxu1 %vm2612_vm3, %v5773_v57  ;;  %v11367_v57 = vld [vmem:[%s18886_s11 + $0x180] sm:$0xff] }
0x1a44   : > { %13477 = vmatprep.mubr.msk.f32.mxu1 %vm14429_vm2, %v14428_v21 }
0x1afb   : > { %v6045_v62 = vpop.f32.mrf.mxu1 }
0x1afc   : > { %v6059_v41 = vmul.f32 0.25, %v6045_v62  ;;  %v11388_v62 = vld [vmem:[%s18888_s13 + $0x68] sm:$0xff] }
0x1afd   : > { %v13464_v23 = vpop.f32.mrf.mxu1 }
0x1afe   : > { %v6062_v25 = vsel %vm2705_vm5, %v6059_v41, -inf  ;;  %v11352_v23 = vld [vmem:[%s18934_s27 + $0x1b8] sm:$0xff] }
0x1aff   : > { %6063 = vmax.xlane.f32.xlu1 %v6062_v25  ;;  %v6050_v12 = vpop.f32.mrf.mxu1 }
0x1b00   : > { %v6060_v26 = vmul.f32 0.25, %v6050_v12  ;;  %v11351_v12 = vld [vmem:[%s18934_s27 + $0x1b0] sm:$0xff] }
0x1b01   : > { %v13467_v20 = vpop.f32.mrf.mxu1 }
0x1b02   : > { %v6065_v30 = vsel %vm2705_vm5, %v6060_v26, -inf  ;;  %v11350_v20 = vld [vmem:[%s18934_s27 + $0x1a8] sm:$0xff] }
0x1b03   : > { %6066 = vmax.xlane.f32.xlu0 %v6065_v30  ;;  %v6055_v45 = vpop.f32.mrf.mxu1 }
0x1b04   : > { %v6061_v29 = vmul.f32 0.25, %v6055_v45  ;;  %v11349_v45 = vld [vmem:[%s18934_s27 + $0x1a0] sm:$0xff] }
0x1b05   : > { %v13470_v31 = vpop.f32.mrf.mxu1 }
0x1b06   : > { %v6068_v13 = vsel %vm2712_vm6, %v6061_v29, -inf  ;;  %v11348_v31 = vld [vmem:[%s18934_s27 + $0x198] sm:$0xff] }
0x1b07   : > { %6069 = vmax.xlane.f32.xlu0 %v6068_v13 }
0x1b88   : > { %v6064_v38 = vpop.xlane.xlu1 %6063 }
0x1b89   : > { %v6071_v40 = vsub.f32 %v6059_v41, %v6064_v38  ;;  %v11387_v41 = vld [vmem:[%s18888_s13 + $0x60] sm:$0xff]  ;;  %v11347_v38 = vld [vmem:[%s18934_s27 + $0x190] sm:$0xff] }
0x1b8b   : > { %v6074_v63 = vmul.f32 1.442695, %v6071_v40 }
0x1b8c   : > { %v6067_v51 = vpop.xlane.xlu0 %6066 }
0x1b8d   : > { %14264 = vpow2.f32 %v6074_v63  ;;  %v6072_v6 = vsub.f32 %v6060_v26, %v6067_v51  ;;  %v11346_v63 = vld [vmem:[%s18934_s27 + $0x188] sm:$0xff] }
0x1b8f   : > { %v6076_v37 = vmul.f32 1.442695, %v6072_v6  ;;  %v11345_v6 = vld [vmem:[%s18934_s27 + $0x180] sm:$0xff] }
0x1b90   : > { %v6070_v55 = vpop.xlane.xlu0 %6069 }
0x1b91   : > { %14266 = vpow2.f32 %v6076_v37  ;;  %v6073_v36 = vsub.f32 %v6061_v29, %v6070_v55 }
0x1b93   : > { %v6078_v44 = vmul.f32 1.442695, %v6073_v36 }
0x1b95   : > { %14268 = vpow2.f32 %v6078_v44 }
0x1b9a   : > { %v14265_v32 = vpop.eup %14264 }
0x1b9b   : > { %v6080_v50 = vsel %vm2705_vm5, %v14265_v32, 0.0 }
0x1b9c   : > { %6081 = vadd.xlane.f32.xlu1 %v6080_v50 }
0x1b9e   : > { %v14267_v42 = vpop.eup %14266 }
0x1b9f   : > { %v6083_v54 = vsel %vm2705_vm5, %v14267_v42, 0.0 }
0x1ba0   : > { %6084 = vadd.xlane.f32.xlu0 %v6083_v54 }
0x1ba2   : > { %v14269_v4 = vpop.eup %14268 }
0x1ba3   : > { %v6086_v5 = vsel %vm2712_vm6, %v14269_v4, 0.0 }
0x1ba4   : > { %6087 = vadd.xlane.f32.xlu1 %v6086_v5 }
0x1bb5   : > { %6476 = vperm.xlu1 %14155, %v11360_v7  }
0x1bb6   : > { %6481 = vperm.xlu0 %14154, %v11361_v9  }
0x1c25   : > { %v6082_v47 = vpop.xlane.xlu1 %6081 }
0x1c26   : > { %14270 = vrcp.f32 %v6082_v47 }
0x1c29   : > { %v6085_v10 = vpop.xlane.xlu0 %6084 }
0x1c2a   : > { %14272 = vrcp.f32 %v6085_v10 }
0x1c2d   : > { %v6088_v59 = vpop.xlane.xlu1 %6087 }
0x1c2e   : > { %14274 = vrcp.f32 %v6088_v59 }
0x1c31   : > { %v6482_v50 = vpop.permute.xlu0 %6481 }
0x1c33   : > { %v14271_v52 = vpop.eup %14270 }
0x1c34   : > { %v17215_v18 = vmul.f32 %v14271_v52, %v14265_v32 }
0x1c36   : > { %13478 = vmatmul.mubr.msk.f32.vlgmr.msra.gmra.mxu1 %vm2705_vm5, %v17215_v18 }
0x1c37   : > { %v14273_v27 = vpop.eup %14272  ;;  %13500 = vmatpush3.msra.mxu1 %v11294_v60  ;;  %13480 = vmatprep.mubr.msk.f32.mxu1 %vm14429_vm2, %v14428_v21 }
0x1c38   : > { %13501 = vmatprep.subr.mxu1 %v14428_v21  ;;  %v17228_v24 = vmul.f32 %v14273_v27, %v14267_v42 }
0x1c39   : > { %13502 = vmatpush3.msra.mxu1 %v11293_v61 }
0x1c3a   : > { %13537 = vmatprep.subr.msk.mxu1 %vm2199_vm0, %v16972_v28  ;;  %13481 = vmatmul.mubr.msk.f32.gmra.mxu1 %vm2705_vm5, %v17228_v24 }
0x1c3b   : > { %v14275_v35 = vpop.eup %14274  ;;  %13483 = vmatprep.mubr.msk.f32.mxu1 %vm14429_vm2, %v14428_v21 }
0x1c3c   : > { %v17236_v34 = vmul.f32 %v14275_v35, %v14269_v4  ;;  %v6477_v4 = vpop.permute.xlu1 %6476 }
0x1c3e   : > { %13484 = vmatmul.mubr.msk.f32.gmra.mxu1 %vm2705_vm5, %v17236_v34 }
0x1c3f   : > { %13503 = vmatprep.mubr.msk.f32.mxu1 %vm14429_vm2, %v14428_v21 }
0x1c42   : > { %13504 = vmatmul.mubr.msk.f32.vlgmr.msra.gmra.mxu1 %vm2612_vm3, %v17162_v2  ;;  %v11358_v2 = vld [vmem:[%s18935_s26 + $0x60] sm:$0xff] }
0x1c43   : > { %13538 = vmatpush3.xpose.msk.msra.mxu1 %vm2199_vm0, %v16972_v28  ;;  %13506 = vmatprep.mubr.msk.f32.mxu1 %vm14429_vm2, %v14428_v21 }
0x1c44   : > { %13539 = vmatprep.subr.msk.mxu1 %vm2199_vm0, %v16953_v15 }
0x1c46   : > { %13507 = vmatmul.mubr.msk.f32.gmra.mxu1 %vm2612_vm3, %v17164_v11  ;;  %v11359_v11 = vld [vmem:[%s18935_s26 + $0x68] sm:$0xff] }
0x1c47   : > { %13540 = vmatpush3.xpose.msk.msra.mxu1 %vm2199_vm0, %v16953_v15  ;;  %13509 = vmatprep.mubr.msk.f32.mxu1 %vm14429_vm2, %v14428_v21 }
0x1c48   : > { %13541 = vmatprep.subr.msk.mxu1 %vm2199_vm0, %v16938_v3 }
0x1c4a   : > { %13510 = vmatmul.mubr.msk.f32.gmra.mxu1 %vm2612_vm3, %v17166_v14  ;;  %v11373_v14 = vld [vmem:[%s18886_s11 + $0x1b0] sm:$0xff] }
0x1c4b   : > { %13542 = vmatpush3.xpose.msk.msra.mxu1 %vm2199_vm0, %v16938_v3  ;;  %13543 = vmatprep.mubr.msk.f32.mxu1 %vm2199_vm0, %v11358_v2 }
0x1c4c   : > { %13546 = vmatprep.subr.mxu1 %v14428_v21 }
0x1c4e   : > { %13544 = vmatmul.mubr.msk.f32.vlgmr.msra.gmra.mxu1 %vm2199_vm0, %v11359_v11  ;;  %v11354_v11 = vld [vmem:[%s18938_s28 + $0x6] ss:$0 sm:$0xff] }
0x1c4f   : > { %13547 = vmatpush3.msra.mxu1 %v11374_v1  ;;  %13562 = vmatprep.mubr.msk.f32.mxu1 %vm14429_vm2, %v14428_v21 }
0x1c50   : > { %13548 = vmatprep.subr.mxu1 %v14428_v21 }
0x1c51   : > { %13549 = vmatpush3.msra.mxu1 %v11373_v14  ;;  %v11376_v14 = vld [vmem:[%s18887_s12 + $0x6] ss:$0 sm:$0xff] }
0x1c52   : > { %13550 = vmatprep.subr.mxu1 %v14428_v21 }
0x1c53   : > { %13551 = vmatpush3.msra.mxu1 %v11372_v48 }
0x1c54   : > { %13552 = vmatprep.subr.mxu1 %v14428_v21 }
0x1c55   : > { %13553 = vmatpush3.msra.mxu1 %v11371_v0 }
0x1c56   : > { %13554 = vmatprep.subr.mxu1 %v14428_v21 }
0x1c57   : > { %13555 = vmatpush3.msra.mxu1 %v11370_v19 }
0x1c58   : > { %13556 = vmatprep.subr.mxu1 %v14428_v21 }
0x1c59   : > { %13557 = vmatpush3.msra.mxu1 %v11369_v43 }
0x1c5a   : > { %13558 = vmatprep.subr.mxu1 %v14428_v21 }
0x1c5b   : > { %13559 = vmatpush3.msra.mxu1 %v11368_v33 }
0x1c5c   : > { %13560 = vmatprep.subr.mxu1 %v14428_v21 }
0x1c5d   : > { %13561 = vmatpush3.msra.mxu1 %v11367_v57 }
0x1c5e   : > { %13563 = vmatmul.mubr.msk.f32.vlgmr.msra.gmra.mxu1 %vm2199_vm0, %v16938_v3  ;;  %13599 = vmatprep.subr.mxu1 %v14428_v21 }
0x1c5f   : > { %13600 = vmatpush3.msra.mxu1 %v11388_v62  ;;  %13565 = vmatprep.mubr.msk.f32.mxu1 %vm14429_vm2, %v14428_v21 }
0x1c60   : > { %13601 = vmatprep.subr.mxu1 %v14428_v21 }
0x1c61   : > { %13602 = vmatpush3.msra.mxu1 %v11387_v41 }
0x1c62   : > { %13566 = vmatmul.mubr.msk.f32.gmra.mxu1 %vm2199_vm0, %v16953_v15  ;;  %13637 = vmatprep.subr.msk.mxu1 %vm2199_vm0, %v16972_v28 }
0x1c63   : > { %13568 = vmatprep.mubr.msk.f32.mxu1 %vm14429_vm2, %v14428_v21 }
0x1c66   : > { %13569 = vmatmul.mubr.msk.f32.gmra.mxu1 %vm2199_vm0, %v16972_v28 }
0x1c67   : > { %13603 = vmatprep.mubr.msk.f32.mxu1 %vm14429_vm2, %v14428_v21 }
0x1cf6   : > { %v6176_v25 = vpop.f32.mrf.mxu1 }
0x1cf7   : > { %13491 = vmatmul.mubr.msk.f32.vlgmr.msra.gmra.mxu0 %vm2612_vm3, %v6176_v25 }
0x1cf8   : > { %13513 = vmatpush3.msra.mxu0 %v11352_v23  ;;  %v13479_v26 = vpop.f32.mrf.mxu1  ;;  %13493 = vmatprep.mubr.msk.f32.mxu0 %vm14429_vm2, %v14428_v21 }
0x1cf9   : > { %13514 = vmatprep.subr.mxu0 %v14428_v21 }
0x1cfa   : > { %13515 = vmatpush3.msra.mxu0 %v11351_v12  ;;  %v6181_v30 = vpop.f32.mrf.mxu1 }
0x1cfb   : > { %13516 = vmatprep.subr.mxu0 %v14428_v21  ;;  %13494 = vmatmul.mubr.msk.f32.gmra.mxu0 %vm2612_vm3, %v6181_v30 }
0x1cfc   : > { %13517 = vmatpush3.msra.mxu0 %v11350_v20  ;;  %v13482_v29 = vpop.f32.mrf.mxu1  ;;  %13496 = vmatprep.mubr.msk.f32.mxu0 %vm14429_vm2, %v14428_v21 }
0x1cfd   : > { %13518 = vmatprep.subr.mxu0 %v14428_v21 }
0x1cfe   : > { %13519 = vmatpush3.msra.mxu0 %v11349_v45  ;;  %v6186_v13 = vpop.f32.mrf.mxu1 }
0x1cff   : > { %13520 = vmatprep.subr.mxu0 %v14428_v21  ;;  %13497 = vmatmul.mubr.msk.f32.gmra.mxu0 %vm2612_vm3, %v6186_v13 }
0x1d00   : > { %13521 = vmatpush3.msra.mxu0 %v11348_v31  ;;  %v13485_v40 = vpop.f32.mrf.mxu1  ;;  %13528 = vmatprep.mubr.msk.f32.mxu0 %vm14429_vm2, %v14428_v21 }
0x1d01   : > { %13522 = vmatprep.subr.mxu0 %v14428_v21 }
0x1d02   : > { %13523 = vmatpush3.msra.mxu0 %v11347_v38  ;;  %v17361_v51 = vpop.f32.mrf.mxu1 }
0x1d03   : > { %13524 = vmatprep.subr.mxu0 %v14428_v21 }
0x1d04   : > { %13525 = vmatpush3.msra.mxu0 %v11346_v63  ;;  %v13505_v37 = vpop.f32.mrf.mxu1 }
0x1d05   : > { %13526 = vmatprep.subr.mxu0 %v14428_v21 }
0x1d06   : > { %13527 = vmatpush3.msra.mxu0 %v11345_v6  ;;  %v17368_v55 = vpop.f32.mrf.mxu1 }
0x1d07   : > { %13529 = vmatmul.mubr.msk.f32.vlgmr.msra.gmra.mxu0 %vm2199_vm0, %v16938_v3  ;;  %13571 = vmatprep.subr.mxu0 %v14428_v21 }
0x1d08   : > { %v13508_v36 = vpop.f32.mrf.mxu1  ;;  %13531 = vmatprep.mubr.msk.f32.mxu0 %vm14429_vm2, %v14428_v21 }
0x1d0a   : > { %v17375_v44 = vpop.f32.mrf.mxu1 }
0x1d0b   : > { %13532 = vmatmul.mubr.msk.f32.gmra.mxu0 %vm2199_vm0, %v16953_v15 }
0x1d0c   : > { %v13511_v32 = vpop.f32.mrf.mxu1  ;;  %13534 = vmatprep.mubr.msk.f32.mxu0 %vm14429_vm2, %v14428_v21 }
0x1d0e   : > { %v13545_v42 = vpop.f32.mrf.mxu1 }
0x1d0f   : > { %13535 = vmatmul.mubr.msk.f32.gmra.mxu0 %vm2199_vm0, %v16972_v28  ;;  %v6562_v54 = vadd.f32 %v13545_v42, %v6482_v50 }
0x1d10   : > { %v6556_v5 = vpop.f32.mrf.mxu1  ;;  %13575 = vmatprep.mubr.msk.f32.mxu0 %vm14429_vm2, %v14428_v21 }
0x1d11   : > { %v6557_v7 = vadd.f32 %v6556_v5, %v6477_v4  ;;  %13572 = vmatpush3.msra.mxu0 %v6562_v54 }
0x1d12   : > { %13573 = vmatprep.subr.mxu0 %v14428_v21 }
0x1d13   : > { %13574 = vmatpush3.msra.mxu0 %v6557_v7 }
0x1d14   : > { %13584 = vmatprep.subr.mxu0 %v14428_v21 }
0x1d1e   : > { %v6648_v9 = vpop.f32.mrf.mxu1 }
0x1d1f   : > { %v6649_v62 = vadd.f32 %v11376_v14, %v6648_v9 }
0x1d20   : > { %v13564_v46 = vpop.f32.mrf.mxu1 }
0x1d22   : > { %v6653_v58 = vpop.f32.mrf.mxu1 }
0x1d23   : > { %v6654_v43 = vadd.f32 %v11376_v14, %v6653_v58 }
0x1d24   : > { %v13567_v47 = vpop.f32.mrf.mxu1 }
0x1d26   : > { %v6658_v10 = vpop.f32.mrf.mxu1 }
0x1d27   : > { %v6659_v0 = vadd.f32 %v11376_v14, %v6658_v10 }
0x1d28   : > { %v13570_v59 = vpop.f32.mrf.mxu1 }
0x1db7   : > { %v17387_v52 = vpop.f32.mrf.mxu0 }
0x1db9   : > { %v13492_v60 = vpop.f32.mrf.mxu0 }
0x1dbb   : > { %v17389_v61 = vpop.f32.mrf.mxu0 }
0x1dbd   : > { %v13495_v27 = vpop.f32.mrf.mxu0 }
0x1dbe   : > { %v11407_v27 = vld [vmem:[%s18885_s10 + $0x70] sm:$0xff] }
0x1dbf   : > { %v17391_v35 = vpop.f32.mrf.mxu0 }
0x1dc1   : > { %v13498_v2 = vpop.f32.mrf.mxu0 }
0x1dc2   : > { %v11408_v2 = vld [vmem:[%s18885_s10 + $0x78] sm:$0xff] }
0x1dc7   : > { %v6454_v1 = vpop.f32.mrf.mxu0 }
0x1dc8   : > { %v6455_v48 = vadd.f32 %v11354_v11, %v6454_v1 }
0x1dc9   : > { %v13530_v19 = vpop.f32.mrf.mxu0 }
0x1dca   : > { %13576 = vmatmul.mubr.msk.f32.vlgmr.msra.gmra.mxu0 %vm2612_vm3, %v6455_v48 }
0x1dcb   : > { %13585 = vmatpush3.msk.msra.mxu0 %vm2749_vm4, %v6659_v0  ;;  %v6459_v33 = vpop.f32.mrf.mxu0  ;;  %13578 = vmatprep.mubr.msk.f32.mxu0 %vm14429_vm2, %v14428_v21  ;;  %v6095_v0 = vadd.f32 %v17215_v18, %v17125_v8  ;;  %v6096_v8 = vadd.f32 %v17228_v24, %v17135_v49  ;;  %v6097_v49 = vadd.f32 %v17236_v34, %v17145_v39  ;;  %v11393_v39 = vld [vmem:[%s18934_s27 + $0x1c8] sm:$0xff]  ;;  %v11392_v34 = vld [vmem:[%s18934_s27 + $0x1c0] sm:$0xff] }
0x1dcc   : > { %v6460_v57 = vadd.f32 %v11354_v11, %v6459_v33  ;;  %13586 = vmatprep.subr.mxu0 %v14428_v21 }
0x1dcd   : > { %13587 = vmatpush3.msra.mxu0 %v6654_v43  ;;  %v13533_v41 = vpop.f32.mrf.mxu0  ;;  %v11399_v43 = vld [vmem:[%s18934_s27 + $0x1f8] sm:$0xff] }
0x1dce   : > { %13588 = vmatprep.subr.mxu0 %v14428_v21  ;;  %13579 = vmatmul.mubr.msk.f32.gmra.mxu0 %vm2612_vm3, %v6460_v57  ;;  %v11398_v57 = vld [vmem:[%s18934_s27 + $0x1f0] sm:$0xff]  ;;  %v11397_v41 = vld [vmem:[%s18934_s27 + $0x1e8] sm:$0xff] }
0x1dcf   : > { %13589 = vmatpush3.msra.mxu0 %v6649_v62  ;;  %v6464_v23 = vpop.f32.mrf.mxu0  ;;  %13581 = vmatprep.mubr.msk.f32.mxu0 %vm14429_vm2, %v14428_v21 }
0x1dd0   : > { %v6465_v25 = vadd.f32 %v11354_v11, %v6464_v23  ;;  %13612 = vmatprep.subr.mxu0 %v14428_v21 }
0x1dd1   : > { %v13536_v12 = vpop.f32.mrf.mxu0 }
0x1dd2   : > { %13582 = vmatmul.mubr.msk.f32.gmra.mxu0 %vm2612_vm3, %v6465_v25  ;;  %v11396_v25 = vld [vmem:[%s18934_s27 + $0x1e0] sm:$0xff] }
0x1dd3   : > { %13590 = vmatprep.mubr.msk.f32.mxu0 %vm14429_vm2, %v14428_v21 }
0x1e8a   : > { %v6737_v26 = vpop.f32.mrf.mxu0 }
0x1e8b   : > { %v6751_v20 = vmul.f32 0.25, %v6737_v26  ;;  %v11395_v26 = vld [vmem:[%s18934_s27 + $0x1d8] sm:$0xff] }
0x1e8c   : > { %v13577_v30 = vpop.f32.mrf.mxu0 }
0x1e8d   : > { %v6754_v45 = vsel %vm2705_vm5, %v6751_v20, -inf  ;;  %v11394_v30 = vld [vmem:[%s18934_s27 + $0x1d0] sm:$0xff] }
0x1e8e   : > { %6755 = vmax.xlane.f32.xlu1 %v6754_v45  ;;  %v6742_v29 = vpop.f32.mrf.mxu0 }
0x1e8f   : > { %v6752_v31 = vmul.f32 0.25, %v6742_v29 }
0x1e90   : > { %v13580_v13 = vpop.f32.mrf.mxu0 }
0x1e91   : > { %v6757_v38 = vsel %vm2705_vm5, %v6752_v31, -inf }
0x1e92   : > { %6758 = vmax.xlane.f32.xlu0 %v6757_v38  ;;  %v6747_v40 = vpop.f32.mrf.mxu0  ;;  %v11405_v38 = vld [vmem:[%s18935_s26 + $0x70] sm:$0xff] }
0x1e93   : > { %v6753_v63 = vmul.f32 0.25, %v6747_v40 }
0x1e94   : > { %v13583_v6 = vpop.f32.mrf.mxu0 }
0x1e95   : > { %v6760_v37 = vsel %vm2712_vm6, %v6753_v63, -inf  ;;  %v11406_v6 = vld [vmem:[%s18935_s26 + $0x78] sm:$0xff] }
0x1e96   : > { %6761 = vmax.xlane.f32.xlu0 %v6760_v37  ;;  %v11421_v37 = vld [vmem:[%s18886_s11 + $0x1f8] sm:$0xff] }
0x1f17   : > { %v6756_v36 = vpop.xlane.xlu1 %6755 }
0x1f18   : > { %v6763_v32 = vsub.f32 %v6751_v20, %v6756_v36  ;;  %v11420_v36 = vld [vmem:[%s18886_s11 + $0x1f0] sm:$0xff] }
0x1f1a   : > { %v6766_v50 = vmul.f32 1.442695, %v6763_v32  ;;  %v11419_v32 = vld [vmem:[%s18886_s11 + $0x1e8] sm:$0xff] }
0x1f1b   : > { %v6759_v42 = vpop.xlane.xlu0 %6758 }
0x1f1c   : > { %14276 = vpow2.f32 %v6766_v50  ;;  %v6764_v54 = vsub.f32 %v6752_v31, %v6759_v42  ;;  %v11418_v42 = vld [vmem:[%s18886_s11 + $0x1e0] sm:$0xff] }
0x1f1e   : > { %v6768_v4 = vmul.f32 1.442695, %v6764_v54 }
0x1f1f   : > { %v6762_v5 = vpop.xlane.xlu0 %6761 }
0x1f20   : > { %14278 = vpow2.f32 %v6768_v4  ;;  %v6765_v7 = vsub.f32 %v6753_v63, %v6762_v5  ;;  %v11417_v4 = vld [vmem:[%s18886_s11 + $0x1d8] sm:$0xff] }
0x1f22   : > { %v6770_v9 = vmul.f32 1.442695, %v6765_v7  ;;  %v11416_v7 = vld [vmem:[%s18886_s11 + $0x1d0] sm:$0xff] }
0x1f24   : > { %14280 = vpow2.f32 %v6770_v9 }
0x1f29   : > { %v14277_v46 = vpop.eup %14276 }
0x1f2a   : > { %v6772_v58 = vsel %vm2705_vm5, %v14277_v46, 0.0 }
0x1f2b   : > { %6773 = vadd.xlane.f32.xlu1 %v6772_v58 }
0x1f2d   : > { %v14279_v47 = vpop.eup %14278 }
0x1f2e   : > { %v6775_v10 = vsel %vm2705_vm5, %v14279_v47, 0.0 }
0x1f2f   : > { %6776 = vadd.xlane.f32.xlu0 %v6775_v10 }
0x1f31   : > { %v14281_v59 = vpop.eup %14280 }
0x1f32   : > { %v6778_v60 = vsel %vm2712_vm6, %v14281_v59, 0.0 }
0x1f33   : > { %6779 = vadd.xlane.f32.xlu1 %v6778_v60 }
0x1f44   : > { %7082 = vperm.xlu1 %14155, %v11407_v27  }
0x1f45   : > { %7087 = vperm.xlu0 %14154, %v11408_v2   ;;  %v6363_v2 = vadd.f32 %v17368_v55, %v17389_v61 }
0x1fb4   : > { %v6774_v11 = vpop.xlane.xlu1 %6773 }
0x1fb5   : > { %14282 = vrcp.f32 %v6774_v11 }
0x1fb8   : > { %v6777_v1 = vpop.xlane.xlu0 %6776 }
0x1fb9   : > { %14284 = vrcp.f32 %v6777_v1 }
0x1fbc   : > { %v6780_v14 = vpop.xlane.xlu1 %6779 }
0x1fbd   : > { %14286 = vrcp.f32 %v6780_v14 }
0x1fc2   : > { %v14283_v48 = vpop.eup %14282 }
0x1fc3   : > { %v6784_v19 = vmul.f32 %v14283_v48, %v14277_v46  ;;  %v11415_v46 = vld [vmem:[%s18886_s11 + $0x1c8] sm:$0xff] }
0x1fc5   : > { %v17429_v33 = vadd.f32 %v6784_v19, %v6095_v0  ;;  %13591 = vmatmul.mubr.msk.f32.vlgmr.msra.gmra.mxu0 %vm2705_vm5, %v6784_v19  ;;  %v7088_v19 = vpop.permute.xlu0 %7087 }
0x1fc6   : > { %v14285_v62 = vpop.eup %14284  ;;  %13613 = vmatpush3.msra.mxu0 %v11399_v43  ;;  %13593 = vmatprep.mubr.msk.f32.mxu0 %vm14429_vm2, %v14428_v21 }
0x1fc7   : > { %13614 = vmatprep.subr.mxu0 %v14428_v21  ;;  %v6785_v18 = vmul.f32 %v14285_v62, %v14279_v47  ;;  %v11414_v47 = vld [vmem:[%s18886_s11 + $0x1c0] sm:$0xff] }
0x1fc8   : > { %13615 = vmatpush3.msra.mxu0 %v11398_v57  ;;  %v7083_v57 = vpop.permute.xlu1 %7082 }
0x1fc9   : > { %13616 = vmatprep.subr.mxu0 %v14428_v21  ;;  %v17444_v23 = vadd.f32 %v6785_v18, %v6096_v8  ;;  %13594 = vmatmul.mubr.msk.f32.gmra.mxu0 %vm2705_vm5, %v6785_v18 }
0x1fca   : > { %v14287_v12 = vpop.eup %14286  ;;  %13617 = vmatpush3.msra.mxu0 %v11397_v41  ;;  %13596 = vmatprep.mubr.msk.f32.mxu0 %vm14429_vm2, %v14428_v21 }
0x1fcb   : > { %13618 = vmatprep.subr.mxu0 %v14428_v21  ;;  %v6786_v24 = vmul.f32 %v14287_v12, %v14281_v59  ;;  %v11423_v12 = vld [vmem:[%s18887_s12 + $0x7] ss:$0 sm:$0xff] }
0x1fcc   : > { %13619 = vmatpush3.msra.mxu0 %v11396_v25 }
0x1fcd   : > { %13620 = vmatprep.subr.mxu0 %v14428_v21  ;;  %v17459_v20 = vadd.f32 %v6786_v24, %v6097_v49  ;;  %13597 = vmatmul.mubr.msk.f32.gmra.mxu0 %vm2705_vm5, %v6786_v24 }
0x1fce   : > { %13621 = vmatpush3.msra.mxu0 %v11395_v26  ;;  %13628 = vmatprep.mubr.msk.f32.mxu0 %vm14429_vm2, %v14428_v21 }
0x1fcf   : > { %13622 = vmatprep.subr.mxu0 %v14428_v21 }
0x1fd0   : > { %13623 = vmatpush3.msra.mxu0 %v11394_v30 }
0x1fd1   : > { %13624 = vmatprep.subr.mxu0 %v14428_v21 }
0x1fd2   : > { %13625 = vmatpush3.msra.mxu0 %v11393_v39 }
0x1fd3   : > { %13626 = vmatprep.subr.mxu0 %v14428_v21 }
0x1fd4   : > { %13627 = vmatpush3.msra.mxu0 %v11392_v34 }
0x1fd5   : > { %13629 = vmatmul.mubr.msk.f32.vlgmr.msra.gmra.mxu0 %vm2199_vm0, %v16938_v3  ;;  %13671 = vmatprep.subr.mxu0 %v14428_v21 }
0x1fd6   : > { %13631 = vmatprep.mubr.msk.f32.mxu0 %vm14429_vm2, %v14428_v21 }
0x1fd9   : > { %13632 = vmatmul.mubr.msk.f32.gmra.mxu0 %vm2199_vm0, %v16953_v15 }
0x1fda   : > { %13634 = vmatprep.mubr.msk.f32.mxu0 %vm14429_vm2, %v14428_v21 }
0x1fdd   : > { %13635 = vmatmul.mubr.msk.f32.gmra.mxu0 %vm2199_vm0, %v16972_v28 }
0x1fde   : > { %13675 = vmatprep.mubr.msk.f32.mxu0 %vm14429_vm2, %v14428_v21 }
0x2085   : > { %v6868_v45 = vpop.f32.mrf.mxu0 }
0x2086   : > { %13604 = vmatmul.mubr.msk.f32.vlgmr.msra.gmra.mxu1 %vm2612_vm3, %v6868_v45 }
0x2087   : > { %13638 = vmatpush3.xpose.msk.msra.mxu1 %vm2199_vm0, %v16972_v28  ;;  %v13592_v29 = vpop.f32.mrf.mxu0  ;;  %13606 = vmatprep.mubr.msk.f32.mxu1 %vm14429_vm2, %v14428_v21 }
0x2088   : > { %13639 = vmatprep.subr.msk.mxu1 %vm2199_vm0, %v16953_v15 }
0x2089   : > { %v6873_v31 = vpop.f32.mrf.mxu0 }
0x208a   : > { %13607 = vmatmul.mubr.msk.f32.gmra.mxu1 %vm2612_vm3, %v6873_v31 }
0x208b   : > { %13640 = vmatpush3.xpose.msk.msra.mxu1 %vm2199_vm0, %v16953_v15  ;;  %v13595_v13 = vpop.f32.mrf.mxu0  ;;  %13609 = vmatprep.mubr.msk.f32.mxu1 %vm14429_vm2, %v14428_v21 }
0x208c   : > { %13641 = vmatprep.subr.msk.mxu1 %vm2199_vm0, %v16938_v3 }
0x208d   : > { %v6878_v40 = vpop.f32.mrf.mxu0 }
0x208e   : > { %13610 = vmatmul.mubr.msk.f32.gmra.mxu1 %vm2612_vm3, %v6878_v40 }
0x208f   : > { %13642 = vmatpush3.xpose.msk.msra.mxu1 %vm2199_vm0, %v16938_v3  ;;  %v13598_v63 = vpop.f32.mrf.mxu0  ;;  %13643 = vmatprep.mubr.msk.f32.mxu1 %vm2199_vm0, %v11405_v38 }
0x2090   : > { %13646 = vmatprep.subr.mxu1 %v14428_v21 }
0x2092   : > { %13644 = vmatmul.mubr.msk.f32.vlgmr.msra.gmra.mxu1 %vm2199_vm0, %v11406_v6 }
0x2093   : > { %13647 = vmatpush3.msra.mxu1 %v11421_v37  ;;  %13662 = vmatprep.mubr.msk.f32.mxu1 %vm14429_vm2, %v14428_v21 }
0x2094   : > { %13648 = vmatprep.subr.mxu1 %v14428_v21 }
0x2095   : > { %v7060_v50 = vpop.f32.mrf.mxu0  ;;  %13649 = vmatpush3.msra.mxu1 %v11420_v36 }
0x2096   : > { %13650 = vmatprep.subr.mxu1 %v14428_v21 }
0x2097   : > { %v13630_v54 = vpop.f32.mrf.mxu0  ;;  %13651 = vmatpush3.msra.mxu1 %v11419_v32 }
0x2098   : > { %13652 = vmatprep.subr.mxu1 %v14428_v21 }
0x2099   : > { %v7065_v5 = vpop.f32.mrf.mxu0  ;;  %13653 = vmatpush3.msra.mxu1 %v11418_v42 }
0x209a   : > { %13654 = vmatprep.subr.mxu1 %v14428_v21 }
0x209b   : > { %v13633_v9 = vpop.f32.mrf.mxu0  ;;  %13655 = vmatpush3.msra.mxu1 %v11417_v4 }
0x209c   : > { %13656 = vmatprep.subr.mxu1 %v14428_v21 }
0x209d   : > { %v7070_v58 = vpop.f32.mrf.mxu0  ;;  %13657 = vmatpush3.msra.mxu1 %v11416_v7 }
0x209e   : > { %13658 = vmatprep.subr.mxu1 %v14428_v21 }
0x209f   : > { %v13636_v10 = vpop.f32.mrf.mxu0  ;;  %13659 = vmatpush3.msra.mxu1 %v11415_v46 }
0x20a0   : > { %13660 = vmatprep.subr.mxu1 %v14428_v21 }
0x20a1   : > { %13661 = vmatpush3.msra.mxu1 %v11414_v47 }
0x20a2   : > { %13663 = vmatmul.mubr.msk.f32.vlgmr.msra.gmra.mxu1 %vm2199_vm0, %v16938_v3  ;;  %13699 = vmatprep.subr.mxu1 %v14428_v21  ;;  %v6358_v3 = vadd.f32 %v17361_v51, %v17387_v52  ;;  %v11401_v52 = vld [vmem:[%s18938_s28 + $0x7] ss:$0 sm:$0xff] }
0x20a3   : > { %13665 = vmatprep.mubr.msk.f32.mxu1 %vm14429_vm2, %v14428_v21  ;;  %v7061_v62 = vadd.f32 %v11401_v52, %v7060_v50 }
0x20a6   : > { %13666 = vmatmul.mubr.msk.f32.gmra.mxu1 %vm2199_vm0, %v16953_v15 }
0x20a7   : > { %13668 = vmatprep.mubr.msk.f32.mxu1 %vm14429_vm2, %v14428_v21 }
0x20aa   : > { %13669 = vmatmul.mubr.msk.f32.gmra.mxu1 %vm2199_vm0, %v16972_v28  ;;  %v6368_v28 = vadd.f32 %v17375_v44, %v17391_v35  ;;  %v7066_v44 = vadd.f32 %v11401_v52, %v7065_v5  ;;  %v7071_v35 = vadd.f32 %v11401_v52, %v7070_v58 }
0x20ab   : > { %13703 = vmatprep.mubr.msk.f32.mxu1 %vm14429_vm2, %v14428_v21 }
0x2146   : > { %v6960_v59 = vpop.f32.mrf.mxu1 }
0x2147   : > { %v17563_v60 = vadd.f32 %v6960_v59, %v6358_v3 }
0x2148   : > { %v13605_v27 = vpop.f32.mrf.mxu1 }
0x214a   : > { %v6965_v15 = vpop.f32.mrf.mxu1 }
0x214b   : > { %v17567_v11 = vadd.f32 %v6965_v15, %v6363_v2  ;;  %v11435_v15 = vld [vmem:[%s18888_s13 + $0x78] sm:$0xff] }
0x214c   : > { %v13608_v1 = vpop.f32.mrf.mxu1  ;;  %13700 = vmatpush3.msra.mxu1 %v11435_v15  ;;  %v11456_v15 = vld [vmem:[%s18892_s17 + $0xd8] sm:$0xff] }
0x214d   : > { %13701 = vmatprep.subr.mxu1 %v14428_v21 }
0x214e   : > { %v6970_v14 = vpop.f32.mrf.mxu1 }
0x214f   : > { %v17571_v48 = vadd.f32 %v6970_v14, %v6368_v28 }
0x2150   : > { %v13611_v0 = vpop.f32.mrf.mxu1 }
0x2152   : > { %v13645_v51 = vpop.f32.mrf.mxu1 }
0x2153   : > { %v7168_v43 = vadd.f32 %v13645_v51, %v7088_v19 }
0x2154   : > { %v7162_v55 = vpop.f32.mrf.mxu1 }
0x2155   : > { %v7163_v61 = vadd.f32 %v7162_v55, %v7083_v57  ;;  %13672 = vmatpush3.msra.mxu0 %v7168_v43 }
0x2156   : > { %13673 = vmatprep.subr.mxu0 %v14428_v21 }
0x2157   : > { %13674 = vmatpush3.msra.mxu0 %v7163_v61 }
0x2158   : > { %13676 = vmatmul.mubr.msk.f32.vlgmr.msra.gmra.mxu0 %vm2612_vm3, %v7061_v62  ;;  %13684 = vmatprep.subr.mxu0 %v14428_v21 }
0x2159   : > { %13678 = vmatprep.mubr.msk.f32.mxu0 %vm14429_vm2, %v14428_v21 }
0x215c   : > { %13679 = vmatmul.mubr.msk.f32.gmra.mxu0 %vm2612_vm3, %v7066_v44 }
0x215d   : > { %13681 = vmatprep.mubr.msk.f32.mxu0 %vm14429_vm2, %v14428_v21 }
0x2160   : > { %13682 = vmatmul.mubr.msk.f32.gmra.mxu0 %vm2612_vm3, %v7071_v35 }
0x2161   : > { %13690 = vmatprep.mubr.msk.f32.mxu0 %vm14429_vm2, %v14428_v21 }
0x2162   : > { %v7254_v8 = vpop.f32.mrf.mxu1 }
0x2163   : > { %v7255_v39 = vadd.f32 %v11423_v12, %v7254_v8 }
0x2164   : > { %v13664_v18 = vpop.f32.mrf.mxu1 }
0x2166   : > { %v7259_v41 = vpop.f32.mrf.mxu1 }
0x2167   : > { %v7260_v30 = vadd.f32 %v11423_v12, %v7259_v41 }
0x2168   : > { %v13667_v25 = vpop.f32.mrf.mxu1 }
0x216a   : > { %v7264_v49 = vpop.f32.mrf.mxu1 }
0x216b   : > { %v7265_v24 = vadd.f32 %v11423_v12, %v7264_v49 }
0x216c   : > { %v13670_v26 = vpop.f32.mrf.mxu1 }
0x216d   : > { %13685 = vmatpush3.msk.msra.mxu0 %vm2749_vm4, %v7265_v24  ;;  %v11440_v26 = vld [vmem:[%s18889_s14 + $0x1] ss:$0 sm:$0xff] }
0x216e   : > { %13686 = vmatprep.subr.mxu0 %v14428_v21 }
0x216f   : > { %13687 = vmatpush3.msra.mxu0 %v7260_v30 }
0x2170   : > { %13688 = vmatprep.subr.mxu0 %v14428_v21 }
0x2171   : > { %13689 = vmatpush3.msra.mxu0 %v7255_v39 }
0x2218   : > { %v7343_v34 = vpop.f32.mrf.mxu0 }
0x2219   : > { %v7357_v45 = vmul.f32 0.25, %v7343_v34 }
0x221a   : > { %v13677_v29 = vpop.f32.mrf.mxu0 }
0x221b   : > { %v7360_v31 = vsel %vm2705_vm5, %v7357_v45, -inf }
0x221c   : > { %7361 = vmax.xlane.f32.xlu1 %v7360_v31  ;;  %v7348_v13 = vpop.f32.mrf.mxu0 }
0x221d   : > { %v7358_v38 = vmul.f32 0.25, %v7348_v13 }
0x221e   : > { %v13680_v40 = vpop.f32.mrf.mxu0 }
0x221f   : > { %v7363_v63 = vsel %vm2705_vm5, %v7358_v38, -inf }
0x2220   : > { %7364 = vmax.xlane.f32.xlu0 %v7363_v63  ;;  %v7353_v6 = vpop.f32.mrf.mxu0 }
0x2221   : > { %v7359_v37 = vmul.f32 0.25, %v7353_v6 }
0x2222   : > { %v13683_v36 = vpop.f32.mrf.mxu0 }
0x2223   : > { %v7366_v32 = vsel %vm2712_vm6, %v7359_v37, -inf }
0x2224   : > { %7367 = vmax.xlane.f32.xlu0 %v7366_v32 }
0x22a5   : > { %v7362_v50 = vpop.xlane.xlu1 %7361 }
0x22a6   : > { %v7369_v42 = vsub.f32 %v7357_v45, %v7362_v50 }
0x22a8   : > { %v7372_v54 = vmul.f32 1.442695, %v7369_v42 }
0x22a9   : > { %v7365_v4 = vpop.xlane.xlu0 %7364 }
0x22aa   : > { %14288 = vpow2.f32 %v7372_v54  ;;  %v7370_v5 = vsub.f32 %v7358_v38, %v7365_v4 }
0x22ac   : > { %v7374_v7 = vmul.f32 1.442695, %v7370_v5 }
0x22ad   : > { %v7368_v9 = vpop.xlane.xlu0 %7367 }
0x22ae   : > { %14290 = vpow2.f32 %v7374_v7  ;;  %v7371_v46 = vsub.f32 %v7359_v37, %v7368_v9 }
0x22b0   : > { %v7376_v58 = vmul.f32 1.442695, %v7371_v46 }
0x22b2   : > { %14292 = vpow2.f32 %v7376_v58 }
0x22b7   : > { %v14289_v47 = vpop.eup %14288 }
0x22b8   : > { %v7378_v10 = vsel %vm2705_vm5, %v14289_v47, 0.0 }
0x22b9   : > { %7379 = vadd.xlane.f32.xlu1 %v7378_v10 }
0x22bb   : > { %v14291_v3 = vpop.eup %14290 }
0x22bc   : > { %v7381_v59 = vsel %vm2705_vm5, %v14291_v3, 0.0 }
0x22bd   : > { %7382 = vadd.xlane.f32.xlu0 %v7381_v59  ;;  %v11459_v59 = vld [vmem:[%s18892_s17 + $0xf0] sm:$0xff] }
0x22bf   : > { %v14293_v27 = vpop.eup %14292 }
0x22c0   : > { %v7384_v2 = vsel %vm2712_vm6, %v14293_v27, 0.0 }
0x22c1   : > { %7385 = vadd.xlane.f32.xlu1 %v7384_v2  ;;  %v11457_v2 = vld [vmem:[%s18892_s17 + $0xe0] sm:$0xff] }
0x2342   : > { %v7380_v1 = vpop.xlane.xlu1 %7379 }
0x2343   : > { %14294 = vrcp.f32 %v7380_v1  ;;  %v11455_v1 = vld [vmem:[%s18892_s17 + $0xd0] sm:$0xff] }
0x2346   : > { %v7383_v28 = vpop.xlane.xlu0 %7382 }
0x2347   : > { %14296 = vrcp.f32 %v7383_v28  ;;  %v11454_v28 = vld [vmem:[%s18892_s17 + $0xc8] sm:$0xff] }
0x234a   : > { %v7386_v14 = vpop.xlane.xlu1 %7385 }
0x234b   : > { %14298 = vrcp.f32 %v7386_v14  ;;  %v11453_v14 = vld [vmem:[%s18892_s17 + $0xc0] sm:$0xff] }
0x2350   : > { %v14295_v0 = vpop.eup %14294 }
0x2351   : > { %v7390_v19 = vmul.f32 %v14295_v0, %v14289_v47  ;;  %v11452_v0 = vld [vmem:[%s18892_s17 + $0xb8] sm:$0xff] }
0x2353   : > { %13691 = vmatmul.mubr.msk.f32.vlgmr.msra.gmra.mxu0 %vm2705_vm5, %v7390_v19  ;;  %v7393_v51 = vadd.f32 %v7390_v19, %v17429_v33  ;;  %v11451_v19 = vld [vmem:[%s18892_s17 + $0xb0] sm:$0xff] }
0x2354   : > { %v14297_v52 = vpop.eup %14296  ;;  %13693 = vmatprep.mubr.msk.f32.mxu0 %vm14429_vm2, %v14428_v21 }
0x2355   : > { %v7391_v43 = vmul.f32 %v14297_v52, %v14291_v3  ;;  %v7583_v57 = vmul.f32 0.25, %v7393_v51  ;;  %v11460_v3 = vld [vmem:[%s18892_s17 + $0xf8] sm:$0xff]  ;;  %v11450_v51 = vld [vmem:[%s18892_s17 + $0xa8] sm:$0xff]  ;;  %v11449_v52 = vld [vmem:[%s18892_s17 + $0xa0] sm:$0xff] }
0x2356   : > { %7719 = vmatprep.subr.mxu0 %v11460_v3  ;;  %v11477_v3 = vld [vmem:[%s18894_s19 + $0x130] sm:$0xff] }
0x2357   : > { %v7394_v55 = vadd.f32 %v7391_v43, %v17444_v23  ;;  %13694 = vmatmul.mubr.msk.f32.gmra.mxu0 %vm2705_vm5, %v7391_v43  ;;  %7586 = vst.msk [vmem:[%s777_s30] sm:$0xff] %vm2705_vm5, %v7583_v57  ;;  %v11434_v23 = vld [vmem:[%s18888_s13 + $0x70] sm:$0xff]  ;;  %v11448_v43 = vld [vmem:[%s18892_s17 + $0x98] sm:$0xff] }
0x2358   : > { %v14299_v61 = vpop.eup %14298  ;;  %13696 = vmatprep.mubr.msk.f32.mxu0 %vm14429_vm2, %v14428_v21  ;;  %13702 = vmatpush3.msra.mxu1 %v11434_v23  ;;  %v11447_v57 = vld [vmem:[%s18892_s17 + $0x90] sm:$0xff] }
0x2359   : > { %v7584_v33 = vmul.f32 0.25, %v7394_v55  ;;  %v7392_v62 = vmul.f32 %v14299_v61, %v14293_v27  ;;  %7720 = vmatpush1.msra.mxu0 %v11459_v59  ;;  %v11458_v27 = vld [vmem:[%s18892_s17 + $0xe8] sm:$0xff]  ;;  %v11445_v61 = vld [vmem:[%s18892_s17 + $0x80] sm:$0xff] }
0x235a   : > { %7721 = vmatprep.subr.mxu0 %v11458_v27  ;;  %v11446_v55 = vld [vmem:[%s18892_s17 + $0x88] sm:$0xff] }
0x235b   : > { %v7395_v44 = vadd.f32 %v7392_v62, %v17459_v20  ;;  %13697 = vmatmul.mubr.msk.f32.gmra.mxu0 %vm2705_vm5, %v7392_v62  ;;  %7587 = vst.msk [vmem:[%s777_s30 + $0x8] sm:$0xff] %vm2705_vm5, %v7584_v33  ;;  %v11492_v59 = vld [vmem:[%s18894_s19 + $0x1a8] sm:$0xff] }
0x235c   : > { %7767 = vmatprep.mubr.f32.mxu0 %v14428_v21  ;;  %7722 = vmatpush1.msra.mxu0 %v11457_v2  ;;  %v11476_v27 = vld [vmem:[%s18894_s19 + $0x128] sm:$0xff]  ;;  %v11491_v2 = vld [vmem:[%s18894_s19 + $0x1a0] sm:$0xff] }
0x235d   : > { %v7585_v35 = vmul.f32 0.25, %v7395_v44  ;;  %7723 = vmatprep.subr.mxu0 %v11456_v15  ;;  %v11475_v15 = vld [vmem:[%s18894_s19 + $0x120] sm:$0xff] }
0x235e   : > { %7724 = vmatpush1.msra.mxu0 %v11455_v1  ;;  %v11490_v1 = vld [vmem:[%s18894_s19 + $0x198] sm:$0xff] }
0x235f   : > { %7588 = vst.msk [vmem:[%s777_s30 + $0x10] sm:$0x1] %vm2712_vm6, %v7585_v35  ;;  %7725 = vmatprep.subr.mxu0 %v11454_v28  ;;  %v11474_v28 = vld [vmem:[%s18894_s19 + $0x118] sm:$0xff] }
0x2360   : > { %7726 = vmatpush1.msra.mxu0 %v11453_v14  ;;  %v11489_v14 = vld [vmem:[%s18894_s19 + $0x190] sm:$0xff] }
0x2361   : > { %7727 = vmatprep.subr.mxu0 %v11452_v0  ;;  %v11473_v0 = vld [vmem:[%s18894_s19 + $0x110] sm:$0xff] }
0x2362   : > { %7728 = vmatpush1.msra.mxu0 %v11451_v19  ;;  %v11488_v19 = vld [vmem:[%s18894_s19 + $0x188] sm:$0xff] }
0x2363   : > { %7729 = vmatprep.subr.mxu0 %v11450_v51  ;;  %v11472_v51 = vld [vmem:[%s18894_s19 + $0x108] sm:$0xff] }
0x2364   : > { %7730 = vmatpush1.msra.mxu0 %v11449_v52  ;;  %v11487_v52 = vld [vmem:[%s18894_s19 + $0x180] sm:$0xff] }
0x2365   : > { %7731 = vmatprep.subr.mxu0 %v11448_v43  ;;  %v11471_v43 = vld [vmem:[%s18894_s19 + $0x100] sm:$0xff] }
0x2366   : > { %7732 = vmatpush1.msra.mxu0 %v11447_v57  ;;  %v11461_v57 = vld [vmem:[%s18893_s18 + $0x2] sm:$0x3] }
0x2367   : > { %7733 = vmatprep.subr.mxu0 %v11446_v55  ;;  %v7687_v55 = vrot.slane %v11461_v57, %v16815_v22 }
0x2368   : > { %7734 = vmatpush1.msra.mxu0 %v11445_v61  ;;  %v7691_v61 = vrot.slane %v11461_v57, %v16820_v53 }
0x2369   : > { %13712 = vmatprep.subr.mxu0 %v14428_v21 }
0x2413   : > { %v7474_v8 = vpop.f32.mrf.mxu0 }
0x2414   : > { %13704 = vmatmul.mubr.msk.f32.vlgmr.msra.gmra.mxu1 %vm2612_vm3, %v7474_v8 }
0x2415   : > { %v13692_v18 = vpop.f32.mrf.mxu0  ;;  %13706 = vmatprep.mubr.msk.f32.mxu1 %vm14429_vm2, %v14428_v21 }
0x2417   : > { %v7479_v20 = vpop.f32.mrf.mxu0 }
0x2418   : > { %13707 = vmatmul.mubr.msk.f32.gmra.mxu1 %vm2612_vm3, %v7479_v20 }
0x2419   : > { %v13695_v41 = vpop.f32.mrf.mxu0  ;;  %13709 = vmatprep.mubr.msk.f32.mxu1 %vm14429_vm2, %v14428_v21 }
0x241b   : > { %v7484_v25 = vpop.f32.mrf.mxu0 }
0x241c   : > { %13710 = vmatmul.mubr.msk.f32.gmra.mxu1 %vm2612_vm3, %v7484_v25 }
0x241d   : > { %v13698_v12 = vpop.f32.mrf.mxu0 }
0x241e   : > { %v11443_v12 = vld [vmem:[%s18890_s15 + $0x1] ss:$0 sm:$0xff] }
0x24d4   : > { %v7566_v49 = vpop.f32.mrf.mxu1 }
0x24d5   : > { %v7580_v24 = vadd.f32 %v7566_v49, %v17563_v60 }
0x24d6   : > { %v13705_v30 = vpop.f32.mrf.mxu1 }
0x24d7   : > { %v7589_v39 = vadd.f32 %v7580_v24, %v16830_v16  ;;  %v11444_v24 = vld [vmem:[%s18891_s16 + $0x1] ss:$0 sm:$0xff] }
0x24d8   : > { %v7571_v34 = vpop.f32.mrf.mxu1 }
0x24d9   : > { %v17638_v45 = vadd.f32 %v11440_v26, %v7589_v39  ;;  %v7581_v29 = vadd.f32 %v7571_v34, %v17567_v11 }
0x24da   : > { %v13708_v31 = vpop.f32.mrf.mxu1 }
0x24db   : > { %v7590_v13 = vadd.f32 %v7581_v29, %v16835_v56  ;;  %v7607_v38 = vsel %vm2199_vm0, %v17638_v45, 0.0 }
0x24dc   : > { %7608 = vadd.xlane.f32.xlu0 %v7607_v38  ;;  %v7576_v60 = vpop.f32.mrf.mxu1 }
0x24dd   : > { %v17644_v40 = vadd.f32 %v11440_v26, %v7590_v13  ;;  %v7582_v63 = vadd.f32 %v7576_v60, %v17571_v48 }
0x24de   : > { %v13711_v6 = vpop.f32.mrf.mxu1 }
0x24df   : > { %v7591_v16 = vadd.f32 %v7582_v63, %v16840_v17  ;;  %v7610_v37 = vsel %vm2199_vm0, %v17644_v40, 0.0  ;;  %v11502_v6 = vld [vmem:[%s18894_s19 + $0x1f8] sm:$0xff] }
0x24e0   : > { %7611 = vadd.xlane.f32.xlu1 %v7610_v37  ;;  %12647 = vmatprep.subr.mxu1 %v11502_v6  ;;  %v11501_v37 = vld [vmem:[%s18894_s19 + $0x1f0] sm:$0xff] }
0x24e1   : > { %v17650_v11 = vadd.f32 %v11440_v26, %v7591_v16  ;;  %v11486_v16 = vld [vmem:[%s18894_s19 + $0x178] sm:$0xff] }
0x24e2   : > { %12648 = vmatpush3.msra.mxu1 %v11486_v16 }
0x24e3   : > { %v7613_v56 = vsel %vm2206_vm1, %v17650_v11, 0.0  ;;  %12649 = vmatprep.subr.mxu1 %v11501_v37 }
0x24e4   : > { %7614 = vadd.xlane.f32.xlu0 %v7613_v56  ;;  %v11485_v56 = vld [vmem:[%s18894_s19 + $0x170] sm:$0xff] }
0x24e5   : > { %12650 = vmatpush3.msra.mxu1 %v11485_v56 }
0x2565   : > { %v7609_v36 = vpop.xlane.xlu0 %7608 }
0x2566   : > { %v7616_v32 = vmul.f32 0.015625, %v7609_v36  ;;  %v11500_v36 = vld [vmem:[%s18894_s19 + $0x1e8] sm:$0xff] }
0x2567   : > { %12651 = vmatprep.subr.mxu1 %v11500_v36 }
0x2568   : > { %v17655_v50 = vsub.f32 %v17638_v45, %v7616_v32  ;;  %v11484_v32 = vld [vmem:[%s18894_s19 + $0x168] sm:$0xff] }
0x2569   : > { %v7612_v42 = vpop.xlane.xlu1 %7611  ;;  %12652 = vmatpush3.msra.mxu1 %v11484_v32 }
0x256a   : > { %v7617_v48 = vmul.f32 0.015625, %v7612_v42  ;;  %v7622_v17 = vmul.f32 %v17655_v50, %v17655_v50  ;;  %v11483_v42 = vld [vmem:[%s18894_s19 + $0x160] sm:$0xff] }
0x256c   : > { %v17660_v54 = vsub.f32 %v17644_v40, %v7617_v48  ;;  %v7625_v4 = vsel %vm2199_vm0, %v7622_v17, 0.0  ;;  %v11498_v48 = vld [vmem:[%s18894_s19 + $0x1d8] sm:$0xff] }
0x256d   : > { %7626 = vadd.xlane.f32.xlu1 %v7625_v4  ;;  %v7615_v5 = vpop.xlane.xlu0 %7614  ;;  %v11482_v17 = vld [vmem:[%s18894_s19 + $0x158] sm:$0xff]  ;;  %v11481_v4 = vld [vmem:[%s18894_s19 + $0x150] sm:$0xff] }
0x256e   : > { %v7618_v7 = vmul.f32 0.015625, %v7615_v5  ;;  %v7623_v9 = vmul.f32 %v17660_v54, %v17660_v54  ;;  %v11496_v5 = vld [vmem:[%s18894_s19 + $0x1c8] sm:$0xff] }
0x2570   : > { %v17666_v46 = vsub.f32 %v17650_v11, %v7618_v7  ;;  %v7628_v58 = vsel %vm2199_vm0, %v7623_v9, 0.0  ;;  %v11480_v7 = vld [vmem:[%s18894_s19 + $0x148] sm:$0xff]  ;;  %v11495_v9 = vld [vmem:[%s18894_s19 + $0x1c0] sm:$0xff] }
0x2571   : > { %7629 = vadd.xlane.f32.xlu0 %v7628_v58  ;;  %v11494_v58 = vld [vmem:[%s18894_s19 + $0x1b8] sm:$0xff] }
0x2572   : > { %v7624_v47 = vmul.f32 %v17666_v46, %v17666_v46 }
0x2574   : > { %v7631_v10 = vsel %vm2206_vm1, %v7624_v47, 0.0  ;;  %v11478_v47 = vld [vmem:[%s18894_s19 + $0x138] sm:$0xff] }
0x2575   : > { %7632 = vadd.xlane.f32.xlu1 %v7631_v10  ;;  %v11493_v10 = vld [vmem:[%s18894_s19 + $0x1b0] sm:$0xff] }
0x25f6   : > { %v7627_v33 = vpop.xlane.xlu1 %7626 }
0x25f7   : > { %v7634_v62 = vmul.f32 0.015625, %v7627_v33 }
0x25f9   : > { %v7637_v44 = vadd.f32 1e-05, %v7634_v62 }
0x25fa   : > { %v7630_v35 = vpop.xlane.xlu0 %7629 }
0x25fb   : > { %14300 = vrsqrt.f32 %v7637_v44  ;;  %v7635_v23 = vmul.f32 0.015625, %v7630_v35 }
0x25fd   : > { %v7638_v8 = vadd.f32 1e-05, %v7635_v23 }
0x25fe   : > { %v7633_v18 = vpop.xlane.xlu1 %7632 }
0x25ff   : > { %14302 = vrsqrt.f32 %v7638_v8  ;;  %v7636_v20 = vmul.f32 0.015625, %v7633_v18 }
0x2601   : > { %v7639_v41 = vadd.f32 1e-05, %v7636_v20 }
0x2603   : > { %14304 = vrsqrt.f32 %v7639_v41 }
0x2608   : > { %v14301_v25 = vpop.eup %14300 }
0x2609   : > { %v7643_v49 = vmul.f32 %v14301_v25, %v17655_v50  ;;  %v11499_v50 = vld [vmem:[%s18894_s19 + $0x1e0] sm:$0xff] }
0x260a   : > { %12653 = vmatprep.subr.mxu1 %v11499_v50 }
0x260b   : > { %v7652_v26 = vmul.f32 %v11443_v12, %v7643_v49  ;;  %12654 = vmatpush3.msra.mxu1 %v11483_v42 }
0x260c   : > { %v14303_v30 = vpop.eup %14302  ;;  %12655 = vmatprep.subr.mxu1 %v11498_v48 }
0x260d   : > { %v7661_v39 = vadd.f32 %v11444_v24, %v7652_v26  ;;  %v7644_v34 = vmul.f32 %v14303_v30, %v17660_v54  ;;  %12656 = vmatpush3.msra.mxu1 %v11482_v17  ;;  %v11497_v54 = vld [vmem:[%s18894_s19 + $0x1d0] sm:$0xff] }
0x260e   : > { %12657 = vmatprep.subr.mxu1 %v11497_v54 }
0x260f   : > { %11462 = vmatmul.mubr.msk.f32.vlgmr.msra.gmra.mxu0 %vm2199_vm0, %v7661_v39  ;;  %v7653_v29 = vmul.f32 %v11443_v12, %v7644_v34  ;;  %12658 = vmatpush3.msra.mxu1 %v11481_v4 }
0x2610   : > { %v14305_v31 = vpop.eup %14304  ;;  %7773 = vmatprep.mubr.f32.mxu0 %v14428_v21  ;;  %12659 = vmatprep.subr.mxu1 %v11496_v5 }
0x2611   : > { %v7645_v13 = vmul.f32 %v14305_v31, %v17666_v46  ;;  %v7662_v38 = vadd.f32 %v11444_v24, %v7653_v29  ;;  %12660 = vmatpush3.msra.mxu1 %v11480_v7  ;;  %v11479_v46 = vld [vmem:[%s18894_s19 + $0x140] sm:$0xff] }
0x2612   : > { %12661 = vmatprep.subr.mxu1 %v11495_v9 }
0x2613   : > { %11463 = vmatmul.mubr.msk.f32.gmra.mxu0 %vm2199_vm0, %v7662_v38  ;;  %v7654_v60 = vmul.f32 %v11443_v12, %v7645_v13  ;;  %12662 = vmatpush3.msra.mxu1 %v11479_v46 }
0x2614   : > { %7779 = vmatprep.mubr.f32.mxu0 %v14428_v21  ;;  %12663 = vmatprep.subr.mxu1 %v11494_v58 }
0x2615   : > { %v7663_v63 = vadd.f32 %v11444_v24, %v7654_v60  ;;  %12664 = vmatpush3.msra.mxu1 %v11478_v47 }
0x2616   : > { %12665 = vmatprep.subr.mxu1 %v11493_v10 }
0x2617   : > { %11464 = vmatmul.mubr.msk.f32.gmra.mxu0 %vm2199_vm0, %v7663_v63  ;;  %12666 = vmatpush3.msra.mxu1 %v11477_v3 }
0x2618   : > { %13728 = vmatprep.mubr.msk.f32.mxu0 %vm14429_vm2, %v14428_v21  ;;  %12667 = vmatprep.subr.mxu1 %v11492_v59 }
0x2619   : > { %12668 = vmatpush3.msra.mxu1 %v11476_v27 }
0x261a   : > { %12669 = vmatprep.subr.mxu1 %v11491_v2 }
0x261b   : > { %12670 = vmatpush3.msra.mxu1 %v11475_v15 }
0x261c   : > { %12671 = vmatprep.subr.mxu1 %v11490_v1 }
0x261d   : > { %12672 = vmatpush3.msra.mxu1 %v11474_v28 }
0x261e   : > { %12673 = vmatprep.subr.mxu1 %v11489_v14 }
0x261f   : > { %12674 = vmatpush3.msra.mxu1 %v11473_v0 }
0x2620   : > { %12675 = vmatprep.subr.mxu1 %v11488_v19  ;;  %v11504_v19 = vld [vmem:[%s18895_s20 + $0x1] ss:$0 sm:$0xff] }
0x2621   : > { %12676 = vmatpush3.msra.mxu1 %v11472_v51 }
0x2622   : > { %12677 = vmatprep.subr.mxu1 %v11487_v52 }
0x2623   : > { %12678 = vmatpush3.msra.mxu1 %v11471_v43 }
0x2624   : > { %13746 = vmatprep.subr.mxu1 %v14428_v21 }
0x26cf   : > { %v7769_v33 = vpop.f32.mrf.mxu0 }
0x26d0   : > { %v7770_v62 = vadd.f32 %v7769_v33, %v7687_v55 }
0x26d1   : > { %v7771_v44 = vpop.f32.mrf.mxu0 }
0x26d2   : > { %v11465_v35 = vmul.f32 -1.702, %v7770_v62  ;;  %v7772_v23 = vadd.f32 %v7771_v44, %v7691_v61 }
0x26d3   : > { %v7775_v8 = vpop.f32.mrf.mxu0 }
0x26d4   : > { %v7798_v18 = vmul.f32 1.442695, %v11465_v35  ;;  %v11466_v20 = vmul.f32 -1.702, %v7772_v23  ;;  %v7776_v41 = vadd.f32 %v7775_v8, %v7687_v55 }
0x26d5   : > { %v7777_v25 = vpop.f32.mrf.mxu0 }
0x26d6   : > { %14306 = vpow2.f32 %v7798_v18  ;;  %v7800_v12 = vmul.f32 1.442695, %v11466_v20  ;;  %v11467_v49 = vmul.f32 -1.702, %v7776_v41  ;;  %v7778_v24 = vadd.f32 %v7777_v25, %v7691_v61 }
0x26d7   : > { %v7781_v26 = vpop.f32.mrf.mxu0 }
0x26d8   : > { %14308 = vpow2.f32 %v7800_v12  ;;  %v7802_v30 = vmul.f32 1.442695, %v11467_v49  ;;  %v11468_v39 = vmul.f32 -1.702, %v7778_v24  ;;  %v7782_v34 = vadd.f32 %v7781_v26, %v7687_v55 }
0x26d9   : > { %v7783_v29 = vpop.f32.mrf.mxu0 }
0x26da   : > { %14310 = vpow2.f32 %v7802_v30  ;;  %v7804_v31 = vmul.f32 1.442695, %v11468_v39  ;;  %v11469_v13 = vmul.f32 -1.702, %v7782_v34  ;;  %v7784_v38 = vadd.f32 %v7783_v29, %v7691_v61 }
0x26dc   : > { %14312 = vpow2.f32 %v7804_v31  ;;  %v7806_v60 = vmul.f32 1.442695, %v11469_v13  ;;  %v11470_v63 = vmul.f32 -1.702, %v7784_v38 }
0x26de   : > { %14314 = vpow2.f32 %v7806_v60  ;;  %v7808_v6 = vmul.f32 1.442695, %v11470_v63  ;;  %v11524_v60 = vld [vmem:[%s18885_s10 + $0x80] sm:$0xff]  ;;  %v11538_v63 = vld [vmem:[%s18886_s11 + $0x238] sm:$0xff] }
0x26e0   : > { %14316 = vpow2.f32 %v7808_v6  ;;  %v11516_v6 = vld [vmem:[%s18934_s27 + $0x238] sm:$0xff] }
0x26e1   : > { %13713 = vmatpush3.msra.mxu0 %v11516_v6 }
0x26e2   : > { %13714 = vmatprep.subr.mxu0 %v14428_v21 }
0x26e3   : > { %v14307_v16 = vpop.eup %14306 }
0x26e4   : > { %v7810_v37 = vadd.f32 1.0, %v14307_v16  ;;  %v11537_v16 = vld [vmem:[%s18886_s11 + $0x230] sm:$0xff] }
0x26e5   : > { %v14309_v56 = vpop.eup %14308 }
0x26e6   : > { %v7811_v36 = vadd.f32 1.0, %v14309_v56  ;;  %14318 = vrcp.f32 %v7810_v37  ;;  %v11515_v37 = vld [vmem:[%s18934_s27 + $0x230] sm:$0xff]  ;;  %v11536_v56 = vld [vmem:[%s18886_s11 + $0x228] sm:$0xff] }
0x26e7   : > { %v14311_v32 = vpop.eup %14310  ;;  %13715 = vmatpush3.msra.mxu0 %v11515_v37 }
0x26e8   : > { %14320 = vrcp.f32 %v7811_v36  ;;  %v7812_v50 = vadd.f32 1.0, %v14311_v32  ;;  %13716 = vmatprep.subr.mxu0 %v14428_v21  ;;  %v11514_v36 = vld [vmem:[%s18934_s27 + $0x228] sm:$0xff]  ;;  %v11535_v32 = vld [vmem:[%s18886_s11 + $0x220] sm:$0xff] }
0x26e9   : > { %v14313_v42 = vpop.eup %14312  ;;  %13717 = vmatpush3.msra.mxu0 %v11514_v36 }
0x26ea   : > { %v7813_v48 = vadd.f32 1.0, %v14313_v42  ;;  %14322 = vrcp.f32 %v7812_v50  ;;  %13718 = vmatprep.subr.mxu0 %v14428_v21  ;;  %v11513_v50 = vld [vmem:[%s18934_s27 + $0x220] sm:$0xff]  ;;  %v11534_v42 = vld [vmem:[%s18886_s11 + $0x218] sm:$0xff] }
0x26eb   : > { %v14315_v17 = vpop.eup %14314  ;;  %13719 = vmatpush3.msra.mxu0 %v11513_v50 }
0x26ec   : > { %14324 = vrcp.f32 %v7813_v48  ;;  %v7814_v54 = vadd.f32 1.0, %v14315_v17  ;;  %v11525_v48 = vld [vmem:[%s18885_s10 + $0x88] sm:$0xff]  ;;  %13720 = vmatprep.subr.mxu0 %v14428_v21  ;;  %v11512_v17 = vld [vmem:[%s18934_s27 + $0x218] sm:$0xff] }
0x26ed   : > { %v14317_v4 = vpop.eup %14316  ;;  %13721 = vmatpush3.msra.mxu0 %v11512_v17 }
0x26ee   : > { %v7815_v5 = vadd.f32 1.0, %v14317_v4  ;;  %14326 = vrcp.f32 %v7814_v54  ;;  %v11533_v54 = vld [vmem:[%s18886_s11 + $0x210] sm:$0xff]  ;;  %13722 = vmatprep.subr.mxu0 %v14428_v21 }
0x26ef   : > { %v11511_v4 = vld [vmem:[%s18934_s27 + $0x210] sm:$0xff] }
0x26f0   : > { %14328 = vrcp.f32 %v7815_v5  ;;  %v11532_v5 = vld [vmem:[%s18886_s11 + $0x208] sm:$0xff]  ;;  %13723 = vmatpush3.msra.mxu0 %v11511_v4 }
0x26f1   : > { %13724 = vmatprep.subr.mxu0 %v14428_v21 }
0x26f3   : > { %v14319_v7 = vpop.eup %14318 }
0x26f4   : > { %v7828_v58 = vmul.f32 %v14319_v7, %v7770_v62  ;;  %v11510_v7 = vld [vmem:[%s18934_s27 + $0x208] sm:$0xff] }
0x26f5   : > { %v14321_v9 = vpop.eup %14320  ;;  %13725 = vmatpush3.msra.mxu0 %v11510_v7 }
0x26f6   : > { %v7829_v46 = vmul.f32 %v14321_v9, %v7772_v23  ;;  %v11531_v9 = vld [vmem:[%s18886_s11 + $0x200] sm:$0xff]  ;;  %13726 = vmatprep.subr.mxu0 %v14428_v21 }
0x26f7   : > { %v14323_v47 = vpop.eup %14322 }
0x26f8   : > { %7931 = vmatprep.mubr.f32.mxu1 %v7829_v46  ;;  %v7830_v59 = vmul.f32 %v14323_v47, %v7776_v41  ;;  %v11509_v46 = vld [vmem:[%s18934_s27 + $0x200] sm:$0xff] }
0x26f9   : > { %v14325_v10 = vpop.eup %14324  ;;  %7932 = vmatmul.mubr.f32.vlgmr.msra.gmra.mxu1 %v7828_v58  ;;  %13727 = vmatpush3.msra.mxu0 %v11509_v46 }
0x26fa   : > { %v7831_v3 = vmul.f32 %v14325_v10, %v7778_v24  ;;  %13747 = vmatpush3.msra.mxu1 %v11538_v63 }
0x26fb   : > { %v14327_v27 = vpop.eup %14326  ;;  %13748 = vmatprep.subr.mxu1 %v14428_v21 }
0x26fc   : > { %7936 = vmatprep.mubr.f32.mxu1 %v7831_v3  ;;  %v7832_v1 = vmul.f32 %v14327_v27, %v7782_v34  ;;  %13749 = vmatpush3.msra.mxu1 %v11537_v16 }
0x26fd   : > { %v14329_v2 = vpop.eup %14328  ;;  %7937 = vmatmul.mubr.f32.gmra.mxu1 %v7830_v59  ;;  %13750 = vmatprep.subr.mxu1 %v14428_v21 }
0x26fe   : > { %v7833_v15 = vmul.f32 %v14329_v2, %v7784_v38  ;;  %13751 = vmatpush3.msra.mxu1 %v11536_v56 }
0x26ff   : > { %13752 = vmatprep.subr.mxu1 %v14428_v21 }
0x2700   : > { %7941 = vmatprep.mubr.f32.mxu1 %v7833_v15  ;;  %13753 = vmatpush3.msra.mxu1 %v11535_v32 }
0x2701   : > { %7942 = vmatmul.mubr.f32.gmra.mxu1 %v7832_v1  ;;  %13754 = vmatprep.subr.mxu1 %v14428_v21 }
0x2702   : > { %13762 = vmatprep.mubr.msk.f32.mxu1 %vm14429_vm2, %v14428_v21  ;;  %13755 = vmatpush3.msra.mxu1 %v11534_v42 }
0x2703   : > { %13756 = vmatprep.subr.mxu1 %v14428_v21 }
0x2704   : > { %13757 = vmatpush3.msra.mxu1 %v11533_v54 }
0x2705   : > { %13758 = vmatprep.subr.mxu1 %v14428_v21 }
0x2706   : > { %13759 = vmatpush3.msra.mxu1 %v11532_v5 }
0x2707   : > { %13760 = vmatprep.subr.mxu1 %v14428_v21 }
0x2708   : > { %13761 = vmatpush3.msra.mxu1 %v11531_v9 }
0x2709   : > { %13799 = vmatprep.subr.mxu1 %v14428_v21 }
0x27b9   : > { %v12679_v28 = vpop.f32.mrf.mxu1 }
0x27bb   : > { %v12680_v14 = vpop.f32.mrf.mxu1 }
0x27bc   : > { %v12681_v0 = vadd.f32 %v12680_v14, %v12679_v28  ;;  %v11507_v14 = vld [vmem:[%s18936_s0 + $0x2] ss:$0 sm:$0xff] }
0x27bd   : > { %v12682_v51 = vpop.f32.mrf.mxu1 }
0x27be   : > { %v7947_v52 = vadd.f32 %v12681_v0, %v17638_v45 }
0x27bf   : > { %v12683_v43 = vpop.f32.mrf.mxu1 }
0x27c0   : > { %v17845_v57 = vadd.f32 %v11504_v19, %v7947_v52  ;;  %v12684_v55 = vadd.f32 %v12683_v43, %v12682_v51 }
0x27c1   : > { %v12685_v61 = vpop.f32.mrf.mxu1 }
0x27c2   : > { %v7948_v33 = vadd.f32 %v12684_v55, %v17644_v40  ;;  %v7965_v62 = vsel %vm2199_vm0, %v17845_v57, 0.0 }
0x27c3   : > { %v12686_v44 = vpop.f32.mrf.mxu1  ;;  %7966 = vadd.xlane.f32.xlu0 %v7965_v62  ;;  %v11559_v62 = vld [vmem:[%s18934_s27 + $0x270] sm:$0xff] }
0x27c4   : > { %v17850_v35 = vadd.f32 %v11504_v19, %v7948_v33  ;;  %v12687_v23 = vadd.f32 %v12686_v44, %v12685_v61  ;;  %v11560_v61 = vld [vmem:[%s18934_s27 + $0x278] sm:$0xff] }
0x27c6   : > { %v7949_v8 = vadd.f32 %v12687_v23, %v17650_v11  ;;  %v7968_v45 = vsel %vm2199_vm0, %v17850_v35, 0.0 }
0x27c7   : > { %7969 = vadd.xlane.f32.xlu0 %v7968_v45  ;;  %v11558_v45 = vld [vmem:[%s18934_s27 + $0x268] sm:$0xff] }
0x27c8   : > { %v17855_v18 = vadd.f32 %v11504_v19, %v7949_v8  ;;  %v11508_v19 = vld [vmem:[%s18937_s3 + $0x2] ss:$0 sm:$0xff] }
0x27ca   : > { %v7971_v20 = vsel %vm2206_vm1, %v17855_v18, 0.0 }
0x27cb   : > { %7972 = vadd.xlane.f32.xlu1 %v7971_v20 }
0x284c   : > { %v7967_v40 = vpop.xlane.xlu0 %7966 }
0x284d   : > { %v7974_v41 = vmul.f32 0.015625, %v7967_v40  ;;  %v11557_v40 = vld [vmem:[%s18934_s27 + $0x260] sm:$0xff] }
0x284f   : > { %v17860_v25 = vsub.f32 %v17845_v57, %v7974_v41 }
0x2850   : > { %v7970_v12 = vpop.xlane.xlu0 %7969 }
0x2851   : > { %v7975_v49 = vmul.f32 0.015625, %v7970_v12  ;;  %v7980_v11 = vmul.f32 %v17860_v25, %v17860_v25  ;;  %v11555_v12 = vld [vmem:[%s18934_s27 + $0x250] sm:$0xff] }
0x2853   : > { %v17865_v24 = vsub.f32 %v17850_v35, %v7975_v49  ;;  %v7983_v26 = vsel %vm2199_vm0, %v7980_v11, 0.0  ;;  %v11522_v49 = vld [vmem:[%s18935_s26 + $0x80] sm:$0xff]  ;;  %v11554_v11 = vld [vmem:[%s18934_s27 + $0x248] sm:$0xff] }
0x2854   : > { %v7973_v30 = vpop.xlane.xlu1 %7972  ;;  %7984 = vadd.xlane.f32.xlu1 %v7983_v26  ;;  %v11582_v26 = vld [vmem:[%s18886_s11 + $0x278] sm:$0xff] }
0x2855   : > { %v7976_v39 = vmul.f32 0.015625, %v7973_v30  ;;  %v7981_v34 = vmul.f32 %v17865_v24, %v17865_v24  ;;  %v11581_v30 = vld [vmem:[%s18886_s11 + $0x270] sm:$0xff] }
0x2857   : > { %v17871_v29 = vsub.f32 %v17855_v18, %v7976_v39  ;;  %v7986_v31 = vsel %vm2199_vm0, %v7981_v34, 0.0  ;;  %v11523_v39 = vld [vmem:[%s18935_s26 + $0x88] sm:$0xff] }
0x2858   : > { %7987 = vadd.xlane.f32.xlu1 %v7986_v31  ;;  %v11580_v34 = vld [vmem:[%s18886_s11 + $0x268] sm:$0xff]  ;;  %v11578_v31 = vld [vmem:[%s18886_s11 + $0x258] sm:$0xff] }
0x2859   : > { %v7982_v13 = vmul.f32 %v17871_v29, %v17871_v29 }
0x285b   : > { %v7989_v38 = vsel %vm2206_vm1, %v7982_v13, 0.0  ;;  %v11577_v13 = vld [vmem:[%s18886_s11 + $0x250] sm:$0xff] }
0x285c   : > { %7990 = vadd.xlane.f32.xlu0 %v7989_v38  ;;  %v11576_v38 = vld [vmem:[%s18886_s11 + $0x248] sm:$0xff] }
0x2869   : > { %8136 = vperm.xlu1 %14155, %v11524_v60   ;;  %v11575_v60 = vld [vmem:[%s18886_s11 + $0x240] sm:$0xff] }
0x2872   : > { %8141 = vperm.xlu0 %14154, %v11525_v48  }
0x28dd   : > { %v7985_v58 = vpop.xlane.xlu1 %7984 }
0x28de   : > { %v7992_v47 = vmul.f32 0.015625, %v7985_v58  ;;  %v11518_v58 = vld [vmem:[%s18938_s28 + $0x8] ss:$0 sm:$0xff] }
0x28e0   : > { %v7995_v10 = vadd.f32 1e-05, %v7992_v47 }
0x28e1   : > { %v7988_v3 = vpop.xlane.xlu1 %7987 }
0x28e2   : > { %14330 = vrsqrt.f32 %v7995_v10  ;;  %v7993_v59 = vmul.f32 0.015625, %v7988_v3 }
0x28e4   : > { %v7996_v27 = vadd.f32 1e-05, %v7993_v59 }
0x28e5   : > { %v7991_v2 = vpop.xlane.xlu0 %7990  ;;  %v8137_v3 = vpop.permute.xlu1 %8136 }
0x28e6   : > { %14332 = vrsqrt.f32 %v7996_v27  ;;  %v7994_v15 = vmul.f32 0.015625, %v7991_v2 }
0x28e8   : > { %v7997_v1 = vadd.f32 1e-05, %v7994_v15 }
0x28ea   : > { %14334 = vrsqrt.f32 %v7997_v1  ;;  %v11540_v1 = vld [vmem:[%s18887_s12 + $0x8] ss:$0 sm:$0xff] }
0x28ed   : > { %v8142_v9 = vpop.permute.xlu0 %8141 }
0x28ef   : > { %v14331_v28 = vpop.eup %14330 }
0x28f0   : > { %v8001_v0 = vmul.f32 %v14331_v28, %v17860_v25  ;;  %v11556_v25 = vld [vmem:[%s18934_s27 + $0x258] sm:$0xff] }
0x28f2   : > { %v8010_v51 = vmul.f32 %v11507_v14, %v8001_v0 }
0x28f3   : > { %v14333_v52 = vpop.eup %14332 }
0x28f4   : > { %v17953_v43 = vadd.f32 %v11508_v19, %v8010_v51  ;;  %v8002_v55 = vmul.f32 %v14333_v52, %v17865_v24  ;;  %v11553_v24 = vld [vmem:[%s18934_s27 + $0x240] sm:$0xff] }
0x28f6   : > { %v8011_v33 = vmul.f32 %v11507_v14, %v8002_v55  ;;  %13729 = vmatmul.mubr.msk.f32.vlgmr.msra.gmra.mxu0 %vm2199_vm0, %v17953_v43  ;;  %13763 = vmatmul.mubr.msk.f32.vlgmr.msra.gmra.mxu1 %vm2199_vm0, %v17953_v43 }
0x28f7   : > { %v14335_v44 = vpop.eup %14334  ;;  %13800 = vmatpush3.msra.mxu1 %v11560_v61  ;;  %13731 = vmatprep.mubr.msk.f32.mxu0 %vm14429_vm2, %v14428_v21 }
0x28f8   : > { %v17968_v23 = vadd.f32 %v11508_v19, %v8011_v33  ;;  %v8003_v8 = vmul.f32 %v14335_v44, %v17871_v29  ;;  %13801 = vmatprep.subr.mxu1 %v14428_v21  ;;  %13765 = vmatprep.mubr.msk.f32.mxu1 %vm14429_vm2, %v14428_v21  ;;  %v11579_v29 = vld [vmem:[%s18886_s11 + $0x260] sm:$0xff] }
0x28f9   : > { %13802 = vmatpush3.msra.mxu1 %v11559_v62 }
0x28fa   : > { %v8012_v20 = vmul.f32 %v11507_v14, %v8003_v8  ;;  %13803 = vmatprep.subr.mxu1 %v14428_v21  ;;  %13732 = vmatmul.mubr.msk.f32.gmra.mxu0 %vm2199_vm0, %v17968_v23 }
0x28fb   : > { %13766 = vmatmul.mubr.msk.f32.gmra.mxu1 %vm2199_vm0, %v17968_v23  ;;  %13734 = vmatprep.mubr.msk.f32.mxu0 %vm14429_vm2, %v14428_v21 }
0x28fc   : > { %v17987_v41 = vadd.f32 %v11508_v19, %v8012_v20  ;;  %13804 = vmatpush3.msra.mxu1 %v11558_v45  ;;  %13768 = vmatprep.mubr.msk.f32.mxu1 %vm14429_vm2, %v14428_v21 }
0x28fd   : > { %13805 = vmatprep.subr.mxu1 %v14428_v21 }
0x28fe   : > { %13806 = vmatpush3.msra.mxu1 %v11557_v40  ;;  %13735 = vmatmul.mubr.msk.f32.gmra.mxu0 %vm2199_vm0, %v17987_v41 }
0x28ff   : > { %13807 = vmatprep.subr.mxu1 %v14428_v21  ;;  %13737 = vmatprep.subr.msk.mxu0 %vm2199_vm0, %v17987_v41 }
0x2900   : > { %13769 = vmatmul.mubr.msk.f32.gmra.mxu1 %vm2199_vm0, %v17987_v41  ;;  %13738 = vmatpush3.xpose.msk.msra.mxu0 %vm2199_vm0, %v17987_v41 }
0x2901   : > { %13808 = vmatpush3.msra.mxu1 %v11556_v25  ;;  %13739 = vmatprep.subr.msk.mxu0 %vm2199_vm0, %v17968_v23 }
0x2902   : > { %13809 = vmatprep.subr.mxu1 %v14428_v21  ;;  %13815 = vmatprep.mubr.msk.f32.mxu1 %vm14429_vm2, %v14428_v21 }
0x2903   : > { %13810 = vmatpush3.msra.mxu1 %v11555_v12  ;;  %13743 = vmatprep.mubr.msk.f32.mxu0 %vm2199_vm0, %v11522_v49 }
0x2904   : > { %13811 = vmatprep.subr.mxu1 %v14428_v21  ;;  %13740 = vmatpush3.xpose.msk.msra.mxu0 %vm2199_vm0, %v17968_v23 }
0x2905   : > { %13812 = vmatpush3.msra.mxu1 %v11554_v11  ;;  %13741 = vmatprep.subr.msk.mxu0 %vm2199_vm0, %v17953_v43 }
0x2906   : > { %13813 = vmatprep.subr.mxu1 %v14428_v21 }
0x2907   : > { %13814 = vmatpush3.msra.mxu1 %v11553_v24 }
0x2908   : > { %13816 = vmatmul.mubr.msk.f32.vlgmr.msra.gmra.mxu1 %vm2199_vm0, %v17953_v43  ;;  %13833 = vmatprep.subr.mxu1 %v14428_v21 }
0x2909   : > { %13834 = vmatpush3.msra.mxu1 %v11582_v26  ;;  %13742 = vmatpush3.xpose.msk.msra.mxu0 %vm2199_vm0, %v17953_v43 }
0x290a   : > { %13835 = vmatprep.subr.mxu1 %v14428_v21  ;;  %13818 = vmatprep.mubr.msk.f32.mxu1 %vm14429_vm2, %v14428_v21 }
0x290b   : > { %13836 = vmatpush3.msra.mxu1 %v11581_v30  ;;  %13771 = vmatprep.subr.mxu0 %v14428_v21 }
0x290c   : > { %13819 = vmatmul.mubr.msk.f32.gmra.mxu1 %vm2199_vm0, %v17968_v23  ;;  %13837 = vmatprep.subr.mxu1 %v14428_v21 }
0x290d   : > { %13744 = vmatmul.mubr.msk.f32.vlgmr.msra.gmra.mxu0 %vm2199_vm0, %v11523_v39  ;;  %13838 = vmatpush3.msra.mxu1 %v11580_v34 }
0x290e   : > { %13839 = vmatprep.subr.mxu1 %v14428_v21  ;;  %13821 = vmatprep.mubr.msk.f32.mxu1 %vm14429_vm2, %v14428_v21 }
0x290f   : > { %13840 = vmatpush3.msra.mxu1 %v11579_v29  ;;  %13775 = vmatprep.mubr.msk.f32.mxu0 %vm14429_vm2, %v14428_v21 }
0x2910   : > { %13822 = vmatmul.mubr.msk.f32.gmra.mxu1 %vm2199_vm0, %v17987_v41  ;;  %13841 = vmatprep.subr.mxu1 %v14428_v21 }
0x2911   : > { %13842 = vmatpush3.msra.mxu1 %v11578_v31  ;;  %13849 = vmatprep.mubr.msk.f32.mxu1 %vm14429_vm2, %v14428_v21 }
0x2912   : > { %13843 = vmatprep.subr.mxu1 %v14428_v21 }
0x2913   : > { %13844 = vmatpush3.msra.mxu1 %v11577_v13 }
0x2914   : > { %13845 = vmatprep.subr.mxu1 %v14428_v21 }
0x2915   : > { %13846 = vmatpush3.msra.mxu1 %v11576_v38 }
0x2916   : > { %13847 = vmatprep.subr.mxu1 %v14428_v21 }
0x2917   : > { %13848 = vmatpush3.msra.mxu1 %v11575_v60 }
0x2918   : > { %13850 = vmatmul.mubr.msk.f32.vlgmr.msra.gmra.mxu1 %vm2199_vm0, %v17953_v43  ;;  %13886 = vmatprep.subr.mxu1 %v14428_v21 }
0x2919   : > { %13852 = vmatprep.mubr.msk.f32.mxu1 %vm14429_vm2, %v14428_v21 }
0x291c   : > { %13853 = vmatmul.mubr.msk.f32.gmra.mxu1 %vm2199_vm0, %v17968_v23 }
0x291d   : > { %13855 = vmatprep.mubr.msk.f32.mxu1 %vm14429_vm2, %v14428_v21 }
0x2920   : > { %13856 = vmatmul.mubr.msk.f32.gmra.mxu1 %vm2199_vm0, %v17987_v41 }
0x2921   : > { %13890 = vmatprep.mubr.msk.f32.mxu1 %vm14429_vm2, %v14428_v21 }
0x29b6   : > { %v8114_v63 = vpop.f32.mrf.mxu0  ;;  %v8308_v6 = vpop.f32.mrf.mxu1 }
0x29b7   : > { %v8115_v15 = vadd.f32 %v11518_v58, %v8114_v63  ;;  %v8309_v51 = vadd.f32 %v11540_v1, %v8308_v6 }
0x29b8   : > { %v13730_v16 = vpop.f32.mrf.mxu0  ;;  %v13764_v37 = vpop.f32.mrf.mxu1 }
0x29ba   : > { %v8119_v56 = vpop.f32.mrf.mxu0 }
0x29bb   : > { %v8313_v36 = vpop.f32.mrf.mxu1  ;;  %v8120_v19 = vadd.f32 %v11518_v58, %v8119_v56 }
0x29bc   : > { %v13733_v32 = vpop.f32.mrf.mxu0  ;;  %v8314_v0 = vadd.f32 %v11540_v1, %v8313_v36 }
0x29bd   : > { %v13767_v50 = vpop.f32.mrf.mxu1 }
0x29be   : > { %v8124_v42 = vpop.f32.mrf.mxu0 }
0x29bf   : > { %v8125_v55 = vadd.f32 %v11518_v58, %v8124_v42 }
0x29c0   : > { %v8318_v48 = vpop.f32.mrf.mxu1  ;;  %v13736_v17 = vpop.f32.mrf.mxu0 }
0x29c1   : > { %v8319_v28 = vadd.f32 %v11540_v1, %v8318_v48  ;;  %v11568_v17 = vld [vmem:[%s18885_s10 + $0x90] sm:$0xff]  ;;  %v11567_v1 = vld [vmem:[%s18935_s26 + $0x98] sm:$0xff] }
0x29c2   : > { %v13770_v54 = vpop.f32.mrf.mxu1 }
0x29c3   : > { %v11569_v54 = vld [vmem:[%s18885_s10 + $0x98] sm:$0xff] }
0x29c8   : > { %v18094_v4 = vpop.f32.mrf.mxu1 }
0x29ca   : > { %v13817_v5 = vpop.f32.mrf.mxu1 }
0x29cc   : > { %v18096_v7 = vpop.f32.mrf.mxu1 }
0x29cd   : > { %v13745_v46 = vpop.f32.mrf.mxu0 }
0x29ce   : > { %v8222_v47 = vadd.f32 %v13745_v46, %v8142_v9  ;;  %v13820_v10 = vpop.f32.mrf.mxu1 }
0x29cf   : > { %v8216_v59 = vpop.f32.mrf.mxu0 }
0x29d0   : > { %v8217_v27 = vadd.f32 %v8216_v59, %v8137_v3  ;;  %13772 = vmatpush3.msra.mxu0 %v8222_v47  ;;  %v18101_v2 = vpop.f32.mrf.mxu1 }
0x29d1   : > { %13773 = vmatprep.subr.mxu0 %v14428_v21 }
0x29d2   : > { %13774 = vmatpush3.msra.mxu0 %v8217_v27  ;;  %v13823_v14 = vpop.f32.mrf.mxu1 }
0x29d3   : > { %13776 = vmatmul.mubr.msk.f32.vlgmr.msra.gmra.mxu0 %vm2612_vm3, %v8115_v15  ;;  %13784 = vmatprep.subr.mxu0 %v14428_v21  ;;  %v11566_v15 = vld [vmem:[%s18935_s26 + $0x90] sm:$0xff] }
0x29d4   : > { %13785 = vmatpush3.msk.msra.mxu0 %vm2749_vm4, %v8319_v28  ;;  %13778 = vmatprep.mubr.msk.f32.mxu0 %vm14429_vm2, %v14428_v21 }
0x29d5   : > { %13786 = vmatprep.subr.mxu0 %v14428_v21 }
0x29d6   : > { %13787 = vmatpush3.msra.mxu0 %v8314_v0 }
0x29d7   : > { %13779 = vmatmul.mubr.msk.f32.gmra.mxu0 %vm2612_vm3, %v8120_v19  ;;  %13788 = vmatprep.subr.mxu0 %v14428_v21 }
0x29d8   : > { %13789 = vmatpush3.msra.mxu0 %v8309_v51  ;;  %v18115_v52 = vpop.f32.mrf.mxu1  ;;  %13781 = vmatprep.mubr.msk.f32.mxu0 %vm14429_vm2, %v14428_v21 }
0x29d9   : > { %13824 = vmatprep.subr.msk.mxu0 %vm2199_vm0, %v17987_v41 }
0x29da   : > { %v13851_v61 = vpop.f32.mrf.mxu1 }
0x29db   : > { %13782 = vmatmul.mubr.msk.f32.gmra.mxu0 %vm2612_vm3, %v8125_v55 }
0x29dc   : > { %v18122_v33 = vpop.f32.mrf.mxu1  ;;  %13790 = vmatprep.mubr.msk.f32.mxu0 %vm14429_vm2, %v14428_v21 }
0x29de   : > { %v13854_v62 = vpop.f32.mrf.mxu1 }
0x29e0   : > { %v18126_v44 = vpop.f32.mrf.mxu1 }
0x29e2   : > { %v13857_v8 = vpop.f32.mrf.mxu1 }
0x29e3   : > { %v11562_v8 = vld [vmem:[%s18938_s28 + $0x9] ss:$0 sm:$0xff] }
0x2a93   : > { %v8397_v45 = vpop.f32.mrf.mxu0 }
0x2a94   : > { %v8411_v20 = vmul.f32 0.25, %v8397_v45 }
0x2a95   : > { %v13777_v40 = vpop.f32.mrf.mxu0 }
0x2a96   : > { %v8414_v25 = vsel %vm2705_vm5, %v8411_v20, -inf }
0x2a97   : > { %8415 = vmax.xlane.f32.xlu1 %v8414_v25  ;;  %v8402_v12 = vpop.f32.mrf.mxu0 }
0x2a98   : > { %v8412_v49 = vmul.f32 0.25, %v8402_v12  ;;  %v8626_v12 = vadd.f32 %v11562_v8, %v18094_v4  ;;  %v8631_v4 = vadd.f32 %v11562_v8, %v18096_v7 }
0x2a99   : > { %v13780_v11 = vpop.f32.mrf.mxu0 }
0x2a9a   : > { %v8417_v24 = vsel %vm2705_vm5, %v8412_v49, -inf }
0x2a9b   : > { %8418 = vmax.xlane.f32.xlu0 %v8417_v24  ;;  %v8407_v26 = vpop.f32.mrf.mxu0 }
0x2a9c   : > { %v8413_v30 = vmul.f32 0.25, %v8407_v26 }
0x2a9d   : > { %v13783_v39 = vpop.f32.mrf.mxu0 }
0x2a9e   : > { %v8420_v34 = vsel %vm2712_vm6, %v8413_v30, -inf }
0x2a9f   : > { %8421 = vmax.xlane.f32.xlu0 %v8420_v34 }
0x2b20   : > { %v8416_v29 = vpop.xlane.xlu1 %8415 }
0x2b21   : > { %v8423_v31 = vsub.f32 %v8411_v20, %v8416_v29 }
0x2b23   : > { %v8426_v13 = vmul.f32 1.442695, %v8423_v31 }
0x2b24   : > { %v8419_v38 = vpop.xlane.xlu0 %8418 }
0x2b25   : > { %14336 = vpow2.f32 %v8426_v13  ;;  %v8424_v60 = vsub.f32 %v8412_v49, %v8419_v38  ;;  %v11584_v49 = vld [vmem:[%s18887_s12 + $0x9] ss:$0 sm:$0xff] }
0x2b26   : > { %v8830_v11 = vadd.f32 %v11584_v49, %v18126_v44  ;;  %v8825_v24 = vadd.f32 %v11584_v49, %v18122_v33  ;;  %v8820_v26 = vadd.f32 %v11584_v49, %v18115_v52  ;;  %v8636_v33 = vadd.f32 %v11562_v8, %v18101_v2 }
0x2b27   : > { %v8428_v63 = vmul.f32 1.442695, %v8424_v60 }
0x2b28   : > { %v8422_v6 = vpop.xlane.xlu0 %8421 }
0x2b29   : > { %14338 = vpow2.f32 %v8428_v63  ;;  %v8425_v16 = vsub.f32 %v8413_v30, %v8422_v6 }
0x2b2b   : > { %v8430_v37 = vmul.f32 1.442695, %v8425_v16 }
0x2b2d   : > { %14340 = vpow2.f32 %v8430_v37 }
0x2b32   : > { %v14337_v56 = vpop.eup %14336 }
0x2b33   : > { %v8432_v36 = vsel %vm2705_vm5, %v14337_v56, 0.0 }
0x2b34   : > { %8433 = vadd.xlane.f32.xlu1 %v8432_v36 }
0x2b36   : > { %v14339_v32 = vpop.eup %14338 }
0x2b37   : > { %v8435_v50 = vsel %vm2705_vm5, %v14339_v32, 0.0 }
0x2b38   : > { %8436 = vadd.xlane.f32.xlu0 %v8435_v50 }
0x2b3a   : > { %v14341_v42 = vpop.eup %14340 }
0x2b3b   : > { %v8438_v48 = vsel %vm2712_vm6, %v14341_v42, 0.0 }
0x2b3c   : > { %8439 = vadd.xlane.f32.xlu1 %v8438_v48 }
0x2b4d   : > { %8647 = vperm.xlu1 %14155, %v11568_v17  }
0x2b4e   : > { %8652 = vperm.xlu0 %14154, %v11569_v54  }
0x2bbd   : > { %v8434_v5 = vpop.xlane.xlu1 %8433 }
0x2bbe   : > { %14342 = vrcp.f32 %v8434_v5 }
0x2bc1   : > { %v8437_v9 = vpop.xlane.xlu0 %8436 }
0x2bc2   : > { %14344 = vrcp.f32 %v8437_v9 }
0x2bc5   : > { %v8440_v46 = vpop.xlane.xlu1 %8439 }
0x2bc6   : > { %14346 = vrcp.f32 %v8440_v46 }
0x2bc9   : > { %v8653_v61 = vpop.permute.xlu0 %8652  ;;  %v8648_v20 = vpop.permute.xlu1 %8647 }
0x2bcb   : > { %v14343_v58 = vpop.eup %14342 }
0x2bcc   : > { %v8444_v47 = vmul.f32 %v14343_v58, %v14337_v56  ;;  %v11618_v58 = vld [vmem:[%s18885_s10 + $0xa0] sm:$0xff] }
0x2bce   : > { %13791 = vmatmul.mubr.msk.f32.vlgmr.msra.gmra.mxu0 %vm2705_vm5, %v8444_v47  ;;  %v11619_v47 = vld [vmem:[%s18885_s10 + $0xa8] sm:$0xff] }
0x2bcf   : > { %v14345_v10 = vpop.eup %14344  ;;  %13825 = vmatpush3.xpose.msk.msra.mxu0 %vm2199_vm0, %v17987_v41  ;;  %13793 = vmatprep.mubr.msk.f32.mxu0 %vm14429_vm2, %v14428_v21 }
0x2bd0   : > { %13826 = vmatprep.subr.msk.mxu0 %vm2199_vm0, %v17968_v23  ;;  %v8445_v3 = vmul.f32 %v14345_v10, %v14339_v32  ;;  %v11596_v10 = vld [vmem:[%s18888_s13 + $0x98] sm:$0xff] }
0x2bd1   : > { %13887 = vmatpush3.msra.mxu1 %v11596_v10 }
0x2bd2   : > { %13794 = vmatmul.mubr.msk.f32.gmra.mxu0 %vm2705_vm5, %v8445_v3  ;;  %v11595_v3 = vld [vmem:[%s18888_s13 + $0x90] sm:$0xff]  ;;  %13888 = vmatprep.subr.mxu1 %v14428_v21 }
0x2bd3   : > { %v14347_v59 = vpop.eup %14346  ;;  %13827 = vmatpush3.xpose.msk.msra.mxu0 %vm2199_vm0, %v17968_v23  ;;  %13796 = vmatprep.mubr.msk.f32.mxu0 %vm14429_vm2, %v14428_v21 }
0x2bd4   : > { %13828 = vmatprep.subr.msk.mxu0 %vm2199_vm0, %v17953_v43  ;;  %v8446_v27 = vmul.f32 %v14347_v59, %v14341_v42  ;;  %13889 = vmatpush3.msra.mxu1 %v11595_v3 }
0x2bd5   : > { %13912 = vmatprep.subr.mxu1 %v14428_v21 }
0x2bd6   : > { %13797 = vmatmul.mubr.msk.f32.gmra.mxu0 %vm2705_vm5, %v8446_v27 }
0x2bd7   : > { %13829 = vmatpush3.xpose.msk.msra.mxu0 %vm2199_vm0, %v17953_v43  ;;  %13830 = vmatprep.mubr.msk.f32.mxu0 %vm2199_vm0, %v11566_v15 }
0x2bd8   : > { %13858 = vmatprep.subr.mxu0 %v14428_v21 }
0x2bda   : > { %13831 = vmatmul.mubr.msk.f32.vlgmr.msra.gmra.mxu0 %vm2199_vm0, %v11567_v1 }
0x2bdb   : > { %13862 = vmatprep.mubr.msk.f32.mxu0 %vm14429_vm2, %v14428_v21 }
0x2c8e   : > { %v18168_v28 = vpop.f32.mrf.mxu0 }
0x2c90   : > { %v13792_v14 = vpop.f32.mrf.mxu0 }
0x2c92   : > { %v18170_v0 = vpop.f32.mrf.mxu0 }
0x2c94   : > { %v13795_v19 = vpop.f32.mrf.mxu0 }
0x2c95   : > { %v11552_v19 = vld [vmem:[%s18888_s13 + $0x88] sm:$0xff] }
0x2c96   : > { %v18172_v51 = vpop.f32.mrf.mxu0 }
0x2c98   : > { %v13798_v55 = vpop.f32.mrf.mxu0 }
0x2c99   : > { %v11551_v55 = vld [vmem:[%s18888_s13 + $0x80] sm:$0xff] }
0x2c9a   : > { %v13832_v62 = vpop.f32.mrf.mxu0 }
0x2c9b   : > { %v8733_v45 = vadd.f32 %v13832_v62, %v8653_v61 }
0x2c9c   : > { %v8727_v40 = vpop.f32.mrf.mxu0 }
0x2c9d   : > { %v8728_v25 = vadd.f32 %v8727_v40, %v8648_v20  ;;  %13859 = vmatpush3.msra.mxu0 %v8733_v45  ;;  %v11609_v40 = vld [vmem:[%s18934_s27 + $0x2b0] sm:$0xff] }
0x2c9e   : > { %13860 = vmatprep.subr.mxu0 %v14428_v21 }
0x2c9f   : > { %13861 = vmatpush3.msra.mxu0 %v8728_v25 }
0x2ca0   : > { %13863 = vmatmul.mubr.msk.f32.vlgmr.msra.gmra.mxu0 %vm2612_vm3, %v8626_v12  ;;  %13871 = vmatprep.subr.mxu0 %v14428_v21  ;;  %v11608_v12 = vld [vmem:[%s18934_s27 + $0x2a8] sm:$0xff] }
0x2ca1   : > { %13872 = vmatpush3.msk.msra.mxu0 %vm2749_vm4, %v8830_v11  ;;  %13865 = vmatprep.mubr.msk.f32.mxu0 %vm14429_vm2, %v14428_v21  ;;  %v11607_v11 = vld [vmem:[%s18934_s27 + $0x2a0] sm:$0xff] }
0x2ca2   : > { %13873 = vmatprep.subr.mxu0 %v14428_v21 }
0x2ca3   : > { %13874 = vmatpush3.msra.mxu0 %v8825_v24 }
0x2ca4   : > { %13866 = vmatmul.mubr.msk.f32.gmra.mxu0 %vm2612_vm3, %v8631_v4  ;;  %13875 = vmatprep.subr.mxu0 %v14428_v21  ;;  %v11606_v4 = vld [vmem:[%s18934_s27 + $0x298] sm:$0xff] }
0x2ca5   : > { %13876 = vmatpush3.msra.mxu0 %v8820_v26  ;;  %13868 = vmatprep.mubr.msk.f32.mxu0 %vm14429_vm2, %v14428_v21 }
0x2ca6   : > { %13899 = vmatprep.subr.mxu0 %v14428_v21 }
0x2ca8   : > { %13869 = vmatmul.mubr.msk.f32.gmra.mxu0 %vm2612_vm3, %v8636_v33  ;;  %v11605_v33 = vld [vmem:[%s18934_s27 + $0x290] sm:$0xff] }
0x2ca9   : > { %13877 = vmatprep.mubr.msk.f32.mxu0 %vm14429_vm2, %v14428_v21 }
0x2d60   : > { %v8908_v7 = vpop.f32.mrf.mxu0 }
0x2d61   : > { %v8922_v52 = vmul.f32 0.25, %v8908_v7 }
0x2d62   : > { %v13864_v44 = vpop.f32.mrf.mxu0 }
0x2d63   : > { %v8925_v30 = vsel %vm2705_vm5, %v8922_v52, -inf }
0x2d64   : > { %8926 = vmax.xlane.f32.xlu1 %v8925_v30  ;;  %v8913_v39 = vpop.f32.mrf.mxu0  ;;  %v11603_v30 = vld [vmem:[%s18934_s27 + $0x280] sm:$0xff] }
0x2d65   : > { %v8923_v34 = vmul.f32 0.25, %v8913_v39 }
0x2d66   : > { %v13867_v29 = vpop.f32.mrf.mxu0 }
0x2d67   : > { %v8928_v31 = vsel %vm2705_vm5, %v8923_v34, -inf }
0x2d68   : > { %8929 = vmax.xlane.f32.xlu0 %v8928_v31  ;;  %v8918_v2 = vpop.f32.mrf.mxu0  ;;  %v11631_v31 = vld [vmem:[%s18886_s11 + $0x2b0] sm:$0xff] }
0x2d69   : > { %v8924_v13 = vmul.f32 0.25, %v8918_v2 }
0x2d6a   : > { %v13870_v38 = vpop.f32.mrf.mxu0 }
0x2d6b   : > { %v8931_v60 = vsel %vm2712_vm6, %v8924_v13, -inf }
0x2d6c   : > { %8932 = vmax.xlane.f32.xlu0 %v8931_v60  ;;  %v11629_v60 = vld [vmem:[%s18886_s11 + $0x2a0] sm:$0xff] }
0x2ded   : > { %v8927_v63 = vpop.xlane.xlu1 %8926 }
0x2dee   : > { %v8934_v6 = vsub.f32 %v8922_v52, %v8927_v63  ;;  %v11604_v52 = vld [vmem:[%s18934_s27 + $0x288] sm:$0xff] }
0x2df0   : > { %v8937_v16 = vmul.f32 1.442695, %v8934_v6  ;;  %v11628_v6 = vld [vmem:[%s18886_s11 + $0x298] sm:$0xff] }
0x2df1   : > { %v8930_v37 = vpop.xlane.xlu0 %8929 }
0x2df2   : > { %14348 = vpow2.f32 %v8937_v16  ;;  %v8935_v56 = vsub.f32 %v8923_v34, %v8930_v37  ;;  %v11632_v34 = vld [vmem:[%s18886_s11 + $0x2b8] sm:$0xff] }
0x2df4   : > { %v8939_v36 = vmul.f32 1.442695, %v8935_v56 }
0x2df5   : > { %v8933_v32 = vpop.xlane.xlu0 %8932 }
0x2df6   : > { %14350 = vpow2.f32 %v8939_v36  ;;  %v8936_v50 = vsub.f32 %v8924_v13, %v8933_v32  ;;  %v11630_v13 = vld [vmem:[%s18886_s11 + $0x2a8] sm:$0xff]  ;;  %v11627_v36 = vld [vmem:[%s18886_s11 + $0x290] sm:$0xff] }
0x2df8   : > { %v8941_v42 = vmul.f32 1.442695, %v8936_v50 }
0x2dfa   : > { %14352 = vpow2.f32 %v8941_v42 }
0x2dff   : > { %v14349_v48 = vpop.eup %14348 }
0x2e00   : > { %v8943_v17 = vsel %vm2705_vm5, %v14349_v48, 0.0 }
0x2e01   : > { %8944 = vadd.xlane.f32.xlu1 %v8943_v17  ;;  %v11625_v17 = vld [vmem:[%s18886_s11 + $0x280] sm:$0xff] }
0x2e03   : > { %v14351_v54 = vpop.eup %14350 }
0x2e04   : > { %v8946_v5 = vsel %vm2705_vm5, %v14351_v54, 0.0 }
0x2e05   : > { %8947 = vadd.xlane.f32.xlu0 %v8946_v5  ;;  %v11645_v5 = vld [vmem:[%s18888_s13 + $0xa0] sm:$0xff] }
0x2e07   : > { %v14353_v9 = vpop.eup %14352 }
0x2e08   : > { %v8949_v46 = vsel %vm2712_vm6, %v14353_v9, 0.0 }
0x2e09   : > { %8950 = vadd.xlane.f32.xlu1 %v8949_v46 }
0x2e1a   : > { %9336 = vperm.xlu1 %14155, %v11618_v58  }
0x2e1b   : > { %9341 = vperm.xlu0 %14154, %v11619_v47  }
0x2e8a   : > { %v8945_v59 = vpop.xlane.xlu1 %8944 }
0x2e8b   : > { %14354 = vrcp.f32 %v8945_v59  ;;  %v11612_v59 = vld [vmem:[%s18938_s28 + $0xa] ss:$0 sm:$0xff] }
0x2e8e   : > { %v8948_v27 = vpop.xlane.xlu0 %8947 }
0x2e8f   : > { %14356 = vrcp.f32 %v8948_v27 }
0x2e92   : > { %v8951_v15 = vpop.xlane.xlu1 %8950 }
0x2e93   : > { %14358 = vrcp.f32 %v8951_v15 }
0x2e96   : > { %v9342_v16 = vpop.permute.xlu0 %9341  ;;  %v9337_v32 = vpop.permute.xlu1 %9336 }
0x2e98   : > { %v14355_v1 = vpop.eup %14354 }
0x2e99   : > { %v8955_v14 = vmul.f32 %v14355_v1, %v14349_v48  ;;  %v11626_v48 = vld [vmem:[%s18886_s11 + $0x288] sm:$0xff] }
0x2e9b   : > { %13878 = vmatmul.mubr.msk.f32.vlgmr.msra.gmra.mxu0 %vm2705_vm5, %v8955_v14 }
0x2e9c   : > { %v14357_v61 = vpop.eup %14356  ;;  %13900 = vmatpush3.msra.mxu0 %v11552_v19  ;;  %13880 = vmatprep.mubr.msk.f32.mxu0 %vm14429_vm2, %v14428_v21 }
0x2e9d   : > { %13901 = vmatprep.subr.mxu0 %v14428_v21  ;;  %v8956_v62 = vmul.f32 %v14357_v61, %v14351_v54  ;;  %v11646_v54 = vld [vmem:[%s18888_s13 + $0xa8] sm:$0xff] }
0x2e9e   : > { %13902 = vmatpush3.msra.mxu0 %v11551_v55 }
0x2e9f   : > { %13937 = vmatprep.subr.msk.mxu0 %vm2199_vm0, %v17987_v41  ;;  %13881 = vmatmul.mubr.msk.f32.gmra.mxu0 %vm2705_vm5, %v8956_v62 }
0x2ea0   : > { %v14359_v8 = vpop.eup %14358  ;;  %13883 = vmatprep.mubr.msk.f32.mxu0 %vm14429_vm2, %v14428_v21 }
0x2ea1   : > { %v8957_v45 = vmul.f32 %v14359_v8, %v14353_v9 }
0x2ea3   : > { %13884 = vmatmul.mubr.msk.f32.gmra.mxu0 %vm2705_vm5, %v8957_v45 }
0x2ea4   : > { %13903 = vmatprep.mubr.msk.f32.mxu0 %vm14429_vm2, %v14428_v21 }
0x2ea7   : > { %13904 = vmatmul.mubr.msk.f32.vlgmr.msra.gmra.mxu0 %vm2612_vm3, %v18168_v28  ;;  %v11616_v28 = vld [vmem:[%s18935_s26 + $0xa0] sm:$0xff] }
0x2ea8   : > { %13938 = vmatpush3.xpose.msk.msra.mxu0 %vm2199_vm0, %v17987_v41  ;;  %13906 = vmatprep.mubr.msk.f32.mxu0 %vm14429_vm2, %v14428_v21 }
0x2ea9   : > { %13939 = vmatprep.subr.msk.mxu0 %vm2199_vm0, %v17968_v23 }
0x2eab   : > { %13907 = vmatmul.mubr.msk.f32.gmra.mxu0 %vm2612_vm3, %v18170_v0  ;;  %v11617_v0 = vld [vmem:[%s18935_s26 + $0xa8] sm:$0xff] }
0x2eac   : > { %13940 = vmatpush3.xpose.msk.msra.mxu0 %vm2199_vm0, %v17968_v23  ;;  %13909 = vmatprep.mubr.msk.f32.mxu0 %vm14429_vm2, %v14428_v21 }
0x2ead   : > { %13941 = vmatprep.subr.msk.mxu0 %vm2199_vm0, %v17953_v43 }
0x2eaf   : > { %13910 = vmatmul.mubr.msk.f32.gmra.mxu0 %vm2612_vm3, %v18172_v51  ;;  %v11610_v51 = vld [vmem:[%s18934_s27 + $0x2b8] sm:$0xff] }
0x2eb0   : > { %13942 = vmatpush3.xpose.msk.msra.mxu0 %vm2199_vm0, %v17953_v43  ;;  %13943 = vmatprep.mubr.msk.f32.mxu0 %vm2199_vm0, %v11616_v28 }
0x2eb1   : > { %13971 = vmatprep.subr.mxu0 %v14428_v21 }
0x2eb3   : > { %13944 = vmatmul.mubr.msk.f32.vlgmr.msra.gmra.mxu0 %vm2199_vm0, %v11617_v0 }
0x2eb4   : > { %13975 = vmatprep.mubr.msk.f32.mxu0 %vm14429_vm2, %v14428_v21 }
0x2f5b   : > { %v9036_v20 = vpop.f32.mrf.mxu0 }
0x2f5c   : > { %13891 = vmatmul.mubr.msk.f32.vlgmr.msra.gmra.mxu1 %vm2612_vm3, %v9036_v20  ;;  %v11634_v20 = vld [vmem:[%s18887_s12 + $0xa] ss:$0 sm:$0xff] }
0x2f5d   : > { %13913 = vmatpush3.msra.mxu1 %v11610_v51  ;;  %v13879_v25 = vpop.f32.mrf.mxu0  ;;  %13893 = vmatprep.mubr.msk.f32.mxu1 %vm14429_vm2, %v14428_v21 }
0x2f5e   : > { %13914 = vmatprep.subr.mxu1 %v14428_v21 }
0x2f5f   : > { %13915 = vmatpush3.msra.mxu1 %v11609_v40  ;;  %v9041_v49 = vpop.f32.mrf.mxu0 }
0x2f60   : > { %13916 = vmatprep.subr.mxu1 %v14428_v21  ;;  %13894 = vmatmul.mubr.msk.f32.gmra.mxu1 %vm2612_vm3, %v9041_v49 }
0x2f61   : > { %13917 = vmatpush3.msra.mxu1 %v11608_v12  ;;  %v13882_v24 = vpop.f32.mrf.mxu0  ;;  %13896 = vmatprep.mubr.msk.f32.mxu1 %vm14429_vm2, %v14428_v21 }
0x2f62   : > { %13918 = vmatprep.subr.mxu1 %v14428_v21 }
0x2f63   : > { %13919 = vmatpush3.msra.mxu1 %v11607_v11  ;;  %v9046_v26 = vpop.f32.mrf.mxu0 }
0x2f64   : > { %13920 = vmatprep.subr.mxu1 %v14428_v21  ;;  %13897 = vmatmul.mubr.msk.f32.gmra.mxu1 %vm2612_vm3, %v9046_v26 }
0x2f65   : > { %13921 = vmatpush3.msra.mxu1 %v11606_v4  ;;  %v13885_v7 = vpop.f32.mrf.mxu0  ;;  %13928 = vmatprep.mubr.msk.f32.mxu1 %vm14429_vm2, %v14428_v21 }
0x2f66   : > { %13922 = vmatprep.subr.mxu1 %v14428_v21 }
0x2f67   : > { %13923 = vmatpush3.msra.mxu1 %v11605_v33  ;;  %v18305_v44 = vpop.f32.mrf.mxu0 }
0x2f68   : > { %13924 = vmatprep.subr.mxu1 %v14428_v21 }
0x2f69   : > { %13925 = vmatpush3.msra.mxu1 %v11604_v52  ;;  %v13905_v39 = vpop.f32.mrf.mxu0 }
0x2f6a   : > { %13926 = vmatprep.subr.mxu1 %v14428_v21 }
0x2f6b   : > { %13927 = vmatpush3.msra.mxu1 %v11603_v30  ;;  %v18315_v29 = vpop.f32.mrf.mxu0 }
0x2f6c   : > { %13929 = vmatmul.mubr.msk.f32.vlgmr.msra.gmra.mxu1 %vm2199_vm0, %v17953_v43  ;;  %13946 = vmatprep.subr.mxu1 %v14428_v21 }
0x2f6d   : > { %13947 = vmatpush3.msra.mxu1 %v11632_v34  ;;  %v13908_v2 = vpop.f32.mrf.mxu0  ;;  %13931 = vmatprep.mubr.msk.f32.mxu1 %vm14429_vm2, %v14428_v21 }
0x2f6e   : > { %13948 = vmatprep.subr.mxu1 %v14428_v21 }
0x2f6f   : > { %13949 = vmatpush3.msra.mxu1 %v11631_v31  ;;  %v18329_v38 = vpop.f32.mrf.mxu0 }
0x2f70   : > { %13932 = vmatmul.mubr.msk.f32.gmra.mxu1 %vm2199_vm0, %v17968_v23  ;;  %13950 = vmatprep.subr.mxu1 %v14428_v21 }
0x2f71   : > { %13951 = vmatpush3.msra.mxu1 %v11630_v13  ;;  %v13911_v63 = vpop.f32.mrf.mxu0  ;;  %13934 = vmatprep.mubr.msk.f32.mxu1 %vm14429_vm2, %v14428_v21 }
0x2f72   : > { %13952 = vmatprep.subr.mxu1 %v14428_v21 }
0x2f73   : > { %13953 = vmatpush3.msra.mxu1 %v11629_v60  ;;  %v13945_v37 = vpop.f32.mrf.mxu0 }
0x2f74   : > { %13935 = vmatmul.mubr.msk.f32.gmra.mxu1 %vm2199_vm0, %v17987_v41  ;;  %v9422_v56 = vadd.f32 %v13945_v37, %v9342_v16  ;;  %13954 = vmatprep.subr.mxu1 %v14428_v21 }
0x2f75   : > { %13955 = vmatpush3.msra.mxu1 %v11628_v6  ;;  %v9416_v50 = vpop.f32.mrf.mxu0  ;;  %13962 = vmatprep.mubr.msk.f32.mxu1 %vm14429_vm2, %v14428_v21 }
0x2f76   : > { %v9417_v42 = vadd.f32 %v9416_v50, %v9337_v32  ;;  %13956 = vmatprep.subr.mxu1 %v14428_v21  ;;  %13972 = vmatpush3.msra.mxu0 %v9422_v56 }
0x2f77   : > { %13957 = vmatpush3.msra.mxu1 %v11627_v36  ;;  %13973 = vmatprep.subr.mxu0 %v14428_v21 }
0x2f78   : > { %13958 = vmatprep.subr.mxu1 %v14428_v21  ;;  %13974 = vmatpush3.msra.mxu0 %v9417_v42 }
0x2f79   : > { %13959 = vmatpush3.msra.mxu1 %v11626_v48  ;;  %13984 = vmatprep.subr.mxu0 %v14428_v21 }
0x2f7a   : > { %13960 = vmatprep.subr.mxu1 %v14428_v21 }
0x2f7b   : > { %13961 = vmatpush3.msra.mxu1 %v11625_v17 }
0x2f7c   : > { %13963 = vmatmul.mubr.msk.f32.vlgmr.msra.gmra.mxu1 %vm2199_vm0, %v17953_v43  ;;  %13999 = vmatprep.subr.mxu1 %v14428_v21 }
0x2f7d   : > { %14000 = vmatpush3.msra.mxu1 %v11646_v54  ;;  %13965 = vmatprep.mubr.msk.f32.mxu1 %vm14429_vm2, %v14428_v21 }
0x2f7e   : > { %14001 = vmatprep.subr.mxu1 %v14428_v21 }
0x2f7f   : > { %14002 = vmatpush3.msra.mxu1 %v11645_v5 }
0x2f80   : > { %13966 = vmatmul.mubr.msk.f32.gmra.mxu1 %vm2199_vm0, %v17968_v23  ;;  %14037 = vmatprep.subr.msk.mxu1 %vm2199_vm0, %v17987_v41 }
0x2f81   : > { %13968 = vmatprep.mubr.msk.f32.mxu1 %vm14429_vm2, %v14428_v21 }
0x2f84   : > { %13969 = vmatmul.mubr.msk.f32.gmra.mxu1 %vm2199_vm0, %v17987_v41 }
0x2f85   : > { %14003 = vmatprep.mubr.msk.f32.mxu1 %vm14429_vm2, %v14428_v21 }
0x301c   : > { %v18384_v9 = vpop.f32.mrf.mxu1 }
0x301e   : > { %v13892_v46 = vpop.f32.mrf.mxu1 }
0x3020   : > { %v18386_v58 = vpop.f32.mrf.mxu1 }
0x3022   : > { %v13895_v47 = vpop.f32.mrf.mxu1 }
0x3023   : > { %v11665_v47 = vld [vmem:[%s18885_s10 + $0xb0] sm:$0xff] }
0x3024   : > { %v18388_v10 = vpop.f32.mrf.mxu1 }
0x3026   : > { %v13898_v3 = vpop.f32.mrf.mxu1 }
0x3027   : > { %v11666_v3 = vld [vmem:[%s18885_s10 + $0xb8] sm:$0xff] }
0x302c   : > { %v9314_v27 = vpop.f32.mrf.mxu1 }
0x302d   : > { %v9315_v15 = vadd.f32 %v11612_v59, %v9314_v27 }
0x302e   : > { %v13930_v1 = vpop.f32.mrf.mxu1 }
0x302f   : > { %13976 = vmatmul.mubr.msk.f32.vlgmr.msra.gmra.mxu0 %vm2612_vm3, %v9315_v15 }
0x3030   : > { %v9319_v14 = vpop.f32.mrf.mxu1  ;;  %13978 = vmatprep.mubr.msk.f32.mxu0 %vm14429_vm2, %v14428_v21 }
0x3031   : > { %v9320_v19 = vadd.f32 %v11612_v59, %v9319_v14 }
0x3032   : > { %v13933_v55 = vpop.f32.mrf.mxu1 }
0x3033   : > { %13979 = vmatmul.mubr.msk.f32.gmra.mxu0 %vm2612_vm3, %v9320_v19  ;;  %v11657_v19 = vld [vmem:[%s18934_s27 + $0x2f8] sm:$0xff]  ;;  %v11656_v55 = vld [vmem:[%s18934_s27 + $0x2f0] sm:$0xff] }
0x3034   : > { %v9324_v61 = vpop.f32.mrf.mxu1  ;;  %13981 = vmatprep.mubr.msk.f32.mxu0 %vm14429_vm2, %v14428_v21 }
0x3035   : > { %v9325_v62 = vadd.f32 %v11612_v59, %v9324_v61 }
0x3036   : > { %v13936_v8 = vpop.f32.mrf.mxu1 }
0x3037   : > { %13982 = vmatmul.mubr.msk.f32.gmra.mxu0 %vm2612_vm3, %v9325_v62  ;;  %v11655_v8 = vld [vmem:[%s18934_s27 + $0x2e8] sm:$0xff] }
0x3038   : > { %13990 = vmatprep.mubr.msk.f32.mxu0 %vm14429_vm2, %v14428_v21 }
0x303c   : > { %v9508_v45 = vpop.f32.mrf.mxu1 }
0x303d   : > { %v9509_v11 = vadd.f32 %v11634_v20, %v9508_v45  ;;  %v11654_v45 = vld [vmem:[%s18934_s27 + $0x2e0] sm:$0xff] }
0x303e   : > { %v13964_v28 = vpop.f32.mrf.mxu1 }
0x3040   : > { %v9513_v0 = vpop.f32.mrf.mxu1 }
0x3041   : > { %v9514_v49 = vadd.f32 %v11634_v20, %v9513_v0 }
0x3042   : > { %v13967_v51 = vpop.f32.mrf.mxu1 }
0x3043   : > { %v11653_v51 = vld [vmem:[%s18934_s27 + $0x2d8] sm:$0xff] }
0x3044   : > { %v9518_v40 = vpop.f32.mrf.mxu1 }
0x3045   : > { %v9519_v25 = vadd.f32 %v11634_v20, %v9518_v40  ;;  %v11652_v20 = vld [vmem:[%s18934_s27 + $0x2d0] sm:$0xff]  ;;  %v11651_v40 = vld [vmem:[%s18934_s27 + $0x2c8] sm:$0xff] }
0x3046   : > { %v13970_v12 = vpop.f32.mrf.mxu1 }
0x3047   : > { %13985 = vmatpush3.msk.msra.mxu0 %vm2749_vm4, %v9519_v25  ;;  %v11650_v25 = vld [vmem:[%s18934_s27 + $0x2c0] sm:$0xff]  ;;  %v11679_v12 = vld [vmem:[%s18886_s11 + $0x2f8] sm:$0xff] }
0x3048   : > { %13986 = vmatprep.subr.mxu0 %v14428_v21 }
0x3049   : > { %13987 = vmatpush3.msra.mxu0 %v9514_v49  ;;  %v11678_v49 = vld [vmem:[%s18886_s11 + $0x2f0] sm:$0xff] }
0x304a   : > { %13988 = vmatprep.subr.mxu0 %v14428_v21 }
0x304b   : > { %13989 = vmatpush3.msra.mxu0 %v9509_v11  ;;  %v11677_v11 = vld [vmem:[%s18886_s11 + $0x2e8] sm:$0xff] }
0x304c   : > { %14012 = vmatprep.subr.mxu0 %v14428_v21 }
0x30ef   : > { %v9597_v24 = vpop.f32.mrf.mxu0 }
0x30f0   : > { %v9611_v4 = vmul.f32 0.25, %v9597_v24  ;;  %v11676_v24 = vld [vmem:[%s18886_s11 + $0x2e0] sm:$0xff] }
0x30f1   : > { %v13977_v26 = vpop.f32.mrf.mxu0 }
0x30f2   : > { %v9614_v33 = vsel %vm2705_vm5, %v9611_v4, -inf  ;;  %v11674_v26 = vld [vmem:[%s18886_s11 + $0x2d0] sm:$0xff] }
0x30f3   : > { %9615 = vmax.xlane.f32.xlu1 %v9614_v33  ;;  %v9602_v7 = vpop.f32.mrf.mxu0  ;;  %v11673_v33 = vld [vmem:[%s18886_s11 + $0x2c8] sm:$0xff] }
0x30f4   : > { %v9612_v52 = vmul.f32 0.25, %v9602_v7  ;;  %v11672_v7 = vld [vmem:[%s18886_s11 + $0x2c0] sm:$0xff] }
0x30f5   : > { %v13980_v30 = vpop.f32.mrf.mxu0 }
0x30f6   : > { %v9617_v39 = vsel %vm2705_vm5, %v9612_v52, -inf }
0x30f7   : > { %9618 = vmax.xlane.f32.xlu0 %v9617_v39  ;;  %v9607_v34 = vpop.f32.mrf.mxu0 }
0x30f8   : > { %v9613_v31 = vmul.f32 0.25, %v9607_v34 }
0x30f9   : > { %v13983_v2 = vpop.f32.mrf.mxu0 }
0x30fa   : > { %v9620_v13 = vsel %vm2712_vm6, %v9613_v31, -inf }
0x30fb   : > { %9621 = vmax.xlane.f32.xlu0 %v9620_v13 }
0x317c   : > { %v9616_v60 = vpop.xlane.xlu1 %9615 }
0x317d   : > { %v9623_v63 = vsub.f32 %v9611_v4, %v9616_v60  ;;  %v11675_v4 = vld [vmem:[%s18886_s11 + $0x2d8] sm:$0xff] }
0x317f   : > { %v9626_v6 = vmul.f32 1.442695, %v9623_v63 }
0x3180   : > { %v9619_v16 = vpop.xlane.xlu0 %9618 }
0x3181   : > { %14360 = vpow2.f32 %v9626_v6  ;;  %v9624_v37 = vsub.f32 %v9612_v52, %v9619_v16 }
0x3183   : > { %v9628_v56 = vmul.f32 1.442695, %v9624_v37 }
0x3184   : > { %v9622_v36 = vpop.xlane.xlu0 %9621 }
0x3185   : > { %14362 = vpow2.f32 %v9628_v56  ;;  %v9625_v32 = vsub.f32 %v9613_v31, %v9622_v36 }
0x3187   : > { %v9630_v50 = vmul.f32 1.442695, %v9625_v32 }
0x3189   : > { %14364 = vpow2.f32 %v9630_v50 }
0x318e   : > { %v14361_v42 = vpop.eup %14360 }
0x318f   : > { %v9632_v48 = vsel %vm2705_vm5, %v14361_v42, 0.0 }
0x3190   : > { %9633 = vadd.xlane.f32.xlu1 %v9632_v48  ;;  %v9218_v48 = vadd.f32 %v18305_v44, %v18384_v9  ;;  %v11659_v9 = vld [vmem:[%s18938_s28 + $0xb] ss:$0 sm:$0xff] }
0x3192   : > { %v14363_v17 = vpop.eup %14362 }
0x3193   : > { %v9635_v54 = vsel %vm2705_vm5, %v14363_v17, 0.0 }
0x3194   : > { %9636 = vadd.xlane.f32.xlu0 %v9635_v54 }
0x3196   : > { %v14365_v5 = vpop.eup %14364 }
0x3197   : > { %v9638_v46 = vsel %vm2712_vm6, %v14365_v5, 0.0 }
0x3198   : > { %9639 = vadd.xlane.f32.xlu1 %v9638_v46  ;;  %v9223_v46 = vadd.f32 %v18315_v29, %v18386_v58 }
0x31a9   : > { %9939 = vperm.xlu1 %14155, %v11665_v47  }
0x31aa   : > { %9944 = vperm.xlu0 %14154, %v11666_v3  }
0x3219   : > { %v9634_v59 = vpop.xlane.xlu1 %9633 }
0x321a   : > { %14366 = vrcp.f32 %v9634_v59 }
0x321d   : > { %v9637_v27 = vpop.xlane.xlu0 %9636 }
0x321e   : > { %14368 = vrcp.f32 %v9637_v27  ;;  %v9228_v27 = vadd.f32 %v18329_v38, %v18388_v10  ;;  %v11681_v38 = vld [vmem:[%s18887_s12 + $0xb] ss:$0 sm:$0xff] }
0x3221   : > { %v9640_v15 = vpop.xlane.xlu1 %9639 }
0x3222   : > { %14370 = vrcp.f32 %v9640_v15 }
0x3227   : > { %v14367_v1 = vpop.eup %14366 }
0x3228   : > { %v9644_v14 = vmul.f32 %v14367_v1, %v14361_v42 }
0x322a   : > { %13991 = vmatmul.mubr.msk.f32.vlgmr.msra.gmra.mxu0 %vm2705_vm5, %v9644_v14 }
0x322b   : > { %v14369_v61 = vpop.eup %14368  ;;  %14013 = vmatpush3.msra.mxu0 %v11657_v19  ;;  %13993 = vmatprep.mubr.msk.f32.mxu0 %vm14429_vm2, %v14428_v21  ;;  %v9945_v19 = vpop.permute.xlu0 %9944 }
0x322c   : > { %14014 = vmatprep.subr.mxu0 %v14428_v21  ;;  %v9645_v62 = vmul.f32 %v14369_v61, %v14363_v17  ;;  %v9940_v61 = vpop.permute.xlu1 %9939 }
0x322d   : > { %14015 = vmatpush3.msra.mxu0 %v11656_v55 }
0x322e   : > { %14016 = vmatprep.subr.mxu0 %v14428_v21  ;;  %13994 = vmatmul.mubr.msk.f32.gmra.mxu0 %vm2705_vm5, %v9645_v62 }
0x322f   : > { %v14371_v28 = vpop.eup %14370  ;;  %14017 = vmatpush3.msra.mxu0 %v11655_v8  ;;  %13996 = vmatprep.mubr.msk.f32.mxu0 %vm14429_vm2, %v14428_v21 }
0x3230   : > { %14018 = vmatprep.subr.mxu0 %v14428_v21  ;;  %v9646_v0 = vmul.f32 %v14371_v28, %v14365_v5 }
0x3231   : > { %14019 = vmatpush3.msra.mxu0 %v11654_v45 }
0x3232   : > { %14020 = vmatprep.subr.mxu0 %v14428_v21  ;;  %13997 = vmatmul.mubr.msk.f32.gmra.mxu0 %vm2705_vm5, %v9646_v0 }
0x3233   : > { %14021 = vmatpush3.msra.mxu0 %v11653_v51  ;;  %14028 = vmatprep.mubr.msk.f32.mxu0 %vm14429_vm2, %v14428_v21 }
0x3234   : > { %14022 = vmatprep.subr.mxu0 %v14428_v21 }
0x3235   : > { %14023 = vmatpush3.msra.mxu0 %v11652_v20 }
0x3236   : > { %14024 = vmatprep.subr.mxu0 %v14428_v21 }
0x3237   : > { %14025 = vmatpush3.msra.mxu0 %v11651_v40 }
0x3238   : > { %14026 = vmatprep.subr.mxu0 %v14428_v21 }
0x3239   : > { %14027 = vmatpush3.msra.mxu0 %v11650_v25 }
0x323a   : > { %14029 = vmatmul.mubr.msk.f32.vlgmr.msra.gmra.mxu0 %vm2199_vm0, %v17953_v43  ;;  %14046 = vmatprep.subr.mxu0 %v14428_v21 }
0x323b   : > { %14047 = vmatpush3.msra.mxu0 %v11679_v12  ;;  %14031 = vmatprep.mubr.msk.f32.mxu0 %vm14429_vm2, %v14428_v21 }
0x323c   : > { %14048 = vmatprep.subr.mxu0 %v14428_v21 }
0x323d   : > { %14049 = vmatpush3.msra.mxu0 %v11678_v49 }
0x323e   : > { %14032 = vmatmul.mubr.msk.f32.gmra.mxu0 %vm2199_vm0, %v17968_v23  ;;  %14050 = vmatprep.subr.mxu0 %v14428_v21 }
0x323f   : > { %14051 = vmatpush3.msra.mxu0 %v11677_v11  ;;  %14034 = vmatprep.mubr.msk.f32.mxu0 %vm14429_vm2, %v14428_v21 }
0x3240   : > { %14052 = vmatprep.subr.mxu0 %v14428_v21 }
0x3241   : > { %14053 = vmatpush3.msra.mxu0 %v11676_v24 }
0x3242   : > { %14035 = vmatmul.mubr.msk.f32.gmra.mxu0 %vm2199_vm0, %v17987_v41  ;;  %14054 = vmatprep.subr.mxu0 %v14428_v21 }
0x3243   : > { %14055 = vmatpush3.msra.mxu0 %v11675_v4  ;;  %14062 = vmatprep.mubr.msk.f32.mxu0 %vm14429_vm2, %v14428_v21 }
0x3244   : > { %14056 = vmatprep.subr.mxu0 %v14428_v21 }
0x3245   : > { %14057 = vmatpush3.msra.mxu0 %v11674_v26 }
0x3246   : > { %14058 = vmatprep.subr.mxu0 %v14428_v21 }
0x3247   : > { %14059 = vmatpush3.msra.mxu0 %v11673_v33 }
0x3248   : > { %14060 = vmatprep.subr.mxu0 %v14428_v21 }
0x3249   : > { %14061 = vmatpush3.msra.mxu0 %v11672_v7 }
0x324a   : > { %14063 = vmatmul.mubr.msk.f32.vlgmr.msra.gmra.mxu0 %vm2199_vm0, %v17953_v43  ;;  %14099 = vmatprep.subr.mxu0 %v14428_v21 }
0x324b   : > { %14065 = vmatprep.mubr.msk.f32.mxu0 %vm14429_vm2, %v14428_v21 }
0x324e   : > { %14066 = vmatmul.mubr.msk.f32.gmra.mxu0 %vm2199_vm0, %v17968_v23 }
0x324f   : > { %14068 = vmatprep.mubr.msk.f32.mxu0 %vm14429_vm2, %v14428_v21 }
0x3252   : > { %14069 = vmatmul.mubr.msk.f32.gmra.mxu0 %vm2199_vm0, %v17987_v41 }
0x3253   : > { %14103 = vmatprep.mubr.msk.f32.mxu0 %vm14429_vm2, %v14428_v21 }
0x32ea   : > { %v9725_v52 = vpop.f32.mrf.mxu0 }
0x32eb   : > { %14004 = vmatmul.mubr.msk.f32.vlgmr.msra.gmra.mxu1 %vm2612_vm3, %v9725_v52 }
0x32ec   : > { %14038 = vmatpush3.xpose.msk.msra.mxu1 %vm2199_vm0, %v17987_v41  ;;  %v13992_v30 = vpop.f32.mrf.mxu0  ;;  %14006 = vmatprep.mubr.msk.f32.mxu1 %vm14429_vm2, %v14428_v21  ;;  %v11663_v41 = vld [vmem:[%s18935_s26 + $0xb0] sm:$0xff] }
0x32ed   : > { %14039 = vmatprep.subr.msk.mxu1 %vm2199_vm0, %v17968_v23 }
0x32ee   : > { %v9730_v39 = vpop.f32.mrf.mxu0 }
0x32ef   : > { %14007 = vmatmul.mubr.msk.f32.gmra.mxu1 %vm2612_vm3, %v9730_v39 }
0x32f0   : > { %14040 = vmatpush3.xpose.msk.msra.mxu1 %vm2199_vm0, %v17968_v23  ;;  %v13995_v34 = vpop.f32.mrf.mxu0  ;;  %14009 = vmatprep.mubr.msk.f32.mxu1 %vm14429_vm2, %v14428_v21  ;;  %v11664_v23 = vld [vmem:[%s18935_s26 + $0xb8] sm:$0xff] }
0x32f1   : > { %14041 = vmatprep.subr.msk.mxu1 %vm2199_vm0, %v17953_v43 }
0x32f2   : > { %v9735_v31 = vpop.f32.mrf.mxu0 }
0x32f3   : > { %14010 = vmatmul.mubr.msk.f32.gmra.mxu1 %vm2612_vm3, %v9735_v31 }
0x32f4   : > { %14042 = vmatpush3.xpose.msk.msra.mxu1 %vm2199_vm0, %v17953_v43  ;;  %v13998_v2 = vpop.f32.mrf.mxu0  ;;  %14043 = vmatprep.mubr.msk.f32.mxu1 %vm2199_vm0, %v11663_v41 }
0x32f5   : > { %14071 = vmatprep.subr.mxu1 %v14428_v21 }
0x32f7   : > { %14044 = vmatmul.mubr.msk.f32.vlgmr.msra.gmra.mxu1 %vm2199_vm0, %v11664_v23 }
0x32f8   : > { %14075 = vmatprep.mubr.msk.f32.mxu1 %vm14429_vm2, %v14428_v21 }
0x32fa   : > { %v9917_v13 = vpop.f32.mrf.mxu0 }
0x32fb   : > { %v9918_v62 = vadd.f32 %v11659_v9, %v9917_v13 }
0x32fc   : > { %v14030_v60 = vpop.f32.mrf.mxu0 }
0x32fe   : > { %v9922_v63 = vpop.f32.mrf.mxu0 }
0x32ff   : > { %v9923_v45 = vadd.f32 %v11659_v9, %v9922_v63 }
0x3300   : > { %v14033_v6 = vpop.f32.mrf.mxu0 }
0x3302   : > { %v9927_v16 = vpop.f32.mrf.mxu0 }
0x3303   : > { %v9928_v0 = vadd.f32 %v11659_v9, %v9927_v16 }
0x3304   : > { %v14036_v43 = vpop.f32.mrf.mxu0 }
0x330a   : > { %v10111_v37 = vpop.f32.mrf.mxu0 }
0x330b   : > { %v10112_v28 = vadd.f32 %v11681_v38, %v10111_v37 }
0x330c   : > { %v14064_v56 = vpop.f32.mrf.mxu0 }
0x330d   : > { %v11693_v56 = vld [vmem:[%s18888_s13 + $0xb8] sm:$0xff] }
0x330e   : > { %v10116_v36 = vpop.f32.mrf.mxu0  ;;  %14100 = vmatpush3.msra.mxu0 %v11693_v56  ;;  %v11708_v56 = vld [vmem:[%s18892_s17 + $0x128] sm:$0xff] }
0x330f   : > { %v10117_v8 = vadd.f32 %v11681_v38, %v10116_v36  ;;  %14101 = vmatprep.subr.mxu0 %v14428_v21 }
0x3310   : > { %v14067_v32 = vpop.f32.mrf.mxu0 }
0x3312   : > { %v10121_v50 = vpop.f32.mrf.mxu0 }
0x3313   : > { %v10122_v10 = vadd.f32 %v11681_v38, %v10121_v50 }
0x3314   : > { %v14070_v42 = vpop.f32.mrf.mxu0 }
0x33ab   : > { %v9817_v17 = vpop.f32.mrf.mxu1 }
0x33ac   : > { %v18548_v54 = vadd.f32 %v9817_v17, %v9218_v48 }
0x33ad   : > { %v14005_v5 = vpop.f32.mrf.mxu1 }
0x33af   : > { %v9822_v47 = vpop.f32.mrf.mxu1 }
0x33b0   : > { %v18552_v3 = vadd.f32 %v9822_v47, %v9223_v46 }
0x33b1   : > { %v14008_v59 = vpop.f32.mrf.mxu1 }
0x33b2   : > { %v11692_v59 = vld [vmem:[%s18888_s13 + $0xb0] sm:$0xff] }
0x33b3   : > { %v9827_v15 = vpop.f32.mrf.mxu1  ;;  %14102 = vmatpush3.msra.mxu0 %v11692_v59 }
0x33b4   : > { %v18556_v1 = vadd.f32 %v9827_v15, %v9228_v27 }
0x33b5   : > { %v14011_v14 = vpop.f32.mrf.mxu1 }
0x33b7   : > { %v14045_v44 = vpop.f32.mrf.mxu1 }
0x33b8   : > { %v10025_v55 = vadd.f32 %v14045_v44, %v9945_v19 }
0x33b9   : > { %v10019_v29 = vpop.f32.mrf.mxu1 }
0x33ba   : > { %v10020_v58 = vadd.f32 %v10019_v29, %v9940_v61  ;;  %14072 = vmatpush3.msra.mxu1 %v10025_v55  ;;  %v11698_v29 = vld [vmem:[%s18889_s14 + $0x2] ss:$0 sm:$0xff] }
0x33bb   : > { %14073 = vmatprep.subr.mxu1 %v14428_v21 }
0x33bc   : > { %14074 = vmatpush3.msra.mxu1 %v10020_v58 }
0x33bd   : > { %14076 = vmatmul.mubr.msk.f32.vlgmr.msra.gmra.mxu1 %vm2612_vm3, %v9918_v62  ;;  %14084 = vmatprep.subr.mxu1 %v14428_v21 }
0x33be   : > { %14085 = vmatpush3.msk.msra.mxu1 %vm2749_vm4, %v10122_v10  ;;  %14078 = vmatprep.mubr.msk.f32.mxu1 %vm14429_vm2, %v14428_v21 }
0x33bf   : > { %14086 = vmatprep.subr.mxu1 %v14428_v21 }
0x33c0   : > { %14087 = vmatpush3.msra.mxu1 %v10117_v8 }
0x33c1   : > { %14079 = vmatmul.mubr.msk.f32.gmra.mxu1 %vm2612_vm3, %v9923_v45  ;;  %14088 = vmatprep.subr.mxu1 %v14428_v21 }
0x33c2   : > { %14089 = vmatpush3.msra.mxu1 %v10112_v28  ;;  %14081 = vmatprep.mubr.msk.f32.mxu1 %vm14429_vm2, %v14428_v21 }
0x33c5   : > { %14082 = vmatmul.mubr.msk.f32.gmra.mxu1 %vm2612_vm3, %v9928_v0 }
0x33c6   : > { %14090 = vmatprep.mubr.msk.f32.mxu1 %vm14429_vm2, %v14428_v21 }
0x347d   : > { %v10200_v51 = vpop.f32.mrf.mxu1 }
0x347e   : > { %v10214_v20 = vmul.f32 0.25, %v10200_v51 }
0x347f   : > { %v14077_v40 = vpop.f32.mrf.mxu1 }
0x3480   : > { %v10217_v25 = vsel %vm2705_vm5, %v10214_v20, -inf }
0x3481   : > { %10218 = vmax.xlane.f32.xlu1 %v10217_v25  ;;  %v10205_v12 = vpop.f32.mrf.mxu1 }
0x3482   : > { %v10215_v49 = vmul.f32 0.25, %v10205_v12 }
0x3483   : > { %v14080_v11 = vpop.f32.mrf.mxu1 }
0x3484   : > { %v10220_v24 = vsel %vm2705_vm5, %v10215_v49, -inf }
0x3485   : > { %10221 = vmax.xlane.f32.xlu0 %v10220_v24  ;;  %v10210_v4 = vpop.f32.mrf.mxu1 }
0x3486   : > { %v10216_v26 = vmul.f32 0.25, %v10210_v4 }
0x3487   : > { %v14083_v33 = vpop.f32.mrf.mxu1 }
0x3488   : > { %v10223_v7 = vsel %vm2712_vm6, %v10216_v26, -inf }
0x3489   : > { %10224 = vmax.xlane.f32.xlu0 %v10223_v7 }
0x350a   : > { %v10219_v52 = vpop.xlane.xlu1 %10218 }
0x350b   : > { %v10226_v30 = vsub.f32 %v10214_v20, %v10219_v52 }
0x350d   : > { %v10229_v39 = vmul.f32 1.442695, %v10226_v30 }
0x350e   : > { %v10222_v34 = vpop.xlane.xlu0 %10221 }
0x350f   : > { %14372 = vpow2.f32 %v10229_v39  ;;  %v10227_v41 = vsub.f32 %v10215_v49, %v10222_v34 }
0x3511   : > { %v10231_v31 = vmul.f32 1.442695, %v10227_v41 }
0x3512   : > { %v10225_v2 = vpop.xlane.xlu0 %10224 }
0x3513   : > { %14374 = vpow2.f32 %v10231_v31  ;;  %v10228_v23 = vsub.f32 %v10216_v26, %v10225_v2  ;;  %v11718_v31 = vld [vmem:[%s18892_s17 + $0x178] sm:$0xff]  ;;  %v11717_v2 = vld [vmem:[%s18892_s17 + $0x170] sm:$0xff] }
0x3514   : > { %10567 = vmatprep.subr.mxu1 %v11718_v31  ;;  %v11735_v31 = vld [vmem:[%s18894_s19 + $0x230] sm:$0xff] }
0x3515   : > { %v10233_v13 = vmul.f32 1.442695, %v10228_v23  ;;  %v11716_v23 = vld [vmem:[%s18892_s17 + $0x168] sm:$0xff] }
0x3517   : > { %14376 = vpow2.f32 %v10233_v13  ;;  %v11715_v13 = vld [vmem:[%s18892_s17 + $0x160] sm:$0xff] }
0x351c   : > { %v14373_v60 = vpop.eup %14372 }
0x351d   : > { %v10235_v63 = vsel %vm2705_vm5, %v14373_v60, 0.0 }
0x351e   : > { %10236 = vadd.xlane.f32.xlu1 %v10235_v63  ;;  %v11713_v63 = vld [vmem:[%s18892_s17 + $0x150] sm:$0xff] }
0x3520   : > { %v14375_v6 = vpop.eup %14374 }
0x3521   : > { %v10238_v16 = vsel %vm2705_vm5, %v14375_v6, 0.0 }
0x3522   : > { %10239 = vadd.xlane.f32.xlu0 %v10238_v16  ;;  %v11711_v16 = vld [vmem:[%s18892_s17 + $0x140] sm:$0xff] }
0x3524   : > { %v14377_v43 = vpop.eup %14376 }
0x3525   : > { %v10241_v37 = vsel %vm2712_vm6, %v14377_v43, 0.0 }
0x3526   : > { %10242 = vadd.xlane.f32.xlu1 %v10241_v37  ;;  %v11709_v37 = vld [vmem:[%s18892_s17 + $0x130] sm:$0xff] }
0x35a7   : > { %v10237_v36 = vpop.xlane.xlu1 %10236 }
0x35a8   : > { %14378 = vrcp.f32 %v10237_v36  ;;  %v11707_v36 = vld [vmem:[%s18892_s17 + $0x120] sm:$0xff] }
0x35ab   : > { %v10240_v32 = vpop.xlane.xlu0 %10239 }
0x35ac   : > { %14380 = vrcp.f32 %v10240_v32  ;;  %v11706_v32 = vld [vmem:[%s18892_s17 + $0x118] sm:$0xff] }
0x35af   : > { %v10243_v50 = vpop.xlane.xlu1 %10242 }
0x35b0   : > { %14382 = vrcp.f32 %v10243_v50  ;;  %v11705_v50 = vld [vmem:[%s18892_s17 + $0x110] sm:$0xff] }
0x35b5   : > { %v14379_v42 = vpop.eup %14378 }
0x35b6   : > { %v10247_v48 = vmul.f32 %v14379_v42, %v14373_v60  ;;  %v11714_v60 = vld [vmem:[%s18892_s17 + $0x158] sm:$0xff]  ;;  %v11704_v42 = vld [vmem:[%s18892_s17 + $0x108] sm:$0xff] }
0x35b8   : > { %14091 = vmatmul.mubr.msk.f32.vlgmr.msra.gmra.mxu1 %vm2705_vm5, %v10247_v48  ;;  %v11703_v48 = vld [vmem:[%s18892_s17 + $0x100] sm:$0xff] }
0x35b9   : > { %v14381_v17 = vpop.eup %14380  ;;  %14093 = vmatprep.mubr.msk.f32.mxu1 %vm14429_vm2, %v14428_v21  ;;  %10568 = vmatpush1.msra.mxu1 %v11717_v2  ;;  %v11750_v2 = vld [vmem:[%s18894_s19 + $0x2a8] sm:$0xff] }
0x35ba   : > { %v10248_v5 = vmul.f32 %v14381_v17, %v14375_v6  ;;  %10569 = vmatprep.subr.mxu1 %v11716_v23  ;;  %v11712_v6 = vld [vmem:[%s18892_s17 + $0x148] sm:$0xff] }
0x35bb   : > { %10570 = vmatpush1.msra.mxu1 %v11715_v13  ;;  %v11734_v23 = vld [vmem:[%s18894_s19 + $0x228] sm:$0xff]  ;;  %v11749_v13 = vld [vmem:[%s18894_s19 + $0x2a0] sm:$0xff] }
0x35bc   : > { %14094 = vmatmul.mubr.msk.f32.gmra.mxu1 %vm2705_vm5, %v10248_v5  ;;  %10571 = vmatprep.subr.mxu1 %v11714_v60  ;;  %v11733_v60 = vld [vmem:[%s18894_s19 + $0x220] sm:$0xff] }
0x35bd   : > { %v14383_v46 = vpop.eup %14382  ;;  %14096 = vmatprep.mubr.msk.f32.mxu1 %vm14429_vm2, %v14428_v21  ;;  %10572 = vmatpush1.msra.mxu1 %v11713_v63  ;;  %v11748_v63 = vld [vmem:[%s18894_s19 + $0x298] sm:$0xff] }
0x35be   : > { %v10249_v47 = vmul.f32 %v14383_v46, %v14377_v43  ;;  %10573 = vmatprep.subr.mxu1 %v11712_v6  ;;  %v11710_v43 = vld [vmem:[%s18892_s17 + $0x138] sm:$0xff] }
0x35bf   : > { %10574 = vmatpush1.msra.mxu1 %v11711_v16  ;;  %v11732_v6 = vld [vmem:[%s18894_s19 + $0x218] sm:$0xff]  ;;  %v11747_v16 = vld [vmem:[%s18894_s19 + $0x290] sm:$0xff] }
0x35c0   : > { %14097 = vmatmul.mubr.msk.f32.gmra.mxu1 %vm2705_vm5, %v10249_v47  ;;  %10575 = vmatprep.subr.mxu1 %v11710_v43  ;;  %v11731_v43 = vld [vmem:[%s18894_s19 + $0x210] sm:$0xff] }
0x35c1   : > { %10615 = vmatprep.mubr.f32.mxu1 %v14428_v21  ;;  %10576 = vmatpush1.msra.mxu1 %v11709_v37  ;;  %v11746_v37 = vld [vmem:[%s18894_s19 + $0x288] sm:$0xff] }
0x35c2   : > { %10577 = vmatprep.subr.mxu1 %v11708_v56  ;;  %v11730_v56 = vld [vmem:[%s18894_s19 + $0x208] sm:$0xff] }
0x35c3   : > { %10578 = vmatpush1.msra.mxu1 %v11707_v36  ;;  %v11745_v36 = vld [vmem:[%s18894_s19 + $0x280] sm:$0xff] }
0x35c4   : > { %10579 = vmatprep.subr.mxu1 %v11706_v32  ;;  %v11729_v32 = vld [vmem:[%s18894_s19 + $0x200] sm:$0xff] }
0x35c5   : > { %10580 = vmatpush1.msra.mxu1 %v11705_v50  ;;  %v11719_v50 = vld [vmem:[%s18893_s18 + $0x4] sm:$0x3] }
0x35c6   : > { %10581 = vmatprep.subr.mxu1 %v11704_v42  ;;  %v10535_v42 = vrot.slane %v11719_v50, %v16815_v22 }
0x35c7   : > { %10582 = vmatpush1.msra.mxu1 %v11703_v48  ;;  %v10539_v48 = vrot.slane %v11719_v50, %v16820_v53 }
0x35c8   : > { %14112 = vmatprep.subr.mxu1 %v14428_v21 }
0x3678   : > { %v10328_v27 = vpop.f32.mrf.mxu1 }
0x3679   : > { %14104 = vmatmul.mubr.msk.f32.vlgmr.msra.gmra.mxu0 %vm2612_vm3, %v10328_v27 }
0x367a   : > { %v14092_v15 = vpop.f32.mrf.mxu1  ;;  %14106 = vmatprep.mubr.msk.f32.mxu0 %vm14429_vm2, %v14428_v21 }
0x367c   : > { %v10333_v14 = vpop.f32.mrf.mxu1 }
0x367d   : > { %14107 = vmatmul.mubr.msk.f32.gmra.mxu0 %vm2612_vm3, %v10333_v14 }
0x367e   : > { %v14095_v19 = vpop.f32.mrf.mxu1  ;;  %14109 = vmatprep.mubr.msk.f32.mxu0 %vm14429_vm2, %v14428_v21 }
0x3680   : > { %v10338_v44 = vpop.f32.mrf.mxu1 }
0x3681   : > { %14110 = vmatmul.mubr.msk.f32.gmra.mxu0 %vm2612_vm3, %v10338_v44 }
0x3682   : > { %v14098_v9 = vpop.f32.mrf.mxu1 }
0x3683   : > { %v11701_v9 = vld [vmem:[%s18890_s15 + $0x2] ss:$0 sm:$0xff] }
0x3739   : > { %v10420_v55 = vpop.f32.mrf.mxu0 }
0x373a   : > { %v10434_v61 = vadd.f32 %v10420_v55, %v18548_v54 }
0x373b   : > { %v14105_v58 = vpop.f32.mrf.mxu0 }
0x373c   : > { %v10437_v62 = vadd.f32 %v10434_v61, %v17845_v57  ;;  %v11702_v61 = vld [vmem:[%s18891_s16 + $0x2] ss:$0 sm:$0xff] }
0x373d   : > { %v10425_v38 = vpop.f32.mrf.mxu0 }
0x373e   : > { %v18611_v10 = vadd.f32 %v11698_v29, %v10437_v62  ;;  %v10435_v8 = vadd.f32 %v10425_v38, %v18552_v3 }
0x373f   : > { %v14108_v45 = vpop.f32.mrf.mxu0 }
0x3740   : > { %v10438_v28 = vadd.f32 %v10435_v8, %v17850_v35  ;;  %v10455_v0 = vsel %vm2199_vm0, %v18611_v10, 0.0 }
0x3741   : > { %10456 = vadd.xlane.f32.xlu0 %v10455_v0  ;;  %v10430_v54 = vpop.f32.mrf.mxu0 }
0x3742   : > { %v18617_v51 = vadd.f32 %v11698_v29, %v10438_v28  ;;  %v10436_v20 = vadd.f32 %v10430_v54, %v18556_v1 }
0x3743   : > { %v14111_v40 = vpop.f32.mrf.mxu0 }
0x3744   : > { %v10439_v57 = vadd.f32 %v10436_v20, %v17855_v18  ;;  %v10458_v25 = vsel %vm2199_vm0, %v18617_v51, 0.0  ;;  %v11760_v40 = vld [vmem:[%s18894_s19 + $0x2f8] sm:$0xff] }
0x3745   : > { %10459 = vadd.xlane.f32.xlu1 %v10458_v25  ;;  %12860 = vmatprep.subr.mxu0 %v11760_v40  ;;  %v11759_v25 = vld [vmem:[%s18894_s19 + $0x2f0] sm:$0xff] }
0x3746   : > { %v18623_v3 = vadd.f32 %v11698_v29, %v10439_v57  ;;  %v11744_v57 = vld [vmem:[%s18894_s19 + $0x278] sm:$0xff] }
0x3747   : > { %12861 = vmatpush3.msra.mxu0 %v11744_v57 }
0x3748   : > { %v10461_v35 = vsel %vm2206_vm1, %v18623_v3, 0.0  ;;  %12862 = vmatprep.subr.mxu0 %v11759_v25 }
0x3749   : > { %10462 = vadd.xlane.f32.xlu0 %v10461_v35  ;;  %v11743_v35 = vld [vmem:[%s18894_s19 + $0x270] sm:$0xff] }
0x374a   : > { %12863 = vmatpush3.msra.mxu0 %v11743_v35 }
0x37ca   : > { %v10457_v12 = vpop.xlane.xlu0 %10456 }
0x37cb   : > { %v10464_v49 = vmul.f32 0.015625, %v10457_v12  ;;  %v11758_v12 = vld [vmem:[%s18894_s19 + $0x2e8] sm:$0xff] }
0x37cc   : > { %12864 = vmatprep.subr.mxu0 %v11758_v12 }
0x37cd   : > { %v18628_v11 = vsub.f32 %v18611_v10, %v10464_v49  ;;  %v11742_v49 = vld [vmem:[%s18894_s19 + $0x268] sm:$0xff] }
0x37ce   : > { %v10460_v24 = vpop.xlane.xlu1 %10459  ;;  %12865 = vmatpush3.msra.mxu0 %v11742_v49 }
0x37cf   : > { %v10465_v1 = vmul.f32 0.015625, %v10460_v24  ;;  %v10470_v18 = vmul.f32 %v18628_v11, %v18628_v11  ;;  %v11741_v24 = vld [vmem:[%s18894_s19 + $0x260] sm:$0xff] }
0x37d1   : > { %v18633_v4 = vsub.f32 %v18617_v51, %v10465_v1  ;;  %v10473_v26 = vsel %vm2199_vm0, %v10470_v18, 0.0  ;;  %v11756_v1 = vld [vmem:[%s18894_s19 + $0x2d8] sm:$0xff] }
0x37d2   : > { %10474 = vadd.xlane.f32.xlu1 %v10473_v26  ;;  %v10463_v33 = vpop.xlane.xlu0 %10462  ;;  %v11740_v18 = vld [vmem:[%s18894_s19 + $0x258] sm:$0xff]  ;;  %v11739_v26 = vld [vmem:[%s18894_s19 + $0x250] sm:$0xff] }
0x37d3   : > { %v10466_v7 = vmul.f32 0.015625, %v10463_v33  ;;  %v10471_v52 = vmul.f32 %v18633_v4, %v18633_v4  ;;  %v11754_v33 = vld [vmem:[%s18894_s19 + $0x2c8] sm:$0xff] }
0x37d5   : > { %v18639_v30 = vsub.f32 %v18623_v3, %v10466_v7  ;;  %v10476_v39 = vsel %vm2199_vm0, %v10471_v52, 0.0  ;;  %v11738_v7 = vld [vmem:[%s18894_s19 + $0x248] sm:$0xff]  ;;  %v11753_v52 = vld [vmem:[%s18894_s19 + $0x2c0] sm:$0xff] }
0x37d6   : > { %10477 = vadd.xlane.f32.xlu0 %v10476_v39  ;;  %v11752_v39 = vld [vmem:[%s18894_s19 + $0x2b8] sm:$0xff] }
0x37d7   : > { %v10472_v34 = vmul.f32 %v18639_v30, %v18639_v30 }
0x37d9   : > { %v10479_v41 = vsel %vm2206_vm1, %v10472_v34, 0.0  ;;  %v11736_v34 = vld [vmem:[%s18894_s19 + $0x238] sm:$0xff] }
0x37da   : > { %10480 = vadd.xlane.f32.xlu1 %v10479_v41  ;;  %v11751_v41 = vld [vmem:[%s18894_s19 + $0x2b0] sm:$0xff] }
0x385b   : > { %v10475_v17 = vpop.xlane.xlu1 %10474 }
0x385c   : > { %v10482_v5 = vmul.f32 0.015625, %v10475_v17 }
0x385e   : > { %v10485_v46 = vadd.f32 1e-05, %v10482_v5 }
0x385f   : > { %v10478_v47 = vpop.xlane.xlu0 %10477 }
0x3860   : > { %14384 = vrsqrt.f32 %v10485_v46  ;;  %v10483_v59 = vmul.f32 0.015625, %v10478_v47 }
0x3862   : > { %v10486_v27 = vadd.f32 1e-05, %v10483_v59 }
0x3863   : > { %v10481_v15 = vpop.xlane.xlu1 %10480 }
0x3864   : > { %14386 = vrsqrt.f32 %v10486_v27  ;;  %v10484_v14 = vmul.f32 0.015625, %v10481_v15 }
0x3866   : > { %v10487_v19 = vadd.f32 1e-05, %v10484_v14 }
0x3868   : > { %14388 = vrsqrt.f32 %v10487_v19 }
0x386d   : > { %v14385_v44 = vpop.eup %14384 }
0x386e   : > { %v10491_v55 = vmul.f32 %v14385_v44, %v18628_v11  ;;  %v11757_v11 = vld [vmem:[%s18894_s19 + $0x2e0] sm:$0xff] }
0x386f   : > { %12866 = vmatprep.subr.mxu0 %v11757_v11 }
0x3870   : > { %v10500_v29 = vmul.f32 %v11701_v9, %v10491_v55  ;;  %12867 = vmatpush3.msra.mxu0 %v11741_v24 }
0x3871   : > { %v14387_v58 = vpop.eup %14386  ;;  %12868 = vmatprep.subr.mxu0 %v11756_v1 }
0x3872   : > { %v10509_v62 = vadd.f32 %v11702_v61, %v10500_v29  ;;  %v10492_v38 = vmul.f32 %v14387_v58, %v18633_v4  ;;  %12869 = vmatpush3.msra.mxu0 %v11740_v18  ;;  %v11755_v4 = vld [vmem:[%s18894_s19 + $0x2d0] sm:$0xff] }
0x3873   : > { %12870 = vmatprep.subr.mxu0 %v11755_v4 }
0x3874   : > { %11720 = vmatmul.mubr.msk.f32.vlgmr.msra.gmra.mxu1 %vm2199_vm0, %v10509_v62  ;;  %v10501_v8 = vmul.f32 %v11701_v9, %v10492_v38  ;;  %12871 = vmatpush3.msra.mxu0 %v11739_v26 }
0x3875   : > { %v14389_v45 = vpop.eup %14388  ;;  %10621 = vmatprep.mubr.f32.mxu1 %v14428_v21  ;;  %12872 = vmatprep.subr.mxu0 %v11754_v33 }
0x3876   : > { %v10493_v28 = vmul.f32 %v14389_v45, %v18639_v30  ;;  %v10510_v0 = vadd.f32 %v11702_v61, %v10501_v8  ;;  %12873 = vmatpush3.msra.mxu0 %v11738_v7  ;;  %v11737_v30 = vld [vmem:[%s18894_s19 + $0x240] sm:$0xff] }
0x3877   : > { %12874 = vmatprep.subr.mxu0 %v11753_v52 }
0x3878   : > { %11721 = vmatmul.mubr.msk.f32.gmra.mxu1 %vm2199_vm0, %v10510_v0  ;;  %v10502_v54 = vmul.f32 %v11701_v9, %v10493_v28  ;;  %12875 = vmatpush3.msra.mxu0 %v11737_v30 }
0x3879   : > { %10627 = vmatprep.mubr.f32.mxu1 %v14428_v21  ;;  %12876 = vmatprep.subr.mxu0 %v11752_v39 }
0x387a   : > { %v10511_v20 = vadd.f32 %v11702_v61, %v10502_v54  ;;  %12877 = vmatpush3.msra.mxu0 %v11736_v34 }
0x387b   : > { %12878 = vmatprep.subr.mxu0 %v11751_v41 }
0x387c   : > { %11722 = vmatmul.mubr.msk.f32.gmra.mxu1 %vm2199_vm0, %v10511_v20  ;;  %12879 = vmatpush3.msra.mxu0 %v11735_v31 }
0x387d   : > { %14128 = vmatprep.mubr.msk.f32.mxu1 %vm14429_vm2, %v14428_v21  ;;  %12880 = vmatprep.subr.mxu0 %v11750_v2 }
0x387e   : > { %12881 = vmatpush3.msra.mxu0 %v11734_v23 }
0x387f   : > { %12882 = vmatprep.subr.mxu0 %v11749_v13 }
0x3880   : > { %12883 = vmatpush3.msra.mxu0 %v11733_v60 }
0x3881   : > { %12884 = vmatprep.subr.mxu0 %v11748_v63 }
0x3882   : > { %12885 = vmatpush3.msra.mxu0 %v11732_v6 }
0x3883   : > { %12886 = vmatprep.subr.mxu0 %v11747_v16 }
0x3884   : > { %12887 = vmatpush3.msra.mxu0 %v11731_v43  ;;  %v11762_v43 = vld [vmem:[%s18895_s20 + $0x2] ss:$0 sm:$0xff] }
0x3885   : > { %12888 = vmatprep.subr.mxu0 %v11746_v37 }
0x3886   : > { %12889 = vmatpush3.msra.mxu0 %v11730_v56 }
0x3887   : > { %12890 = vmatprep.subr.mxu0 %v11745_v36 }
0x3888   : > { %12891 = vmatpush3.msra.mxu0 %v11729_v32 }
0x3934   : > { %v10617_v17 = vpop.f32.mrf.mxu1 }
0x3935   : > { %v10618_v5 = vadd.f32 %v10617_v17, %v10535_v42 }
0x3936   : > { %v10619_v46 = vpop.f32.mrf.mxu1 }
0x3937   : > { %v11723_v47 = vmul.f32 -1.702, %v10618_v5  ;;  %v10620_v59 = vadd.f32 %v10619_v46, %v10539_v48 }
0x3938   : > { %v10623_v27 = vpop.f32.mrf.mxu1 }
0x3939   : > { %v10646_v15 = vmul.f32 1.442695, %v11723_v47  ;;  %v11724_v14 = vmul.f32 -1.702, %v10620_v59  ;;  %v10624_v19 = vadd.f32 %v10623_v27, %v10535_v42 }
0x393a   : > { %v10625_v44 = vpop.f32.mrf.mxu1 }
0x393b   : > { %14390 = vpow2.f32 %v10646_v15  ;;  %v10648_v9 = vmul.f32 1.442695, %v11724_v14  ;;  %v11725_v55 = vmul.f32 -1.702, %v10624_v19  ;;  %v10626_v61 = vadd.f32 %v10625_v44, %v10539_v48 }
0x393c   : > { %v10629_v29 = vpop.f32.mrf.mxu1 }
0x393d   : > { %14392 = vpow2.f32 %v10648_v9  ;;  %v10650_v58 = vmul.f32 1.442695, %v11725_v55  ;;  %v11726_v22 = vmul.f32 -1.702, %v10626_v61  ;;  %v10630_v62 = vadd.f32 %v10629_v29, %v10535_v42 }
0x393e   : > { %v10631_v53 = vpop.f32.mrf.mxu1 }
0x393f   : > { %14394 = vpow2.f32 %v10650_v58  ;;  %v10652_v38 = vmul.f32 1.442695, %v11726_v22  ;;  %v11727_v8 = vmul.f32 -1.702, %v10630_v62  ;;  %v10632_v45 = vadd.f32 %v10631_v53, %v10539_v48 }
0x3941   : > { %14396 = vpow2.f32 %v10652_v38  ;;  %v10654_v28 = vmul.f32 1.442695, %v11727_v8  ;;  %v11728_v0 = vmul.f32 -1.702, %v10632_v45  ;;  %v10875_v8 = vld [vmem:[%s18898_s23 + $0x38] sm:$0xff] }
0x3942   : > { %14113 = vmatpush3.msra.mxu1 %v10875_v8 }
0x3943   : > { %14398 = vpow2.f32 %v10654_v28  ;;  %v10656_v54 = vmul.f32 1.442695, %v11728_v0  ;;  %14114 = vmatprep.subr.mxu1 %v14428_v21  ;;  %v10873_v28 = vld [vmem:[%s18898_s23 + $0x28] sm:$0xff]  ;;  %v10872_v0 = vld [vmem:[%s18898_s23 + $0x20] sm:$0xff] }
0x3945   : > { %14400 = vpow2.f32 %v10656_v54  ;;  %v10871_v54 = vld [vmem:[%s18898_s23 + $0x18] sm:$0xff] }
0x3948   : > { %v14391_v20 = vpop.eup %14390 }
0x3949   : > { %v10658_v40 = vadd.f32 1.0, %v14391_v20  ;;  %v10870_v20 = vld [vmem:[%s18898_s23 + $0x10] sm:$0xff] }
0x394a   : > { %v14393_v57 = vpop.eup %14392 }
0x394b   : > { %v10659_v25 = vadd.f32 1.0, %v14393_v57  ;;  %14402 = vrcp.f32 %v10658_v40  ;;  %v10869_v40 = vld [vmem:[%s18898_s23 + $0x8] sm:$0xff]  ;;  %v10868_v57 = vld [vmem:[%s18898_s23] sm:$0xff] }
0x394c   : > { %v14395_v35 = vpop.eup %14394 }
0x394d   : > { %14404 = vrcp.f32 %v10659_v25  ;;  %v10660_v12 = vadd.f32 1.0, %v14395_v35 }
0x394e   : > { %v14397_v49 = vpop.eup %14396 }
0x394f   : > { %v10661_v11 = vadd.f32 1.0, %v14397_v49  ;;  %14406 = vrcp.f32 %v10660_v12 }
0x3950   : > { %v14399_v24 = vpop.eup %14398 }
0x3951   : > { %14408 = vrcp.f32 %v10661_v11  ;;  %v10662_v1 = vadd.f32 1.0, %v14399_v24 }
0x3952   : > { %v14401_v18 = vpop.eup %14400 }
0x3953   : > { %v10663_v4 = vadd.f32 1.0, %v14401_v18  ;;  %14410 = vrcp.f32 %v10662_v1 }
0x3955   : > { %14412 = vrcp.f32 %v10663_v4 }
0x3958   : > { %v14403_v26 = vpop.eup %14402 }
0x3959   : > { %v10676_v52 = vmul.f32 %v14403_v26, %v10618_v5 }
0x395a   : > { %v14405_v33 = vpop.eup %14404 }
0x395b   : > { %v10677_v7 = vmul.f32 %v14405_v33, %v10620_v59  ;;  %v11763_v33 = vld [vmem:[%s18896_s21] ss:$0 sm:$0xff] }
0x395c   : > { %v14407_v30 = vpop.eup %14406 }
0x395d   : > { %10779 = vmatprep.mubr.f32.mxu0 %v10677_v7  ;;  %v10678_v41 = vmul.f32 %v14407_v30, %v10624_v19 }
0x395e   : > { %v14409_v39 = vpop.eup %14408  ;;  %10780 = vmatmul.mubr.f32.vlgmr.msra.gmra.mxu0 %v10676_v52  ;;  %v11764_v52 = vld [vmem:[%s18897_s22] ss:$0 sm:$0xff] }
0x395f   : > { %v10679_v34 = vmul.f32 %v14409_v39, %v10626_v61 }
0x3960   : > { %v14411_v31 = vpop.eup %14410 }
0x3961   : > { %10784 = vmatprep.mubr.f32.mxu0 %v10679_v34  ;;  %v10680_v13 = vmul.f32 %v14411_v31, %v10630_v62 }
0x3962   : > { %v14413_v2 = vpop.eup %14412  ;;  %10785 = vmatmul.mubr.f32.gmra.mxu0 %v10678_v41 }
0x3963   : > { %v10681_v23 = vmul.f32 %v14413_v2, %v10632_v45  ;;  %v10874_v45 = vld [vmem:[%s18898_s23 + $0x30] sm:$0xff] }
0x3964   : > { %14115 = vmatpush3.msra.mxu1 %v10874_v45 }
0x3965   : > { %10789 = vmatprep.mubr.f32.mxu0 %v10681_v23  ;;  %14116 = vmatprep.subr.mxu1 %v14428_v21 }
0x3966   : > { %10790 = vmatmul.mubr.f32.gmra.mxu0 %v10680_v13  ;;  %14117 = vmatpush3.msra.mxu1 %v10873_v28 }
0x3967   : > { %14118 = vmatprep.subr.mxu1 %v14428_v21 }
0x3968   : > { %14119 = vmatpush3.msra.mxu1 %v10872_v0 }
0x3969   : > { %14120 = vmatprep.subr.mxu1 %v14428_v21 }
0x396a   : > { %14121 = vmatpush3.msra.mxu1 %v10871_v54 }
0x396b   : > { %14122 = vmatprep.subr.mxu1 %v14428_v21 }
0x396c   : > { %14123 = vmatpush3.msra.mxu1 %v10870_v20 }
0x396d   : > { %14124 = vmatprep.subr.mxu1 %v14428_v21 }
0x396e   : > { %14125 = vmatpush3.msra.mxu1 %v10869_v40 }
0x396f   : > { %14126 = vmatprep.subr.mxu1 %v14428_v21 }
0x3970   : > { %14127 = vmatpush3.msra.mxu1 %v10868_v57 }
0x3a1e   : > { %v12892_v60 = vpop.f32.mrf.mxu0 }
0x3a20   : > { %v12893_v63 = vpop.f32.mrf.mxu0 }
0x3a21   : > { %v12894_v6 = vadd.f32 %v12893_v63, %v12892_v60 }
0x3a22   : > { %v12895_v16 = vpop.f32.mrf.mxu0 }
0x3a23   : > { %v10795_v37 = vadd.f32 %v12894_v6, %v18611_v10 }
0x3a24   : > { %v12896_v56 = vpop.f32.mrf.mxu0 }
0x3a25   : > { %v12897_v36 = vadd.f32 %v12896_v56, %v12895_v16  ;;  %v10806_v32 = vadd.f32 %v11762_v43, %v10795_v37 }
0x3a26   : > { %v12898_v50 = vpop.f32.mrf.mxu0 }
0x3a27   : > { %v10796_v42 = vadd.f32 %v12897_v36, %v18617_v51  ;;  %v10811_v48 = vsel %vm2199_vm0, %v10806_v32, 0.0 }
0x3a28   : > { %v12899_v17 = vpop.f32.mrf.mxu0  ;;  %10812 = vadd.xlane.f32.xlu0 %v10811_v48 }
0x3a29   : > { %v12900_v5 = vadd.f32 %v12899_v17, %v12898_v50  ;;  %v10807_v46 = vadd.f32 %v11762_v43, %v10796_v42 }
0x3a2b   : > { %v10797_v47 = vadd.f32 %v12900_v5, %v18623_v3  ;;  %v10814_v59 = vsel %vm2199_vm0, %v10807_v46, 0.0 }
0x3a2c   : > { %10815 = vadd.xlane.f32.xlu1 %v10814_v59 }
0x3a2d   : > { %v10808_v27 = vadd.f32 %v11762_v43, %v10797_v47 }
0x3a2f   : > { %v10817_v10 = vsel %vm2206_vm1, %v10808_v27, 0.0 }
0x3a30   : > { %10818 = vadd.xlane.f32.xlu0 %v10817_v10 }
0x3ab1   : > { %v10813_v15 = vpop.xlane.xlu0 %10812 }
0x3ab2   : > { %v10820_v14 = vmul.f32 0.015625, %v10813_v15 }
0x3ab4   : > { %v10823_v19 = vsub.f32 %v10806_v32, %v10820_v14 }
0x3ab5   : > { %v10816_v44 = vpop.xlane.xlu1 %10815 }
0x3ab6   : > { %v10821_v51 = vmul.f32 0.015625, %v10816_v44  ;;  %v10826_v9 = vmul.f32 %v10823_v19, %v10823_v19 }
0x3ab8   : > { %v10824_v55 = vsub.f32 %v10807_v46, %v10821_v51  ;;  %v10829_v61 = vsel %vm2199_vm0, %v10826_v9, 0.0 }
0x3ab9   : > { %10830 = vadd.xlane.f32.xlu1 %v10829_v61  ;;  %v10819_v29 = vpop.xlane.xlu0 %10818 }
0x3aba   : > { %v10822_v58 = vmul.f32 0.015625, %v10819_v29  ;;  %v10827_v3 = vmul.f32 %v10824_v55, %v10824_v55 }
0x3abc   : > { %v10825_v22 = vsub.f32 %v10808_v27, %v10822_v58  ;;  %v10832_v62 = vsel %vm2199_vm0, %v10827_v3, 0.0 }
0x3abd   : > { %10833 = vadd.xlane.f32.xlu0 %v10832_v62 }
0x3abe   : > { %v10828_v53 = vmul.f32 %v10825_v22, %v10825_v22 }
0x3ac0   : > { %v10835_v38 = vsel %vm2206_vm1, %v10828_v53, 0.0 }
0x3ac1   : > { %10836 = vadd.xlane.f32.xlu1 %v10835_v38 }
0x3b42   : > { %v10831_v25 = vpop.xlane.xlu1 %10830 }
0x3b43   : > { %v10838_v35 = vmul.f32 0.015625, %v10831_v25 }
0x3b45   : > { %v10841_v12 = vadd.f32 1e-05, %v10838_v35 }
0x3b46   : > { %v10834_v49 = vpop.xlane.xlu0 %10833 }
0x3b47   : > { %14414 = vrsqrt.f32 %v10841_v12  ;;  %v10839_v11 = vmul.f32 0.015625, %v10834_v49 }
0x3b49   : > { %v10842_v24 = vadd.f32 1e-05, %v10839_v11 }
0x3b4a   : > { %v10837_v1 = vpop.xlane.xlu1 %10836 }
0x3b4b   : > { %14416 = vrsqrt.f32 %v10842_v24  ;;  %v10840_v18 = vmul.f32 0.015625, %v10837_v1 }
0x3b4d   : > { %v10843_v4 = vadd.f32 1e-05, %v10840_v18 }
0x3b4f   : > { %14418 = vrsqrt.f32 %v10843_v4 }
0x3b54   : > { %v14415_v26 = vpop.eup %14414 }
0x3b55   : > { %v10847_v7 = vmul.f32 %v14415_v26, %v10823_v19 }
0x3b57   : > { %v10856_v30 = vmul.f32 %v11763_v33, %v10847_v7 }
0x3b58   : > { %v14417_v39 = vpop.eup %14416 }
0x3b59   : > { %v10865_v34 = vadd.f32 %v11764_v52, %v10856_v30  ;;  %v10848_v41 = vmul.f32 %v14417_v39, %v10824_v55 }
0x3b5b   : > { %14129 = vmatmul.mubr.msk.f32.vlgmr.msra.gmra.mxu1 %vm2199_vm0, %v10865_v34  ;;  %v10857_v31 = vmul.f32 %v11763_v33, %v10848_v41 }
0x3b5c   : > { %v14419_v2 = vpop.eup %14418  ;;  %14131 = vmatprep.mubr.msk.f32.mxu1 %vm14429_vm2, %v14428_v21 }
0x3b5d   : > { %v10849_v23 = vmul.f32 %v14419_v2, %v10825_v22  ;;  %v10866_v13 = vadd.f32 %v11764_v52, %v10857_v31 }
0x3b5f   : > { %14132 = vmatmul.mubr.msk.f32.gmra.mxu1 %vm2199_vm0, %v10866_v13  ;;  %v10858_v60 = vmul.f32 %v11763_v33, %v10849_v23 }
0x3b60   : > { %14134 = vmatprep.mubr.msk.f32.mxu1 %vm14429_vm2, %v14428_v21 }
0x3b61   : > { %v10867_v63 = vadd.f32 %v11764_v52, %v10858_v60 }
0x3b63   : > { %14135 = vmatmul.mubr.msk.f32.gmra.mxu1 %vm2199_vm0, %v10867_v63 }
0x3c1b   : > { %v10951_v6 = vpop.f32.mrf.mxu1 }
0x3c1c   : > { %10966 = vst.msk [vmem:[%s772_s5] sm:$0xff] %vm10965_vm7, %v10951_v6 }
0x3c1d   : > { %v14130_v16 = vpop.f32.mrf.mxu1 }
0x3c1f   : > { %v10956_v43 = vpop.f32.mrf.mxu1 }
0x3c20   : > { %10967 = vst.msk [vmem:[%s772_s5 + $0x8] sm:$0xff] %vm10965_vm7, %v10956_v43 }
0x3c21   : > { %v14133_v37 = vpop.f32.mrf.mxu1 }
0x3c23   : > { %v10961_v56 = vpop.f32.mrf.mxu1 }
0x3c24   : > { %10969 = vst.msk [vmem:[%s772_s5 + $0x10] sm:$0x1] %vm10968_vm8, %v10961_v56 }
0x3c25   : > { %v14136_v36 = vpop.f32.mrf.mxu1 }
0x3c26 PF: > { %s18941_s6 = sld [smem:[#allocation2_spill]] }
0x3c2c   : > { %s36_s29 = sadd.s32 1, %s18941_s6  }
0x3c2d   : > { %p33_p4 = scmp.ge.s32.totalorder %s36_s29, 4  }
0x3c2f   :  { %35 = sbr.rel (!%p33_p4) target bundleno = 12 (0xc), region = 253 }

</bundles_post_ra>
